<compile_context>
chip_gen: v5e
topology: v5e:2x2
jax: 0.10.0
libtpu: 0.0.40
codegen_flags: <defaults>
</compile_context>

<pallas_src>
import jax
import jax.numpy as jnp
from jax import lax
from jax.experimental import pallas as pl
from jax.experimental.pallas import tpu as pltpu

TM = 512          # rows (voxels) per grid step for the flat (M, C) kernels
BN_EPS = 1e-3     # nn.BatchNorm3d(eps=0.001)

_VMEM_LIMIT_CACHE = None


def _vmem_limit_bytes():
    """Generation-aware scoped-VMEM limit: ~60% of physical VMEM, capped.
    ~76 MiB on v5e/v6e (128 MiB physical), ~38 MiB on v7x (64 MiB physical)."""
    global _VMEM_LIMIT_CACHE
    if _VMEM_LIMIT_CACHE is None:
        limit = 32 * 1024 * 1024
        try:
            cap = int(getattr(pltpu.get_tpu_info(), "vmem_capacity_bytes", 0))
            if cap > 0:
                limit = min(int(cap * 0.6), 96 * 1024 * 1024)
        except Exception:
            pass
        _VMEM_LIMIT_CACHE = limit
    return _VMEM_LIMIT_CACHE


def _cparams(dims):
    return pltpu.CompilerParams(dimension_semantics=dims,
                                vmem_limit_bytes=_vmem_limit_bytes())


# ---------------------------------------------------------------------------
# Pallas kernels
# ---------------------------------------------------------------------------
def _mm1_kernel(x_ref, w_ref, y_ref, s_ref, sq_ref):
    """Fused 1x1x1 convs: x @ [w_b1a|w_b2a|w_b0] on the MXU + per-block channel
    sums / sum-of-squares for train-mode BatchNorm."""
    y = jnp.dot(x_ref[...], w_ref[...], preferred_element_type=jnp.float32)
    y_ref[...] = y.astype(y_ref.dtype)
    s_ref[0] = jnp.sum(y, axis=0, keepdims=True)
    sq_ref[0] = jnp.sum(y * y, axis=0, keepdims=True)


def _bn_relu_split_kernel(y_ref, scale_ref, shift_ref, a1_ref, a2_ref):
    """BN affine + ReLU of the [b1a|b2a] columns only (they feed the 3x3x3 convs);
    the b0 columns are consumed later directly by the assemble kernel."""
    c1 = a1_ref.shape[-1]
    c3 = a2_ref.shape[-1]
    y = y_ref[...][:, :c1 + c3].astype(jnp.float32)
    a = jnp.maximum(y * scale_ref[...] + shift_ref[...], 0.0)
    a1_ref[...] = a[:, :c1].astype(a1_ref.dtype)
    a2_ref[...] = a[:, c1:].astype(a2_ref.dtype)


def _pool_mm_kernel(xp_ref, w3_ref, y3_ref, s3_ref, sq3_ref, pacc_ref):
    """Fused 3x3x3 max-pool (zero SAME pad) + b3b 1x1x1 matmul + BN partial sums.
    Grid = (N, T, 3): one padded T-plane per step; the dt axis ("arbitrary")
    accumulates the temporal max into a VMEM scratch, and the matmul runs once
    the 3-plane window is complete — pooled activations never touch HBM."""
    dt = pl.program_id(2)
    plane = xp_ref[0, 0]                               # (H+2, W+2, Cin) bf16
    hp2, wp2, cin = plane.shape
    h, w = hp2 - 2, wp2 - 2
    mh = jnp.maximum(jnp.maximum(plane[0:h], plane[1:h + 1]), plane[2:h + 2])
    mw = jnp.maximum(jnp.maximum(mh[:, 0:w], mh[:, 1:w + 1]), mh[:, 2:w + 2])

    @pl.when(dt == 0)
    def _():
        pacc_ref[...] = mw

    @pl.when(dt > 0)
    def _():
        pacc_ref[...] = jnp.maximum(pacc_ref[...], mw)

    @pl.when(dt == 2)
    def _():
        pooled = pacc_ref[...].reshape(h * w, cin)
        z = jnp.dot(pooled, w3_ref[...], preferred_element_type=jnp.float32)
        y3_ref[0, 0] = z.astype(y3_ref.dtype)
        s3_ref[0, 0] = jnp.sum(z, axis=0, keepdims=True)
        sq3_ref[0, 0] = jnp.sum(z * z, axis=0, keepdims=True)


def _conv3x3_kernel(x_ref, w_ref, y_ref, s_ref, sq_ref, acc_ref):
    """3x3x3 SAME conv, halo-tiled per padded T-plane (grid = (N, T, 3)).
    The W taps are folded into the contraction: per (dt, dh) a (H*W, 3*Cin)
    operand hits the MXU (9 matmuls per output plane, K = 3*Cin), accumulated
    into a VMEM f32 scratch across the dt grid axis."""
    dt = pl.program_id(2)

    @pl.when(dt == 0)
    def _():
        acc_ref[...] = jnp.zeros_like(acc_ref)

    plane = x_ref[0, 0]                                # (H+2, W+2, Cin) bf16
    hp2, wp2, cin = plane.shape
    h, w = hp2 - 2, wp2 - 2
    acc = acc_ref[...]
    for dh in range(3):
        rows = plane[dh:dh + h]                        # (H, W+2, Cin)
        taps = jnp.concatenate(
            [rows[:, 0:w], rows[:, 1:1 + w], rows[:, 2:2 + w]],
            axis=-1).reshape(h * w, 3 * cin)
        acc = acc + jnp.dot(taps, w_ref[dt * 3 + dh],
                            preferred_element_type=jnp.float32)
    acc_ref[...] = acc

    @pl.when(dt == 2)
    def _():
        y_ref[0, 0] = acc.astype(y_ref.dtype)
        s_ref[0, 0] = jnp.sum(acc, axis=0, keepdims=True)
        sq_ref[0, 0] = jnp.sum(acc * acc, axis=0, keepdims=True)


def _assemble_kernel(y013_ref, y1_ref, y2_ref, y3_ref, scale_ref, shift_ref, o_ref):
    """Final fused BN+ReLU + branch concat: each branch's affine is applied and
    written straight into its channel slice of the (TM, Ctot) bf16 output block
    (no in-kernel concatenates). b0's pre-BN activations ride at the tail of y013."""
    c013 = y013_ref.shape[-1]
    c2 = y1_ref.shape[-1]
    c4 = y2_ref.shape[-1]
    c5 = y3_ref.shape[-1]
    ctot = o_ref.shape[-1]
    c0 = ctot - (c2 + c4 + c5)
    sc = scale_ref[...]
    sh = shift_ref[...]

    def bn_relu(yv, lo, hi):
        return jnp.maximum(yv.astype(jnp.float32) * sc[:, lo:hi] + sh[:, lo:hi],
                           0.0).astype(o_ref.dtype)

    o_ref[:, 0:c0] = bn_relu(y013_ref[...][:, c013 - c0:], 0, c0)                  # b0
    o_ref[:, c0:c0 + c2] = bn_relu(y1_ref[...], c0, c0 + c2)                       # b1
    o_ref[:, c0 + c2:c0 + c2 + c4] = bn_relu(y2_ref[...], c0 + c2, c0 + c2 + c4)   # b2
    o_ref[:, c0 + c2 + c4:] = bn_relu(y3_ref[...], c0 + c2 + c4, ctot)             # b3


# ---------------------------------------------------------------------------
# Pallas wrappers
# ---------------------------------------------------------------------------
def _round_up(n, m):
    return ((n + m - 1) // m) * m


def _pad_rows(x, mp):
    m = x.shape[0]
    return x if mp == m else jnp.pad(x, ((0, mp - m), (0, 0)))


def _row_tile(m):
    return TM if m >= TM else _round_up(m, 8)


def _mm1(xf, w013, tm):
    mp, cin = xf.shape
    c013 = w013.shape[1]
    g = mp // tm
    return pl.pallas_call(
        _mm1_kernel,
        out_shape=(jax.ShapeDtypeStruct((mp, c013), jnp.bfloat16),
                   jax.ShapeDtypeStruct((g, 1, c013), jnp.float32),
                   jax.ShapeDtypeStruct((g, 1, c013), jnp.float32)),
        grid_spec=pltpu.PrefetchScalarGridSpec(
            num_scalar_prefetch=0, grid=(g,),
            in_specs=[pl.BlockSpec((tm, cin), lambda i: (i, 0)),
                      pl.BlockSpec((cin, c013), lambda i: (0, 0))],
            out_specs=[pl.BlockSpec((tm, c013), lambda i: (i, 0)),
                       pl.BlockSpec((1, 1, c013), lambda i: (i, 0, 0)),
                       pl.BlockSpec((1, 1, c013), lambda i: (i, 0, 0))]),
        compiler_params=_cparams(("parallel",)),
    )(xf, w013)


def _bn_relu_split(y013, scale12, shift12, c1, c3, tm):
    mp, c013 = y013.shape
    g = mp // tm
    return pl.pallas_call(
        _bn_relu_split_kernel,
        out_shape=(jax.ShapeDtypeStruct((mp, c1), jnp.bfloat16),
                   jax.ShapeDtypeStruct((mp, c3), jnp.bfloat16)),
        grid_spec=pltpu.PrefetchScalarGridSpec(
            num_scalar_prefetch=0, grid=(g,),
            in_specs=[pl.BlockSpec((tm, c013), lambda i: (i, 0)),
                      pl.BlockSpec((1, c1 + c3), lambda i: (0, 0)),
                      pl.BlockSpec((1, c1 + c3), lambda i: (0, 0))],
            out_specs=[pl.BlockSpec((tm, c1), lambda i: (i, 0)),
                       pl.BlockSpec((tm, c3), lambda i: (i, 0))]),
        compiler_params=_cparams(("parallel",)),
    )(y013, scale12, shift12)


def _pool_mm(xp, w3):
    n, tp2, hp2, wp2, cin = xp.shape
    t, h, w = tp2 - 2, hp2 - 2, wp2 - 2
    hw = h * w
    c5 = w3.shape[1]
    return pl.pallas_call(
        _pool_mm_kernel,
        out_shape=(jax.ShapeDtypeStruct((n, t, hw, c5), jnp.bfloat16),
                   jax.ShapeDtypeStruct((n, t, 1, c5), jnp.float32),
                   jax.ShapeDtypeStruct((n, t, 1, c5), jnp.float32)),
        grid_spec=pltpu.PrefetchScalarGridSpec(
            num_scalar_prefetch=0, grid=(n, t, 3),
            in_specs=[pl.BlockSpec((1, 1, hp2, wp2, cin),
                                   lambda ni, ti, dt: (ni, ti + dt, 0, 0, 0)),
                      pl.BlockSpec((cin, c5), lambda ni, ti, dt: (0, 0))],
            out_specs=[pl.BlockSpec((1, 1, hw, c5), lambda ni, ti, dt: (ni, ti, 0, 0)),
                       pl.BlockSpec((1, 1, 1, c5), lambda ni, ti, dt: (ni, ti, 0, 0)),
                       pl.BlockSpec((1, 1, 1, c5), lambda ni, ti, dt: (ni, ti, 0, 0))],
            scratch_shapes=[pltpu.VMEM((h, w, cin), jnp.bfloat16)]),
        compiler_params=_cparams(("parallel", "parallel", "arbitrary")),
    )(xp, w3)


def _conv3x3(ap, w9):
    """ap: (N, T+2, H+2, W+2, Cin) padded activations, w9: (9, 3*Cin, Cout)."""
    n, tp2, hp2, wp2, cin = ap.shape
    t, h, w = tp2 - 2, hp2 - 2, wp2 - 2
    hw = h * w
    cout = w9.shape[2]
    return pl.pallas_call(
        _conv3x3_kernel,
        out_shape=(jax.ShapeDtypeStruct((n, t, hw, cout), jnp.bfloat16),
                   jax.ShapeDtypeStruct((n, t, 1, cout), jnp.float32),
                   jax.ShapeDtypeStruct((n, t, 1, cout), jnp.float32)),
        grid_spec=pltpu.PrefetchScalarGridSpec(
            num_scalar_prefetch=0, grid=(n, t, 3),
            in_specs=[pl.BlockSpec((1, 1, hp2, wp2, cin),
                                   lambda ni, ti, dt: (ni, ti + dt, 0, 0, 0)),
                      # TODO(synk): single-buffer this constant weight block
                      # (pipeline_mode) to halve its VMEM footprint on v7x.
                      pl.BlockSpec((9, 3 * cin, cout),
                                   lambda ni, ti, dt: (0, 0, 0))],
            out_specs=[pl.BlockSpec((1, 1, hw, cout), lambda ni, ti, dt: (ni, ti, 0, 0)),
                       pl.BlockSpec((1, 1, 1, cout), lambda ni, ti, dt: (ni, ti, 0, 0)),
                       pl.BlockSpec((1, 1, 1, cout), lambda ni, ti, dt: (ni, ti, 0, 0))],
            scratch_shapes=[pltpu.VMEM((hw, cout), jnp.float32)]),
        compiler_params=_cparams(("parallel", "parallel", "arbitrary")),
    )(ap, w9)


def _assemble(y013, y1, y2, y3, scale_cat, shift_cat, tm):
    mp, c013 = y013.shape
    c2, c4, c5 = y1.shape[1], y2.shape[1], y3.shape[1]
    ctot = scale_cat.shape[1]
    g = mp // tm
    return pl.pallas_call(
        _assemble_kernel,
        out_shape=jax.ShapeDtypeStruct((mp, ctot), jnp.bfloat16),
        grid_spec=pltpu.PrefetchScalarGridSpec(
            num_scalar_prefetch=0, grid=(g,),
            in_specs=[pl.BlockSpec((tm, c013), lambda i: (i, 0)),
                      pl.BlockSpec((tm, c2), lambda i: (i, 0)),
                      pl.BlockSpec((tm, c4), lambda i: (i, 0)),
                      pl.BlockSpec((tm, c5), lambda i: (i, 0)),
                      pl.BlockSpec((1, ctot), lambda i: (0, 0)),
                      pl.BlockSpec((1, ctot), lambda i: (0, 0))],
            out_specs=pl.BlockSpec((tm, ctot), lambda i: (i, 0))),
        compiler_params=_cparams(("parallel",)),
    )(y013, y1, y2, y3, scale_cat, shift_cat)


def _bn_scale_shift(s, sq, gamma, beta, m):
    """Train-mode BN (biased variance) scale/shift from f32 partial sums."""
    c = s.shape[-1]
    ssum = jnp.sum(s.reshape(-1, c), axis=0)
    sqsum = jnp.sum(sq.reshape(-1, c), axis=0)
    mean = ssum / m
    # TODO(synk): switch to a two-pass / Welford variance for very large M to
    # avoid f32 cancellation in E[y^2] - mean^2 (clamped to >= 0 here).
    var = jnp.maximum(sqsum / m - mean * mean, 0.0)
    scale = gamma * lax.rsqrt(var + BN_EPS)
    shift = beta - mean * scale
    return scale, shift


# ---------------------------------------------------------------------------
# Parameters (deterministic, synthetic) and forward pass
# ---------------------------------------------------------------------------
def init_params(key, in_channels, out_channels):
    ks = jax.random.split(key, 12)

    def conv_w(k, cout, cin, ksz):          # PyTorch layout (Cout, Cin, kT, kH, kW)
        fan_in = cin * ksz ** 3
        return jax.random.normal(k, (cout, cin, ksz, ksz, ksz), jnp.float32) / jnp.sqrt(fan_in)

    def bn(k, c):
        k1, k2 = jax.random.split(k)
        return (1.0 + 0.1 * jax.random.normal(k1, (c,), jnp.float32),
                0.1 * jax.random.normal(k2, (c,), jnp.float32))

    p = {}
    p['b0_w'] = conv_w(ks[0], out_channels[0], in_channels, 1)
    p['b0_g'], p['b0_b'] = bn(ks[1], out_channels[0])
    p['b1a_w'] = conv_w(ks[2], out_channels[1], in_channels, 1)
    p['b1a_g'], p['b1a_b'] = bn(ks[3], out_channels[1])
    p['b1b_w'] = conv_w(ks[4], out_channels[2], out_channels[1], 3)
    p['b1b_g'], p['b1b_b'] = bn(ks[5], out_channels[2])
    p['b2a_w'] = conv_w(ks[6], out_channels[3], in_channels, 1)
    p['b2a_g'], p['b2a_b'] = bn(ks[7], out_channels[3])
    p['b2b_w'] = conv_w(ks[8], out_channels[4], out_channels[3], 3)
    p['b2b_g'], p['b2b_b'] = bn(ks[9], out_channels[4])
    p['b3b_w'] = conv_w(ks[10], out_channels[5], in_channels, 1)
    p['b3b_g'], p['b3b_b'] = bn(ks[11], out_channels[5])
    return p


def _w1x1(w):   # (Cout, Cin, 1, 1, 1) -> (Cin, Cout)
    return jnp.transpose(w[:, :, 0, 0, 0], (1, 0))


def _w3x3_folded(w):
    """(Cout, Cin, 3, 3, 3) -> (9, 3*Cin, Cout); row = dt*3+dh, K index = dw*Cin+cin,
    matching the in-kernel W-tap concatenation order."""
    cout, cin = w.shape[0], w.shape[1]
    return jnp.transpose(w, (2, 3, 4, 1, 0)).reshape(9, 3 * cin, cout)


@jax.jit
def inception_module(x_ncthw, p):
    n, cin, t, h, w = x_ncthw.shape
    m = n * t * h * w

    x = jnp.transpose(x_ncthw, (0, 2, 3, 4, 1)).astype(jnp.bfloat16)   # (N,T,H,W,C)
    x_flat = x.reshape(m, cin)
    xp = jnp.pad(x, ((0, 0), (1, 1), (1, 1), (1, 1), (0, 0)))          # SAME zero pad

    # 1x1x1 weights: columns ordered [b1a | b2a | b0] so the slices feeding the
    # 3x3x3 convs start at lane offset 0; b0 rides at the tail and is consumed
    # directly by the assemble kernel.
    # TODO(synk): pad each branch's columns to a multiple of 128 for fully
    # lane-aligned, unmasked stores at real I3D widths.
    w1a, w2a, w0, w3b = (_w1x1(p['b1a_w']), _w1x1(p['b2a_w']),
                         _w1x1(p['b0_w']), _w1x1(p['b3b_w']))
    c1, c3, c0, c5 = w1a.shape[1], w2a.shape[1], w0.shape[1], w3b.shape[1]
    w013 = jnp.concatenate([w1a, w2a, w0], axis=1).astype(jnp.bfloat16)
    w3 = w3b.astype(jnp.bfloat16)
    w1b = _w3x3_folded(p['b1b_w']).astype(jnp.bfloat16)                # (9, 3*C1, C2)
    w2b = _w3x3_folded(p['b2b_w']).astype(jnp.bfloat16)                # (9, 3*C3, C4)
    c2, c4 = w1b.shape[2], w2b.shape[2]

    # Branch 3: fused maxpool + b3b 1x1x1 (pooled activations never touch HBM).
    y3, s3, sq3 = _pool_mm(xp, w3)

    # Fused 1x1x1 convs (b1a|b2a|b0) + BN partial stats.
    tm = _row_tile(m)
    mp_rows = _round_up(m, tm)
    y013, s013, sq013 = _mm1(_pad_rows(x_flat, mp_rows), w013, tm)

    gamma013 = jnp.concatenate([p['b1a_g'], p['b2a_g'], p['b0_g']])
    beta013 = jnp.concatenate([p['b1a_b'], p['b2a_b'], p['b0_b']])
    scale013, shift013 = _bn_scale_shift(s013, sq013, gamma013, beta013, m)
    scale3, shift3 = _bn_scale_shift(s3, sq3, p['b3b_g'], p['b3b_b'], m)

    # BN+ReLU only for the columns feeding the 3x3x3 convs.
    a1, a2 = _bn_relu_split(y013, scale013[None, :c1 + c3],
                            shift013[None, :c1 + c3], c1, c3, tm)

    # 3x3x3 SAME convs: one padded T-plane per grid step, W taps folded into K.
    # TODO(synk): express the halo via in-kernel zeroing / element-offset index
    # maps to avoid these two jnp.pad round trips of the intermediate activations.
    a1p = jnp.pad(a1[:m].reshape(n, t, h, w, c1),
                  ((0, 0), (1, 1), (1, 1), (1, 1), (0, 0)))
    a2p = jnp.pad(a2[:m].reshape(n, t, h, w, c3),
                  ((0, 0), (1, 1), (1, 1), (1, 1), (0, 0)))
    y1b, s1b, sq1b = _conv3x3(a1p, w1b)
    y2b, s2b, sq2b = _conv3x3(a2p, w2b)
    scale1b, shift1b = _bn_scale_shift(s1b, sq1b, p['b1b_g'], p['b1b_b'], m)
    scale2b, shift2b = _bn_scale_shift(s2b, sq2b, p['b2b_g'], p['b2b_b'], m)

    # Final fused BN+ReLU + branch concat (bf16, each branch slice written once).
    scale_cat = jnp.concatenate([scale013[c1 + c3:], scale1b, scale2b, scale3])[None, :]
    shift_cat = jnp.concatenate([shift013[c1 + c3:], shift1b, shift2b, shift3])[None, :]
    out = _assemble(y013,
                    _pad_rows(y1b.reshape(m, c2), mp_rows),
                    _pad_rows(y2b.reshape(m, c4), mp_rows),
                    _pad_rows(y3.reshape(m, c5), mp_rows),
                    scale_cat, shift_cat, tm)                          # (Mp, Ctot) bf16
    out = out[:m].reshape(n, t, h, w, c0 + c2 + c4 + c5)
    # TODO(synk): fold this NCTHW transpose into the assemble kernel (in-kernel
    # XLU transpose with lane-dense THW stores) to save one HBM round trip.
    return jnp.transpose(out, (0, 4, 1, 2, 3)).astype(jnp.float32)     # back to NCTHW


# ---------------------------------------------------------------------------
# Pure-JAX f32 reference (for correctness check)
# ---------------------------------------------------------------------------
def _ref_unit3d(x, w, gamma, beta, pad):
    y = lax.conv_general_dilated(
        x, w, window_strides=(1, 1, 1), padding=[(pad, pad)] * 3,
        dimension_numbers=('NCDHW', 'OIDHW', 'NCDHW'))
    mean = jnp.mean(y, axis=(0, 2, 3, 4), keepdims=True)
    var = jnp.mean(jnp.square(y - mean), axis=(0, 2, 3, 4), keepdims=True)
    y = (y - mean) * lax.rsqrt(var + BN_EPS)
    y = y * gamma.reshape(1, -1, 1, 1, 1) + beta.reshape(1, -1, 1, 1, 1)
    return jnp.maximum(y, 0.0)


def _ref_maxpool(x):
    xp = jnp.pad(x, ((0, 0), (0, 0), (1, 1), (1, 1), (1, 1)))   # F.pad pads with 0
    return lax.reduce_window(xp, -jnp.inf, lax.max,
                             (1, 1, 3, 3, 3), (1, 1, 1, 1, 1), 'VALID')


def inception_reference(x, p):
    b0 = _ref_unit3d(x, p['b0_w'], p['b0_g'], p['b0_b'], 0)
    b1 = _ref_unit3d(_ref_unit3d(x, p['b1a_w'], p['b1a_g'], p['b1a_b'], 0),
                     p['b1b_w'], p['b1b_g'], p['b1b_b'], 1)
    b2 = _ref_unit3d(_ref_unit3d(x, p['b2a_w'], p['b2a_g'], p['b2a_b'], 0),
                     p['b2b_w'], p['b2b_g'], p['b2b_b'], 1)
    b3 = _ref_unit3d(_ref_maxpool(x), p['b3b_w'], p['b3b_g'], p['b3b_b'], 0)
    return jnp.concatenate([b0, b1, b2, b3], axis=1)


if __name__ == "__main__":
    key = jax.random.PRNGKey(0)
    kx, kp = jax.random.split(key)

    N, Cin, T, H, W = 2, 16, 4, 8, 8
    out_channels = [8, 8, 16, 8, 16, 8]
    x = jax.random.normal(kx, (N, Cin, T, H, W), jnp.float32)
    params = init_params(kp, Cin, out_channels)

    out = jax.block_until_ready(inception_module(x, params))

    c_total = out_channels[0] + out_channels[2] + out_channels[4] + out_channels[5]
    assert out.shape == (N, c_total, T, H, W)
    assert bool(jnp.all(jnp.isfinite(out)))

    ref = inception_reference(x, params)
    max_err = float(jnp.max(jnp.abs(out - ref)))
    assert bool(jnp.allclose(out, ref, atol=3e-2, rtol=3e-2)), max_err

    print("KERNEL_OK")
</pallas_src>

<mosaic_0001>
module attributes {stable_mosaic.version = 11 : i64} {
  func.func @_bn_relu_split_kernel(%arg0: i32, %arg1: memref<512x24xbf16, #tpu.memory_space<vmem>>, %arg2: memref<1x16xf32, #tpu.memory_space<vmem>>, %arg3: memref<1x16xf32, #tpu.memory_space<vmem>>, %arg4: memref<512x8xbf16, #tpu.memory_space<vmem>>, %arg5: memref<512x8xbf16, #tpu.memory_space<vmem>>) attributes {dimension_semantics = [#tpu.dimension_semantics<parallel>], iteration_bounds = array<i64: 1>, scalar_prefetch = 0 : i64, scratch_operands = 0 : i64, tpu.core_type = #tpu.core_type<tc>, window_params = [{transform_indices = @transform_0, window_bounds = array<i64: 512, 24>}, {pipeline_mode = #tpu.pipeline_mode<synchronous>, transform_indices = @transform_1, window_bounds = array<i64: 1, 16>}, {pipeline_mode = #tpu.pipeline_mode<synchronous>, transform_indices = @transform_2, window_bounds = array<i64: 1, 16>}, {transform_indices = @transform_3, window_bounds = array<i64: 512, 8>}, {transform_indices = @transform_4, window_bounds = array<i64: 512, 8>}]} {
    %c0 = arith.constant 0 : index
    %c0_0 = arith.constant 0 : index
    %0 = vector.load %arg1[%c0, %c0_0] : memref<512x24xbf16, #tpu.memory_space<vmem>>, vector<512x24xbf16>
    %1 = vector.extract_strided_slice %0 {offsets = [0, 0], sizes = [512, 16], strides = [1, 1]} : vector<512x24xbf16> to vector<512x16xbf16>
    %2 = arith.extf %1 : vector<512x16xbf16> to vector<512x16xf32>
    %c0_1 = arith.constant 0 : index
    %c0_2 = arith.constant 0 : index
    %3 = vector.load %arg2[%c0_1, %c0_2] : memref<1x16xf32, #tpu.memory_space<vmem>>, vector<1x16xf32>
    %4 = vector.broadcast %3 : vector<1x16xf32> to vector<512x16xf32>
    %5 = arith.mulf %2, %4 : vector<512x16xf32>
    %c0_3 = arith.constant 0 : index
    %c0_4 = arith.constant 0 : index
    %6 = vector.load %arg3[%c0_3, %c0_4] : memref<1x16xf32, #tpu.memory_space<vmem>>, vector<1x16xf32>
    %7 = vector.broadcast %6 : vector<1x16xf32> to vector<512x16xf32>
    %8 = arith.addf %5, %7 : vector<512x16xf32>
    %cst = arith.constant 0.000000e+00 : f32
    %9 = vector.broadcast %cst : f32 to vector<512x16xf32>
    %10 = arith.maximumf %8, %9 : vector<512x16xf32>
    %11 = vector.extract_strided_slice %10 {offsets = [0, 0], sizes = [512, 8], strides = [1, 1]} : vector<512x16xf32> to vector<512x8xf32>
    %12 = arith.truncf %11 : vector<512x8xf32> to vector<512x8xbf16>
    %c0_5 = arith.constant 0 : index
    %c0_6 = arith.constant 0 : index
    %13 = vector.load %arg4[%c0_5, %c0_6] : memref<512x8xbf16, #tpu.memory_space<vmem>>, vector<512x8xbf16>
    tpu.vector_store %arg4[%c0_5, %c0_6], %12 {strides = array<i32>} : memref<512x8xbf16, #tpu.memory_space<vmem>>, vector<512x8xbf16>,
    %14 = vector.extract_strided_slice %10 {offsets = [0, 8], sizes = [512, 8], strides = [1, 1]} : vector<512x16xf32> to vector<512x8xf32>
    %15 = arith.truncf %14 : vector<512x8xf32> to vector<512x8xbf16>
    %c0_7 = arith.constant 0 : index
    %c0_8 = arith.constant 0 : index
    %16 = vector.load %arg5[%c0_7, %c0_8] : memref<512x8xbf16, #tpu.memory_space<vmem>>, vector<512x8xbf16>
    tpu.vector_store %arg5[%c0_7, %c0_8], %15 {strides = array<i32>} : memref<512x8xbf16, #tpu.memory_space<vmem>>, vector<512x8xbf16>,
    return
  }
  func.func @transform_0(%arg0: i32) -> (i32, i32) {
    %c0_i32 = arith.constant 0 : i32
    %c0_i32_0 = arith.constant 0 : i32
    return %arg0, %c0_i32 : i32, i32
  }
  func.func @transform_1(%arg0: i32) -> (i32, i32) {
    %c0_i32 = arith.constant 0 : i32
    %c0_i32_0 = arith.constant 0 : i32
    %c0_i32_1 = arith.constant 0 : i32
    return %c0_i32, %c0_i32_0 : i32, i32
  }
  func.func @transform_2(%arg0: i32) -> (i32, i32) {
    %c0_i32 = arith.constant 0 : i32
    %c0_i32_0 = arith.constant 0 : i32
    %c0_i32_1 = arith.constant 0 : i32
    return %c0_i32, %c0_i32_0 : i32, i32
  }
  func.func @transform_3(%arg0: i32) -> (i32, i32) {
    %c0_i32 = arith.constant 0 : i32
    %c0_i32_0 = arith.constant 0 : i32
    return %arg0, %c0_i32 : i32, i32
  }
  func.func @transform_4(%arg0: i32) -> (i32, i32) {
    %c0_i32 = arith.constant 0 : i32
    %c0_i32_0 = arith.constant 0 : i32
    return %arg0, %c0_i32 : i32, i32
  }
}

module attributes {stable_mosaic.version = 11 : i64} {
  func.func @_mm1_kernel(%arg0: i32, %arg1: memref<512x16xbf16, #tpu.memory_space<vmem>>, %arg2: memref<16x24xbf16, #tpu.memory_space<vmem>>, %arg3: memref<512x24xbf16, #tpu.memory_space<vmem>>, %arg4: memref<1x1x24xf32, #tpu.memory_space<vmem>>, %arg5: memref<1x1x24xf32, #tpu.memory_space<vmem>>) attributes {dimension_semantics = [#tpu.dimension_semantics<parallel>], iteration_bounds = array<i64: 1>, scalar_prefetch = 0 : i64, scratch_operands = 0 : i64, tpu.core_type = #tpu.core_type<tc>, window_params = [{transform_indices = @transform_0, window_bounds = array<i64: 512, 16>}, {pipeline_mode = #tpu.pipeline_mode<synchronous>, transform_indices = @transform_1, window_bounds = array<i64: 16, 24>}, {transform_indices = @transform_2, window_bounds = array<i64: 512, 24>}, {transform_indices = @transform_3, window_bounds = array<i64: 1, 1, 24>}, {transform_indices = @transform_4, window_bounds = array<i64: 1, 1, 24>}]} {
    %c0 = arith.constant 0 : index
    %c0_0 = arith.constant 0 : index
    %0 = vector.load %arg1[%c0, %c0_0] : memref<512x16xbf16, #tpu.memory_space<vmem>>, vector<512x16xbf16>
    %c0_1 = arith.constant 0 : index
    %c0_2 = arith.constant 0 : index
    %1 = vector.load %arg2[%c0_1, %c0_2] : memref<16x24xbf16, #tpu.memory_space<vmem>>, vector<16x24xbf16>
    %cst = arith.constant dense<0.000000e+00> : vector<512x24xf32>
    %2 = tpu.matmul %0, %1, %cst {dimension_numbers = #tpu.dot_dimension_numbers<[1], [0], [0], [1], [0, 0, 1, 1], [], []>} : vector<512x16xbf16>, vector<16x24xbf16>, vector<512x24xf32> -> vector<512x24xf32>
    %3 = arith.truncf %2 : vector<512x24xf32> to vector<512x24xbf16>
    %c0_3 = arith.constant 0 : index
    %c0_4 = arith.constant 0 : index
    %4 = vector.load %arg3[%c0_3, %c0_4] : memref<512x24xbf16, #tpu.memory_space<vmem>>, vector<512x24xbf16>
    tpu.vector_store %arg3[%c0_3, %c0_4], %3 {strides = array<i32>} : memref<512x24xbf16, #tpu.memory_space<vmem>>, vector<512x24xbf16>,
    %cst_5 = arith.constant dense<0.000000e+00> : vector<24xf32>
    %5 = vector.multi_reduction <add>, %2, %cst_5 [0] : vector<512x24xf32> to vector<24xf32>
    %6 = vector.shape_cast %5 : vector<24xf32> to vector<1x24xf32>
    %c0_6 = arith.constant 0 : index
    %c0_7 = arith.constant 0 : index
    %c0_8 = arith.constant 0 : index
    %7 = vector.load %arg4[%c0_6, %c0_7, %c0_8] : memref<1x1x24xf32, #tpu.memory_space<vmem>>, vector<1x1x24xf32>
    %8 = vector.shape_cast %7 : vector<1x1x24xf32> to vector<1x24xf32>
    %9 = vector.shape_cast %6 : vector<1x24xf32> to vector<1x1x24xf32>
    tpu.vector_store %arg4[%c0_6, %c0_7, %c0_8], %9 {strides = array<i32>} : memref<1x1x24xf32, #tpu.memory_space<vmem>>, vector<1x1x24xf32>,
    %10 = arith.mulf %2, %2 : vector<512x24xf32>
    %cst_9 = arith.constant dense<0.000000e+00> : vector<24xf32>
    %11 = vector.multi_reduction <add>, %10, %cst_9 [0] : vector<512x24xf32> to vector<24xf32>
    %12 = vector.shape_cast %11 : vector<24xf32> to vector<1x24xf32>
    %c0_10 = arith.constant 0 : index
    %c0_11 = arith.constant 0 : index
    %c0_12 = arith.constant 0 : index
    %13 = vector.load %arg5[%c0_10, %c0_11, %c0_12] : memref<1x1x24xf32, #tpu.memory_space<vmem>>, vector<1x1x24xf32>
    %14 = vector.shape_cast %13 : vector<1x1x24xf32> to vector<1x24xf32>
    %15 = vector.shape_cast %12 : vector<1x24xf32> to vector<1x1x24xf32>
    tpu.vector_store %arg5[%c0_10, %c0_11, %c0_12], %15 {strides = array<i32>} : memref<1x1x24xf32, #tpu.memory_space<vmem>>, vector<1x1x24xf32>,
    return
  }
  func.func @transform_0(%arg0: i32) -> (i32, i32) {
    %c0_i32 = arith.constant 0 : i32
    %c0_i32_0 = arith.constant 0 : i32
    return %arg0, %c0_i32 : i32, i32
  }
  func.func @transform_1(%arg0: i32) -> (i32, i32) {
    %c0_i32 = arith.constant 0 : i32
    %c0_i32_0 = arith.constant 0 : i32
    %c0_i32_1 = arith.constant 0 : i32
    return %c0_i32, %c0_i32_0 : i32, i32
  }
  func.func @transform_2(%arg0: i32) -> (i32, i32) {
    %c0_i32 = arith.constant 0 : i32
    %c0_i32_0 = arith.constant 0 : i32
    return %arg0, %c0_i32 : i32, i32
  }
  func.func @transform_3(%arg0: i32) -> (i32, i32, i32) {
    %c0_i32 = arith.constant 0 : i32
    %c0_i32_0 = arith.constant 0 : i32
    %c0_i32_1 = arith.constant 0 : i32
    return %arg0, %c0_i32, %c0_i32_0 : i32, i32, i32
  }
  func.func @transform_4(%arg0: i32) -> (i32, i32, i32) {
    %c0_i32 = arith.constant 0 : i32
    %c0_i32_0 = arith.constant 0 : i32
    %c0_i32_1 = arith.constant 0 : i32
    return %arg0, %c0_i32, %c0_i32_0 : i32, i32, i32
  }
}

module attributes {stable_mosaic.version = 11 : i64} {
  func.func @_conv3x3_kernel(%arg0: i32, %arg1: i32, %arg2: i32, %arg3: memref<1x1x10x10x8xbf16, #tpu.memory_space<vmem>>, %arg4: memref<9x24x16xbf16, #tpu.memory_space<vmem>>, %arg5: memref<1x1x64x16xbf16, #tpu.memory_space<vmem>>, %arg6: memref<1x1x1x16xf32, #tpu.memory_space<vmem>>, %arg7: memref<1x1x1x16xf32, #tpu.memory_space<vmem>>, %arg8: memref<64x16xf32, #tpu.memory_space<vmem>>) attributes {dimension_semantics = [#tpu.dimension_semantics<parallel>, #tpu.dimension_semantics<parallel>, #tpu.dimension_semantics<arbitrary>], iteration_bounds = array<i64: 2, 4, 3>, scalar_prefetch = 0 : i64, scratch_operands = 1 : i64, tpu.core_type = #tpu.core_type<tc>, window_params = [{transform_indices = @transform_0, window_bounds = array<i64: 1, 1, 10, 10, 8>}, {pipeline_mode = #tpu.pipeline_mode<synchronous>, transform_indices = @transform_1, window_bounds = array<i64: 9, 24, 16>}, {transform_indices = @transform_2, window_bounds = array<i64: 1, 1, 64, 16>}, {transform_indices = @transform_3, window_bounds = array<i64: 1, 1, 1, 16>}, {transform_indices = @transform_4, window_bounds = array<i64: 1, 1, 1, 16>}]} {
    %c0_i32 = arith.constant 0 : i32
    %0 = arith.cmpi eq, %arg2, %c0_i32 : i32
    %1 = arith.extui %0 : i1 to i32
    %c0_i32_0 = arith.constant 0 : i32
    %2 = arith.cmpi ne, %1, %c0_i32_0 : i32
    scf.if %2 {
      %cst_22 = arith.constant 0.000000e+00 : f32
      %49 = vector.broadcast %cst_22 : f32 to vector<64x16xf32>
      %c0_23 = arith.constant 0 : index
      %c0_24 = arith.constant 0 : index
      %50 = vector.load %arg8[%c0_23, %c0_24] : memref<64x16xf32, #tpu.memory_space<vmem>>, vector<64x16xf32>
      tpu.vector_store %arg8[%c0_23, %c0_24], %49 {strides = array<i32>} : memref<64x16xf32, #tpu.memory_space<vmem>>, vector<64x16xf32>,
    } else {
    }
    %c0 = arith.constant 0 : index
    %c0_1 = arith.constant 0 : index
    %c0_2 = arith.constant 0 : index
    %c0_3 = arith.constant 0 : index
    %c0_4 = arith.constant 0 : index
    %3 = vector.load %arg3[%c0, %c0_1, %c0_2, %c0_3, %c0_4] : memref<1x1x10x10x8xbf16, #tpu.memory_space<vmem>>, vector<1x1x10x10x8xbf16>
    %4 = vector.shape_cast %3 : vector<1x1x10x10x8xbf16> to vector<10x10x8xbf16>
    %c0_5 = arith.constant 0 : index
    %c0_6 = arith.constant 0 : index
    %5 = vector.load %arg8[%c0_5, %c0_6] : memref<64x16xf32, #tpu.memory_space<vmem>>, vector<64x16xf32>
    %6 = vector.extract_strided_slice %4 {offsets = [0, 0, 0], sizes = [8, 10, 8], strides = [1, 1, 1]} : vector<10x10x8xbf16> to vector<8x10x8xbf16>
    %7 = vector.extract_strided_slice %6 {offsets = [0, 0, 0], sizes = [8, 8, 8], strides = [1, 1, 1]} : vector<8x10x8xbf16> to vector<8x8x8xbf16>
    %8 = vector.extract_strided_slice %6 {offsets = [0, 1, 0], sizes = [8, 8, 8], strides = [1, 1, 1]} : vector<8x10x8xbf16> to vector<8x8x8xbf16>
    %9 = vector.extract_strided_slice %6 {offsets = [0, 2, 0], sizes = [8, 8, 8], strides = [1, 1, 1]} : vector<8x10x8xbf16> to vector<8x8x8xbf16>
    %10 = tpu.concatenate %7, %8, %9 in 2 : vector<8x8x8xbf16>, vector<8x8x8xbf16>, vector<8x8x8xbf16> -> vector<8x8x24xbf16>
    %11 = vector.shape_cast %10 : vector<8x8x24xbf16> to vector<64x24xbf16>
    %c3_i32 = arith.constant 3 : i32
    %12 = arith.muli %arg2, %c3_i32 : i32
    %c0_i32_7 = arith.constant 0 : i32
    %13 = arith.addi %12, %c0_i32_7 : i32
    %14 = arith.index_cast %13 : i32 to index
    %c0_8 = arith.constant 0 : index
    %c0_9 = arith.constant 0 : index
    %15 = vector.load %arg4[%14, %c0_8, %c0_9] : memref<9x24x16xbf16, #tpu.memory_space<vmem>>, vector<1x24x16xbf16>
    %16 = vector.shape_cast %15 : vector<1x24x16xbf16> to vector<24x16xbf16>
    %cst = arith.constant dense<0.000000e+00> : vector<64x16xf32>
    %17 = tpu.matmul %11, %16, %cst {dimension_numbers = #tpu.dot_dimension_numbers<[1], [0], [0], [1], [0, 0, 1, 1], [], []>} : vector<64x24xbf16>, vector<24x16xbf16>, vector<64x16xf32> -> vector<64x16xf32>
    %18 = arith.addf %5, %17 : vector<64x16xf32>
    %19 = vector.extract_strided_slice %4 {offsets = [1, 0, 0], sizes = [8, 10, 8], strides = [1, 1, 1]} : vector<10x10x8xbf16> to vector<8x10x8xbf16>
    %20 = vector.extract_strided_slice %19 {offsets = [0, 0, 0], sizes = [8, 8, 8], strides = [1, 1, 1]} : vector<8x10x8xbf16> to vector<8x8x8xbf16>
    %21 = vector.extract_strided_slice %19 {offsets = [0, 1, 0], sizes = [8, 8, 8], strides = [1, 1, 1]} : vector<8x10x8xbf16> to vector<8x8x8xbf16>
    %22 = vector.extract_strided_slice %19 {offsets = [0, 2, 0], sizes = [8, 8, 8], strides = [1, 1, 1]} : vector<8x10x8xbf16> to vector<8x8x8xbf16>
    %23 = tpu.concatenate %20, %21, %22 in 2 : vector<8x8x8xbf16>, vector<8x8x8xbf16>, vector<8x8x8xbf16> -> vector<8x8x24xbf16>
    %24 = vector.shape_cast %23 : vector<8x8x24xbf16> to vector<64x24xbf16>
    %c3_i32_10 = arith.constant 3 : i32
    %25 = arith.muli %arg2, %c3_i32_10 : i32
    %c1_i32 = arith.constant 1 : i32
    %26 = arith.addi %25, %c1_i32 : i32
    %27 = arith.index_cast %26 : i32 to index
    %c0_11 = arith.constant 0 : index
    %c0_12 = arith.constant 0 : index
    %28 = vector.load %arg4[%27, %c0_11, %c0_12] : memref<9x24x16xbf16, #tpu.memory_space<vmem>>, vector<1x24x16xbf16>
    %29 = vector.shape_cast %28 : vector<1x24x16xbf16> to vector<24x16xbf16>
    %cst_13 = arith.constant dense<0.000000e+00> : vector<64x16xf32>
    %30 = tpu.matmul %24, %29, %cst_13 {dimension_numbers = #tpu.dot_dimension_numbers<[1], [0], [0], [1], [0, 0, 1, 1], [], []>} : vector<64x24xbf16>, vector<24x16xbf16>, vector<64x16xf32> -> vector<64x16xf32>
    %31 = arith.addf %18, %30 : vector<64x16xf32>
    %32 = vector.extract_strided_slice %4 {offsets = [2, 0, 0], sizes = [8, 10, 8], strides = [1, 1, 1]} : vector<10x10x8xbf16> to vector<8x10x8xbf16>
    %33 = vector.extract_strided_slice %32 {offsets = [0, 0, 0], sizes = [8, 8, 8], strides = [1, 1, 1]} : vector<8x10x8xbf16> to vector<8x8x8xbf16>
    %34 = vector.extract_strided_slice %32 {offsets = [0, 1, 0], sizes = [8, 8, 8], strides = [1, 1, 1]} : vector<8x10x8xbf16> to vector<8x8x8xbf16>
    %35 = vector.extract_strided_slice %32 {offsets = [0, 2, 0], sizes = [8, 8, 8], strides = [1, 1, 1]} : vector<8x10x8xbf16> to vector<8x8x8xbf16>
    %36 = tpu.concatenate %33, %34, %35 in 2 : vector<8x8x8xbf16>, vector<8x8x8xbf16>, vector<8x8x8xbf16> -> vector<8x8x24xbf16>
    %37 = vector.shape_cast %36 : vector<8x8x24xbf16> to vector<64x24xbf16>
    %c3_i32_14 = arith.constant 3 : i32
    %38 = arith.muli %arg2, %c3_i32_14 : i32
    %c2_i32 = arith.constant 2 : i32
    %39 = arith.addi %38, %c2_i32 : i32
    %40 = arith.index_cast %39 : i32 to index
    %c0_15 = arith.constant 0 : index
    %c0_16 = arith.constant 0 : index
    %41 = vector.load %arg4[%40, %c0_15, %c0_16] : memref<9x24x16xbf16, #tpu.memory_space<vmem>>, vector<1x24x16xbf16>
    %42 = vector.shape_cast %41 : vector<1x24x16xbf16> to vector<24x16xbf16>
    %cst_17 = arith.constant dense<0.000000e+00> : vector<64x16xf32>
    %43 = tpu.matmul %37, %42, %cst_17 {dimension_numbers = #tpu.dot_dimension_numbers<[1], [0], [0], [1], [0, 0, 1, 1], [], []>} : vector<64x24xbf16>, vector<24x16xbf16>, vector<64x16xf32> -> vector<64x16xf32>
    %44 = arith.addf %31, %43 : vector<64x16xf32>
    %c0_18 = arith.constant 0 : index
    %c0_19 = arith.constant 0 : index
    %45 = vector.load %arg8[%c0_18, %c0_19] : memref<64x16xf32, #tpu.memory_space<vmem>>, vector<64x16xf32>
    tpu.vector_store %arg8[%c0_18, %c0_19], %44 {strides = array<i32>} : memref<64x16xf32, #tpu.memory_space<vmem>>, vector<64x16xf32>,
    %c2_i32_20 = arith.constant 2 : i32
    %46 = arith.cmpi eq, %arg2, %c2_i32_20 : i32
    %47 = arith.extui %46 : i1 to i32
    %c0_i32_21 = arith.constant 0 : i32
    %48 = arith.cmpi ne, %47, %c0_i32_21 : i32
    scf.if %48 {
      %49 = arith.truncf %44 : vector<64x16xf32> to vector<64x16xbf16>
      %c0_22 = arith.constant 0 : index
      %c0_23 = arith.constant 0 : index
      %c0_24 = arith.constant 0 : index
      %c0_25 = arith.constant 0 : index
      %50 = vector.load %arg5[%c0_22, %c0_23, %c0_24, %c0_25] : memref<1x1x64x16xbf16, #tpu.memory_space<vmem>>, vector<1x1x64x16xbf16>
      %51 = vector.shape_cast %50 : vector<1x1x64x16xbf16> to vector<64x16xbf16>
      %52 = vector.shape_cast %49 : vector<64x16xbf16> to vector<1x1x64x16xbf16>
      tpu.vector_store %arg5[%c0_22, %c0_23, %c0_24, %c0_25], %52 {strides = array<i32>} : memref<1x1x64x16xbf16, #tpu.memory_space<vmem>>, vector<1x1x64x16xbf16>,
      %cst_26 = arith.constant dense<0.000000e+00> : vector<16xf32>
      %53 = vector.multi_reduction <add>, %44, %cst_26 [0] : vector<64x16xf32> to vector<16xf32>
      %54 = vector.shape_cast %53 : vector<16xf32> to vector<1x16xf32>
      %c0_27 = arith.constant 0 : index
      %c0_28 = arith.constant 0 : index
      %c0_29 = arith.constant 0 : index
      %c0_30 = arith.constant 0 : index
      %55 = vector.load %arg6[%c0_27, %c0_28, %c0_29, %c0_30] : memref<1x1x1x16xf32, #tpu.memory_space<vmem>>, vector<1x1x1x16xf32>
      %56 = vector.shape_cast %55 : vector<1x1x1x16xf32> to vector<1x16xf32>
      %57 = vector.shape_cast %54 : vector<1x16xf32> to vector<1x1x1x16xf32>
      tpu.vector_store %arg6[%c0_27, %c0_28, %c0_29, %c0_30], %57 {strides = array<i32>} : memref<1x1x1x16xf32, #tpu.memory_space<vmem>>, vector<1x1x1x16xf32>,
      %58 = arith.mulf %44, %44 : vector<64x16xf32>
      %cst_31 = arith.constant dense<0.000000e+00> : vector<16xf32>
      %59 = vector.multi_reduction <add>, %58, %cst_31 [0] : vector<64x16xf32> to vector<16xf32>
      %60 = vector.shape_cast %59 : vector<16xf32> to vector<1x16xf32>
      %c0_32 = arith.constant 0 : index
      %c0_33 = arith.constant 0 : index
      %c0_34 = arith.constant 0 : index
      %c0_35 = arith.constant 0 : index
      %61 = vector.load %arg7[%c0_32, %c0_33, %c0_34, %c0_35] : memref<1x1x1x16xf32, #tpu.memory_space<vmem>>, vector<1x1x1x16xf32>
      %62 = vector.shape_cast %61 : vector<1x1x1x16xf32> to vector<1x16xf32>
      %63 = vector.shape_cast %60 : vector<1x16xf32> to vector<1x1x1x16xf32>
      tpu.vector_store %arg7[%c0_32, %c0_33, %c0_34, %c0_35], %63 {strides = array<i32>} : memref<1x1x1x16xf32, #tpu.memory_space<vmem>>, vector<1x1x1x16xf32>,
    } else {
    }
    return
  }
  func.func @transform_0(%arg0: i32, %arg1: i32, %arg2: i32) -> (i32, i32, i32, i32, i32) {
    %0 = arith.addi %arg1, %arg2 : i32
    %c0_i32 = arith.constant 0 : i32
    %c0_i32_0 = arith.constant 0 : i32
    %c0_i32_1 = arith.constant 0 : i32
    %c0_i32_2 = arith.constant 0 : i32
    return %arg0, %0, %c0_i32, %c0_i32_0, %c0_i32_1 : i32, i32, i32, i32, i32
  }
  func.func @transform_1(%arg0: i32, %arg1: i32, %arg2: i32) -> (i32, i32, i32) {
    %c0_i32 = arith.constant 0 : i32
    %c0_i32_0 = arith.constant 0 : i32
    %c0_i32_1 = arith.constant 0 : i32
    %c0_i32_2 = arith.constant 0 : i32
    return %c0_i32, %c0_i32_0, %c0_i32_1 : i32, i32, i32
  }
  func.func @transform_2(%arg0: i32, %arg1: i32, %arg2: i32) -> (i32, i32, i32, i32) {
    %c0_i32 = arith.constant 0 : i32
    %c0_i32_0 = arith.constant 0 : i32
    %c0_i32_1 = arith.constant 0 : i32
    return %arg0, %arg1, %c0_i32, %c0_i32_0 : i32, i32, i32, i32
  }
  func.func @transform_3(%arg0: i32, %arg1: i32, %arg2: i32) -> (i32, i32, i32, i32) {
    %c0_i32 = arith.constant 0 : i32
    %c0_i32_0 = arith.constant 0 : i32
    %c0_i32_1 = arith.constant 0 : i32
    return %arg0, %arg1, %c0_i32, %c0_i32_0 : i32, i32, i32, i32
  }
  func.func @transform_4(%arg0: i32, %arg1: i32, %arg2: i32) -> (i32, i32, i32, i32) {
    %c0_i32 = arith.constant 0 : i32
    %c0_i32_0 = arith.constant 0 : i32
    %c0_i32_1 = arith.constant 0 : i32
    return %arg0, %arg1, %c0_i32, %c0_i32_0 : i32, i32, i32, i32
  }
}

module attributes {stable_mosaic.version = 11 : i64} {
  func.func @_pool_mm_kernel(%arg0: i32, %arg1: i32, %arg2: i32, %arg3: memref<1x1x10x10x16xbf16, #tpu.memory_space<vmem>>, %arg4: memref<16x8xbf16, #tpu.memory_space<vmem>>, %arg5: memref<1x1x64x8xbf16, #tpu.memory_space<vmem>>, %arg6: memref<1x1x1x8xf32, #tpu.memory_space<vmem>>, %arg7: memref<1x1x1x8xf32, #tpu.memory_space<vmem>>, %arg8: memref<8x8x16xbf16, #tpu.memory_space<vmem>>) attributes {dimension_semantics = [#tpu.dimension_semantics<parallel>, #tpu.dimension_semantics<parallel>, #tpu.dimension_semantics<arbitrary>], iteration_bounds = array<i64: 2, 4, 3>, scalar_prefetch = 0 : i64, scratch_operands = 1 : i64, tpu.core_type = #tpu.core_type<tc>, window_params = [{transform_indices = @transform_0, window_bounds = array<i64: 1, 1, 10, 10, 16>}, {pipeline_mode = #tpu.pipeline_mode<synchronous>, transform_indices = @transform_1, window_bounds = array<i64: 16, 8>}, {transform_indices = @transform_2, window_bounds = array<i64: 1, 1, 64, 8>}, {transform_indices = @transform_3, window_bounds = array<i64: 1, 1, 1, 8>}, {transform_indices = @transform_4, window_bounds = array<i64: 1, 1, 1, 8>}]} {
    %c0 = arith.constant 0 : index
    %c0_0 = arith.constant 0 : index
    %c0_1 = arith.constant 0 : index
    %c0_2 = arith.constant 0 : index
    %c0_3 = arith.constant 0 : index
    %0 = vector.load %arg3[%c0, %c0_0, %c0_1, %c0_2, %c0_3] : memref<1x1x10x10x16xbf16, #tpu.memory_space<vmem>>, vector<1x1x10x10x16xbf16>
    %1 = vector.shape_cast %0 : vector<1x1x10x10x16xbf16> to vector<10x10x16xbf16>
    %2 = vector.extract_strided_slice %1 {offsets = [0, 0, 0], sizes = [8, 10, 16], strides = [1, 1, 1]} : vector<10x10x16xbf16> to vector<8x10x16xbf16>
    %3 = vector.extract_strided_slice %1 {offsets = [1, 0, 0], sizes = [8, 10, 16], strides = [1, 1, 1]} : vector<10x10x16xbf16> to vector<8x10x16xbf16>
    %4 = arith.maximumf %2, %3 : vector<8x10x16xbf16>
    %5 = vector.extract_strided_slice %1 {offsets = [2, 0, 0], sizes = [8, 10, 16], strides = [1, 1, 1]} : vector<10x10x16xbf16> to vector<8x10x16xbf16>
    %6 = arith.maximumf %4, %5 : vector<8x10x16xbf16>
    %7 = vector.extract_strided_slice %6 {offsets = [0, 0, 0], sizes = [8, 8, 16], strides = [1, 1, 1]} : vector<8x10x16xbf16> to vector<8x8x16xbf16>
    %8 = vector.extract_strided_slice %6 {offsets = [0, 1, 0], sizes = [8, 8, 16], strides = [1, 1, 1]} : vector<8x10x16xbf16> to vector<8x8x16xbf16>
    %9 = arith.maximumf %7, %8 : vector<8x8x16xbf16>
    %10 = vector.extract_strided_slice %6 {offsets = [0, 2, 0], sizes = [8, 8, 16], strides = [1, 1, 1]} : vector<8x10x16xbf16> to vector<8x8x16xbf16>
    %11 = arith.maximumf %9, %10 : vector<8x8x16xbf16>
    %c0_i32 = arith.constant 0 : i32
    %12 = arith.cmpi eq, %arg2, %c0_i32 : i32
    %13 = arith.extui %12 : i1 to i32
    %c0_i32_4 = arith.constant 0 : i32
    %14 = arith.cmpi ne, %13, %c0_i32_4 : i32
    scf.if %14 {
      %c0_8 = arith.constant 0 : index
      %c0_9 = arith.constant 0 : index
      %c0_10 = arith.constant 0 : index
      %21 = vector.load %arg8[%c0_8, %c0_9, %c0_10] : memref<8x8x16xbf16, #tpu.memory_space<vmem>>, vector<8x8x16xbf16>
      tpu.vector_store %arg8[%c0_8, %c0_9, %c0_10], %11 {strides = array<i32>} : memref<8x8x16xbf16, #tpu.memory_space<vmem>>, vector<8x8x16xbf16>,
    } else {
    }
    %c0_i32_5 = arith.constant 0 : i32
    %15 = arith.cmpi sgt, %arg2, %c0_i32_5 : i32
    %16 = arith.extui %15 : i1 to i32
    %c0_i32_6 = arith.constant 0 : i32
    %17 = arith.cmpi ne, %16, %c0_i32_6 : i32
    scf.if %17 {
      %c0_8 = arith.constant 0 : index
      %c0_9 = arith.constant 0 : index
      %c0_10 = arith.constant 0 : index
      %21 = vector.load %arg8[%c0_8, %c0_9, %c0_10] : memref<8x8x16xbf16, #tpu.memory_space<vmem>>, vector<8x8x16xbf16>
      %22 = arith.maximumf %21, %11 : vector<8x8x16xbf16>
      %c0_11 = arith.constant 0 : index
      %c0_12 = arith.constant 0 : index
      %c0_13 = arith.constant 0 : index
      %23 = vector.load %arg8[%c0_11, %c0_12, %c0_13] : memref<8x8x16xbf16, #tpu.memory_space<vmem>>, vector<8x8x16xbf16>
      tpu.vector_store %arg8[%c0_11, %c0_12, %c0_13], %22 {strides = array<i32>} : memref<8x8x16xbf16, #tpu.memory_space<vmem>>, vector<8x8x16xbf16>,
    } else {
    }
    %c2_i32 = arith.constant 2 : i32
    %18 = arith.cmpi eq, %arg2, %c2_i32 : i32
    %19 = arith.extui %18 : i1 to i32
    %c0_i32_7 = arith.constant 0 : i32
    %20 = arith.cmpi ne, %19, %c0_i32_7 : i32
    scf.if %20 {
      %c0_8 = arith.constant 0 : index
      %c0_9 = arith.constant 0 : index
      %c0_10 = arith.constant 0 : index
      %21 = vector.load %arg8[%c0_8, %c0_9, %c0_10] : memref<8x8x16xbf16, #tpu.memory_space<vmem>>, vector<8x8x16xbf16>
      %22 = vector.shape_cast %21 : vector<8x8x16xbf16> to vector<64x16xbf16>
      %c0_11 = arith.constant 0 : index
      %c0_12 = arith.constant 0 : index
      %23 = vector.load %arg4[%c0_11, %c0_12] : memref<16x8xbf16, #tpu.memory_space<vmem>>, vector<16x8xbf16>
      %cst = arith.constant dense<0.000000e+00> : vector<64x8xf32>
      %24 = tpu.matmul %22, %23, %cst {dimension_numbers = #tpu.dot_dimension_numbers<[1], [0], [0], [1], [0, 0, 1, 1], [], []>} : vector<64x16xbf16>, vector<16x8xbf16>, vector<64x8xf32> -> vector<64x8xf32>
      %25 = arith.truncf %24 : vector<64x8xf32> to vector<64x8xbf16>
      %c0_13 = arith.constant 0 : index
      %c0_14 = arith.constant 0 : index
      %c0_15 = arith.constant 0 : index
      %c0_16 = arith.constant 0 : index
      %26 = vector.load %arg5[%c0_13, %c0_14, %c0_15, %c0_16] : memref<1x1x64x8xbf16, #tpu.memory_space<vmem>>, vector<1x1x64x8xbf16>
      %27 = vector.shape_cast %26 : vector<1x1x64x8xbf16> to vector<64x8xbf16>
      %28 = vector.shape_cast %25 : vector<64x8xbf16> to vector<1x1x64x8xbf16>
      tpu.vector_store %arg5[%c0_13, %c0_14, %c0_15, %c0_16], %28 {strides = array<i32>} : memref<1x1x64x8xbf16, #tpu.memory_space<vmem>>, vector<1x1x64x8xbf16>,
      %cst_17 = arith.constant dense<0.000000e+00> : vector<8xf32>
      %29 = vector.multi_reduction <add>, %24, %cst_17 [0] : vector<64x8xf32> to vector<8xf32>
      %30 = vector.shape_cast %29 : vector<8xf32> to vector<1x8xf32>
      %c0_18 = arith.constant 0 : index
      %c0_19 = arith.constant 0 : index
      %c0_20 = arith.constant 0 : index
      %c0_21 = arith.constant 0 : index
      %31 = vector.load %arg6[%c0_18, %c0_19, %c0_20, %c0_21] : memref<1x1x1x8xf32, #tpu.memory_space<vmem>>, vector<1x1x1x8xf32>
      %32 = vector.shape_cast %31 : vector<1x1x1x8xf32> to vector<1x8xf32>
      %33 = vector.shape_cast %30 : vector<1x8xf32> to vector<1x1x1x8xf32>
      tpu.vector_store %arg6[%c0_18, %c0_19, %c0_20, %c0_21], %33 {strides = array<i32>} : memref<1x1x1x8xf32, #tpu.memory_space<vmem>>, vector<1x1x1x8xf32>,
      %34 = arith.mulf %24, %24 : vector<64x8xf32>
      %cst_22 = arith.constant dense<0.000000e+00> : vector<8xf32>
      %35 = vector.multi_reduction <add>, %34, %cst_22 [0] : vector<64x8xf32> to vector<8xf32>
      %36 = vector.shape_cast %35 : vector<8xf32> to vector<1x8xf32>
      %c0_23 = arith.constant 0 : index
      %c0_24 = arith.constant 0 : index
      %c0_25 = arith.constant 0 : index
      %c0_26 = arith.constant 0 : index
      %37 = vector.load %arg7[%c0_23, %c0_24, %c0_25, %c0_26] : memref<1x1x1x8xf32, #tpu.memory_space<vmem>>, vector<1x1x1x8xf32>
      %38 = vector.shape_cast %37 : vector<1x1x1x8xf32> to vector<1x8xf32>
      %39 = vector.shape_cast %36 : vector<1x8xf32> to vector<1x1x1x8xf32>
      tpu.vector_store %arg7[%c0_23, %c0_24, %c0_25, %c0_26], %39 {strides = array<i32>} : memref<1x1x1x8xf32, #tpu.memory_space<vmem>>, vector<1x1x1x8xf32>,
    } else {
    }
    return
  }
  func.func @transform_0(%arg0: i32, %arg1: i32, %arg2: i32) -> (i32, i32, i32, i32, i32) {
    %0 = arith.addi %arg1, %arg2 : i32
    %c0_i32 = arith.constant 0 : i32
    %c0_i32_0 = arith.constant 0 : i32
    %c0_i32_1 = arith.constant 0 : i32
    %c0_i32_2 = arith.constant 0 : i32
    return %arg0, %0, %c0_i32, %c0_i32_0, %c0_i32_1 : i32, i32, i32, i32, i32
  }
  func.func @transform_1(%arg0: i32, %arg1: i32, %arg2: i32) -> (i32, i32) {
    %c0_i32 = arith.constant 0 : i32
    %c0_i32_0 = arith.constant 0 : i32
    %c0_i32_1 = arith.constant 0 : i32
    return %c0_i32, %c0_i32_0 : i32, i32
  }
  func.func @transform_2(%arg0: i32, %arg1: i32, %arg2: i32) -> (i32, i32, i32, i32) {
    %c0_i32 = arith.constant 0 : i32
    %c0_i32_0 = arith.constant 0 : i32
    %c0_i32_1 = arith.constant 0 : i32
    return %arg0, %arg1, %c0_i32, %c0_i32_0 : i32, i32, i32, i32
  }
  func.func @transform_3(%arg0: i32, %arg1: i32, %arg2: i32) -> (i32, i32, i32, i32) {
    %c0_i32 = arith.constant 0 : i32
    %c0_i32_0 = arith.constant 0 : i32
    %c0_i32_1 = arith.constant 0 : i32
    return %arg0, %arg1, %c0_i32, %c0_i32_0 : i32, i32, i32, i32
  }
  func.func @transform_4(%arg0: i32, %arg1: i32, %arg2: i32) -> (i32, i32, i32, i32) {
    %c0_i32 = arith.constant 0 : i32
    %c0_i32_0 = arith.constant 0 : i32
    %c0_i32_1 = arith.constant 0 : i32
    return %arg0, %arg1, %c0_i32, %c0_i32_0 : i32, i32, i32, i32
  }
}

module attributes {stable_mosaic.version = 11 : i64} {
  func.func @_assemble_kernel(%arg0: i32, %arg1: memref<512x24xbf16, #tpu.memory_space<vmem>>, %arg2: memref<512x16xbf16, #tpu.memory_space<vmem>>, %arg3: memref<512x16xbf16, #tpu.memory_space<vmem>>, %arg4: memref<512x8xbf16, #tpu.memory_space<vmem>>, %arg5: memref<1x48xf32, #tpu.memory_space<vmem>>, %arg6: memref<1x48xf32, #tpu.memory_space<vmem>>, %arg7: memref<512x48xbf16, #tpu.memory_space<vmem>>) attributes {dimension_semantics = [#tpu.dimension_semantics<parallel>], iteration_bounds = array<i64: 1>, scalar_prefetch = 0 : i64, scratch_operands = 0 : i64, tpu.core_type = #tpu.core_type<tc>, window_params = [{transform_indices = @transform_0, window_bounds = array<i64: 512, 24>}, {transform_indices = @transform_1, window_bounds = array<i64: 512, 16>}, {transform_indices = @transform_2, window_bounds = array<i64: 512, 16>}, {transform_indices = @transform_3, window_bounds = array<i64: 512, 8>}, {pipeline_mode = #tpu.pipeline_mode<synchronous>, transform_indices = @transform_4, window_bounds = array<i64: 1, 48>}, {pipeline_mode = #tpu.pipeline_mode<synchronous>, transform_indices = @transform_5, window_bounds = array<i64: 1, 48>}, {transform_indices = @transform_6, window_bounds = array<i64: 512, 48>}]} {
    %c0 = arith.constant 0 : index
    %c0_0 = arith.constant 0 : index
    %0 = vector.load %arg5[%c0, %c0_0] : memref<1x48xf32, #tpu.memory_space<vmem>>, vector<1x48xf32>
    %c0_1 = arith.constant 0 : index
    %c0_2 = arith.constant 0 : index
    %1 = vector.load %arg6[%c0_1, %c0_2] : memref<1x48xf32, #tpu.memory_space<vmem>>, vector<1x48xf32>
    %c0_3 = arith.constant 0 : index
    %c0_4 = arith.constant 0 : index
    %2 = vector.load %arg1[%c0_3, %c0_4] : memref<512x24xbf16, #tpu.memory_space<vmem>>, vector<512x24xbf16>
    %3 = vector.extract_strided_slice %2 {offsets = [0, 16], sizes = [512, 8], strides = [1, 1]} : vector<512x24xbf16> to vector<512x8xbf16>
    %4 = arith.extf %3 : vector<512x8xbf16> to vector<512x8xf32>
    %5 = vector.extract_strided_slice %0 {offsets = [0, 0], sizes = [1, 8], strides = [1, 1]} : vector<1x48xf32> to vector<1x8xf32>
    %6 = vector.broadcast %5 : vector<1x8xf32> to vector<512x8xf32>
    %7 = arith.mulf %4, %6 : vector<512x8xf32>
    %8 = vector.extract_strided_slice %1 {offsets = [0, 0], sizes = [1, 8], strides = [1, 1]} : vector<1x48xf32> to vector<1x8xf32>
    %9 = vector.broadcast %8 : vector<1x8xf32> to vector<512x8xf32>
    %10 = arith.addf %7, %9 : vector<512x8xf32>
    %cst = arith.constant 0.000000e+00 : f32
    %11 = vector.broadcast %cst : f32 to vector<512x8xf32>
    %12 = arith.maximumf %10, %11 : vector<512x8xf32>
    %13 = arith.truncf %12 : vector<512x8xf32> to vector<512x8xbf16>
    %c0_5 = arith.constant 0 : index
    %c0_6 = arith.constant 0 : index
    %14 = vector.load %arg7[%c0_5, %c0_6] : memref<512x48xbf16, #tpu.memory_space<vmem>>, vector<512x8xbf16>
    tpu.vector_store %arg7[%c0_5, %c0_6], %13 {strides = array<i32>} : memref<512x48xbf16, #tpu.memory_space<vmem>>, vector<512x8xbf16>,
    %c0_7 = arith.constant 0 : index
    %c0_8 = arith.constant 0 : index
    %15 = vector.load %arg2[%c0_7, %c0_8] : memref<512x16xbf16, #tpu.memory_space<vmem>>, vector<512x16xbf16>
    %16 = arith.extf %15 : vector<512x16xbf16> to vector<512x16xf32>
    %17 = vector.extract_strided_slice %0 {offsets = [0, 8], sizes = [1, 16], strides = [1, 1]} : vector<1x48xf32> to vector<1x16xf32>
    %18 = vector.broadcast %17 : vector<1x16xf32> to vector<512x16xf32>
    %19 = arith.mulf %16, %18 : vector<512x16xf32>
    %20 = vector.extract_strided_slice %1 {offsets = [0, 8], sizes = [1, 16], strides = [1, 1]} : vector<1x48xf32> to vector<1x16xf32>
    %21 = vector.broadcast %20 : vector<1x16xf32> to vector<512x16xf32>
    %22 = arith.addf %19, %21 : vector<512x16xf32>
    %cst_9 = arith.constant 0.000000e+00 : f32
    %23 = vector.broadcast %cst_9 : f32 to vector<512x16xf32>
    %24 = arith.maximumf %22, %23 : vector<512x16xf32>
    %25 = arith.truncf %24 : vector<512x16xf32> to vector<512x16xbf16>
    %c0_10 = arith.constant 0 : index
    %c8 = arith.constant 8 : index
    %26 = vector.load %arg7[%c0_10, %c8] : memref<512x48xbf16, #tpu.memory_space<vmem>>, vector<512x16xbf16>
    tpu.vector_store %arg7[%c0_10, %c8], %25 {strides = array<i32>} : memref<512x48xbf16, #tpu.memory_space<vmem>>, vector<512x16xbf16>,
    %c0_11 = arith.constant 0 : index
    %c0_12 = arith.constant 0 : index
    %27 = vector.load %arg3[%c0_11, %c0_12] : memref<512x16xbf16, #tpu.memory_space<vmem>>, vector<512x16xbf16>
    %28 = arith.extf %27 : vector<512x16xbf16> to vector<512x16xf32>
    %29 = vector.extract_strided_slice %0 {offsets = [0, 24], sizes = [1, 16], strides = [1, 1]} : vector<1x48xf32> to vector<1x16xf32>
    %30 = vector.broadcast %29 : vector<1x16xf32> to vector<512x16xf32>
    %31 = arith.mulf %28, %30 : vector<512x16xf32>
    %32 = vector.extract_strided_slice %1 {offsets = [0, 24], sizes = [1, 16], strides = [1, 1]} : vector<1x48xf32> to vector<1x16xf32>
    %33 = vector.broadcast %32 : vector<1x16xf32> to vector<512x16xf32>
    %34 = arith.addf %31, %33 : vector<512x16xf32>
    %cst_13 = arith.constant 0.000000e+00 : f32
    %35 = vector.broadcast %cst_13 : f32 to vector<512x16xf32>
    %36 = arith.maximumf %34, %35 : vector<512x16xf32>
    %37 = arith.truncf %36 : vector<512x16xf32> to vector<512x16xbf16>
    %c0_14 = arith.constant 0 : index
    %c24 = arith.constant 24 : index
    %38 = vector.load %arg7[%c0_14, %c24] : memref<512x48xbf16, #tpu.memory_space<vmem>>, vector<512x16xbf16>
    tpu.vector_store %arg7[%c0_14, %c24], %37 {strides = array<i32>} : memref<512x48xbf16, #tpu.memory_space<vmem>>, vector<512x16xbf16>,
    %c0_15 = arith.constant 0 : index
    %c0_16 = arith.constant 0 : index
    %39 = vector.load %arg4[%c0_15, %c0_16] : memref<512x8xbf16, #tpu.memory_space<vmem>>, vector<512x8xbf16>
    %40 = arith.extf %39 : vector<512x8xbf16> to vector<512x8xf32>
    %41 = vector.extract_strided_slice %0 {offsets = [0, 40], sizes = [1, 8], strides = [1, 1]} : vector<1x48xf32> to vector<1x8xf32>
    %42 = vector.broadcast %41 : vector<1x8xf32> to vector<512x8xf32>
    %43 = arith.mulf %40, %42 : vector<512x8xf32>
    %44 = vector.extract_strided_slice %1 {offsets = [0, 40], sizes = [1, 8], strides = [1, 1]} : vector<1x48xf32> to vector<1x8xf32>
    %45 = vector.broadcast %44 : vector<1x8xf32> to vector<512x8xf32>
    %46 = arith.addf %43, %45 : vector<512x8xf32>
    %cst_17 = arith.constant 0.000000e+00 : f32
    %47 = vector.broadcast %cst_17 : f32 to vector<512x8xf32>
    %48 = arith.maximumf %46, %47 : vector<512x8xf32>
    %49 = arith.truncf %48 : vector<512x8xf32> to vector<512x8xbf16>
    %c0_18 = arith.constant 0 : index
    %c40 = arith.constant 40 : index
    %50 = vector.load %arg7[%c0_18, %c40] : memref<512x48xbf16, #tpu.memory_space<vmem>>, vector<512x8xbf16>
    tpu.vector_store %arg7[%c0_18, %c40], %49 {strides = array<i32>} : memref<512x48xbf16, #tpu.memory_space<vmem>>, vector<512x8xbf16>,
    return
  }
  func.func @transform_0(%arg0: i32) -> (i32, i32) {
    %c0_i32 = arith.constant 0 : i32
    %c0_i32_0 = arith.constant 0 : i32
    return %arg0, %c0_i32 : i32, i32
  }
  func.func @transform_1(%arg0: i32) -> (i32, i32) {
    %c0_i32 = arith.constant 0 : i32
    %c0_i32_0 = arith.constant 0 : i32
    return %arg0, %c0_i32 : i32, i32
  }
  func.func @transform_2(%arg0: i32) -> (i32, i32) {
    %c0_i32 = arith.constant 0 : i32
    %c0_i32_0 = arith.constant 0 : i32
    return %arg0, %c0_i32 : i32, i32
  }
  func.func @transform_3(%arg0: i32) -> (i32, i32) {
    %c0_i32 = arith.constant 0 : i32
    %c0_i32_0 = arith.constant 0 : i32
    return %arg0, %c0_i32 : i32, i32
  }
  func.func @transform_4(%arg0: i32) -> (i32, i32) {
    %c0_i32 = arith.constant 0 : i32
    %c0_i32_0 = arith.constant 0 : i32
    %c0_i32_1 = arith.constant 0 : i32
    return %c0_i32, %c0_i32_0 : i32, i32
  }
  func.func @transform_5(%arg0: i32) -> (i32, i32) {
    %c0_i32 = arith.constant 0 : i32
    %c0_i32_0 = arith.constant 0 : i32
    %c0_i32_1 = arith.constant 0 : i32
    return %c0_i32, %c0_i32_0 : i32, i32
  }
  func.func @transform_6(%arg0: i32) -> (i32, i32) {
    %c0_i32 = arith.constant 0 : i32
    %c0_i32_0 = arith.constant 0 : i32
    return %arg0, %c0_i32 : i32, i32
  }
}

</mosaic_0001>

<bundles_post_ra>
// kernel: inception_module.9
= control target key start
LH: loop header
LB: loop body
LE: loop exit
PB: predicated region body
PF: predicated region fallthrough
CT: control target
= control target key end

     0   :  { %s1304_s15 = smov 0   ;;  %s1306_s16 = smov 0   ;;  %s1557_s0 = inlined_call_operand.vmem [shape: bf16[2,6,10,10,8], index: 0, kind: input, shape index: {}]   ;;  %s1558_s1 = inlined_call_operand.vmem [shape: bf16[9,24,16], index: 1, kind: input, shape index: {}]   ;;  %s1559_s2 = inlined_call_operand.vmem [shape: bf16[2,4,64,16], index: 2, kind: output, shape index: {0}]   ;;  %s1560_s3 = inlined_call_operand.vmem [shape: f32[2,4,1,16], index: 3, kind: output, shape index: {1}]   ;;  %s1561_s4 = inlined_call_operand.vmem [shape: f32[2,4,1,16], index: 4, kind: output, shape index: {2}]  }
   0x1   :  { %s1308_s17 = smov 0   ;;  %s1310_s18 = smov 0  }
   0x2   :  { %s1312_s19 = smov 0   ;;  %s1314_s20 = smov 0  }
   0x3   :  { %s1316_s21 = smov 0  }
   0x4 LB: > { %s27_s22 = sadd.s32 1, %s1262_s18  ;;  %s30_s23 = sadd.s32 1, %s1266_s19  ;;  %s1274_s21 = sphi %s1316_s21, %s15_s21   ;;  %s1270_s20 = sphi %s1314_s20, %s1569_s20   ;;  %s1266_s19 = sphi %s1312_s19, %s1568_s19   ;;  %s1262_s18 = sphi %s1310_s18, %s1567_s18   ;;  %s1258_s17 = sphi %s1308_s17, %s1566_s17   ;;  %s1254_s16 = sphi %s1306_s16, %s1565_s16   ;;  %s1250_s15 = sphi %s1304_s15, %s1564_s15  }
   0x5   : > { %p28_p0 = scmp.ge.s32.totalorder %s27_s22, 3  ;;  %p1054_p1 = scmp.ge.s32.totalorder %s1274_s21, 1 }
   0x6   : > { %p202_p2 = scmp.lt.s32.totalorder %s1274_s21, 25  ;;  %s34_s24 = sadd.s32 1, %s1270_s20 }
   0x7   : > { %s1571_s22 = smov (%p28_p0, %s27_s22), 0  ;;  %s1573_s23 = smov (!%p28_p0, %s30_s23), %s1266_s19 }
   0x8   : > { %p203_p3 = pnand %p1054_p1, %p202_p2  ;;  %p32_p4 = scmp.ge.s32.totalorder %s1573_s23, 4 }
   0x9   : > { %s251_s25 = sadd.s32 (!%p203_p3), %s1250_s15, %s1254_s16  ;;  %p252_p6 = scmp.lt.s32.totalorder (!%p203_p3), %s1258_s17, 1 }
   0xa   : > { %s1575_s23 = smov (%p32_p4, %s1573_s23), 0  ;;  %s1577_s24 = smov (!%p32_p4, %s34_s24), %s1270_s20 }
   0xb   : > { %p36_p5 = scmp.ge.s32.totalorder %s1577_s24, 2  ;;  %206 = sbr.rel (%p203_p3) target bundleno = 399 (0x18f), region = 28 }
   0xc   : > { %p254_p7 = scmp.lt.s32.totalorder (!%p203_p3), %s251_s25, 5  ;;  %p264_p8 = scmp.lt.s32.totalorder (!%p203_p3), %s1254_s16, 3 }
   0xd   : > { %s1579_s24 = smov (%p36_p5, %s1577_s24), 0  ;;  %p1061_p9 = scmp.ne.s32.totalorder (!%p203_p3), %s1250_s15, 0 }
   0xe   : > { %1562 = sst [smem:[#allocation3_spill]] %s1579_s24 }
  0x10   : > { %s1581_s17 = smov (!%p252_p6, %s1258_s17), 1  ;;  %s1583_s25 = smov (!%p254_p7, %s251_s25), 5 }
  0x11   : > { %s1160_s26 = smul.u32 120, %s1581_s17  ;;  %s1057_s28 = sshll.u32 %s1581_s17, 5 }
  0x12   : > { %s1159_s27 = smul.u32 20, %s1583_s25  ;;  %s1585_s16 = smov (!%p264_p8, %s1254_s16), 3 }
  0x13   : > { %s1059_s30 = sshll.u32 %s1581_s17, 2  ;;  %s1056_s6 = sshll.u32 %s1585_s16, 3 }
  0x14   : > { %s258_s29 = sadd.s32 %s1160_s26, %s1159_s27  ;;  %s268_s10 = sadd.s32 %s1057_s28, %s1056_s6 }
  0x15   : > { %s1055_s5 = sshll.u32 %s258_s29, 2  ;;  %s1058_s11 = sshll.u32 %s268_s10, 2 }
  0x16   : > { %s1357_s9 = scalar_lea.vmem %s1557_s0, %s1055_s5  ;;  %s1359_s12 = sadd.s32 %s1059_s30, %s1585_s16 }
  0x17   : > { %s1364_s25 = scalar_lea.vmem %s1559_s2, %s1058_s11  ;;  %s277_s27 = scalar_lea.vmem %s1560_s3, %s1359_s12 }
  0x18   : > { %s284_s5 = scalar_lea.vmem %s1561_s4, %s1359_s12  ;;  %289 = sbr.rel (%p1061_p9) target bundleno = 38 (0x26), region = 32 }
  0x1d   : > { %vm290_vm0 = vcmask 130048   ;;  %v1276_v0 = vmov 0.0  }
  0x1e   : > { %291 = vst.msk [vmem:[#allocation2] sm:$0xff] %vm290_vm0, %v1276_v0 }
  0x1f   : > { %292 = vst.msk [vmem:[#allocation2 + $0x8] sm:$0xff] %vm290_vm0, %v1276_v0 }
  0x20   : > { %293 = vst.msk [vmem:[#allocation2 + $0x10] sm:$0xff] %vm290_vm0, %v1276_v0 }
  0x21   : > { %294 = vst.msk [vmem:[#allocation2 + $0x18] sm:$0xff] %vm290_vm0, %v1276_v0 }
  0x22   : > { %295 = vst.msk [vmem:[#allocation2 + $0x20] sm:$0xff] %vm290_vm0, %v1276_v0 }
  0x23   : > { %296 = vst.msk [vmem:[#allocation2 + $0x28] sm:$0xff] %vm290_vm0, %v1276_v0 }
  0x24   : > { %297 = vst.msk [vmem:[#allocation2 + $0x30] sm:$0xff] %vm290_vm0, %v1276_v0 }
  0x25   : > { %298 = vst.msk [vmem:[#allocation2 + $0x38] sm:$0xff] %vm290_vm0, %v1276_v0 }
  0x26 PF: > { %v1072_v1 = vld [vmem:[%s1357_s9 + $0x10] sm:$0xf]  ;;  %v1141_v2 = vld [vmem:[%s1357_s9 + $0x10] sm:$0x10]  ;;  %v1076_v4 = vld [vmem:[%s1357_s9 + $0x18] sm:$0xf] }
  0x27   : > { %v1073_v3 = vor.u32 %v1141_v2, %v1072_v1  ;;  %v1142_v5 = vld [vmem:[%s1357_s9 + $0x18] sm:$0x10]  ;;  %v1080_v7 = vld [vmem:[%s1357_s9 + $0x20] sm:$0xf]  ;;  %v1143_v8 = vld [vmem:[%s1357_s9 + $0x20] sm:$0x10] }
  0x28   : > { %v1077_v6 = vor.u32 %v1142_v5, %v1076_v4  ;;  %v1084_v12 = vld [vmem:[%s1357_s9 + $0x28] sm:$0xf]  ;;  %v1144_v13 = vld [vmem:[%s1357_s9 + $0x28] sm:$0x10]  ;;  %s1277_s16 = smov 16   ;;  %v1081_v16 = vor.u32 %v1143_v8, %v1080_v7  ;;  %s1278_s24 = smov 8  }
  0x29   : > { %v441_v9 = vrot.slane %v1073_v3, 1  ;;  %v382_v10 = vshrl.u32 %v1073_v3, 16  ;;  %v384_v11 = vshll.u32 %v1073_v3, 16  ;;  %v1085_v18 = vor.u32 %v1144_v13, %v1084_v12  ;;  %v1064_v27 = vld [vmem:[%s1357_s9] sm:$0xf]  ;;  %s1149_s28 = smul.u32 36, %s1250_s15 }
  0x2a   : > { %v391_v15 = vshll.u32 %v1077_v6, 16  ;;  %v396_v19 = vshrl.u32 %v1081_v16, 16  ;;  %v398_v20 = vshll.u32 %v1081_v16, 16  ;;  %v442_v21 = vrot.slane %v1077_v6, 1  ;;  %v1139_v28 = vld [vmem:[%s1357_s9] sm:$0x10] }
  0x2b   : > { %451 = vrot.lane.b32.xlu1 %v441_v9, %s1277_s16  ;;  %v386_v14 = vrot.slane %v384_v11, 1  ;;  %v389_v22 = vshrl.u32 %v1077_v6, 16  ;;  %v405_v25 = vshll.u32 %v1085_v18, 16  ;;  %v403_v30 = vshrl.u32 %v1085_v18, 16  ;;  %v1068_v32 = vld [vmem:[%s1357_s9 + $0x8] sm:$0xf]  ;;  %s508_s7 = scalar_lea.vmem %s1558_s1, %s1149_s28 }
  0x2c   : > { %v393_v23 = vrot.slane %v391_v15, 1  ;;  %v400_v24 = vrot.slane %v398_v20, 1  ;;  %v1140_v33 = vld [vmem:[%s1357_s9 + $0x8] sm:$0x10]  ;;  %v1065_v34 = vor.u32 %v1139_v28, %v1064_v27  ;;  %v444_v35 = vrot.slane %v1085_v18, 1  ;;  %p1136_p10 = scmp.ne.s32.totalorder %s1250_s15, 2 }
  0x2d   : > { %v387_v17 = vor.u32 %v386_v14, %v382_v10  ;;  %v407_v31 = vrot.slane %v405_v25, 1  ;;  %v1069_v36 = vor.u32 %v1140_v33, %v1068_v32  ;;  %v1092_v39 = vld [vmem:[%s1357_s9 + $0x38] sm:$0xf]  ;;  %v1146_v40 = vld [vmem:[%s1357_s9 + $0x38] sm:$0x10]  ;;  %v443_v41 = vrot.slane %v1081_v16, 1 }
  0x2e   : > { %v401_v26 = vor.u32 %v400_v24, %v396_v19  ;;  %v394_v29 = vor.u32 %v393_v23, %v389_v22  ;;  %v370_v38 = vshll.u32 %v1065_v34, 16  ;;  %v1088_v42 = vld [vmem:[%s1357_s9 + $0x30] sm:$0xf]  ;;  %v1145_v44 = vld [vmem:[%s1357_s9 + $0x30] sm:$0x10]  ;;  %v1093_v45 = vor.u32 %v1146_v40, %v1092_v39  ;;  %v1150_v23 = vld [vmem:[%s508_s7] sm:$0xff] }
  0x2f   : > { %427 = vrot.lane.b32.xlu0 %v387_v17, %s1278_s24  ;;  %v408_v37 = vor.u32 %v407_v31, %v403_v30  ;;  %v377_v43 = vshll.u32 %v1069_v36, 16  ;;  %v368_v46 = vshrl.u32 %v1065_v34, 16  ;;  %v439_v48 = vrot.slane %v1065_v34, 1  ;;  %v1106_v54 = vld [vmem:[%s1357_s9 + $0x40] sm:$0xf]  ;;  %v1151_v30 = vld [vmem:[%s508_s7 + $0xc] sm:$0xff] }
  0x30   : > { %431 = vrot.lane.b32.xlu2 %v401_v26, %s1278_s24  ;;  %v372_v47 = vrot.slane %v370_v38, 1  ;;  %v1089_v49 = vor.u32 %v1145_v44, %v1088_v42  ;;  %v375_v50 = vshrl.u32 %v1069_v36, 16  ;;  %v419_v52 = vshll.u32 %v1093_v45, 16  ;;  %v1147_v55 = vld [vmem:[%s1357_s9 + $0x40] sm:$0x10]  ;;  %v1152_v31 = vld [vmem:[%s508_s7 + $0x18] sm:$0xff] }
  0x31   : > { %v379_v51 = vrot.slane %v377_v43, 1  ;;  %v417_v58 = vshrl.u32 %v1093_v45, 16  ;;  %v1107_v60 = vor.u32 %v1147_v55, %v1106_v54  ;;  %v440_v1 = vrot.slane %v1069_v36, 1  ;;  %v1122_v2 = vld [vmem:[%s1357_s9 + $0x48] sm:$0xf] }
  0x32   : > { %v373_v53 = vor.u32 %v372_v47, %v368_v46  ;;  %v412_v56 = vshll.u32 %v1089_v49, 16  ;;  %v421_v59 = vrot.slane %v419_v52, 1  ;;  %v410_v61 = vshrl.u32 %v1089_v49, 16  ;;  %v1148_v3 = vld [vmem:[%s1357_s9 + $0x48] sm:$0x10] }
  0x33   : > { %453 = vrot.lane.b32.xlu1 %v442_v21, %s1277_s16  ;;  %v380_v57 = vor.u32 %v379_v51, %v375_v50  ;;  %v603_v0 = vshll.u32 %v1107_v60, 16  ;;  %v601_v5 = vshrl.u32 %v1107_v60, 16  ;;  %v1123_v7 = vor.u32 %v1148_v3, %v1122_v2  ;;  %v511_v17 = vld [vmem:[%s508_s7 + $0x8] sm:$0xf]  ;;  %v1111_v21 = vld [vmem:[%s508_s7 + $0x14] sm:$0xf] }
  0x34   : > { %v414_v62 = vrot.slane %v412_v56, 1  ;;  %v422_v63 = vor.u32 %v421_v59, %v417_v58  ;;  %v445_v9 = vrot.slane %v1089_v49, 1  ;;  %v446_v11 = vrot.slane %v1093_v45, 1  ;;  %v1127_v22 = vld [vmem:[%s508_s7 + $0x20] sm:$0xf] }
  0x35   : > { %v605_v6 = vrot.slane %v603_v0, 1  ;;  %v699_v10 = vshll.u32 %v1123_v7, 16  ;;  %v697_v12 = vshrl.u32 %v1123_v7, 16  ;;  %v705_v14 = vrot.slane %v1123_v7, 1  ;;  %v303_v36 = vld [vmem:[%s1357_s9 + $0x10] sm:$0xf] }
  0x36   : > { %v415_v4 = vor.u32 %v414_v62, %v410_v61  ;;  %v609_v16 = vrot.slane %v1107_v60, 1  ;;  %v537_v18 = vunpack.c.l.b16 %v511_v17  ;;  %vm554_vm1 = vcmask 1043456   ;;  %v305_v39 = vld [vmem:[%s1357_s9 + $0x18] sm:$0xf]  ;;  %v309_v40 = vld [vmem:[%s1357_s9 + $0x28] sm:$0xf] }
  0x37   : > { %429 = vrot.lane.b32.xlu0 %v394_v29, %s1278_s24  ;;  %v606_v8 = vor.u32 %v605_v6, %v601_v5  ;;  %v701_v13 = vrot.slane %v699_v10, 1  ;;  %v635_v24 = vunpack.c.l.b16 %v1111_v21  ;;  %v728_v25 = vunpack.c.l.b16 %v1127_v22  ;;  %v307_v50 = vld [vmem:[%s1357_s9 + $0x20] sm:$0xf]  ;;  %v301_v0 = vld [vmem:[%s1357_s9 + $0x8] sm:$0xf] }
  0x38   : > { %433 = vrot.lane.b32.xlu2 %v408_v37, %s1278_s24  ;;  %v539_v19 = vpack.c.b16 %v537_v18, %v537_v18  ;;  %vm463_vm2 = vcmask 64512   ;;  %vm488_vm3 = vcmask 130048   ;;  %vm541_vm4 = vcmask 195584   ;;  %v299_v58 = vld [vmem:[%s1357_s9] sm:$0xf] }
  0x39   : > { %v702_v15 = vor.u32 %v701_v13, %v697_v12  ;;  %v637_v26 = vpack.c.b16 %v635_v24, %v635_v24  ;;  %v730_v27 = vpack.c.b16 %v728_v25, %v728_v25  ;;  %v315_v22 = vld [vmem:[%s1357_s9 + $0x40] sm:$0xf] }
  0x3a   : > { %v556_v20 = vsel %vm554_vm1, %v539_v19, 0 }
  0x3b   : > { %457 = vrot.lane.b32.xlu1 %v444_v35, %s1277_s16  ;;  %1153 = vmatpush.bf16.msra.mxu3 %v556_v20  ;;  %v652_v28 = vsel %vm554_vm1, %v637_v26, 0  ;;  %v736_v29 = vsel %vm554_vm1, %v730_v27, 0  ;;  %v317_v26 = vld [vmem:[%s1357_s9 + $0x48] sm:$0xf] }
  0x3c   : > { %564 = vmatpush.bf16.msra.mxu0 %v556_v20  ;;  %1155 = vmatpush.bf16.msra.mxu1 %v652_v28 }
  0x3d   : > { %1157 = vmatpush.bf16.msra.mxu2 %v736_v29 }
  0x3f   : > { %455 = vrot.lane.b32.xlu0 %v443_v41, %s1277_s16  ;;  %1154 = vmatpush.bf16.msra.mxu3 %v1150_v23 }
  0x40   : > { %423 = vrot.lane.b32.xlu2 %v373_v53, %s1278_s24  ;;  %565 = vmatpush.bf16.msra.mxu0 %v1150_v23 }
  0x41   : > { %1156 = vmatpush.bf16.msra.mxu1 %v1151_v30  ;;  %1158 = vmatpush.bf16.msra.mxu2 %v1152_v31 }
  0x43   : > { %447 = vrot.lane.b32.xlu1 %v439_v48, %s1277_s16 }
  0x44   : > { %660 = vmatpush.bf16.msrb.mxu0 %v652_v28 }
  0x47   : > { %425 = vrot.lane.b32.xlu0 %v380_v57, %s1278_s24 }
  0x48   : > { %449 = vrot.lane.b32.xlu2 %v440_v1, %s1277_s16  ;;  %661 = vmatpush.bf16.msrb.mxu0 %v1151_v30 }
  0x4b   : > { %437 = vrot.lane.b32.xlu1 %v422_v63, %s1278_s24 }
  0x4f   : > { %435 = vrot.lane.b32.xlu0 %v415_v4, %s1278_s24 }
  0x50   : > { %459 = vrot.lane.b32.xlu2 %v445_v9, %s1277_s16 }
  0x53   : > { %607 = vrot.lane.b32.xlu1 %v606_v8, %s1278_s24  ;;  %v311_v8 = vld [vmem:[%s1357_s9 + $0x30] sm:$0xf] }
  0x57   : > { %461 = vrot.lane.b32.xlu0 %v446_v11, %s1277_s16 }
  0x58   : > { %703 = vrot.lane.b32.xlu2 %v702_v15, %s1278_s24 }
  0x5b   : > { %706 = vrot.lane.b32.xlu1 %v705_v14, %s1277_s16  ;;  %v313_v14 = vld [vmem:[%s1357_s9 + $0x38] sm:$0xf] }
  0x5f   : > { %610 = vrot.lane.b32.xlu0 %v609_v16, %s1277_s16 }
  0x8a   : > { %v432_v32 = vpop.permute.xlu2 %431 }
  0x8b   : > { %v478_v53 = vsel %vm463_vm2, %v307_v50, %v432_v32 }
  0x92   : > { %v434_v35 = vpop.permute.xlu2 %433 }
  0x93   : > { %v481_v45 = vsel %vm463_vm2, %v309_v40, %v434_v35 }
  0x9a   : > { %v424_v48 = vpop.permute.xlu2 %423 }
  0x9b   : > { %v466_v61 = vsel %vm463_vm2, %v299_v58, %v424_v48 }
  0x9d   : > { %v452_v33 = vpop.permute.xlu1 %451 }
  0xa1   : > { %v428_v34 = vpop.permute.xlu0 %427 }
  0xa2   : > { %v472_v38 = vsel %vm463_vm2, %v303_v36, %v428_v34  ;;  %v450_v63 = vpop.permute.xlu2 %449 }
  0xa3   : > { %v494_v41 = vsel %vm488_vm3, %v472_v38, %v452_v33 }
  0xa4   : > { %v522_v46 = vunpack.c.l.b16 %v494_v41 }
  0xa5   : > { %v454_v37 = vpop.permute.xlu1 %453 }
  0xa9   : > { %v430_v42 = vpop.permute.xlu0 %429 }
  0xaa   : > { %v475_v43 = vsel %vm463_vm2, %v305_v39, %v430_v42  ;;  %v460_v10 = vpop.permute.xlu2 %459 }
  0xab   : > { %v496_v44 = vsel %vm488_vm3, %v475_v43, %v454_v37  ;;  %v321_v37 = vld [vmem:[#allocation2 + $0x10] sm:$0xff]  ;;  %v322_v43 = vld [vmem:[#allocation2 + $0x18] sm:$0xff] }
  0xac   : > { %v523_v47 = vunpack.c.l.b16 %v496_v44 }
  0xad   : > { %v458_v49 = vpop.permute.xlu1 %457 }
  0xae   : > { %v500_v51 = vsel %vm488_vm3, %v481_v45, %v458_v49  ;;  %v529_v52 = vpack.c.b16 %v523_v47, %v522_v46 }
  0xaf   : > { %v525_v54 = vunpack.c.l.b16 %v500_v51 }
  0xb0   : > { %1101 = vmatmul.msk.bf16.vlgmr.msra.gmra.mxu3 %vm541_vm4, %v529_v52 }
  0xb1   : > { %v456_v55 = vpop.permute.xlu0 %455 }
  0xb2   : > { %v498_v56 = vsel %vm488_vm3, %v478_v53, %v456_v55  ;;  %v704_v27 = vpop.permute.xlu2 %703  ;;  %v323_v55 = vld [vmem:[#allocation2 + $0x20] sm:$0xff] }
  0xb3   : > { %v524_v57 = vunpack.c.l.b16 %v498_v56 }
  0xb5   : > { %v627_v59 = vpack.c.b16 %v524_v57, %v523_v47  ;;  %v530_v60 = vpack.c.b16 %v525_v54, %v524_v57  ;;  %v448_v62 = vpop.permute.xlu1 %447 }
  0xb6   : > { %v490_v1 = vsel %vm488_vm3, %v466_v61, %v448_v62 }
  0xb7   : > { %1117 = vmatmul.msk.bf16.vlgmr.msra.gmra.mxu1 %vm541_vm4, %v627_v59  ;;  %1133 = vmatmul.msk.bf16.vlgmr.msra.gmra.mxu2 %vm541_vm4, %v530_v60  ;;  %v520_v5 = vunpack.c.l.b16 %v490_v1 }
  0xb9   : > { %v426_v2 = vpop.permute.xlu0 %425 }
  0xba   : > { %v469_v3 = vsel %vm463_vm2, %v301_v0, %v426_v2  ;;  %v319_v2 = vld [vmem:[#allocation2] sm:$0xff] }
  0xbb   : > { %v492_v4 = vsel %vm488_vm3, %v469_v3, %v450_v63 }
  0xbc   : > { %v521_v6 = vunpack.c.l.b16 %v492_v4 }
  0xbd   : > { %v438_v9 = vpop.permute.xlu1 %437 }
  0xbe   : > { %v528_v7 = vpack.c.b16 %v521_v6, %v520_v5  ;;  %v487_v17 = vsel %vm463_vm2, %v313_v14, %v438_v9  ;;  %v626_v24 = vpack.c.b16 %v522_v46, %v521_v6  ;;  %v325_v6 = vld [vmem:[#allocation2 + $0x30] sm:$0xff]  ;;  %v320_v14 = vld [vmem:[#allocation2 + $0x8] sm:$0xff] }
  0xc0   : > { %1100 = vmatmul.msk.bf16.vlgmr.msra.gmra.mxu0 %vm541_vm4, %v528_v7  ;;  %1102 = vmatmul.msk.bf16.gmra.mxu3 %vm541_vm4, %v530_v60  ;;  %v324_v60 = vld [vmem:[#allocation2 + $0x28] sm:$0xff] }
  0xc1   : > { %v436_v11 = vpop.permute.xlu0 %435  ;;  %744 = vmatpush.bf16.msra.mxu0 %v736_v29 }
  0xc2   : > { %v484_v12 = vsel %vm463_vm2, %v311_v8, %v436_v11 }
  0xc3   : > { %v502_v13 = vsel %vm488_vm3, %v484_v12, %v460_v10 }
  0xc4   : > { %v526_v15 = vunpack.c.l.b16 %v502_v13 }
  0xc5   : > { %745 = vmatpush.bf16.msra.mxu0 %v1152_v31  ;;  %v608_v19 = vpop.permute.xlu1 %607  ;;  %v710_v31 = vsel %vm463_vm2, %v317_v26, %v704_v27 }
  0xc6   : > { %v628_v16 = vpack.c.b16 %v526_v15, %v525_v54  ;;  %v614_v25 = vsel %vm463_vm2, %v315_v22, %v608_v19 }
  0xc8   : > { %1118 = vmatmul.msk.bf16.gmra.mxu1 %vm541_vm4, %v628_v16 }
  0xc9   : > { %v462_v18 = vpop.permute.xlu0 %461 }
  0xca   : > { %v504_v20 = vsel %vm488_vm3, %v487_v17, %v462_v18  ;;  %v326_v17 = vld [vmem:[#allocation2 + $0x38] sm:$0xff] }
  0xcb   : > { %v527_v21 = vunpack.c.l.b16 %v504_v20 }
  0xcd   : > { %v531_v23 = vpack.c.b16 %v527_v21, %v526_v15  ;;  %v707_v32 = vpop.permute.xlu1 %706 }
  0xce   : > { %v712_v34 = vsel %vm488_vm3, %v710_v31, %v707_v32 }
  0xcf   : > { %1134 = vmatmul.msk.bf16.gmra.mxu2 %vm541_vm4, %v531_v23  ;;  %v721_v35 = vunpack.c.l.b16 %v712_v34 }
  0xd0   : > { %1103 = vmatmul.msk.bf16.gmra.mxu3 %vm541_vm4, %v531_v23  ;;  %1116 = vmatmul.msk.bf16.vlgmr.msrb.gmra.mxu0 %vm541_vm4, %v626_v24 }
  0xd1   : > { %v611_v28 = vpop.permute.xlu0 %610 }
  0xd2   : > { %v616_v29 = vsel %vm488_vm3, %v614_v25, %v611_v28 }
  0xd3   : > { %v625_v30 = vunpack.c.l.b16 %v616_v29 }
  0xd5   : > { %v629_v33 = vpack.c.b16 %v625_v30, %v527_v21  ;;  %v722_v36 = vpack.c.b16 %v721_v35, %v625_v30 }
  0xd8   : > { %1119 = vmatmul.msk.bf16.gmra.mxu1 %vm541_vm4, %v629_v33 }
  0xdf   : > { %1135 = vmatmul.msk.bf16.gmra.mxu2 %vm541_vm4, %v722_v36 }
  0xe0   : > { %1132 = vmatmul.msk.bf16.vlgmr.msra.gmra.mxu0 %vm541_vm4, %v529_v52 }
 0x133   : > { %v572_v38 = vpop.f32.mrf.mxu3 }
 0x134   : > { %v668_v39 = vpop.f32.mrf.mxu1  ;;  %v589_v40 = vadd.f32 %v572_v38, %v321_v37 }
 0x136   : > { %v685_v41 = vadd.f32 %v668_v39, %v589_v40 }
 0x13a   : > { %v752_v42 = vpop.f32.mrf.mxu2 }
 0x13b   : > { %v1461_v44 = vadd.f32 %v752_v42, %v685_v41  ;;  %v574_v45 = vpop.f32.mrf.mxu3 }
 0x13c   : > { %v590_v46 = vadd.f32 %v574_v45, %v322_v43  ;;  %v670_v48 = vpop.f32.mrf.mxu1 }
 0x13d   : > { %777 = vst.msk [vmem:[#allocation2 + $0x10] sm:$0xff] %vm488_vm3, %v1461_v44  ;;  %v567_v47 = vpop.f32.mrf.mxu0 }
 0x13e   : > { %v686_v49 = vadd.f32 %v670_v48, %v590_v46  ;;  %v587_v5 = vadd.f32 %v567_v47, %v319_v2 }
 0x142   : > { %v754_v50 = vpop.f32.mrf.mxu2 }
 0x143   : > { %v1465_v51 = vadd.f32 %v754_v50, %v686_v49  ;;  %v577_v52 = vpop.f32.mrf.mxu3 }
 0x144   : > { %v591_v56 = vadd.f32 %v577_v52, %v323_v55 }
 0x145   : > { %778 = vst.msk [vmem:[#allocation2 + $0x18] sm:$0xff] %vm488_vm3, %v1465_v51  ;;  %v569_v53 = vpop.f32.mrf.mxu0  ;;  %v673_v54 = vpop.f32.mrf.mxu1 }
 0x146   : > { %v687_v59 = vadd.f32 %v673_v54, %v591_v56  ;;  %v588_v16 = vadd.f32 %v569_v53, %v320_v14 }
 0x14b   : > { %v579_v58 = vpop.f32.mrf.mxu3 }
 0x14c   : > { %v592_v0 = vadd.f32 %v579_v58, %v324_v60 }
 0x14d   : > { %v663_v57 = vpop.f32.mrf.mxu0  ;;  %v675_v61 = vpop.f32.mrf.mxu1 }
 0x14e   : > { %v688_v4 = vadd.f32 %v675_v61, %v592_v0  ;;  %v683_v9 = vadd.f32 %v663_v57, %v587_v5 }
 0x152   : > { %v757_v62 = vpop.f32.mrf.mxu2 }
 0x153   : > { %v771_v63 = vadd.f32 %v757_v62, %v687_v59  ;;  %v582_v3 = vpop.f32.mrf.mxu3 }
 0x154   : > { %v593_v11 = vadd.f32 %v582_v3, %v325_v6 }
 0x155   : > { %779 = vst.msk [vmem:[#allocation2 + $0x20] sm:$0xff] %vm488_vm3, %v771_v63  ;;  %v665_v1 = vpop.f32.mrf.mxu0  ;;  %v678_v10 = vpop.f32.mrf.mxu1 }
 0x156   : > { %v689_v15 = vadd.f32 %v678_v10, %v593_v11  ;;  %v684_v21 = vadd.f32 %v665_v1, %v588_v16 }
 0x15a   : > { %v759_v7 = vpop.f32.mrf.mxu2 }
 0x15b   : > { %v1470_v8 = vadd.f32 %v759_v7, %v688_v4  ;;  %v584_v18 = vpop.f32.mrf.mxu3 }
 0x15c   : > { %v594_v22 = vadd.f32 %v584_v18, %v326_v17 }
 0x15d   : > { %780 = vst.msk [vmem:[#allocation2 + $0x28] sm:$0xff] %vm488_vm3, %v1470_v8  ;;  %v747_v12 = vpop.f32.mrf.mxu0  ;;  %v680_v24 = vpop.f32.mrf.mxu1 }
 0x15e   : > { %v767_v13 = vadd.f32 %v747_v12, %v683_v9  ;;  %v690_v26 = vadd.f32 %v680_v24, %v594_v22 }
 0x160   : > { %775 = vst.msk [vmem:[#allocation2] sm:$0xff] %vm488_vm3, %v767_v13 }
 0x162   : > { %v762_v19 = vpop.f32.mrf.mxu2 }
 0x163   : > { %v773_v20 = vadd.f32 %v762_v19, %v689_v15 }
 0x165   : > { %781 = vst.msk [vmem:[#allocation2 + $0x30] sm:$0xff] %vm488_vm3, %v773_v20  ;;  %v749_v23 = vpop.f32.mrf.mxu0 }
 0x166   : > { %v768_v25 = vadd.f32 %v749_v23, %v684_v21 }
 0x168   : > { %776 = vst.msk [vmem:[#allocation2 + $0x8] sm:$0xff] %vm488_vm3, %v768_v25 }
 0x169   : > { %786 = sbr.rel (%p1136_p10) target bundleno = 399 (0x18f), region = 36 }
 0x16a   : > { %v764_v27 = vpop.f32.mrf.mxu2 }
 0x16b   : > { %v774_v28 = vadd.f32 %v764_v27, %v690_v26 }
 0x16d   : > { %782 = vst.msk [vmem:[#allocation2 + $0x38] sm:$0xff] %vm488_vm3, %v774_v28 }
 0x16e   : > { %v787_v29 = vpack.c.bf16 %v767_v13, %v767_v13  ;;  %vm795_vm5 = vcmask 125952   ;;  %v788_v30 = vpack.c.bf16 %v768_v25, %v768_v25  ;;  %v789_v31 = vpack.c.bf16 %v1461_v44, %v1461_v44 }
 0x16f   : > { %v790_v32 = vpack.c.bf16 %v1465_v51, %v1465_v51  ;;  %v791_v33 = vpack.c.bf16 %v771_v63, %v771_v63  ;;  %v804_v34 = vsel %vm488_vm3, %v767_v13, 0.0  ;;  %v805_v35 = vsel %vm488_vm3, %v768_v25, 0.0 }
 0x170   : > { %796 = vst.msk [vmem:[%s1364_s25] sm:$0xf] %vm795_vm5, %v787_v29  ;;  %v807_v36 = vsel %vm488_vm3, %v1461_v44, 0.0  ;;  %v792_v37 = vpack.c.bf16 %v1470_v8, %v1470_v8  ;;  %v806_v38 = vadd.f32 %v805_v35, %v804_v34  ;;  %v793_v39 = vpack.c.bf16 %v773_v20, %v773_v20 }
 0x171   : > { %797 = vst.msk [vmem:[%s1364_s25 + $0x4] sm:$0xf] %vm795_vm5, %v788_v30  ;;  %v794_v40 = vpack.c.bf16 %v774_v28, %v774_v28  ;;  %v809_v41 = vsel %vm488_vm3, %v1465_v51, 0.0  ;;  %v827_v42 = vmul.f32 %v767_v13, %v767_v13  ;;  %v828_v45 = vmul.f32 %v768_v25, %v768_v25 }
 0x172   : > { %798 = vst.msk [vmem:[%s1364_s25 + $0x8] sm:$0xf] %vm795_vm5, %v789_v31  ;;  %v808_v43 = vadd.f32 %v807_v36, %v806_v38  ;;  %v829_v46 = vmul.f32 %v1461_v44, %v1461_v44  ;;  %v830_v47 = vmul.f32 %v1465_v51, %v1465_v51  ;;  %v811_v48 = vsel %vm488_vm3, %v771_v63, 0.0 }
 0x173   : > { %799 = vst.msk [vmem:[%s1364_s25 + $0xc] sm:$0xf] %vm795_vm5, %v790_v32  ;;  %v831_v49 = vmul.f32 %v771_v63, %v771_v63  ;;  %v835_v52 = vsel %vm488_vm3, %v827_v42, 0.0  ;;  %v836_v53 = vsel %vm488_vm3, %v828_v45, 0.0  ;;  %v813_v44 = vsel %vm488_vm3, %v1470_v8, 0.0 }
 0x174   : > { %800 = vst.msk [vmem:[%s1364_s25 + $0x10] sm:$0xf] %vm795_vm5, %v791_v33  ;;  %v810_v50 = vadd.f32 %v809_v41, %v808_v43  ;;  %v838_v54 = vsel %vm488_vm3, %v829_v46, 0.0  ;;  %v837_v51 = vadd.f32 %v836_v53, %v835_v52  ;;  %v832_v56 = vmul.f32 %v1470_v8, %v1470_v8 }
 0x175   : > { %801 = vst.msk [vmem:[%s1364_s25 + $0x14] sm:$0xf] %vm795_vm5, %v792_v37  ;;  %v840_v57 = vsel %vm488_vm3, %v830_v47, 0.0  ;;  %v815_v58 = vsel %vm488_vm3, %v773_v20, 0.0  ;;  %v833_v61 = vmul.f32 %v773_v20, %v773_v20  ;;  %v842_v62 = vsel %vm488_vm3, %v831_v49, 0.0 }
 0x176   : > { %802 = vst.msk [vmem:[%s1364_s25 + $0x18] sm:$0xf] %vm795_vm5, %v793_v39  ;;  %v812_v55 = vadd.f32 %v811_v48, %v810_v50  ;;  %v839_v59 = vadd.f32 %v838_v54, %v837_v51  ;;  %v817_v63 = vsel %vm488_vm3, %v774_v28, 0.0  ;;  %v834_v2 = vmul.f32 %v774_v28, %v774_v28 }
 0x177   : > { %803 = vst.msk [vmem:[%s1364_s25 + $0x1c] sm:$0xf] %vm795_vm5, %v794_v40  ;;  %v844_v3 = vsel %vm488_vm3, %v832_v56, 0.0  ;;  %v846_v6 = vsel %vm488_vm3, %v833_v61, 0.0  ;;  %vm825_vm6 = vcmask 122880  }
 0x178   : > { %v814_v60 = vadd.f32 %v813_v44, %v812_v55  ;;  %v841_v0 = vadd.f32 %v840_v57, %v839_v59  ;;  %v848_v9 = vsel %vm488_vm3, %v834_v2, 0.0 }
 0x17a   : > { %v816_v1 = vadd.f32 %v815_v58, %v814_v60  ;;  %v843_v4 = vadd.f32 %v842_v62, %v841_v0 }
 0x17c   : > { %v818_v5 = vadd.f32 %v817_v63, %v816_v1  ;;  %v845_v7 = vadd.f32 %v844_v3, %v843_v4 }
 0x17e   : > { %v819_v8 = vrot.slane %v818_v5, 4  ;;  %v847_v10 = vadd.f32 %v846_v6, %v845_v7 }
 0x180   : > { %v820_v11 = vadd.f32 %v819_v8, %v818_v5  ;;  %v849_v12 = vadd.f32 %v848_v9, %v847_v10 }
 0x182   : > { %v821_v13 = vrot.slane %v820_v11, 2  ;;  %v850_v14 = vrot.slane %v849_v12, 4 }
 0x184   : > { %v822_v15 = vadd.f32 %v821_v13, %v820_v11  ;;  %v851_v16 = vadd.f32 %v850_v14, %v849_v12 }
 0x186   : > { %v823_v17 = vrot.slane %v822_v15, 1  ;;  %v852_v18 = vrot.slane %v851_v16, 2 }
 0x188   : > { %v824_v19 = vadd.f32 %v823_v17, %v822_v15  ;;  %v853_v20 = vadd.f32 %v852_v18, %v851_v16 }
 0x18a   : > { %826 = vst.msk [vmem:[%s277_s27] sm:$0x1] %vm825_vm6, %v824_v19  ;;  %v854_v21 = vrot.slane %v853_v20, 1 }
 0x18c   : > { %v855_v22 = vadd.f32 %v854_v21, %v853_v20 }
 0x18e   : > { %856 = vst.msk [vmem:[%s284_s5] sm:$0x1] %vm825_vm6, %v855_v22 }
 0x18f PF: > { %s15_s21 = sadd.s32 1, %s1274_s21   ;;  %s1563_s11 = sld [smem:[#allocation3_spill]] }
 0x190   : > { %p12_p11 = scmp.ge.s32.totalorder %s15_s21, 26   ;;  %s1564_s15 = smov %s1262_s18 }
 0x191   : > { %s1565_s16 = smov %s1266_s19  ;;  %s1566_s17 = smov %s1270_s20 }
 0x192   : > { %s1567_s18 = smov %s1571_s22  ;;  %s1568_s19 = smov %s1575_s23 }
 0x193   :  { %14 = sbr.rel (!%p12_p11) target bundleno = 4 (0x4), region = 93 }
 0x195   : > { %s1569_s20 = smov %s1563_s11 }

// kernel: inception_module.7
= control target key start
LH: loop header
LB: loop body
LE: loop exit
PB: predicated region body
PF: predicated region fallthrough
CT: control target
= control target key end

     0   :  { %vm247_vm0 = vcmask 130048   ;;  %vm577_vm1 = vcmask 191488   ;;  %vm642_vm2 = vcmask 195584   ;;  %vm776_vm3 = vcmask 188416   ;;  %s2118_s1 = inlined_call_operand.vmem [shape: bf16[16,24], index: 1, kind: input, shape index: {}]   ;;  %s2119_s0 = inlined_call_operand.vmem [shape: bf16[512,16], index: 0, kind: input, shape index: {}]   ;;  %s2120_s2 = inlined_call_operand.vmem [shape: bf16[512,24], index: 2, kind: output, shape index: {0}]   ;;  %s2121_s3 = inlined_call_operand.vmem [shape: f32[1,1,24], index: 3, kind: output, shape index: {1}]   ;;  %s2122_s4 = inlined_call_operand.vmem [shape: f32[1,1,24], index: 4, kind: output, shape index: {2}]  }
   0x1   :  { %v1184_v0 = vld [vmem:[%s2118_s1] sm:$0xff]  ;;  %v1153_v3 = vld [vmem:[%s2119_s0 + $0x8] sm:$0xff]  ;;  %v1154_v6 = vld [vmem:[%s2119_s0 + $0x10] sm:$0xff] }
   0x2   :  { %v1152_v1 = vld [vmem:[%s2119_s0] sm:$0xff]  ;;  %351 = vmatpush.bf16.msra.mxu0 %v1184_v0  ;;  %1185 = vmatpush.bf16.msra.mxu1 %v1184_v0  ;;  %v1161_v4 = vld [vmem:[%s2119_s0 + $0x48] sm:$0xff]  ;;  %v1162_v7 = vld [vmem:[%s2119_s0 + $0x50] sm:$0xff] }
   0x3   :  { %v1160_v2 = vld [vmem:[%s2119_s0 + $0x40] sm:$0xff]  ;;  %1186 = vmatpush.bf16.msra.mxu2 %v1184_v0  ;;  %1187 = vmatpush.bf16.msra.mxu3 %v1184_v0  ;;  %v1169_v8 = vld [vmem:[%s2119_s0 + $0x88] sm:$0xff]  ;;  %v1155_v9 = vld [vmem:[%s2119_s0 + $0x18] sm:$0xff] }
   0x4   :  { %v1168_v5 = vld [vmem:[%s2119_s0 + $0x80] sm:$0xff]  ;;  %v1163_v10 = vld [vmem:[%s2119_s0 + $0x58] sm:$0xff]  ;;  %v1170_v11 = vld [vmem:[%s2119_s0 + $0x90] sm:$0xff] }
   0x5   :  { %1120 = vmatmul.msk.bf16.vlgmr.msra.gmra.mxu0 %vm247_vm0, %v1152_v1  ;;  %1128 = vmatmul.msk.bf16.vlgmr.msra.gmra.mxu1 %vm247_vm0, %v1160_v2  ;;  %v1176_v12 = vld [vmem:[%s2119_s0 + $0xc0] sm:$0xff]  ;;  %v1171_v15 = vld [vmem:[%s2119_s0 + $0x98] sm:$0xff]  ;;  %v1177_v16 = vld [vmem:[%s2119_s0 + $0xc8] sm:$0xff] }
   0x6   :  { %1136 = vmatmul.msk.bf16.vlgmr.msra.gmra.mxu2 %vm247_vm0, %v1168_v5  ;;  %1144 = vmatmul.msk.bf16.vlgmr.msra.gmra.mxu3 %vm247_vm0, %v1176_v12  ;;  %v1156_v13 = vld [vmem:[%s2119_s0 + $0x20] sm:$0xff]  ;;  %v1157_v17 = vld [vmem:[%s2119_s0 + $0x28] sm:$0xff]  ;;  %v1178_v20 = vld [vmem:[%s2119_s0 + $0xd0] sm:$0xff] }
   0x7   :  { %v1164_v14 = vld [vmem:[%s2119_s0 + $0x60] sm:$0xff]  ;;  %v1165_v18 = vld [vmem:[%s2119_s0 + $0x68] sm:$0xff]  ;;  %v1158_v21 = vld [vmem:[%s2119_s0 + $0x30] sm:$0xff] }
   0x8   :  { %v1172_v19 = vld [vmem:[%s2119_s0 + $0xa0] sm:$0xff]  ;;  %v1166_v22 = vld [vmem:[%s2119_s0 + $0x70] sm:$0xff]  ;;  %v1173_v23 = vld [vmem:[%s2119_s0 + $0xa8] sm:$0xff] }
   0x9   :  { %v1179_v24 = vld [vmem:[%s2119_s0 + $0xd8] sm:$0xff]  ;;  %v1174_v27 = vld [vmem:[%s2119_s0 + $0xb0] sm:$0xff]  ;;  %v1180_v28 = vld [vmem:[%s2119_s0 + $0xe0] sm:$0xff] }
   0xa   :  { %v1159_v25 = vld [vmem:[%s2119_s0 + $0x38] sm:$0xff]  ;;  %v1181_v34 = vld [vmem:[%s2119_s0 + $0xe8] sm:$0xff]  ;;  %v1182_v55 = vld [vmem:[%s2119_s0 + $0xf0] sm:$0xff] }
   0xb   :  { %v1167_v26 = vld [vmem:[%s2119_s0 + $0x78] sm:$0xff] }
   0xc   :  { %v1175_v33 = vld [vmem:[%s2119_s0 + $0xb8] sm:$0xff] }
  0x15   :  { %1121 = vmatmul.msk.bf16.gmra.mxu0 %vm247_vm0, %v1153_v3  ;;  %1129 = vmatmul.msk.bf16.gmra.mxu1 %vm247_vm0, %v1161_v4 }
  0x16   :  { %1137 = vmatmul.msk.bf16.gmra.mxu2 %vm247_vm0, %v1169_v8  ;;  %1145 = vmatmul.msk.bf16.gmra.mxu3 %vm247_vm0, %v1177_v16 }
  0x25   :  { %1122 = vmatmul.msk.bf16.gmra.mxu0 %vm247_vm0, %v1154_v6  ;;  %1130 = vmatmul.msk.bf16.gmra.mxu1 %vm247_vm0, %v1162_v7 }
  0x26   :  { %1138 = vmatmul.msk.bf16.gmra.mxu2 %vm247_vm0, %v1170_v11  ;;  %1146 = vmatmul.msk.bf16.gmra.mxu3 %vm247_vm0, %v1178_v20 }
  0x35   :  { %1123 = vmatmul.msk.bf16.gmra.mxu0 %vm247_vm0, %v1155_v9  ;;  %1131 = vmatmul.msk.bf16.gmra.mxu1 %vm247_vm0, %v1163_v10 }
  0x36   :  { %1139 = vmatmul.msk.bf16.gmra.mxu2 %vm247_vm0, %v1171_v15  ;;  %1147 = vmatmul.msk.bf16.gmra.mxu3 %vm247_vm0, %v1179_v24 }
  0x45   :  { %1124 = vmatmul.msk.bf16.gmra.mxu0 %vm247_vm0, %v1156_v13  ;;  %1132 = vmatmul.msk.bf16.gmra.mxu1 %vm247_vm0, %v1164_v14  ;;  %v1183_v14 = vld [vmem:[%s2119_s0 + $0xf8] sm:$0xff] }
  0x46   :  { %1140 = vmatmul.msk.bf16.gmra.mxu2 %vm247_vm0, %v1172_v19  ;;  %1148 = vmatmul.msk.bf16.gmra.mxu3 %vm247_vm0, %v1180_v28 }
  0x55   :  { %1125 = vmatmul.msk.bf16.gmra.mxu0 %vm247_vm0, %v1157_v17  ;;  %1133 = vmatmul.msk.bf16.gmra.mxu1 %vm247_vm0, %v1165_v18 }
  0x56   :  { %1141 = vmatmul.msk.bf16.gmra.mxu2 %vm247_vm0, %v1173_v23  ;;  %1149 = vmatmul.msk.bf16.gmra.mxu3 %vm247_vm0, %v1181_v34 }
  0x65   :  { %1126 = vmatmul.msk.bf16.gmra.mxu0 %vm247_vm0, %v1158_v21  ;;  %1134 = vmatmul.msk.bf16.gmra.mxu1 %vm247_vm0, %v1166_v22 }
  0x66   :  { %1142 = vmatmul.msk.bf16.gmra.mxu2 %vm247_vm0, %v1174_v27  ;;  %1150 = vmatmul.msk.bf16.gmra.mxu3 %vm247_vm0, %v1182_v55 }
  0x75   :  { %1127 = vmatmul.msk.bf16.gmra.mxu0 %vm247_vm0, %v1159_v25  ;;  %1135 = vmatmul.msk.bf16.gmra.mxu1 %vm247_vm0, %v1167_v26 }
  0x76   :  { %1143 = vmatmul.msk.bf16.gmra.mxu2 %vm247_vm0, %v1175_v33  ;;  %1151 = vmatmul.msk.bf16.gmra.mxu3 %vm247_vm0, %v1183_v14 }
  0x82   :  { %v353_v29 = vpop.f32.mrf.mxu0  ;;  %v1328_v30 = vpop.f32.mrf.mxu1 }
  0x83   :  { %v513_v31 = vpack.c.bf16 %v353_v29, %v353_v29  ;;  %v529_v32 = vpack.c.bf16 %v1328_v30, %v1328_v30  ;;  %v778_v35 = vmul.f32 %v353_v29, %v353_v29  ;;  %v643_v36 = vsel %vm642_vm2, %v353_v29, 0.0 }
  0x85   :  { %578 = vst.msk [vmem:[%s2120_s2] sm:$0xf] %vm577_vm1, %v513_v31  ;;  %v842_v44 = vsel %vm642_vm2, %v778_v35, 0.0 }
  0x86   :  { %594 = vst.msk [vmem:[%s2120_s2 + $0x40] sm:$0xf] %vm577_vm1, %v529_v32 }
  0x89   :  { %v1387_v63 = vpop.f32.mrf.mxu2  ;;  %v1492_v34 = vpop.f32.mrf.mxu3 }
  0x8a   :  { %v355_v37 = vpop.f32.mrf.mxu0  ;;  %v1349_v38 = vpop.f32.mrf.mxu1  ;;  %v545_v3 = vpack.c.bf16 %v1387_v63, %v1387_v63 }
  0x8b   :  { %v514_v39 = vpack.c.bf16 %v355_v37, %v355_v37  ;;  %v644_v40 = vsel %vm642_vm2, %v355_v37, 0.0  ;;  %v779_v41 = vmul.f32 %v355_v37, %v355_v37  ;;  %v530_v42 = vpack.c.bf16 %v1349_v38, %v1349_v38 }
  0x8c   :  { %v645_v43 = vadd.f32 %v644_v40, %v643_v36  ;;  %610 = vst.msk [vmem:[%s2120_s2 + $0x80] sm:$0xf] %vm577_vm1, %v545_v3  ;;  %v561_v36 = vpack.c.bf16 %v1492_v34, %v1492_v34 }
  0x8d   :  { %579 = vst.msk [vmem:[%s2120_s2 + $0x4] sm:$0xf] %vm577_vm1, %v514_v39  ;;  %v843_v45 = vsel %vm642_vm2, %v779_v41, 0.0 }
  0x8e   :  { %v844_v46 = vadd.f32 %v843_v45, %v842_v44  ;;  %595 = vst.msk [vmem:[%s2120_s2 + $0x44] sm:$0xf] %vm577_vm1, %v530_v42 }
  0x8f   :  { %626 = vst.msk [vmem:[%s2120_s2 + $0xc0] sm:$0xf] %vm577_vm1, %v561_v36 }
  0x91   :  { %v1409_v10 = vpop.f32.mrf.mxu2 }
  0x92   :  { %v358_v47 = vpop.f32.mrf.mxu0  ;;  %v1364_v48 = vpop.f32.mrf.mxu1  ;;  %v546_v12 = vpack.c.bf16 %v1409_v10, %v1409_v10 }
  0x93   :  { %v515_v49 = vpack.c.bf16 %v358_v47, %v358_v47  ;;  %v646_v50 = vsel %vm642_vm2, %v358_v47, 0.0  ;;  %v780_v51 = vmul.f32 %v358_v47, %v358_v47  ;;  %v531_v52 = vpack.c.bf16 %v1364_v48, %v1364_v48 }
  0x94   :  { %v647_v53 = vadd.f32 %v646_v50, %v645_v43  ;;  %611 = vst.msk [vmem:[%s2120_s2 + $0x84] sm:$0xf] %vm577_vm1, %v546_v12  ;;  %v1524_v43 = vpop.f32.mrf.mxu3 }
  0x95   :  { %580 = vst.msk [vmem:[%s2120_s2 + $0x8] sm:$0xf] %vm577_vm1, %v515_v49  ;;  %v845_v54 = vsel %vm642_vm2, %v780_v51, 0.0  ;;  %v562_v45 = vpack.c.bf16 %v1524_v43, %v1524_v43 }
  0x96   :  { %v846_v56 = vadd.f32 %v845_v54, %v844_v46  ;;  %596 = vst.msk [vmem:[%s2120_s2 + $0x48] sm:$0xf] %vm577_vm1, %v531_v52 }
  0x97   :  { %627 = vst.msk [vmem:[%s2120_s2 + $0xc4] sm:$0xf] %vm577_vm1, %v562_v45 }
  0x99   :  { %v1442_v20 = vpop.f32.mrf.mxu2 }
  0x9a   :  { %v360_v57 = vpop.f32.mrf.mxu0  ;;  %v1382_v58 = vpop.f32.mrf.mxu1  ;;  %v547_v21 = vpack.c.bf16 %v1442_v20, %v1442_v20 }
  0x9b   :  { %v516_v59 = vpack.c.bf16 %v360_v57, %v360_v57  ;;  %v648_v60 = vsel %vm642_vm2, %v360_v57, 0.0  ;;  %v781_v61 = vmul.f32 %v360_v57, %v360_v57  ;;  %v532_v62 = vpack.c.bf16 %v1382_v58, %v1382_v58 }
  0x9c   :  { %v649_v0 = vadd.f32 %v648_v60, %v647_v53  ;;  %612 = vst.msk [vmem:[%s2120_s2 + $0x88] sm:$0xf] %vm577_vm1, %v547_v21  ;;  %v1556_v52 = vpop.f32.mrf.mxu3 }
  0x9d   :  { %581 = vst.msk [vmem:[%s2120_s2 + $0xc] sm:$0xf] %vm577_vm1, %v516_v59  ;;  %v847_v1 = vsel %vm642_vm2, %v781_v61, 0.0  ;;  %v563_v54 = vpack.c.bf16 %v1556_v52, %v1556_v52 }
  0x9e   :  { %v848_v2 = vadd.f32 %v847_v1, %v846_v56  ;;  %597 = vst.msk [vmem:[%s2120_s2 + $0x4c] sm:$0xf] %vm577_vm1, %v532_v62 }
  0x9f   :  { %628 = vst.msk [vmem:[%s2120_s2 + $0xc8] sm:$0xf] %vm577_vm1, %v563_v54 }
  0xa1   :  { %v1466_v26 = vpop.f32.mrf.mxu2 }
  0xa2   :  { %v363_v4 = vpop.f32.mrf.mxu0  ;;  %v1404_v5 = vpop.f32.mrf.mxu1  ;;  %v548_v27 = vpack.c.bf16 %v1466_v26, %v1466_v26 }
  0xa3   :  { %v517_v6 = vpack.c.bf16 %v363_v4, %v363_v4  ;;  %v650_v7 = vsel %vm642_vm2, %v363_v4, 0.0  ;;  %v782_v8 = vmul.f32 %v363_v4, %v363_v4  ;;  %v533_v9 = vpack.c.bf16 %v1404_v5, %v1404_v5 }
  0xa4   :  { %v1411_v11 = vadd.f32 %v650_v7, %v649_v0  ;;  %613 = vst.msk [vmem:[%s2120_s2 + $0x8c] sm:$0xf] %vm577_vm1, %v548_v27  ;;  %v1588_v61 = vpop.f32.mrf.mxu3 }
  0xa5   :  { %582 = vst.msk [vmem:[%s2120_s2 + $0x10] sm:$0xf] %vm577_vm1, %v517_v6  ;;  %v849_v13 = vsel %vm642_vm2, %v782_v8, 0.0  ;;  %v564_v0 = vpack.c.bf16 %v1588_v61, %v1588_v61 }
  0xa6   :  { %v1423_v15 = vadd.f32 %v849_v13, %v848_v2  ;;  %598 = vst.msk [vmem:[%s2120_s2 + $0x50] sm:$0xf] %vm577_vm1, %v533_v9 }
  0xa7   :  { %629 = vst.msk [vmem:[%s2120_s2 + $0xcc] sm:$0xf] %vm577_vm1, %v564_v0 }
  0xa9   :  { %v1490_v33 = vpop.f32.mrf.mxu2 }
  0xaa   :  { %v1434_v16 = vpop.f32.mrf.mxu0  ;;  %v1436_v17 = vpop.f32.mrf.mxu1  ;;  %v549_v35 = vpack.c.bf16 %v1490_v33, %v1490_v33 }
  0xab   :  { %v518_v18 = vpack.c.bf16 %v1434_v16, %v1434_v16  ;;  %v534_v19 = vpack.c.bf16 %v1436_v17, %v1436_v17  ;;  %v783_v12 = vmul.f32 %v1434_v16, %v1434_v16 }
  0xac   :  { %614 = vst.msk [vmem:[%s2120_s2 + $0x90] sm:$0xf] %vm577_vm1, %v549_v35  ;;  %v1616_v7 = vpop.f32.mrf.mxu3 }
  0xad   :  { %583 = vst.msk [vmem:[%s2120_s2 + $0x14] sm:$0xf] %vm577_vm1, %v518_v18  ;;  %v565_v27 = vpack.c.bf16 %v1616_v7, %v1616_v7 }
  0xae   :  { %599 = vst.msk [vmem:[%s2120_s2 + $0x54] sm:$0xf] %vm577_vm1, %v534_v19 }
  0xaf   :  { %630 = vst.msk [vmem:[%s2120_s2 + $0xd0] sm:$0xf] %vm577_vm1, %v565_v27 }
  0xb1   :  { %v1522_v42 = vpop.f32.mrf.mxu2 }
  0xb2   :  { %v1458_v22 = vpop.f32.mrf.mxu0  ;;  %v1460_v23 = vpop.f32.mrf.mxu1  ;;  %v550_v44 = vpack.c.bf16 %v1522_v42, %v1522_v42 }
  0xb3   :  { %v519_v24 = vpack.c.bf16 %v1458_v22, %v1458_v22  ;;  %v535_v25 = vpack.c.bf16 %v1460_v23, %v1460_v23 }
  0xb4   :  { %615 = vst.msk [vmem:[%s2120_s2 + $0x94] sm:$0xf] %vm577_vm1, %v550_v44  ;;  %v1634_v19 = vpop.f32.mrf.mxu3 }
  0xb5   :  { %584 = vst.msk [vmem:[%s2120_s2 + $0x18] sm:$0xf] %vm577_vm1, %v519_v24  ;;  %v652_v24 = vsel %vm642_vm2, %v1434_v16, 0.0  ;;  %v851_v16 = vsel %vm642_vm2, %v783_v12, 0.0 }
  0xb6   :  { %600 = vst.msk [vmem:[%s2120_s2 + $0x58] sm:$0xf] %vm577_vm1, %v535_v25  ;;  %v784_v25 = vmul.f32 %v1458_v22, %v1458_v22  ;;  %v653_v36 = vadd.f32 %v652_v24, %v1411_v11  ;;  %v852_v11 = vadd.f32 %v851_v16, %v1423_v15 }
  0xb9   :  { %v1554_v51 = vpop.f32.mrf.mxu2 }
  0xba   :  { %v1482_v28 = vpop.f32.mrf.mxu0  ;;  %v1484_v29 = vpop.f32.mrf.mxu1  ;;  %v551_v53 = vpack.c.bf16 %v1554_v51, %v1554_v51 }
  0xbb   :  { %v520_v31 = vpack.c.bf16 %v1482_v28, %v1482_v28  ;;  %v536_v32 = vpack.c.bf16 %v1484_v29, %v1484_v29 }
  0xbc   :  { %616 = vst.msk [vmem:[%s2120_s2 + $0x98] sm:$0xf] %vm577_vm1, %v551_v53 }
  0xbd   :  { %585 = vst.msk [vmem:[%s2120_s2 + $0x1c] sm:$0xf] %vm577_vm1, %v520_v31  ;;  %v785_v31 = vmul.f32 %v1482_v28, %v1482_v28 }
  0xbe   :  { %601 = vst.msk [vmem:[%s2120_s2 + $0x5c] sm:$0xf] %vm577_vm1, %v536_v32  ;;  %v654_v32 = vsel %vm642_vm2, %v1458_v22, 0.0  ;;  %v853_v22 = vsel %vm642_vm2, %v784_v25, 0.0 }
  0xbf   :  { %v655_v45 = vadd.f32 %v654_v32, %v653_v36  ;;  %v854_v0 = vadd.f32 %v853_v22, %v852_v11 }
  0xc1   :  { %v1586_v60 = vpop.f32.mrf.mxu2 }
  0xc2   :  { %v1514_v37 = vpop.f32.mrf.mxu0  ;;  %v1516_v39 = vpop.f32.mrf.mxu1  ;;  %v552_v62 = vpack.c.bf16 %v1586_v60, %v1586_v60 }
  0xc3   :  { %v521_v40 = vpack.c.bf16 %v1514_v37, %v1514_v37  ;;  %v537_v41 = vpack.c.bf16 %v1516_v39, %v1516_v39  ;;  %v786_v44 = vmul.f32 %v1514_v37, %v1514_v37 }
  0xc4   :  { %617 = vst.msk [vmem:[%s2120_s2 + $0x9c] sm:$0xf] %vm577_vm1, %v552_v62  ;;  %v1695_v62 = vpop.f32.mrf.mxu3 }
  0xc5   :  { %586 = vst.msk [vmem:[%s2120_s2 + $0x20] sm:$0xf] %vm577_vm1, %v521_v40  ;;  %v566_v40 = vpack.c.bf16 %v1634_v19, %v1634_v19 }
  0xc6   :  { %602 = vst.msk [vmem:[%s2120_s2 + $0x60] sm:$0xf] %vm577_vm1, %v537_v41  ;;  %v656_v41 = vsel %vm642_vm2, %v1482_v28, 0.0  ;;  %v658_v28 = vsel %vm642_vm2, %v1514_v37, 0.0 }
  0xc7   :  { %631 = vst.msk [vmem:[%s2120_s2 + $0xd4] sm:$0xf] %vm577_vm1, %v566_v40 }
  0xc9   :  { %v1614_v6 = vpop.f32.mrf.mxu2 }
  0xca   :  { %v1546_v46 = vpop.f32.mrf.mxu0  ;;  %v1548_v47 = vpop.f32.mrf.mxu1  ;;  %v553_v21 = vpack.c.bf16 %v1614_v6, %v1614_v6 }
  0xcb   :  { %v522_v49 = vpack.c.bf16 %v1546_v46, %v1546_v46  ;;  %v538_v50 = vpack.c.bf16 %v1548_v47, %v1548_v47  ;;  %v787_v54 = vmul.f32 %v1546_v46, %v1546_v46  ;;  %v660_v12 = vsel %vm642_vm2, %v1546_v46, 0.0 }
  0xcc   :  { %618 = vst.msk [vmem:[%s2120_s2 + $0xa0] sm:$0xf] %vm577_vm1, %v553_v21 }
  0xcd   :  { %587 = vst.msk [vmem:[%s2120_s2 + $0x24] sm:$0xf] %vm577_vm1, %v522_v49  ;;  %v855_v49 = vsel %vm642_vm2, %v785_v31, 0.0  ;;  %v859_v24 = vsel %vm642_vm2, %v787_v54, 0.0 }
  0xce   :  { %603 = vst.msk [vmem:[%s2120_s2 + $0x64] sm:$0xf] %vm577_vm1, %v538_v50 }
  0xd1   :  { %v1632_v18 = vpop.f32.mrf.mxu2 }
  0xd2   :  { %v1578_v55 = vpop.f32.mrf.mxu0  ;;  %v1580_v56 = vpop.f32.mrf.mxu1  ;;  %v554_v35 = vpack.c.bf16 %v1632_v18, %v1632_v18 }
  0xd3   :  { %v523_v57 = vpack.c.bf16 %v1578_v55, %v1578_v55  ;;  %v539_v59 = vpack.c.bf16 %v1580_v56, %v1580_v56  ;;  %v788_v37 = vmul.f32 %v1578_v55, %v1578_v55  ;;  %v662_v46 = vsel %vm642_vm2, %v1578_v55, 0.0 }
  0xd4   :  { %619 = vst.msk [vmem:[%s2120_s2 + $0xa4] sm:$0xf] %vm577_vm1, %v554_v35 }
  0xd5   :  { %588 = vst.msk [vmem:[%s2120_s2 + $0x28] sm:$0xf] %vm577_vm1, %v523_v57  ;;  %v861_v31 = vsel %vm642_vm2, %v788_v37, 0.0 }
  0xd6   :  { %604 = vst.msk [vmem:[%s2120_s2 + $0x68] sm:$0xf] %vm577_vm1, %v539_v59 }
  0xd9   :  { %v1693_v59 = vpop.f32.mrf.mxu2 }
  0xda   :  { %v380_v1 = vpop.f32.mrf.mxu0  ;;  %v1610_v2 = vpop.f32.mrf.mxu1 }
  0xdb   :  { %v524_v3 = vpack.c.bf16 %v380_v1, %v380_v1  ;;  %v540_v4 = vpack.c.bf16 %v1610_v2, %v1610_v2  ;;  %v789_v21 = vmul.f32 %v380_v1, %v380_v1  ;;  %v664_v16 = vsel %vm642_vm2, %v380_v1, 0.0 }
  0xdd   :  { %589 = vst.msk [vmem:[%s2120_s2 + $0x2c] sm:$0xf] %vm577_vm1, %v524_v3  ;;  %v657_v3 = vadd.f32 %v656_v41, %v655_v45  ;;  %v863_v40 = vsel %vm642_vm2, %v789_v21, 0.0 }
  0xde   :  { %605 = vst.msk [vmem:[%s2120_s2 + $0x6c] sm:$0xf] %vm577_vm1, %v540_v4  ;;  %v857_v4 = vsel %vm642_vm2, %v786_v44, 0.0 }
  0xe2   :  { %v383_v8 = vpop.f32.mrf.mxu0  ;;  %v1626_v9 = vpop.f32.mrf.mxu1 }
  0xe3   :  { %v525_v13 = vpack.c.bf16 %v383_v8, %v383_v8  ;;  %v541_v14 = vpack.c.bf16 %v1626_v9, %v1626_v9  ;;  %v790_v32 = vmul.f32 %v383_v8, %v383_v8  ;;  %v666_v44 = vsel %vm642_vm2, %v383_v8, 0.0 }
  0xe5   :  { %590 = vst.msk [vmem:[%s2120_s2 + $0x30] sm:$0xf] %vm577_vm1, %v525_v13  ;;  %v856_v13 = vadd.f32 %v855_v49, %v854_v0  ;;  %v1721_v49 = vpop.f32.mrf.mxu2 }
  0xe6   :  { %606 = vst.msk [vmem:[%s2120_s2 + $0x70] sm:$0xf] %vm577_vm1, %v541_v14  ;;  %v659_v14 = vadd.f32 %v658_v28, %v657_v3  ;;  %v1723_v28 = vpop.f32.mrf.mxu3  ;;  %v567_v3 = vpack.c.bf16 %v1695_v62, %v1695_v62 }
  0xe7   :  { %v858_v25 = vadd.f32 %v857_v4, %v856_v13  ;;  %v556_v13 = vpack.c.bf16 %v1721_v49, %v1721_v49 }
  0xe8   :  { %v661_v27 = vadd.f32 %v660_v12, %v659_v14  ;;  %632 = vst.msk [vmem:[%s2120_s2 + $0xd8] sm:$0xf] %vm577_vm1, %v567_v3  ;;  %v676_v3 = vsel %vm642_vm2, %v1349_v38, 0.0 }
  0xe9   :  { %v860_v35 = vadd.f32 %v859_v24, %v858_v25  ;;  %v568_v24 = vpack.c.bf16 %v1723_v28, %v1723_v28  ;;  %621 = vst.msk [vmem:[%s2120_s2 + $0xac] sm:$0xf] %vm577_vm1, %v556_v13  ;;  %v794_v25 = vmul.f32 %v1328_v30, %v1328_v30  ;;  %v797_v13 = vmul.f32 %v1382_v58, %v1382_v58 }
  0xea   :  { %v385_v50 = vpop.f32.mrf.mxu0  ;;  %v1681_v53 = vpop.f32.mrf.mxu1  ;;  %v663_v36 = vadd.f32 %v662_v46, %v661_v27 }
  0xeb   :  { %v526_v57 = vpack.c.bf16 %v385_v50, %v385_v50  ;;  %v542_v15 = vpack.c.bf16 %v1681_v53, %v1681_v53  ;;  %v791_v11 = vmul.f32 %v385_v50, %v385_v50  ;;  %v862_v1 = vadd.f32 %v861_v31, %v860_v35  ;;  %633 = vst.msk [vmem:[%s2120_s2 + $0xdc] sm:$0xf] %vm577_vm1, %v568_v24 }
  0xec   :  { %v665_v54 = vadd.f32 %v664_v16, %v663_v36  ;;  %v668_v0 = vsel %vm642_vm2, %v385_v50, 0.0 }
  0xed   :  { %591 = vst.msk [vmem:[%s2120_s2 + $0x34] sm:$0xf] %vm577_vm1, %v526_v57  ;;  %v555_v57 = vpack.c.bf16 %v1693_v59, %v1693_v59  ;;  %v864_v4 = vadd.f32 %v863_v40, %v862_v1  ;;  %v867_v37 = vsel %vm642_vm2, %v791_v11, 0.0  ;;  %v674_v1 = vsel %vm642_vm2, %v1328_v30, 0.0 }
  0xee   :  { %607 = vst.msk [vmem:[%s2120_s2 + $0x74] sm:$0xf] %vm577_vm1, %v542_v15  ;;  %v865_v15 = vsel %vm642_vm2, %v790_v32, 0.0  ;;  %v667_v12 = vadd.f32 %v666_v44, %v665_v54  ;;  %v1769_v44 = vpop.f32.mrf.mxu2  ;;  %v1771_v11 = vpop.f32.mrf.mxu3  ;;  %v795_v54 = vmul.f32 %v1349_v38, %v1349_v38  ;;  %v873_v30 = vsel %vm642_vm2, %v794_v25, 0.0 }
  0xef   :  { %620 = vst.msk [vmem:[%s2120_s2 + $0xa8] sm:$0xf] %vm577_vm1, %v555_v57  ;;  %v866_v14 = vadd.f32 %v865_v15, %v864_v4  ;;  %v796_v15 = vmul.f32 %v1364_v48, %v1364_v48  ;;  %v798_v38 = vmul.f32 %v1404_v5, %v1404_v5  ;;  %v557_v25 = vpack.c.bf16 %v1769_v44, %v1769_v44 }
  0xf0   :  { %v669_v21 = vadd.f32 %v668_v0, %v667_v12 }
  0xf1   :  { %v868_v27 = vadd.f32 %v867_v37, %v866_v14  ;;  %v875_v37 = vsel %vm642_vm2, %v795_v54, 0.0  ;;  %v877_v14 = vsel %vm642_vm2, %v796_v15, 0.0  ;;  %622 = vst.msk [vmem:[%s2120_s2 + $0xb0] sm:$0xf] %vm577_vm1, %v557_v25  ;;  %v684_v54 = vsel %vm642_vm2, %v1436_v17, 0.0 }
  0xf2   :  { %v388_v22 = vpop.f32.mrf.mxu0  ;;  %v1716_v41 = vpop.f32.mrf.mxu1 }
  0xf3   :  { %v527_v45 = vpack.c.bf16 %v388_v22, %v388_v22  ;;  %v543_v55 = vpack.c.bf16 %v1716_v41, %v1716_v41  ;;  %v792_v8 = vmul.f32 %v388_v22, %v388_v22  ;;  %v670_v50 = vsel %vm642_vm2, %v388_v22, 0.0 }
  0xf4   :  { %v671_v31 = vadd.f32 %v670_v50, %v669_v21  ;;  %v678_v50 = vsel %vm642_vm2, %v1364_v48, 0.0 }
  0xf5   :  { %592 = vst.msk [vmem:[%s2120_s2 + $0x38] sm:$0xf] %vm577_vm1, %v527_v45  ;;  %v869_v46 = vsel %vm642_vm2, %v792_v8, 0.0 }
  0xf6   :  { %608 = vst.msk [vmem:[%s2120_s2 + $0x78] sm:$0xf] %vm577_vm1, %v543_v55  ;;  %v870_v45 = vadd.f32 %v869_v46, %v868_v27  ;;  %v680_v46 = vsel %vm642_vm2, %v1382_v58, 0.0  ;;  %v569_v27 = vpack.c.bf16 %v1771_v11, %v1771_v11  ;;  %v1805_v48 = vpop.f32.mrf.mxu2  ;;  %v682_v58 = vsel %vm642_vm2, %v1404_v5, 0.0 }
  0xf8   :  { %634 = vst.msk [vmem:[%s2120_s2 + $0xe0] sm:$0xf] %vm577_vm1, %v569_v27 }
  0xfa   :  { %v390_v16 = vpop.f32.mrf.mxu0  ;;  %v1760_v32 = vpop.f32.mrf.mxu1 }
  0xfb   :  { %v528_v35 = vpack.c.bf16 %v390_v16, %v390_v16  ;;  %v672_v36 = vsel %vm642_vm2, %v390_v16, 0.0  ;;  %v793_v40 = vmul.f32 %v390_v16, %v390_v16  ;;  %v544_v22 = vpack.c.bf16 %v1760_v32, %v1760_v32 }
  0xfc   :  { %v673_v55 = vadd.f32 %v672_v36, %v671_v31  ;;  %v1807_v31 = vpop.f32.mrf.mxu3  ;;  %v879_v36 = vsel %vm642_vm2, %v797_v13, 0.0 }
  0xfd   :  { %593 = vst.msk [vmem:[%s2120_s2 + $0x3c] sm:$0xf] %vm577_vm1, %v528_v35  ;;  %v871_v57 = vsel %vm642_vm2, %v793_v40, 0.0  ;;  %v799_v40 = vmul.f32 %v1436_v17, %v1436_v17  ;;  %v570_v5 = vpack.c.bf16 %v1807_v31, %v1807_v31  ;;  %v686_v17 = vsel %vm642_vm2, %v1460_v23, 0.0 }
  0xfe   :  { %v675_v0 = vadd.f32 %v674_v1, %v673_v55  ;;  %v872_v8 = vadd.f32 %v871_v57, %v870_v45  ;;  %609 = vst.msk [vmem:[%s2120_s2 + $0x7c] sm:$0xf] %vm577_vm1, %v544_v22  ;;  %v558_v22 = vpack.c.bf16 %v1805_v48, %v1805_v48  ;;  %v881_v1 = vsel %vm642_vm2, %v798_v38, 0.0  ;;  %v1849_v13 = vpop.f32.mrf.mxu2 }
  0xff   :  { %v800_v57 = vmul.f32 %v1460_v23, %v1460_v23  ;;  %635 = vst.msk [vmem:[%s2120_s2 + $0xe4] sm:$0xf] %vm577_vm1, %v570_v5  ;;  %v803_v38 = vmul.f32 %v1548_v47, %v1548_v47 }
 0x100   :  { %v677_v4 = vadd.f32 %v676_v3, %v675_v0  ;;  %v874_v12 = vadd.f32 %v873_v30, %v872_v8  ;;  %623 = vst.msk [vmem:[%s2120_s2 + $0xb4] sm:$0xf] %vm577_vm1, %v558_v22  ;;  %v883_v8 = vsel %vm642_vm2, %v799_v40, 0.0  ;;  %v801_v30 = vmul.f32 %v1484_v29, %v1484_v29 }
 0x101   :  { %v891_v40 = vsel %vm642_vm2, %v803_v38, 0.0  ;;  %v805_v22 = vmul.f32 %v1610_v2, %v1610_v2  ;;  %v809_v38 = vmul.f32 %v1760_v32, %v1760_v32 }
 0x102   :  { %v679_v21 = vadd.f32 %v678_v50, %v677_v4  ;;  %v876_v24 = vadd.f32 %v875_v37, %v874_v12  ;;  %v885_v12 = vsel %vm642_vm2, %v800_v57, 0.0  ;;  %v688_v37 = vsel %vm642_vm2, %v1484_v29, 0.0 }
 0x103   :  { %v802_v50 = vmul.f32 %v1516_v39, %v1516_v39  ;;  %v887_v23 = vsel %vm642_vm2, %v801_v30, 0.0  ;;  %v804_v29 = vmul.f32 %v1580_v56, %v1580_v56  ;;  %v807_v30 = vmul.f32 %v1681_v53, %v1681_v53 }
 0x104   :  { %v681_v16 = vadd.f32 %v680_v46, %v679_v21  ;;  %v878_v35 = vadd.f32 %v877_v14, %v876_v24  ;;  %v1851_v14 = vpop.f32.mrf.mxu3  ;;  %v690_v46 = vsel %vm642_vm2, %v1516_v39, 0.0  ;;  %v694_v39 = vsel %vm642_vm2, %v1580_v56, 0.0 }
 0x105   :  { %v571_v57 = vpack.c.bf16 %v1851_v14, %v1851_v14 }
 0x106   :  { %v683_v45 = vadd.f32 %v682_v58, %v681_v16  ;;  %v880_v55 = vadd.f32 %v879_v36, %v878_v35  ;;  %v889_v16 = vsel %vm642_vm2, %v802_v50, 0.0  ;;  %v692_v35 = vsel %vm642_vm2, %v1548_v47, 0.0  ;;  %v1877_v56 = vpop.f32.mrf.mxu2 }
 0x107   :  { %v806_v47 = vmul.f32 %v1626_v9, %v1626_v9  ;;  %636 = vst.msk [vmem:[%s2120_s2 + $0xe8] sm:$0xf] %vm577_vm1, %v571_v57  ;;  %v700_v50 = vsel %vm642_vm2, %v1681_v53, 0.0  ;;  %v702_v53 = vsel %vm642_vm2, %v1716_v41, 0.0 }
 0x108   :  { %v685_v15 = vadd.f32 %v684_v54, %v683_v45  ;;  %v882_v0 = vadd.f32 %v881_v1, %v880_v55  ;;  %v893_v45 = vsel %vm642_vm2, %v804_v29, 0.0  ;;  %v696_v1 = vsel %vm642_vm2, %v1610_v2, 0.0 }
 0x109   :  { %v559_v54 = vpack.c.bf16 %v1849_v13, %v1849_v13  ;;  %v698_v2 = vsel %vm642_vm2, %v1626_v9, 0.0 }
 0x10a   :  { %v884_v3 = vadd.f32 %v883_v8, %v882_v0  ;;  %v687_v4 = vadd.f32 %v686_v17, %v685_v15  ;;  %v895_v17 = vsel %vm642_vm2, %v805_v22, 0.0  ;;  %v903_v22 = vsel %vm642_vm2, %v809_v38, 0.0 }
 0x10b   :  { %624 = vst.msk [vmem:[%s2120_s2 + $0xb8] sm:$0xf] %vm577_vm1, %v559_v54 }
 0x10c   :  { %v689_v21 = vadd.f32 %v688_v37, %v687_v4  ;;  %v886_v24 = vadd.f32 %v885_v12, %v884_v3  ;;  %v1879_v15 = vpop.f32.mrf.mxu3  ;;  %v560_v3 = vpack.c.bf16 %v1877_v56, %v1877_v56  ;;  %v897_v37 = vsel %vm642_vm2, %v806_v47, 0.0 }
 0x10d   :  { %v572_v9 = vpack.c.bf16 %v1879_v15, %v1879_v15 }
 0x10e   :  { %v691_v25 = vadd.f32 %v690_v46, %v689_v21  ;;  %v888_v27 = vadd.f32 %v887_v23, %v886_v24  ;;  %v808_v21 = vmul.f32 %v1716_v41, %v1716_v41  ;;  %625 = vst.msk [vmem:[%s2120_s2 + $0xbc] sm:$0xf] %vm577_vm1, %v560_v3  ;;  %v899_v46 = vsel %vm642_vm2, %v807_v30, 0.0 }
 0x10f   :  { %637 = vst.msk [vmem:[%s2120_s2 + $0xec] sm:$0xf] %vm577_vm1, %v572_v9  ;;  %v706_v41 = vsel %vm642_vm2, %v1387_v63, 0.0  ;;  %v814_v30 = vmul.f32 %v1490_v33, %v1490_v33 }
 0x110   :  { %v693_v36 = vadd.f32 %v692_v35, %v691_v25  ;;  %v890_v58 = vadd.f32 %v889_v16, %v888_v27  ;;  %v810_v27 = vmul.f32 %v1387_v63, %v1387_v63  ;;  %v901_v16 = vsel %vm642_vm2, %v808_v21, 0.0 }
 0x111   :  { %v704_v35 = vsel %vm642_vm2, %v1760_v32, 0.0  ;;  %v812_v32 = vmul.f32 %v1442_v20, %v1442_v20  ;;  %v710_v63 = vsel %vm642_vm2, %v1442_v20, 0.0 }
 0x112   :  { %v695_v55 = vadd.f32 %v694_v39, %v693_v36  ;;  %v892_v5 = vadd.f32 %v891_v40, %v890_v58  ;;  %v811_v39 = vmul.f32 %v1409_v10, %v1409_v10 }
 0x114   :  { %v697_v0 = vadd.f32 %v696_v1, %v695_v55  ;;  %v894_v8 = vadd.f32 %v893_v45, %v892_v5  ;;  %v1921_v36 = vpop.f32.mrf.mxu3  ;;  %v905_v5 = vsel %vm642_vm2, %v810_v27, 0.0  ;;  %v708_v1 = vsel %vm642_vm2, %v1409_v10, 0.0 }
 0x115   :  { %v907_v57 = vsel %vm642_vm2, %v811_v39, 0.0  ;;  %v712_v10 = vsel %vm642_vm2, %v1466_v26, 0.0  ;;  %v573_v3 = vpack.c.bf16 %v1921_v36, %v1921_v36  ;;  %v817_v27 = vmul.f32 %v1586_v60, %v1586_v60 }
 0x116   :  { %v699_v4 = vadd.f32 %v698_v2, %v697_v0  ;;  %v896_v12 = vadd.f32 %v895_v17, %v894_v8  ;;  %v813_v0 = vmul.f32 %v1466_v26, %v1466_v26  ;;  %v909_v2 = vsel %vm642_vm2, %v812_v32, 0.0 }
 0x117   :  { %v815_v26 = vmul.f32 %v1522_v42, %v1522_v42  ;;  %638 = vst.msk [vmem:[%s2120_s2 + $0xf0] sm:$0xf] %vm577_vm1, %v573_v3 }
 0x118   :  { %v898_v24 = vadd.f32 %v897_v37, %v896_v12  ;;  %v701_v23 = vadd.f32 %v700_v50, %v699_v4  ;;  %v911_v37 = vsel %vm642_vm2, %v813_v0, 0.0  ;;  %v714_v50 = vsel %vm642_vm2, %v1490_v33, 0.0 }
 0x119   :  { %v716_v33 = vsel %vm642_vm2, %v1522_v42, 0.0  ;;  %v720_v42 = vsel %vm642_vm2, %v1586_v60, 0.0  ;;  %v724_v60 = vsel %vm642_vm2, %v1632_v18, 0.0  ;;  %v821_v0 = vmul.f32 %v1721_v49, %v1721_v49 }
 0x11a   :  { %v900_v29 = vadd.f32 %v899_v46, %v898_v24  ;;  %v703_v25 = vadd.f32 %v702_v53, %v701_v23  ;;  %v913_v23 = vsel %vm642_vm2, %v814_v30, 0.0  ;;  %v816_v46 = vmul.f32 %v1554_v51, %v1554_v51 }
 0x11c   :  { %v902_v58 = vadd.f32 %v901_v16, %v900_v29  ;;  %v705_v40 = vadd.f32 %v704_v35, %v703_v25  ;;  %v1945_v4 = vpop.f32.mrf.mxu3  ;;  %v915_v29 = vsel %vm642_vm2, %v815_v26, 0.0  ;;  %v718_v25 = vsel %vm642_vm2, %v1554_v51, 0.0 }
 0x11d   :  { %v574_v9 = vpack.c.bf16 %v1945_v4, %v1945_v4  ;;  %v722_v51 = vsel %vm642_vm2, %v1614_v6, 0.0 }
 0x11e   :  { %v707_v45 = vadd.f32 %v706_v41, %v705_v40  ;;  %v904_v55 = vadd.f32 %v903_v22, %v902_v58  ;;  %v917_v58 = vsel %vm642_vm2, %v816_v46, 0.0  ;;  %v818_v40 = vmul.f32 %v1614_v6, %v1614_v6 }
 0x11f   :  { %639 = vst.msk [vmem:[%s2120_s2 + $0xf4] sm:$0xf] %vm577_vm1, %v574_v9  ;;  %v726_v6 = vsel %vm642_vm2, %v1693_v59, 0.0  ;;  %v927_v9 = vsel %vm642_vm2, %v821_v0, 0.0 }
 0x120   :  { %v709_v47 = vadd.f32 %v708_v1, %v707_v45  ;;  %v906_v54 = vadd.f32 %v905_v5, %v904_v55  ;;  %v919_v45 = vsel %vm642_vm2, %v817_v27, 0.0  ;;  %v819_v55 = vmul.f32 %v1632_v18, %v1632_v18 }
 0x121   :  { %v921_v32 = vsel %vm642_vm2, %v818_v40, 0.0  ;;  %v728_v18 = vsel %vm642_vm2, %v1721_v49, 0.0  ;;  %v823_v49 = vmul.f32 %v1805_v48, %v1805_v48  ;;  %v826_v27 = vmul.f32 %v1492_v34, %v1492_v34 }
 0x122   :  { %v711_v8 = vadd.f32 %v710_v63, %v709_v47  ;;  %v908_v17 = vadd.f32 %v907_v57, %v906_v54  ;;  %v820_v47 = vmul.f32 %v1693_v59, %v1693_v59  ;;  %v923_v63 = vsel %vm642_vm2, %v819_v55, 0.0 }
 0x123   :  { %v931_v46 = vsel %vm642_vm2, %v823_v49, 0.0 }
 0x124   :  { %v713_v12 = vadd.f32 %v712_v10, %v711_v8  ;;  %v910_v20 = vadd.f32 %v909_v2, %v908_v17  ;;  %v1977_v41 = vpop.f32.mrf.mxu3  ;;  %v925_v2 = vsel %vm642_vm2, %v820_v47, 0.0  ;;  %v822_v10 = vmul.f32 %v1769_v44, %v1769_v44 }
 0x125   :  { %v575_v30 = vpack.c.bf16 %v1977_v41, %v1977_v41 }
 0x126   :  { %v715_v21 = vadd.f32 %v714_v50, %v713_v12  ;;  %v912_v24 = vadd.f32 %v911_v37, %v910_v20  ;;  %v730_v37 = vsel %vm642_vm2, %v1769_v44, 0.0  ;;  %v732_v44 = vsel %vm642_vm2, %v1805_v48, 0.0 }
 0x127   :  { %640 = vst.msk [vmem:[%s2120_s2 + $0xf8] sm:$0xf] %vm577_vm1, %v575_v30 }
 0x128   :  { %v717_v53 = vadd.f32 %v716_v33, %v715_v21  ;;  %v914_v38 = vadd.f32 %v913_v23, %v912_v24  ;;  %v929_v21 = vsel %vm642_vm2, %v822_v10, 0.0  ;;  %v824_v24 = vmul.f32 %v1849_v13, %v1849_v13 }
 0x129   :  { %v832_v10 = vmul.f32 %v1695_v62, %v1695_v62 }
 0x12a   :  { %v916_v16 = vadd.f32 %v915_v29, %v914_v38  ;;  %v719_v35 = vadd.f32 %v718_v25, %v717_v53  ;;  %v734_v53 = vsel %vm642_vm2, %v1849_v13, 0.0  ;;  %v825_v38 = vmul.f32 %v1877_v56, %v1877_v56 }
 0x12b   :  { %v933_v48 = vsel %vm642_vm2, %v824_v24, 0.0  ;;  %v827_v13 = vmul.f32 %v1524_v43, %v1524_v43  ;;  %v949_v49 = vsel %vm642_vm2, %v832_v10, 0.0  ;;  %v835_v24 = vmul.f32 %v1807_v31, %v1807_v31 }
 0x12c   :  { %v721_v39 = vadd.f32 %v720_v42, %v719_v35  ;;  %v918_v22 = vadd.f32 %v917_v58, %v916_v16  ;;  %v2001_v3 = vpop.f32.mrf.mxu3  ;;  %v736_v16 = vsel %vm642_vm2, %v1877_v56, 0.0  ;;  %v738_v42 = vsel %vm642_vm2, %v1492_v34, 0.0 }
 0x12d   :  { %v576_v20 = vpack.c.bf16 %v2001_v3, %v2001_v3  ;;  %v935_v40 = vsel %vm642_vm2, %v825_v38, 0.0  ;;  %v828_v56 = vmul.f32 %v1556_v52, %v1556_v52  ;;  %v742_v34 = vsel %vm642_vm2, %v1556_v52, 0.0 }
 0x12e   :  { %v723_v5 = vadd.f32 %v722_v51, %v721_v39  ;;  %v920_v1 = vadd.f32 %v919_v45, %v918_v22  ;;  %v937_v45 = vsel %vm642_vm2, %v826_v27, 0.0  ;;  %v740_v51 = vsel %vm642_vm2, %v1524_v43, 0.0 }
 0x12f   :  { %641 = vst.msk [vmem:[%s2120_s2 + $0xfc] sm:$0xf] %vm577_vm1, %v576_v20  ;;  %v744_v43 = vsel %vm642_vm2, %v1588_v61, 0.0  ;;  %v746_v52 = vsel %vm642_vm2, %v1616_v7, 0.0  ;;  %v833_v20 = vmul.f32 %v1723_v28, %v1723_v28  ;;  %v837_v27 = vmul.f32 %v1879_v15, %v1879_v15 }
 0x130   :  { %v725_v54 = vadd.f32 %v724_v60, %v723_v5  ;;  %v922_v57 = vadd.f32 %v921_v32, %v920_v1  ;;  %v939_v1 = vsel %vm642_vm2, %v827_v13, 0.0  ;;  %v829_v32 = vmul.f32 %v1588_v61, %v1588_v61 }
 0x131   :  { %v748_v61 = vsel %vm642_vm2, %v1634_v19, 0.0 }
 0x132   :  { %v727_v8 = vadd.f32 %v726_v6, %v725_v54  ;;  %v924_v17 = vadd.f32 %v923_v63, %v922_v57  ;;  %v941_v54 = vsel %vm642_vm2, %v828_v56, 0.0  ;;  %v830_v57 = vmul.f32 %v1616_v7, %v1616_v7 }
 0x133   :  { %v943_v0 = vsel %vm642_vm2, %v829_v32, 0.0  ;;  %v750_v7 = vsel %vm642_vm2, %v1695_v62, 0.0  ;;  %v754_v62 = vsel %vm642_vm2, %v1771_v11, 0.0  ;;  %v840_v56 = vmul.f32 %v1977_v41, %v1977_v41 }
 0x134   :  { %v729_v12 = vadd.f32 %v728_v18, %v727_v8  ;;  %v926_v59 = vadd.f32 %v925_v2, %v924_v17  ;;  %v831_v8 = vmul.f32 %v1634_v19, %v1634_v19  ;;  %v945_v18 = vsel %vm642_vm2, %v830_v57, 0.0 }
 0x135   :  { %v752_v19 = vsel %vm642_vm2, %v1723_v28, 0.0  ;;  %v756_v28 = vsel %vm642_vm2, %v1807_v31, 0.0  ;;  %v760_v31 = vsel %vm642_vm2, %v1879_v15, 0.0  ;;  %v764_v15 = vsel %vm642_vm2, %v1945_v4, 0.0 }
 0x136   :  { %v928_v50 = vadd.f32 %v927_v9, %v926_v59  ;;  %v731_v26 = vadd.f32 %v730_v37, %v729_v12  ;;  %v947_v59 = vsel %vm642_vm2, %v831_v8, 0.0 }
 0x138   :  { %v930_v23 = vadd.f32 %v929_v21, %v928_v50  ;;  %v733_v33 = vadd.f32 %v732_v44, %v731_v26  ;;  %v834_v50 = vmul.f32 %v1771_v11, %v1771_v11  ;;  %v951_v44 = vsel %vm642_vm2, %v833_v20, 0.0 }
 0x139   :  { %v758_v11 = vsel %vm642_vm2, %v1851_v14, 0.0 }
 0x13a   :  { %v932_v29 = vadd.f32 %v931_v46, %v930_v23  ;;  %v735_v25 = vadd.f32 %v734_v53, %v733_v33  ;;  %v953_v46 = vsel %vm642_vm2, %v834_v50, 0.0  ;;  %v836_v53 = vmul.f32 %v1851_v14, %v1851_v14 }
 0x13b   :  { %v762_v14 = vsel %vm642_vm2, %v1921_v36, 0.0 }
 0x13c   :  { %v934_v35 = vadd.f32 %v933_v48, %v932_v29  ;;  %v737_v58 = vadd.f32 %v736_v16, %v735_v25  ;;  %v955_v25 = vsel %vm642_vm2, %v835_v24, 0.0 }
 0x13e   :  { %v739_v39 = vadd.f32 %v738_v42, %v737_v58  ;;  %v936_v22 = vadd.f32 %v935_v40, %v934_v35  ;;  %v957_v35 = vsel %vm642_vm2, %v836_v53, 0.0  ;;  %v838_v58 = vmul.f32 %v1921_v36, %v1921_v36 }
 0x13f   :  { %v959_v40 = vsel %vm642_vm2, %v837_v27, 0.0  ;;  %v766_v36 = vsel %vm642_vm2, %v1977_v41, 0.0 }
 0x140   :  { %v741_v55 = vadd.f32 %v740_v51, %v739_v39  ;;  %v938_v5 = vadd.f32 %v937_v45, %v936_v22  ;;  %v839_v39 = vmul.f32 %v1945_v4, %v1945_v4  ;;  %v961_v51 = vsel %vm642_vm2, %v838_v58, 0.0 }
 0x141   :  { %v768_v4 = vsel %vm642_vm2, %v2001_v3, 0.0 }
 0x142   :  { %v743_v60 = vadd.f32 %v742_v34, %v741_v55  ;;  %v940_v47 = vadd.f32 %v939_v1, %v938_v5  ;;  %v963_v1 = vsel %vm642_vm2, %v839_v39, 0.0  ;;  %v841_v34 = vmul.f32 %v2001_v3, %v2001_v3 }
 0x144   :  { %v745_v63 = vadd.f32 %v744_v43, %v743_v60  ;;  %v942_v6 = vadd.f32 %v941_v54, %v940_v47  ;;  %v965_v47 = vsel %vm642_vm2, %v840_v56, 0.0  ;;  %v967_v57 = vsel %vm642_vm2, %v841_v34, 0.0 }
 0x146   :  { %v747_v17 = vadd.f32 %v746_v52, %v745_v63  ;;  %v944_v2 = vadd.f32 %v943_v0, %v942_v6 }
 0x148   :  { %v749_v30 = vadd.f32 %v748_v61, %v747_v17  ;;  %v946_v12 = vadd.f32 %v945_v18, %v944_v2 }
 0x14a   :  { %v948_v9 = vadd.f32 %v947_v59, %v946_v12  ;;  %v751_v37 = vadd.f32 %v750_v7, %v749_v30 }
 0x14c   :  { %v753_v26 = vadd.f32 %v752_v19, %v751_v37  ;;  %v950_v21 = vadd.f32 %v949_v49, %v948_v9 }
 0x14e   :  { %v755_v23 = vadd.f32 %v754_v62, %v753_v26  ;;  %v952_v33 = vadd.f32 %v951_v44, %v950_v21 }
 0x150   :  { %v757_v38 = vadd.f32 %v756_v28, %v755_v23  ;;  %v954_v29 = vadd.f32 %v953_v46, %v952_v33 }
 0x152   :  { %v759_v48 = vadd.f32 %v758_v11, %v757_v38  ;;  %v956_v16 = vadd.f32 %v955_v25, %v954_v29 }
 0x154   :  { %v761_v42 = vadd.f32 %v760_v31, %v759_v48  ;;  %v958_v13 = vadd.f32 %v957_v35, %v956_v16 }
 0x156   :  { %v960_v22 = vadd.f32 %v959_v40, %v958_v13  ;;  %v763_v45 = vadd.f32 %v762_v14, %v761_v42 }
 0x158   :  { %v962_v55 = vadd.f32 %v961_v51, %v960_v22  ;;  %v765_v5 = vadd.f32 %v764_v15, %v763_v45 }
 0x15a   :  { %v964_v32 = vadd.f32 %v963_v1, %v962_v55  ;;  %v767_v60 = vadd.f32 %v766_v36, %v765_v5 }
 0x15c   :  { %v966_v54 = vadd.f32 %v965_v47, %v964_v32  ;;  %v769_v43 = vadd.f32 %v768_v4, %v767_v60 }
 0x15e   :  { %v770_v63 = vrot.slane %v769_v43, 4  ;;  %v968_v6 = vadd.f32 %v967_v57, %v966_v54 }
 0x160   :  { %v771_v0 = vadd.f32 %v770_v63, %v769_v43  ;;  %v969_v52 = vrot.slane %v968_v6, 4 }
 0x162   :  { %v772_v8 = vrot.slane %v771_v0, 2  ;;  %v970_v41 = vadd.f32 %v969_v52, %v968_v6 }
 0x164   :  { %v773_v17 = vadd.f32 %v772_v8, %v771_v0  ;;  %v971_v2 = vrot.slane %v970_v41, 2 }
 0x166   :  { %v774_v18 = vrot.slane %v773_v17, 1  ;;  %v972_v61 = vadd.f32 %v971_v2, %v970_v41 }
 0x168   :  { %v775_v10 = vadd.f32 %v774_v18, %v773_v17  ;;  %v973_v30 = vrot.slane %v972_v61, 1 }
 0x16a   :  { %777 = vst.msk [vmem:[%s2121_s3] sm:$0x1] %vm776_vm3, %v775_v10  ;;  %v974_v3 = vadd.f32 %v973_v30, %v972_v61 }
 0x16c   :  { %975 = vst.msk [vmem:[%s2122_s4] sm:$0x1] %vm776_vm3, %v974_v3 }

// kernel: inception_module.8
= control target key start
LH: loop header
LB: loop body
LE: loop exit
PB: predicated region body
PF: predicated region fallthrough
CT: control target
= control target key end

     0   :  { %vm408_vm0 = vcmask 60416   ;;  %s963_s7 = smov 120   ;;  %s2007_s0 = inlined_call_operand.vmem [shape: bf16[512,24], index: 0, kind: input, shape index: {}]   ;;  %s2008_s1 = inlined_call_operand.vmem [shape: f32[1,16], index: 1, kind: input, shape index: {}]   ;;  %s2009_s2 = inlined_call_operand.vmem [shape: f32[1,16], index: 2, kind: input, shape index: {}]   ;;  %s2010_s3 = inlined_call_operand.vmem [shape: bf16[512,8], index: 3, kind: output, shape index: {0}]   ;;  %s2011_s4 = inlined_call_operand.vmem [shape: bf16[512,8], index: 4, kind: output, shape index: {1}]  }
   0x1   :  { %v802_v0 = vld [vmem:[%s2007_s0] sm:$0xff]   ;;  %v929_v5 = vld [vmem:[%s2007_s0 + $0x8] sm:$0xff]   ;;  %v931_v8 = vld [vmem:[%s2007_s0 + $0x18] sm:$0xff]  }
   0x2   :  { %v995_v1 = vld [vmem:[%s2008_s1] ss:$0 sm:$0xff]  ;;  %v803_v2 = vunpack.c.l.bf16 %v802_v0  ;;  %v804_v3 = vunpack.c.h.bf16 %v802_v0  ;;  %v807_v6 = vunpack.c.l.bf16 %v929_v5  ;;  %v808_v7 = vunpack.c.h.bf16 %v929_v5  ;;  %v930_v10 = vld [vmem:[%s2007_s0 + $0x10] sm:$0xff]   ;;  %v1035_v35 = vld [vmem:[%s2007_s0 + $0x28] sm:$0xff]  }
   0x3   :  { %v1000_v4 = vld [vmem:[%s2009_s2] ss:$0 sm:$0xff]  ;;  %v815_v13 = vunpack.c.l.bf16 %v931_v8  ;;  %v816_v14 = vunpack.c.h.bf16 %v931_v8  ;;  %v811_v18 = vunpack.c.l.bf16 %v930_v10  ;;  %v812_v26 = vunpack.c.h.bf16 %v930_v10  ;;  %v934_v36 = vld [vmem:[%s2007_s0 + $0x30] sm:$0xff]   ;;  %v1044_v42 = vld [vmem:[%s2007_s0 + $0x38] sm:$0xff]  }
   0x4   :  { %v1011_v9 = vld [vmem:[%s2007_s0 + $0x20] sm:$0xff]   ;;  %v148_v11 = vmul.f32 %v995_v1, %v803_v2  ;;  %v149_v12 = vmul.f32 %v995_v1, %v804_v3  ;;  %v150_v15 = vmul.f32 %v995_v1, %v807_v6  ;;  %v151_v16 = vmul.f32 %v995_v1, %v808_v7  ;;  %v937_v3 = vld [vmem:[%s2007_s0 + $0x48] sm:$0xff]  }
   0x5   :  { %v820_v17 = vunpack.c.h.bf16 %v1011_v9  ;;  %v154_v21 = vmul.f32 %v995_v1, %v815_v13  ;;  %v155_v22 = vmul.f32 %v995_v1, %v816_v14  ;;  %v152_v34 = vmul.f32 %v995_v1, %v811_v18  ;;  %v1089_v2 = vld [vmem:[%s2007_s0 + $0x40] sm:$0xff]  }
   0x6   :  { %v216_v19 = vadd.f32 %v1000_v4, %v148_v11  ;;  %v217_v20 = vadd.f32 %v1000_v4, %v149_v12  ;;  %v218_v23 = vadd.f32 %v1000_v4, %v150_v15  ;;  %v219_v24 = vadd.f32 %v1000_v4, %v151_v16 }
   0x7   :  { %v157_v25 = vmul.f32 %v995_v1, %v820_v17  ;;  %v222_v29 = vadd.f32 %v1000_v4, %v154_v21  ;;  %v223_v30 = vadd.f32 %v1000_v4, %v155_v22  ;;  %v220_v41 = vadd.f32 %v1000_v4, %v152_v34 }
   0x8   :  { %v280_v27 = vmax.f32 %v216_v19, 0.0  ;;  %v281_v28 = vmax.f32 %v217_v20, 0.0  ;;  %v282_v31 = vmax.f32 %v218_v23, 0.0  ;;  %v283_v32 = vmax.f32 %v219_v24, 0.0 }
   0x9   :  { %v225_v33 = vadd.f32 %v1000_v4, %v157_v25  ;;  %v286_v38 = vmax.f32 %v222_v29, 0.0  ;;  %v287_v40 = vmax.f32 %v223_v30, 0.0  ;;  %v823_v45 = vunpack.c.l.bf16 %v1035_v35 }
   0xa   :  { %v344_v37 = vpack.c.bf16 %v280_v27, %v280_v27  ;;  %v346_v39 = vpack.c.bf16 %v282_v31, %v282_v31  ;;  %v345_v43 = vpack.c.bf16 %v281_v28, %v281_v28  ;;  %v827_v46 = vunpack.c.l.bf16 %v934_v36  ;;  %v1147_v27 = vld [vmem:[%s2007_s0 + $0x50] sm:$0xff]  }
   0xb   :  { %v289_v44 = vmax.f32 %v225_v33, 0.0  ;;  %v347_v47 = vpack.c.bf16 %v283_v32, %v283_v32  ;;  %v284_v48 = vmax.f32 %v220_v41, 0.0  ;;  %v153_v49 = vmul.f32 %v995_v1, %v812_v26 }
   0xc   :  { %537 = vrot.lane.b32.xlu0 %v344_v37, %s963_s7  ;;  %409 = vst.msk [vmem:[%s2010_s3] sm:$0xf] %vm408_vm0, %v344_v37  ;;  %541 = vrot.lane.b32.xlu1 %v346_v39, %s963_s7  ;;  %v828_v50 = vunpack.c.h.bf16 %v934_v36  ;;  %v350_v51 = vpack.c.bf16 %v286_v38, %v286_v38  ;;  %v158_v52 = vmul.f32 %v995_v1, %v823_v45  ;;  %v832_v54 = vunpack.c.h.bf16 %v1044_v42  ;;  %v940_v45 = vld [vmem:[%s2007_s0 + $0x60] sm:$0xff]  }
   0xd   :  { %411 = vst.msk [vmem:[%s2010_s3 + $0x8] sm:$0xf] %vm408_vm0, %v346_v39  ;;  %v160_v53 = vmul.f32 %v995_v1, %v827_v46  ;;  %v351_v55 = vpack.c.bf16 %v287_v40, %v287_v40  ;;  %v348_v56 = vpack.c.bf16 %v284_v48, %v284_v48  ;;  %v221_v57 = vadd.f32 %v1000_v4, %v153_v49 }
   0xe   :  { %410 = vst.msk [vmem:[%s2010_s3 + $0x4] sm:$0xf] %vm408_vm0, %v345_v43  ;;  %v161_v58 = vmul.f32 %v995_v1, %v828_v50  ;;  %v1075_v59 = vpack.c.bf16 %v289_v44, %v289_v44  ;;  %v226_v60 = vadd.f32 %v1000_v4, %v158_v52  ;;  %v163_v62 = vmul.f32 %v995_v1, %v832_v54  ;;  %v1181_v44 = vld [vmem:[%s2007_s0 + $0x58] sm:$0xff]  }
   0xf   :  { %412 = vst.msk [vmem:[%s2010_s3 + $0xc] sm:$0xf] %vm408_vm0, %v347_v47  ;;  %v228_v61 = vadd.f32 %v1000_v4, %v160_v53  ;;  %545 = vrot.lane.b32.xlu2 %v348_v56, %s963_s7  ;;  %v285_v63 = vmax.f32 %v221_v57, 0.0  ;;  %v819_v8 = vunpack.c.l.bf16 %v1011_v9  ;;  %v835_v12 = vunpack.c.l.bf16 %v1089_v2 }
  0x10   :  { %415 = vst.msk [vmem:[%s2010_s3 + $0x18] sm:$0xf] %vm408_vm0, %v350_v51  ;;  %v229_v0 = vadd.f32 %v1000_v4, %v161_v58  ;;  %v290_v5 = vmax.f32 %v226_v60, 0.0  ;;  %v231_v7 = vadd.f32 %v1000_v4, %v163_v62  ;;  %v839_v13 = vunpack.c.l.bf16 %v937_v3  ;;  %v1219_v60 = vld [vmem:[%s2007_s0 + $0x68] sm:$0xff]  }
  0x11   :  { %416 = vst.msk [vmem:[%s2010_s3 + $0x1c] sm:$0xf] %vm408_vm0, %v351_v55  ;;  %v292_v6 = vmax.f32 %v228_v61, 0.0  ;;  %v349_v10 = vpack.c.bf16 %v285_v63, %v285_v63  ;;  %v156_v16 = vmul.f32 %v995_v1, %v819_v8  ;;  %v164_v9 = vmul.f32 %v995_v1, %v835_v12 }
  0x12   :  { %418 = vst.msk [vmem:[%s2010_s3 + $0x24] sm:$0xf] %vm408_vm0, %v1075_v59  ;;  %v293_v11 = vmax.f32 %v229_v0, 0.0  ;;  %v354_v14 = vpack.c.bf16 %v290_v5, %v290_v5  ;;  %v295_v15 = vmax.f32 %v231_v7, 0.0  ;;  %v166_v18 = vmul.f32 %v995_v1, %v839_v13 }
  0x13   :  { %413 = vst.msk [vmem:[%s2010_s3 + $0x10] sm:$0xf] %vm408_vm0, %v348_v56  ;;  %v1109_v17 = vpack.c.bf16 %v292_v6, %v292_v6  ;;  %v224_v20 = vadd.f32 %v1000_v4, %v156_v16  ;;  %v232_v22 = vadd.f32 %v1000_v4, %v164_v9  ;;  %v824_v29 = vunpack.c.h.bf16 %v1035_v35  ;;  %v943_v16 = vld [vmem:[%s2007_s0 + $0x78] sm:$0xff]  }
  0x14   :  { %539 = vrot.lane.b32.xlu0 %v345_v43, %s963_s7  ;;  %543 = vrot.lane.b32.xlu1 %v347_v47, %s963_s7  ;;  %414 = vst.msk [vmem:[%s2010_s3 + $0x14] sm:$0xf] %vm408_vm0, %v349_v10  ;;  %v1121_v19 = vpack.c.bf16 %v293_v11, %v293_v11  ;;  %v1129_v21 = vpack.c.bf16 %v295_v15, %v295_v15  ;;  %v840_v30 = vunpack.c.h.bf16 %v937_v3  ;;  %v844_v31 = vunpack.c.h.bf16 %v1147_v27  ;;  %v1255_v15 = vld [vmem:[%s2007_s0 + $0x70] sm:$0xff]  }
  0x15   :  { %419 = vst.msk [vmem:[%s2010_s3 + $0x28] sm:$0xf] %vm408_vm0, %v354_v14  ;;  %v234_v23 = vadd.f32 %v1000_v4, %v166_v18  ;;  %v288_v24 = vmax.f32 %v224_v20, 0.0  ;;  %v296_v25 = vmax.f32 %v232_v22, 0.0  ;;  %v159_v34 = vmul.f32 %v995_v1, %v824_v29 }
  0x16   :  { %421 = vst.msk [vmem:[%s2010_s3 + $0x30] sm:$0xf] %vm408_vm0, %v1109_v17  ;;  %v167_v36 = vmul.f32 %v995_v1, %v840_v30  ;;  %v169_v35 = vmul.f32 %v995_v1, %v844_v31  ;;  %v831_v47 = vunpack.c.l.bf16 %v1044_v42  ;;  %v847_v49 = vunpack.c.l.bf16 %v1181_v44  ;;  %v1294_v31 = vld [vmem:[%s2007_s0 + $0x80] sm:$0xff]  }
  0x17   :  { %422 = vst.msk [vmem:[%s2010_s3 + $0x34] sm:$0xf] %vm408_vm0, %v1121_v19  ;;  %547 = vrot.lane.b32.xlu2 %v349_v10, %s963_s7  ;;  %v298_v26 = vmax.f32 %v234_v23, 0.0  ;;  %v352_v28 = vpack.c.bf16 %v288_v24, %v288_v24  ;;  %v1151_v32 = vpack.c.bf16 %v296_v25, %v296_v25  ;;  %v227_v37 = vadd.f32 %v1000_v4, %v159_v34 }
  0x18   :  { %424 = vst.msk [vmem:[%s2010_s3 + $0x3c] sm:$0xf] %vm408_vm0, %v1129_v21  ;;  %v235_v38 = vadd.f32 %v1000_v4, %v167_v36  ;;  %v237_v39 = vadd.f32 %v1000_v4, %v169_v35  ;;  %v851_v50 = vunpack.c.l.bf16 %v940_v45  ;;  %v162_v52 = vmul.f32 %v995_v1, %v831_v47 }
  0x19   :  { %v1153_v33 = vpack.c.bf16 %v298_v26, %v298_v26  ;;  %417 = vst.msk [vmem:[%s2010_s3 + $0x20] sm:$0xf] %vm408_vm0, %v352_v28  ;;  %v291_v40 = vmax.f32 %v227_v37, 0.0  ;;  %v170_v42 = vmul.f32 %v995_v1, %v847_v49  ;;  %v836_v62 = vunpack.c.h.bf16 %v1089_v2  ;;  %v946_v49 = vld [vmem:[%s2007_s0 + $0x90] sm:$0xff]  }
  0x1a   :  { %425 = vst.msk [vmem:[%s2010_s3 + $0x40] sm:$0xf] %vm408_vm0, %v1151_v32  ;;  %v299_v41 = vmax.f32 %v235_v38, 0.0  ;;  %v301_v43 = vmax.f32 %v237_v39, 0.0  ;;  %v172_v53 = vmul.f32 %v995_v1, %v851_v50  ;;  %v230_v54 = vadd.f32 %v1000_v4, %v162_v52 }
  0x1b   :  { %427 = vst.msk [vmem:[%s2010_s3 + $0x48] sm:$0xf] %vm408_vm0, %v1153_v33  ;;  %v355_v46 = vpack.c.bf16 %v291_v40, %v291_v40  ;;  %v852_v63 = vunpack.c.h.bf16 %v940_v45  ;;  %v856_v0 = vunpack.c.h.bf16 %v1219_v60  ;;  %v165_v6 = vmul.f32 %v995_v1, %v836_v62 }
  0x1c   :  { %549 = vrot.lane.b32.xlu0 %v350_v51, %s963_s7  ;;  %551 = vrot.lane.b32.xlu1 %v351_v55, %s963_s7  ;;  %v1187_v48 = vpack.c.bf16 %v299_v41, %v299_v41  ;;  %v1196_v51 = vpack.c.bf16 %v301_v43, %v301_v43  ;;  %v238_v55 = vadd.f32 %v1000_v4, %v170_v42  ;;  %v294_v57 = vmax.f32 %v230_v54, 0.0 }
  0x1d   :  { %420 = vst.msk [vmem:[%s2010_s3 + $0x2c] sm:$0xf] %vm408_vm0, %v355_v46  ;;  %v240_v56 = vadd.f32 %v1000_v4, %v172_v53  ;;  %v173_v7 = vmul.f32 %v995_v1, %v852_v63  ;;  %v175_v2 = vmul.f32 %v995_v1, %v856_v0  ;;  %v233_v8 = vadd.f32 %v1000_v4, %v165_v6  ;;  %v1369_v0 = vld [vmem:[%s2007_s0 + $0x98] sm:$0xff]  }
  0x1e   :  { %428 = vst.msk [vmem:[%s2010_s3 + $0x4c] sm:$0xf] %vm408_vm0, %v1187_v48  ;;  %v302_v58 = vmax.f32 %v238_v55, 0.0  ;;  %v358_v61 = vpack.c.bf16 %v294_v57, %v294_v57  ;;  %v843_v9 = vunpack.c.l.bf16 %v1147_v27  ;;  %v863_v20 = vunpack.c.l.bf16 %v943_v16 }
  0x1f   :  { %553 = vrot.lane.b32.xlu2 %v352_v28, %s963_s7  ;;  %430 = vst.msk [vmem:[%s2010_s3 + $0x54] sm:$0xf] %vm408_vm0, %v1196_v51  ;;  %v241_v10 = vadd.f32 %v1000_v4, %v173_v7  ;;  %v243_v11 = vadd.f32 %v1000_v4, %v175_v2  ;;  %v297_v12 = vmax.f32 %v233_v8, 0.0  ;;  %v848_v34 = vunpack.c.h.bf16 %v1181_v44 }
  0x20   :  { %v1223_v3 = vpack.c.bf16 %v302_v58, %v302_v58  ;;  %423 = vst.msk [vmem:[%s2010_s3 + $0x38] sm:$0xf] %vm408_vm0, %v358_v61  ;;  %v168_v23 = vmul.f32 %v995_v1, %v843_v9  ;;  %v178_v24 = vmul.f32 %v995_v1, %v863_v20  ;;  %v864_v36 = vunpack.c.h.bf16 %v943_v16 }
  0x21   :  { %v305_v13 = vmax.f32 %v241_v10, 0.0  ;;  %v868_v35 = vunpack.c.h.bf16 %v1294_v31  ;;  %v171_v39 = vmul.f32 %v995_v1, %v848_v34  ;;  %v855_v52 = vunpack.c.l.bf16 %v1219_v60 }
  0x22   :  { %431 = vst.msk [vmem:[%s2010_s3 + $0x58] sm:$0xf] %vm408_vm0, %v1223_v3  ;;  %v236_v25 = vadd.f32 %v1000_v4, %v168_v23  ;;  %v246_v27 = vadd.f32 %v1000_v4, %v178_v24  ;;  %v179_v40 = vmul.f32 %v995_v1, %v864_v36  ;;  %v875_v54 = vunpack.c.l.bf16 %v946_v49 }
  0x23   :  { %v1261_v18 = vpack.c.bf16 %v305_v13, %v305_v13  ;;  %v181_v41 = vmul.f32 %v995_v1, %v868_v35  ;;  %v860_v6 = vunpack.c.h.bf16 %v1255_v15  ;;  %v876_v7 = vunpack.c.h.bf16 %v946_v49  ;;  %v1444_v35 = vld [vmem:[%s2007_s0 + $0xb0] sm:$0xff]  }
  0x24   :  { %555 = vrot.lane.b32.xlu0 %v1075_v59, %s963_s7  ;;  %557 = vrot.lane.b32.xlu1 %v354_v14, %s963_s7  ;;  %v304_v59 = vmax.f32 %v240_v56, 0.0  ;;  %v307_v14 = vmax.f32 %v243_v11, 0.0  ;;  %v300_v28 = vmax.f32 %v236_v25, 0.0  ;;  %v310_v30 = vmax.f32 %v246_v27, 0.0 }
  0x25   :  { %434 = vst.msk [vmem:[%s2010_s3 + $0x64] sm:$0xf] %vm408_vm0, %v1261_v18  ;;  %v247_v43 = vadd.f32 %v1000_v4, %v179_v40  ;;  %v249_v44 = vadd.f32 %v1000_v4, %v181_v41  ;;  %v174_v56 = vmul.f32 %v995_v1, %v855_v52  ;;  %v184_v57 = vmul.f32 %v995_v1, %v875_v54 }
  0x26   :  { %v1225_v5 = vpack.c.bf16 %v304_v59, %v304_v59  ;;  %v1270_v22 = vpack.c.bf16 %v307_v14, %v307_v14  ;;  %v1300_v38 = vpack.c.bf16 %v310_v30, %v310_v30  ;;  %v880_v2 = vunpack.c.h.bf16 %v1369_v0 }
  0x27   :  { %559 = vrot.lane.b32.xlu2 %v355_v46, %s963_s7  ;;  %v311_v46 = vmax.f32 %v247_v43, 0.0  ;;  %v313_v47 = vmax.f32 %v249_v44, 0.0  ;;  %v242_v58 = vadd.f32 %v1000_v4, %v174_v56  ;;  %v252_v60 = vadd.f32 %v1000_v4, %v184_v57 }
  0x28   :  { %433 = vst.msk [vmem:[%s2010_s3 + $0x60] sm:$0xf] %vm408_vm0, %v1225_v5  ;;  %v177_v11 = vmul.f32 %v995_v1, %v860_v6  ;;  %v187_v13 = vmul.f32 %v995_v1, %v880_v2  ;;  %v867_v23 = vunpack.c.l.bf16 %v1294_v31  ;;  %v892_v41 = vunpack.c.h.bf16 %v1444_v35  ;;  %v1519_v2 = vld [vmem:[%s2007_s0 + $0xc8] sm:$0xff]  }
  0x29   :  { %436 = vst.msk [vmem:[%s2010_s3 + $0x6c] sm:$0xf] %vm408_vm0, %v1270_v22  ;;  %v1336_v42 = vpack.c.bf16 %v311_v46, %v311_v46  ;;  %v1345_v55 = vpack.c.bf16 %v313_v47, %v313_v47  ;;  %v316_v63 = vmax.f32 %v252_v60, 0.0  ;;  %v879_v56 = vunpack.c.l.bf16 %v1369_v0 }
  0x2a   :  { %439 = vst.msk [vmem:[%s2010_s3 + $0x78] sm:$0xf] %vm408_vm0, %v1300_v38  ;;  %v180_v27 = vmul.f32 %v995_v1, %v867_v23  ;;  %v193_v46 = vmul.f32 %v995_v1, %v892_v41 }
  0x2b   :  { %440 = vst.msk [vmem:[%s2010_s3 + $0x7c] sm:$0xf] %vm408_vm0, %v1336_v42  ;;  %v1375_v10 = vpack.c.bf16 %v316_v63, %v316_v63  ;;  %v186_v60 = vmul.f32 %v995_v1, %v879_v56 }
  0x2c   :  { %561 = vrot.lane.b32.xlu0 %v1109_v17, %s963_s7  ;;  %563 = vrot.lane.b32.xlu1 %v1121_v19, %s963_s7  ;;  %v361_v17 = vpack.c.bf16 %v297_v12, %v297_v12  ;;  %v859_v19 = vunpack.c.l.bf16 %v1255_v15  ;;  %442 = vst.msk [vmem:[%s2010_s3 + $0x84] sm:$0xf] %vm408_vm0, %v1345_v55  ;;  %v185_v12 = vmul.f32 %v995_v1, %v876_v7 }
  0x2d   :  { %445 = vst.msk [vmem:[%s2010_s3 + $0x90] sm:$0xf] %vm408_vm0, %v1375_v10  ;;  %v255_v15 = vadd.f32 %v1000_v4, %v187_v13 }
  0x2e   :  { %426 = vst.msk [vmem:[%s2010_s3 + $0x44] sm:$0xf] %vm408_vm0, %v361_v17  ;;  %v253_v14 = vadd.f32 %v1000_v4, %v185_v12  ;;  %v904_v12 = vunpack.c.h.bf16 %v1519_v2 }
  0x2f   :  { %565 = vrot.lane.b32.xlu2 %v358_v61, %s963_s7  ;;  %v306_v61 = vmax.f32 %v242_v58, 0.0  ;;  %v319_v9 = vmax.f32 %v255_v15, 0.0 }
  0x34   :  { %567 = vrot.lane.b32.xlu0 %v1129_v21, %s963_s7  ;;  %569 = vrot.lane.b32.xlu1 %v1151_v32, %s963_s7  ;;  %v176_v21 = vmul.f32 %v995_v1, %v859_v19  ;;  %v364_v32 = vpack.c.bf16 %v300_v28, %v300_v28  ;;  %v949_v19 = vld [vmem:[%s2007_s0 + $0xa8] sm:$0xff]  }
  0x35   :  { %v887_v25 = vunpack.c.l.bf16 %v949_v19  ;;  %v888_v40 = vunpack.c.h.bf16 %v949_v19 }
  0x36   :  { %v244_v26 = vadd.f32 %v1000_v4, %v176_v21  ;;  %429 = vst.msk [vmem:[%s2010_s3 + $0x50] sm:$0xf] %vm408_vm0, %v364_v32 }
  0x37   :  { %571 = vrot.lane.b32.xlu2 %v361_v17, %s963_s7  ;;  %v317_v17 = vmax.f32 %v253_v14, 0.0  ;;  %v190_v28 = vmul.f32 %v995_v1, %v887_v25  ;;  %v955_v25 = vld [vmem:[%s2007_s0 + $0xd8] sm:$0xff]  }
  0x38   :  { %v308_v29 = vmax.f32 %v244_v26, 0.0  ;;  %v1420_v26 = vpack.c.bf16 %v319_v9, %v319_v9 }
  0x39   :  { %v1411_v21 = vpack.c.bf16 %v317_v17, %v317_v17  ;;  %v258_v31 = vadd.f32 %v1000_v4, %v190_v28  ;;  %v199_v17 = vmul.f32 %v995_v1, %v904_v12 }
  0x3a   :  { %v1298_v37 = vpack.c.bf16 %v308_v29, %v308_v29  ;;  %448 = vst.msk [vmem:[%s2010_s3 + $0x9c] sm:$0xf] %vm408_vm0, %v1420_v26  ;;  %v248_v29 = vadd.f32 %v1000_v4, %v180_v27  ;;  %v891_v27 = vunpack.c.l.bf16 %v1444_v35 }
  0x3b   :  { %446 = vst.msk [vmem:[%s2010_s3 + $0x94] sm:$0xf] %vm408_vm0, %v1411_v21  ;;  %v322_v36 = vmax.f32 %v258_v31, 0.0  ;;  %v267_v19 = vadd.f32 %v1000_v4, %v199_v17 }
  0x3c   :  { %573 = vrot.lane.b32.xlu0 %v1153_v33, %s963_s7  ;;  %575 = vrot.lane.b32.xlu1 %v1187_v48, %s963_s7  ;;  %437 = vst.msk [vmem:[%s2010_s3 + $0x70] sm:$0xf] %vm408_vm0, %v1298_v37  ;;  %v239_v33 = vadd.f32 %v1000_v4, %v171_v39  ;;  %v1330_v48 = vld [vmem:[%s2007_s0 + $0x88] sm:$0xff]  }
  0x3d   :  { %v871_v53 = vunpack.c.l.bf16 %v1330_v48  ;;  %v872_v39 = vunpack.c.h.bf16 %v1330_v48  ;;  %v1450_v43 = vpack.c.bf16 %v322_v36, %v322_v36  ;;  %v261_v48 = vadd.f32 %v1000_v4, %v193_v46 }
  0x3e   :  { %v303_v45 = vmax.f32 %v239_v33, 0.0 }
  0x3f   :  { %577 = vrot.lane.b32.xlu2 %v364_v32, %s963_s7  ;;  %v312_v32 = vmax.f32 %v248_v29, 0.0  ;;  %v183_v44 = vmul.f32 %v995_v1, %v872_v39  ;;  %451 = vst.msk [vmem:[%s2010_s3 + $0xa8] sm:$0xf] %vm408_vm0, %v1450_v43  ;;  %v325_v52 = vmax.f32 %v261_v48, 0.0 }
  0x40   :  { %v367_v50 = vpack.c.bf16 %v303_v45, %v303_v45  ;;  %v191_v45 = vmul.f32 %v995_v1, %v888_v40 }
  0x42   :  { %432 = vst.msk [vmem:[%s2010_s3 + $0x5c] sm:$0xf] %vm408_vm0, %v367_v50  ;;  %v259_v47 = vadd.f32 %v1000_v4, %v191_v45  ;;  %v912_v45 = vunpack.c.h.bf16 %v955_v25 }
  0x44   :  { %579 = vrot.lane.b32.xlu0 %v1196_v51, %s963_s7  ;;  %581 = vrot.lane.b32.xlu1 %v1223_v3, %s963_s7  ;;  %v182_v51 = vmul.f32 %v995_v1, %v871_v53  ;;  %v370_v3 = vpack.c.bf16 %v306_v61, %v306_v61  ;;  %v952_v53 = vld [vmem:[%s2007_s0 + $0xc0] sm:$0xff]  }
  0x45   :  { %v899_v58 = vunpack.c.l.bf16 %v952_v53 }
  0x46   :  { %v250_v59 = vadd.f32 %v1000_v4, %v182_v51  ;;  %435 = vst.msk [vmem:[%s2010_s3 + $0x68] sm:$0xf] %vm408_vm0, %v370_v3 }
  0x47   :  { %583 = vrot.lane.b32.xlu2 %v367_v50, %s963_s7  ;;  %v323_v50 = vmax.f32 %v259_v47, 0.0  ;;  %v196_v61 = vmul.f32 %v995_v1, %v899_v58 }
  0x48   :  { %v314_v62 = vmax.f32 %v250_v59, 0.0  ;;  %v1495_v59 = vpack.c.bf16 %v325_v52, %v325_v52  ;;  %v203_v52 = vmul.f32 %v995_v1, %v912_v45 }
  0x49   :  { %v1486_v51 = vpack.c.bf16 %v323_v50, %v323_v50  ;;  %v264_v0 = vadd.f32 %v1000_v4, %v196_v61  ;;  %v958_v61 = vld [vmem:[%s2007_s0 + $0xf0] sm:$0xff]  }
  0x4a   :  { %v1373_v8 = vpack.c.bf16 %v314_v62, %v314_v62  ;;  %454 = vst.msk [vmem:[%s2010_s3 + $0xb4] sm:$0xf] %vm408_vm0, %v1495_v59  ;;  %v254_v62 = vadd.f32 %v1000_v4, %v186_v60 }
  0x4b   :  { %452 = vst.msk [vmem:[%s2010_s3 + $0xac] sm:$0xf] %vm408_vm0, %v1486_v51  ;;  %v328_v7 = vmax.f32 %v264_v0, 0.0 }
  0x4c   :  { %585 = vrot.lane.b32.xlu0 %v1225_v5, %s963_s7  ;;  %587 = vrot.lane.b32.xlu1 %v1261_v18, %s963_s7  ;;  %443 = vst.msk [vmem:[%s2010_s3 + $0x88] sm:$0xf] %vm408_vm0, %v1373_v8  ;;  %v245_v5 = vadd.f32 %v1000_v4, %v177_v11  ;;  %v1405_v18 = vld [vmem:[%s2007_s0 + $0xa0] sm:$0xff]   ;;  %v900_v11 = vunpack.c.h.bf16 %v952_v53 }
  0x4d   :  { %v883_v24 = vunpack.c.l.bf16 %v1405_v18 }
  0x4e   :  { %v309_v16 = vmax.f32 %v245_v5, 0.0 }
  0x4f   :  { %589 = vrot.lane.b32.xlu2 %v370_v3, %s963_s7  ;;  %v318_v3 = vmax.f32 %v254_v62, 0.0  ;;  %v903_v62 = vunpack.c.l.bf16 %v1519_v2 }
  0x50   :  { %v373_v20 = vpack.c.bf16 %v309_v16, %v309_v16  ;;  %v197_v16 = vmul.f32 %v995_v1, %v900_v11 }
  0x51   :  { %v382_v5 = vpack.c.bf16 %v318_v3, %v318_v3  ;;  %v198_v11 = vmul.f32 %v995_v1, %v903_v62 }
  0x52   :  { %438 = vst.msk [vmem:[%s2010_s3 + $0x74] sm:$0xf] %vm408_vm0, %v373_v20 }
  0x53   :  { %447 = vst.msk [vmem:[%s2010_s3 + $0x98] sm:$0xf] %vm408_vm0, %v382_v5 }
  0x54   :  { %591 = vrot.lane.b32.xlu0 %v1270_v22, %s963_s7  ;;  %593 = vrot.lane.b32.xlu1 %v1298_v37, %s963_s7  ;;  %v188_v22 = vmul.f32 %v995_v1, %v883_v24  ;;  %v376_v37 = vpack.c.bf16 %v312_v32, %v312_v32  ;;  %v1559_v24 = vld [vmem:[%s2007_s0 + $0xd0] sm:$0xff]   ;;  %v192_v32 = vmul.f32 %v995_v1, %v891_v27 }
  0x55   :  { %v907_v29 = vunpack.c.l.bf16 %v1559_v24 }
  0x56   :  { %v256_v30 = vadd.f32 %v1000_v4, %v188_v22  ;;  %441 = vst.msk [vmem:[%s2010_s3 + $0x80] sm:$0xf] %vm408_vm0, %v376_v37  ;;  %v260_v35 = vadd.f32 %v1000_v4, %v192_v32 }
  0x57   :  { %595 = vrot.lane.b32.xlu2 %v373_v20, %s963_s7 }
  0x58   :  { %v320_v34 = vmax.f32 %v256_v30, 0.0  ;;  %v911_v30 = vunpack.c.l.bf16 %v955_v25  ;;  %v324_v40 = vmax.f32 %v260_v35, 0.0 }
  0x5a   :  { %v1448_v33 = vpack.c.bf16 %v320_v34, %v320_v34  ;;  %v202_v36 = vmul.f32 %v995_v1, %v911_v30  ;;  %v388_v47 = vpack.c.bf16 %v324_v40, %v324_v40 }
  0x5c   :  { %597 = vrot.lane.b32.xlu0 %v1300_v38, %s963_s7  ;;  %599 = vrot.lane.b32.xlu1 %v1336_v42, %s963_s7  ;;  %449 = vst.msk [vmem:[%s2010_s3 + $0xa0] sm:$0xf] %vm408_vm0, %v1448_v33  ;;  %v251_v38 = vadd.f32 %v1000_v4, %v183_v44  ;;  %v1480_v42 = vld [vmem:[%s2007_s0 + $0xb8] sm:$0xff]   ;;  %v270_v39 = vadd.f32 %v1000_v4, %v202_v36 }
  0x5d   :  { %v895_v57 = vunpack.c.l.bf16 %v1480_v42  ;;  %v896_v44 = vunpack.c.h.bf16 %v1480_v42  ;;  %453 = vst.msk [vmem:[%s2010_s3 + $0xb0] sm:$0xf] %vm408_vm0, %v388_v47 }
  0x5e   :  { %v315_v49 = vmax.f32 %v251_v38, 0.0 }
  0x5f   :  { %601 = vrot.lane.b32.xlu2 %v376_v37, %s963_s7  ;;  %v195_v50 = vmul.f32 %v995_v1, %v896_v44 }
  0x60   :  { %v379_v54 = vpack.c.bf16 %v315_v49, %v315_v49  ;;  %v334_v49 = vmax.f32 %v270_v39, 0.0 }
  0x61   :  { %v263_v53 = vadd.f32 %v1000_v4, %v195_v50 }
  0x62   :  { %444 = vst.msk [vmem:[%s2010_s3 + $0x8c] sm:$0xf] %vm408_vm0, %v379_v54 }
  0x63   :  { %v327_v58 = vmax.f32 %v263_v53, 0.0 }
  0x64   :  { %603 = vrot.lane.b32.xlu0 %v1345_v55, %s963_s7  ;;  %605 = vrot.lane.b32.xlu1 %v1373_v8, %s963_s7  ;;  %v194_v55 = vmul.f32 %v995_v1, %v895_v57  ;;  %v884_v8 = vunpack.c.h.bf16 %v1405_v18  ;;  %v265_v18 = vadd.f32 %v1000_v4, %v197_v16 }
  0x65   :  { %v391_v0 = vpack.c.bf16 %v327_v58, %v327_v58 }
  0x66   :  { %v262_v63 = vadd.f32 %v1000_v4, %v194_v55  ;;  %v189_v15 = vmul.f32 %v995_v1, %v884_v8  ;;  %v329_v23 = vmax.f32 %v265_v18, 0.0  ;;  %v1650_v55 = vld [vmem:[%s2007_s0 + $0xe8] sm:$0xff]   ;;  %v1701_v18 = vld [vmem:[%s2007_s0 + $0xf8] sm:$0xff]  }
  0x67   :  { %607 = vrot.lane.b32.xlu2 %v379_v54, %s963_s7  ;;  %v271_v54 = vadd.f32 %v1000_v4, %v203_v52  ;;  %456 = vst.msk [vmem:[%s2010_s3 + $0xbc] sm:$0xf] %vm408_vm0, %v391_v0 }
  0x68   :  { %v326_v6 = vmax.f32 %v262_v63, 0.0  ;;  %v257_v9 = vadd.f32 %v1000_v4, %v189_v15  ;;  %v1572_v31 = vpack.c.bf16 %v329_v23, %v329_v23  ;;  %v928_v23 = vunpack.c.h.bf16 %v1701_v18 }
  0x69   :  { %v546_v13 = vpop.permute.xlu2 %545  ;;  %v335_v60 = vmax.f32 %v271_v54, 0.0 }
  0x6a   :  { %v1523_v14 = vpack.c.bf16 %v326_v6, %v326_v6  ;;  %733 = vst.msk [vmem:[%s2011_s4 + $0x10] sm:$0xf] %vm408_vm0, %v546_v13  ;;  %v321_v20 = vmax.f32 %v257_v9, 0.0  ;;  %v919_v6 = vunpack.c.l.bf16 %v1650_v55  ;;  %v266_v13 = vadd.f32 %v1000_v4, %v198_v11 }
  0x6b   :  { %458 = vst.msk [vmem:[%s2010_s3 + $0xc4] sm:$0xf] %vm408_vm0, %v1572_v31  ;;  %v1663_v8 = vpack.c.bf16 %v335_v60, %v335_v60 }
  0x6c   :  { %609 = vrot.lane.b32.xlu0 %v1375_v10, %s963_s7  ;;  %611 = vrot.lane.b32.xlu1 %v1411_v21, %s963_s7  ;;  %v1540_v10 = vpack.c.bf16 %v328_v7, %v328_v7  ;;  %455 = vst.msk [vmem:[%s2010_s3 + $0xb8] sm:$0xf] %vm408_vm0, %v1523_v14  ;;  %v331_v21 = vmax.f32 %v267_v19, 0.0  ;;  %v385_v28 = vpack.c.bf16 %v321_v20, %v321_v20  ;;  %v923_v7 = vunpack.c.l.bf16 %v958_v61 }
  0x6d   :  { %v206_v2 = vmul.f32 %v995_v1, %v919_v6  ;;  %464 = vst.msk [vmem:[%s2010_s3 + $0xdc] sm:$0xf] %vm408_vm0, %v1663_v8  ;;  %v330_v17 = vmax.f32 %v266_v13, 0.0  ;;  %v908_v19 = vunpack.c.h.bf16 %v1559_v24  ;;  %v924_v20 = vunpack.c.h.bf16 %v958_v61 }
  0x6e   :  { %457 = vst.msk [vmem:[%s2010_s3 + $0xc0] sm:$0xf] %vm408_vm0, %v1540_v10  ;;  %v1581_v34 = vpack.c.bf16 %v331_v21, %v331_v21 }
  0x6f   :  { %613 = vrot.lane.b32.xlu2 %v382_v5, %s963_s7  ;;  %450 = vst.msk [vmem:[%s2010_s3 + $0xa4] sm:$0xf] %vm408_vm0, %v385_v28  ;;  %v274_v15 = vadd.f32 %v1000_v4, %v206_v2  ;;  %v394_v25 = vpack.c.bf16 %v330_v17, %v330_v17  ;;  %v209_v24 = vmul.f32 %v995_v1, %v924_v20 }
  0x70   :  { %460 = vst.msk [vmem:[%s2010_s3 + $0xcc] sm:$0xf] %vm408_vm0, %v1581_v34 }
  0x71   :  { %v548_v22 = vpop.permute.xlu2 %547  ;;  %v338_v9 = vmax.f32 %v274_v15, 0.0  ;;  %459 = vst.msk [vmem:[%s2010_s3 + $0xc8] sm:$0xf] %vm408_vm0, %v394_v25  ;;  %v277_v32 = vadd.f32 %v1000_v4, %v209_v24 }
  0x72   :  { %734 = vst.msk [vmem:[%s2011_s4 + $0x14] sm:$0xf] %vm408_vm0, %v548_v22 }
  0x73   :  { %v1705_v27 = vpack.c.bf16 %v338_v9, %v338_v9 }
  0x74   :  { %615 = vrot.lane.b32.xlu0 %v1420_v26, %s963_s7  ;;  %617 = vrot.lane.b32.xlu1 %v1448_v33, %s963_s7  ;;  %v200_v26 = vmul.f32 %v995_v1, %v907_v29  ;;  %v1602_v33 = vld [vmem:[%s2007_s0 + $0xe0] sm:$0xff]   ;;  %v211_v29 = vmul.f32 %v995_v1, %v928_v23 }
  0x75   :  { %v916_v46 = vunpack.c.h.bf16 %v1602_v33  ;;  %467 = vst.msk [vmem:[%s2010_s3 + $0xe8] sm:$0xf] %vm408_vm0, %v1705_v27  ;;  %v915_v39 = vunpack.c.l.bf16 %v1602_v33 }
  0x76   :  { %v268_v37 = vadd.f32 %v1000_v4, %v200_v26  ;;  %v279_v36 = vadd.f32 %v1000_v4, %v211_v29 }
  0x77   :  { %619 = vrot.lane.b32.xlu2 %v385_v28, %s963_s7  ;;  %v205_v42 = vmul.f32 %v995_v1, %v916_v46  ;;  %v201_v28 = vmul.f32 %v995_v1, %v908_v19  ;;  %v204_v46 = vmul.f32 %v995_v1, %v915_v39 }
  0x78   :  { %v332_v41 = vmax.f32 %v268_v37, 0.0  ;;  %v341_v37 = vmax.f32 %v277_v32, 0.0  ;;  %v343_v44 = vmax.f32 %v279_v36, 0.0 }
  0x79   :  { %v554_v38 = vpop.permute.xlu2 %553  ;;  %v273_v57 = vadd.f32 %v1000_v4, %v205_v42  ;;  %v269_v30 = vadd.f32 %v1000_v4, %v201_v28 }
  0x7a   :  { %v1606_v48 = vpack.c.bf16 %v332_v41, %v332_v41  ;;  %737 = vst.msk [vmem:[%s2011_s4 + $0x20] sm:$0xf] %vm408_vm0, %v554_v38  ;;  %v405_v45 = vpack.c.bf16 %v341_v37, %v341_v37 }
  0x7b   :  { %v337_v3 = vmax.f32 %v273_v57, 0.0  ;;  %v333_v35 = vmax.f32 %v269_v30, 0.0 }
  0x7c   :  { %621 = vrot.lane.b32.xlu0 %v1450_v43, %s963_s7  ;;  %623 = vrot.lane.b32.xlu1 %v1486_v51, %s963_s7  ;;  %461 = vst.msk [vmem:[%s2010_s3 + $0xd0] sm:$0xf] %vm408_vm0, %v1606_v48  ;;  %v1634_v51 = vpack.c.bf16 %v334_v49, %v334_v49  ;;  %v920_v49 = vunpack.c.h.bf16 %v1650_v55 }
  0x7d   :  { %v397_v41 = vpack.c.bf16 %v333_v35, %v333_v35  ;;  %470 = vst.msk [vmem:[%s2010_s3 + $0xf4] sm:$0xf] %vm408_vm0, %v405_v45 }
  0x7e   :  { %v538_v43 = vpop.permute.xlu0 %537  ;;  %v542_v56 = vpop.permute.xlu1 %541  ;;  %463 = vst.msk [vmem:[%s2010_s3 + $0xd8] sm:$0xf] %vm408_vm0, %v1634_v51  ;;  %v207_v42 = vmul.f32 %v995_v1, %v920_v49 }
  0x7f   :  { %729 = vst.msk [vmem:[%s2011_s4] sm:$0xf] %vm408_vm0, %v538_v43  ;;  %625 = vrot.lane.b32.xlu2 %v388_v47, %s963_s7  ;;  %v407_v47 = vpack.c.bf16 %v343_v44, %v343_v44 }
  0x80   :  { %731 = vst.msk [vmem:[%s2011_s4 + $0x8] sm:$0xf] %vm408_vm0, %v542_v56  ;;  %v275_v53 = vadd.f32 %v1000_v4, %v207_v42 }
  0x81   :  { %v560_v63 = vpop.permute.xlu2 %559  ;;  %462 = vst.msk [vmem:[%s2010_s3 + $0xd4] sm:$0xf] %vm408_vm0, %v397_v41 }
  0x82   :  { %740 = vst.msk [vmem:[%s2011_s4 + $0x2c] sm:$0xf] %vm408_vm0, %v560_v63  ;;  %v339_v56 = vmax.f32 %v275_v53, 0.0 }
  0x83   :  { %472 = vst.msk [vmem:[%s2010_s3 + $0xfc] sm:$0xf] %vm408_vm0, %v407_v47 }
  0x84   :  { %627 = vrot.lane.b32.xlu0 %v1495_v59, %s963_s7  ;;  %629 = vrot.lane.b32.xlu1 %v1523_v14, %s963_s7  ;;  %v208_v59 = vmul.f32 %v995_v1, %v923_v7  ;;  %v1684_v14 = vpack.c.bf16 %v337_v3, %v337_v3  ;;  %v403_v58 = vpack.c.bf16 %v339_v56, %v339_v56 }
  0x86   :  { %v540_v12 = vpop.permute.xlu0 %539  ;;  %v544_v5 = vpop.permute.xlu1 %543  ;;  %v276_v16 = vadd.f32 %v1000_v4, %v208_v59  ;;  %466 = vst.msk [vmem:[%s2010_s3 + $0xe4] sm:$0xf] %vm408_vm0, %v1684_v14 }
  0x87   :  { %730 = vst.msk [vmem:[%s2011_s4 + $0x4] sm:$0xf] %vm408_vm0, %v540_v12  ;;  %631 = vrot.lane.b32.xlu2 %v391_v0, %s963_s7 }
  0x88   :  { %732 = vst.msk [vmem:[%s2011_s4 + $0xc] sm:$0xf] %vm408_vm0, %v544_v5  ;;  %v340_v22 = vmax.f32 %v276_v16, 0.0 }
  0x89   :  { %v566_v21 = vpop.permute.xlu2 %565  ;;  %468 = vst.msk [vmem:[%s2010_s3 + $0xec] sm:$0xf] %vm408_vm0, %v403_v58 }
  0x8a   :  { %743 = vst.msk [vmem:[%s2011_s4 + $0x38] sm:$0xf] %vm408_vm0, %v566_v21  ;;  %v404_v26 = vpack.c.bf16 %v340_v22, %v340_v22 }
  0x8c   :  { %633 = vrot.lane.b32.xlu0 %v1540_v10, %s963_s7  ;;  %635 = vrot.lane.b32.xlu1 %v1572_v31, %s963_s7  ;;  %469 = vst.msk [vmem:[%s2010_s3 + $0xf0] sm:$0xf] %vm408_vm0, %v404_v26 }
  0x8e   :  { %v550_v10 = vpop.permute.xlu0 %549  ;;  %v552_v31 = vpop.permute.xlu1 %551 }
  0x8f   :  { %735 = vst.msk [vmem:[%s2011_s4 + $0x18] sm:$0xf] %vm408_vm0, %v550_v10  ;;  %637 = vrot.lane.b32.xlu2 %v394_v25, %s963_s7 }
  0x90   :  { %736 = vst.msk [vmem:[%s2011_s4 + $0x1c] sm:$0xf] %vm408_vm0, %v552_v31 }
  0x91   :  { %v572_v40 = vpop.permute.xlu2 %571 }
  0x92   :  { %746 = vst.msk [vmem:[%s2011_s4 + $0x44] sm:$0xf] %vm408_vm0, %v572_v40 }
  0x94   :  { %639 = vrot.lane.b32.xlu0 %v1581_v34, %s963_s7  ;;  %641 = vrot.lane.b32.xlu1 %v1606_v48, %s963_s7  ;;  %v272_v34 = vadd.f32 %v1000_v4, %v204_v46 }
  0x96   :  { %v556_v33 = vpop.permute.xlu0 %555  ;;  %v558_v38 = vpop.permute.xlu1 %557  ;;  %v336_v48 = vmax.f32 %v272_v34, 0.0 }
  0x97   :  { %738 = vst.msk [vmem:[%s2011_s4 + $0x24] sm:$0xf] %vm408_vm0, %v556_v33  ;;  %643 = vrot.lane.b32.xlu2 %v397_v41, %s963_s7 }
  0x98   :  { %739 = vst.msk [vmem:[%s2011_s4 + $0x28] sm:$0xf] %vm408_vm0, %v558_v38  ;;  %v400_v52 = vpack.c.bf16 %v336_v48, %v336_v48 }
  0x99   :  { %v578_v50 = vpop.permute.xlu2 %577 }
  0x9a   :  { %749 = vst.msk [vmem:[%s2011_s4 + $0x50] sm:$0xf] %vm408_vm0, %v578_v50 }
  0x9b   :  { %465 = vst.msk [vmem:[%s2010_s3 + $0xe0] sm:$0xf] %vm408_vm0, %v400_v52 }
  0x9c   :  { %645 = vrot.lane.b32.xlu0 %v1634_v51, %s963_s7  ;;  %647 = vrot.lane.b32.xlu1 %v1663_v8, %s963_s7  ;;  %v927_v51 = vunpack.c.l.bf16 %v1701_v18 }
  0x9e   :  { %v562_v43 = vpop.permute.xlu0 %561  ;;  %v564_v54 = vpop.permute.xlu1 %563  ;;  %v210_v60 = vmul.f32 %v995_v1, %v927_v51 }
  0x9f   :  { %741 = vst.msk [vmem:[%s2011_s4 + $0x30] sm:$0xf] %vm408_vm0, %v562_v43  ;;  %649 = vrot.lane.b32.xlu2 %v400_v52, %s963_s7 }
  0xa0   :  { %742 = vst.msk [vmem:[%s2011_s4 + $0x34] sm:$0xf] %vm408_vm0, %v564_v54  ;;  %v278_v61 = vadd.f32 %v1000_v4, %v210_v60 }
  0xa1   :  { %v584_v57 = vpop.permute.xlu2 %583 }
  0xa2   :  { %752 = vst.msk [vmem:[%s2011_s4 + $0x5c] sm:$0xf] %vm408_vm0, %v584_v57  ;;  %v342_v1 = vmax.f32 %v278_v61, 0.0 }
  0xa4   :  { %651 = vrot.lane.b32.xlu0 %v1684_v14, %s963_s7  ;;  %653 = vrot.lane.b32.xlu1 %v1705_v27, %s963_s7  ;;  %v406_v0 = vpack.c.bf16 %v342_v1, %v342_v1 }
  0xa6   :  { %v568_v55 = vpop.permute.xlu0 %567  ;;  %v570_v62 = vpop.permute.xlu1 %569  ;;  %471 = vst.msk [vmem:[%s2010_s3 + $0xf8] sm:$0xf] %vm408_vm0, %v406_v0 }
  0xa7   :  { %744 = vst.msk [vmem:[%s2011_s4 + $0x3c] sm:$0xf] %vm408_vm0, %v568_v55  ;;  %655 = vrot.lane.b32.xlu2 %v403_v58, %s963_s7 }
  0xa8   :  { %745 = vst.msk [vmem:[%s2011_s4 + $0x40] sm:$0xf] %vm408_vm0, %v570_v62 }
  0xa9   :  { %v590_v63 = vpop.permute.xlu2 %589 }
  0xaa   :  { %755 = vst.msk [vmem:[%s2011_s4 + $0x68] sm:$0xf] %vm408_vm0, %v590_v63 }
  0xac   :  { %657 = vrot.lane.b32.xlu0 %v404_v26, %s963_s7  ;;  %659 = vrot.lane.b32.xlu1 %v405_v45, %s963_s7 }
  0xae   :  { %v574_v4 = vpop.permute.xlu0 %573  ;;  %v576_v3 = vpop.permute.xlu1 %575 }
  0xaf   :  { %747 = vst.msk [vmem:[%s2011_s4 + $0x48] sm:$0xf] %vm408_vm0, %v574_v4  ;;  %661 = vrot.lane.b32.xlu2 %v406_v0, %s963_s7 }
  0xb0   :  { %748 = vst.msk [vmem:[%s2011_s4 + $0x4c] sm:$0xf] %vm408_vm0, %v576_v3 }
  0xb1   :  { %v596_v6 = vpop.permute.xlu2 %595 }
  0xb2   :  { %758 = vst.msk [vmem:[%s2011_s4 + $0x74] sm:$0xf] %vm408_vm0, %v596_v6 }
  0xb4   :  { %663 = vrot.lane.b32.xlu0 %v407_v47, %s963_s7 }
  0xb6   :  { %v580_v7 = vpop.permute.xlu0 %579  ;;  %v582_v8 = vpop.permute.xlu1 %581 }
  0xb7   :  { %750 = vst.msk [vmem:[%s2011_s4 + $0x54] sm:$0xf] %vm408_vm0, %v580_v7 }
  0xb8   :  { %751 = vst.msk [vmem:[%s2011_s4 + $0x58] sm:$0xf] %vm408_vm0, %v582_v8 }
  0xb9   :  { %v602_v11 = vpop.permute.xlu2 %601 }
  0xba   :  { %761 = vst.msk [vmem:[%s2011_s4 + $0x80] sm:$0xf] %vm408_vm0, %v602_v11 }
  0xbe   :  { %v586_v2 = vpop.permute.xlu0 %585  ;;  %v588_v59 = vpop.permute.xlu1 %587 }
  0xbf   :  { %753 = vst.msk [vmem:[%s2011_s4 + $0x60] sm:$0xf] %vm408_vm0, %v586_v2 }
  0xc0   :  { %754 = vst.msk [vmem:[%s2011_s4 + $0x64] sm:$0xf] %vm408_vm0, %v588_v59 }
  0xc1   :  { %v608_v12 = vpop.permute.xlu2 %607 }
  0xc2   :  { %764 = vst.msk [vmem:[%s2011_s4 + $0x8c] sm:$0xf] %vm408_vm0, %v608_v12 }
  0xc6   :  { %v592_v13 = vpop.permute.xlu0 %591  ;;  %v594_v5 = vpop.permute.xlu1 %593 }
  0xc7   :  { %756 = vst.msk [vmem:[%s2011_s4 + $0x6c] sm:$0xf] %vm408_vm0, %v592_v13 }
  0xc8   :  { %757 = vst.msk [vmem:[%s2011_s4 + $0x70] sm:$0xf] %vm408_vm0, %v594_v5 }
  0xc9   :  { %v614_v14 = vpop.permute.xlu2 %613 }
  0xca   :  { %767 = vst.msk [vmem:[%s2011_s4 + $0x98] sm:$0xf] %vm408_vm0, %v614_v14 }
  0xce   :  { %v598_v15 = vpop.permute.xlu0 %597  ;;  %v600_v16 = vpop.permute.xlu1 %599 }
  0xcf   :  { %759 = vst.msk [vmem:[%s2011_s4 + $0x78] sm:$0xf] %vm408_vm0, %v598_v15 }
  0xd0   :  { %760 = vst.msk [vmem:[%s2011_s4 + $0x7c] sm:$0xf] %vm408_vm0, %v600_v16 }
  0xd1   :  { %v620_v17 = vpop.permute.xlu2 %619 }
  0xd2   :  { %770 = vst.msk [vmem:[%s2011_s4 + $0xa4] sm:$0xf] %vm408_vm0, %v620_v17 }
  0xd6   :  { %v604_v9 = vpop.permute.xlu0 %603  ;;  %v606_v18 = vpop.permute.xlu1 %605 }
  0xd7   :  { %762 = vst.msk [vmem:[%s2011_s4 + $0x84] sm:$0xf] %vm408_vm0, %v604_v9 }
  0xd8   :  { %763 = vst.msk [vmem:[%s2011_s4 + $0x88] sm:$0xf] %vm408_vm0, %v606_v18 }
  0xd9   :  { %v626_v19 = vpop.permute.xlu2 %625 }
  0xda   :  { %773 = vst.msk [vmem:[%s2011_s4 + $0xb0] sm:$0xf] %vm408_vm0, %v626_v19 }
  0xde   :  { %v610_v20 = vpop.permute.xlu0 %609  ;;  %v612_v23 = vpop.permute.xlu1 %611 }
  0xdf   :  { %765 = vst.msk [vmem:[%s2011_s4 + $0x90] sm:$0xf] %vm408_vm0, %v610_v20 }
  0xe0   :  { %766 = vst.msk [vmem:[%s2011_s4 + $0x94] sm:$0xf] %vm408_vm0, %v612_v23 }
  0xe1   :  { %v632_v21 = vpop.permute.xlu2 %631 }
  0xe2   :  { %776 = vst.msk [vmem:[%s2011_s4 + $0xbc] sm:$0xf] %vm408_vm0, %v632_v21 }
  0xe6   :  { %v616_v25 = vpop.permute.xlu0 %615  ;;  %v618_v27 = vpop.permute.xlu1 %617 }
  0xe7   :  { %768 = vst.msk [vmem:[%s2011_s4 + $0x9c] sm:$0xf] %vm408_vm0, %v616_v25 }
  0xe8   :  { %769 = vst.msk [vmem:[%s2011_s4 + $0xa0] sm:$0xf] %vm408_vm0, %v618_v27 }
  0xe9   :  { %v638_v22 = vpop.permute.xlu2 %637 }
  0xea   :  { %779 = vst.msk [vmem:[%s2011_s4 + $0xc8] sm:$0xf] %vm408_vm0, %v638_v22 }
  0xee   :  { %v622_v28 = vpop.permute.xlu0 %621  ;;  %v624_v24 = vpop.permute.xlu1 %623 }
  0xef   :  { %771 = vst.msk [vmem:[%s2011_s4 + $0xa8] sm:$0xf] %vm408_vm0, %v622_v28 }
  0xf0   :  { %772 = vst.msk [vmem:[%s2011_s4 + $0xac] sm:$0xf] %vm408_vm0, %v624_v24 }
  0xf1   :  { %v644_v29 = vpop.permute.xlu2 %643 }
  0xf2   :  { %782 = vst.msk [vmem:[%s2011_s4 + $0xd4] sm:$0xf] %vm408_vm0, %v644_v29 }
  0xf6   :  { %v628_v10 = vpop.permute.xlu0 %627  ;;  %v630_v30 = vpop.permute.xlu1 %629 }
  0xf7   :  { %774 = vst.msk [vmem:[%s2011_s4 + $0xb4] sm:$0xf] %vm408_vm0, %v628_v10 }
  0xf8   :  { %775 = vst.msk [vmem:[%s2011_s4 + $0xb8] sm:$0xf] %vm408_vm0, %v630_v30 }
  0xf9   :  { %v650_v32 = vpop.permute.xlu2 %649 }
  0xfa   :  { %785 = vst.msk [vmem:[%s2011_s4 + $0xe0] sm:$0xf] %vm408_vm0, %v650_v32 }
  0xfe   :  { %v634_v31 = vpop.permute.xlu0 %633  ;;  %v636_v26 = vpop.permute.xlu1 %635 }
  0xff   :  { %777 = vst.msk [vmem:[%s2011_s4 + $0xc0] sm:$0xf] %vm408_vm0, %v634_v31 }
 0x100   :  { %778 = vst.msk [vmem:[%s2011_s4 + $0xc4] sm:$0xf] %vm408_vm0, %v636_v26 }
 0x101   :  { %v656_v36 = vpop.permute.xlu2 %655 }
 0x102   :  { %788 = vst.msk [vmem:[%s2011_s4 + $0xec] sm:$0xf] %vm408_vm0, %v656_v36 }
 0x106   :  { %v640_v35 = vpop.permute.xlu0 %639  ;;  %v642_v37 = vpop.permute.xlu1 %641 }
 0x107   :  { %780 = vst.msk [vmem:[%s2011_s4 + $0xcc] sm:$0xf] %vm408_vm0, %v640_v35 }
 0x108   :  { %781 = vst.msk [vmem:[%s2011_s4 + $0xd0] sm:$0xf] %vm408_vm0, %v642_v37 }
 0x109   :  { %v662_v39 = vpop.permute.xlu2 %661 }
 0x10a   :  { %791 = vst.msk [vmem:[%s2011_s4 + $0xf8] sm:$0xf] %vm408_vm0, %v662_v39 }
 0x10e   :  { %v646_v40 = vpop.permute.xlu0 %645  ;;  %v648_v41 = vpop.permute.xlu1 %647 }
 0x10f   :  { %783 = vst.msk [vmem:[%s2011_s4 + $0xd8] sm:$0xf] %vm408_vm0, %v646_v40 }
 0x110   :  { %784 = vst.msk [vmem:[%s2011_s4 + $0xdc] sm:$0xf] %vm408_vm0, %v648_v41 }
 0x116   :  { %v652_v44 = vpop.permute.xlu0 %651  ;;  %v654_v45 = vpop.permute.xlu1 %653 }
 0x117   :  { %786 = vst.msk [vmem:[%s2011_s4 + $0xe4] sm:$0xf] %vm408_vm0, %v652_v44 }
 0x118   :  { %787 = vst.msk [vmem:[%s2011_s4 + $0xe8] sm:$0xf] %vm408_vm0, %v654_v45 }
 0x11e   :  { %v658_v46 = vpop.permute.xlu0 %657  ;;  %v660_v33 = vpop.permute.xlu1 %659 }
 0x11f   :  { %789 = vst.msk [vmem:[%s2011_s4 + $0xf0] sm:$0xf] %vm408_vm0, %v658_v46 }
 0x120   :  { %790 = vst.msk [vmem:[%s2011_s4 + $0xf4] sm:$0xf] %vm408_vm0, %v660_v33 }
 0x126   :  { %v664_v34 = vpop.permute.xlu0 %663 }
 0x127   :  { %792 = vst.msk [vmem:[%s2011_s4 + $0xfc] sm:$0xf] %vm408_vm0, %v664_v34 }

// kernel: inception_module.6
= control target key start
LH: loop header
LB: loop body
LE: loop exit
PB: predicated region body
PF: predicated region fallthrough
CT: control target
= control target key end

     0   :  { %s1152_s15 = smov 0   ;;  %s1154_s16 = smov 0   ;;  %s1379_s0 = inlined_call_operand.vmem [shape: bf16[2,6,10,10,16], index: 0, kind: input, shape index: {}]   ;;  %s1380_s1 = inlined_call_operand.vmem [shape: bf16[16,8], index: 1, kind: input, shape index: {}]   ;;  %s1381_s2 = inlined_call_operand.vmem [shape: bf16[2,4,64,8], index: 2, kind: output, shape index: {0}]   ;;  %s1382_s3 = inlined_call_operand.vmem [shape: f32[2,4,1,8], index: 3, kind: output, shape index: {1}]   ;;  %s1383_s4 = inlined_call_operand.vmem [shape: f32[2,4,1,8], index: 4, kind: output, shape index: {2}]  }
   0x1   :  { %s1156_s17 = smov 0   ;;  %s1158_s18 = smov 0  }
   0x2   :  { %s1160_s19 = smov 0   ;;  %s1162_s20 = smov 0  }
   0x3   :  { %s1164_s21 = smov 0  }
   0x4 LB: > { %s27_s22 = sadd.s32 1, %s1113_s18  ;;  %s30_s23 = sadd.s32 1, %s1117_s19  ;;  %s1125_s21 = sphi %s1164_s21, %s15_s21   ;;  %s1121_s20 = sphi %s1162_s20, %s1389_s20   ;;  %s1117_s19 = sphi %s1160_s19, %s1388_s19   ;;  %s1113_s18 = sphi %s1158_s18, %s1387_s18   ;;  %s1109_s17 = sphi %s1156_s17, %s1386_s17   ;;  %s1105_s16 = sphi %s1154_s16, %s1385_s16   ;;  %s1101_s15 = sphi %s1152_s15, %s1384_s15  }
   0x5   : > { %p28_p0 = scmp.ge.s32.totalorder %s27_s22, 3  ;;  %p950_p1 = scmp.ge.s32.totalorder %s1125_s21, 1 }
   0x6   : > { %p202_p2 = scmp.lt.s32.totalorder %s1125_s21, 25  ;;  %s34_s24 = sadd.s32 1, %s1121_s20 }
   0x7   : > { %s1391_s22 = smov (%p28_p0, %s27_s22), 0  ;;  %s1393_s23 = smov (!%p28_p0, %s30_s23), %s1117_s19 }
   0x8   : > { %p203_p3 = pnand %p950_p1, %p202_p2  ;;  %p32_p4 = scmp.ge.s32.totalorder %s1393_s23, 4 }
   0x9   : > { %s251_s25 = sadd.s32 (!%p203_p3), %s1101_s15, %s1105_s16  ;;  %p252_p6 = scmp.lt.s32.totalorder (!%p203_p3), %s1109_s17, 1 }
   0xa   : > { %s1395_s23 = smov (%p32_p4, %s1393_s23), 0  ;;  %s1397_s24 = smov (!%p32_p4, %s34_s24), %s1121_s20 }
   0xb   : > { %p36_p5 = scmp.ge.s32.totalorder %s1397_s24, 2  ;;  %206 = sbr.rel (%p203_p3) target bundleno = 262 (0x106), region = 28 }
   0xc   : > { %p254_p7 = scmp.lt.s32.totalorder (!%p203_p3), %s251_s25, 5  ;;  %p264_p8 = scmp.lt.s32.totalorder (!%p203_p3), %s1105_s16, 3 }
   0xd   : > { %s1399_s24 = smov (%p36_p5, %s1397_s24), 0  ;;  %p957_p9 = scmp.ne.s32.totalorder (!%p203_p3), %s1101_s15, 0 }
  0x10   : > { %s1401_s17 = smov (!%p252_p6, %s1109_s17), 1  ;;  %s1403_s25 = smov (!%p254_p7, %s251_s25), 5  ;;  %vm438_vm0 = vcmask 1046528   ;;  %vm495_vm1 = vcmask 1045504  }
  0x11   : > { %s1014_s26 = smul.u32 120, %s1401_s17  ;;  %s953_s28 = sshll.u32 %s1401_s17, 5 }
  0x12   : > { %s1013_s27 = smul.u32 20, %s1403_s25  ;;  %s1405_s16 = smov (!%p264_p8, %s1105_s16), 3 }
  0x13   : > { %s955_s30 = sshll.u32 %s1401_s17, 2  ;;  %s952_s6 = sshll.u32 %s1405_s16, 3 }
  0x14   : > { %s258_s29 = sadd.s32 %s1014_s26, %s1013_s27  ;;  %s268_s10 = sadd.s32 %s953_s28, %s952_s6 }
  0x15   : > { %s951_s5 = sshll.u32 %s258_s29, 2  ;;  %s954_s11 = sshll.u32 %s268_s10, 2 }
  0x16   : > { %s1205_s9 = scalar_lea.vmem %s1379_s0, %s951_s5  ;;  %s1207_s12 = sadd.s32 %s955_s30, %s1405_s16 }
  0x17   : > { %v286_v0 = vld [vmem:[%s1205_s9] sm:$0xf]  ;;  %v287_v1 = vld [vmem:[%s1205_s9 + $0x4] sm:$0x1]  ;;  %s1214_s17 = scalar_lea.vmem %s1381_s2, %s954_s11  ;;  %s277_s27 = scalar_lea.vmem %s1382_s3, %s1207_s12  ;;  %v288_v2 = vld [vmem:[%s1205_s9 + $0x8] sm:$0xf] }
  0x18   : > { %v289_v3 = vld [vmem:[%s1205_s9 + $0xc] sm:$0x1]  ;;  %v290_v4 = vld [vmem:[%s1205_s9 + $0x10] sm:$0xf]  ;;  %v306_v5 = vunpack.c.l.bf16 %v286_v0  ;;  %v307_v6 = vunpack.c.l.bf16 %v287_v1  ;;  %s284_s29 = scalar_lea.vmem %s1383_s4, %s1207_s12  ;;  %v291_v7 = vld [vmem:[%s1205_s9 + $0x14] sm:$0x1]  ;;  %v308_v10 = vunpack.c.l.bf16 %v288_v2 }
  0x19   : > { %v292_v8 = vld [vmem:[%s1205_s9 + $0x18] sm:$0xf]  ;;  %v293_v9 = vld [vmem:[%s1205_s9 + $0x1c] sm:$0x1]  ;;  %v309_v11 = vunpack.c.l.bf16 %v289_v3  ;;  %v310_v12 = vunpack.c.l.bf16 %v290_v4  ;;  %v294_v13 = vld [vmem:[%s1205_s9 + $0x20] sm:$0xf]  ;;  %v311_v16 = vunpack.c.l.bf16 %v291_v7 }
  0x1a   : > { %v295_v14 = vld [vmem:[%s1205_s9 + $0x24] sm:$0x1]  ;;  %v296_v15 = vld [vmem:[%s1205_s9 + $0x28] sm:$0xf]  ;;  %v312_v17 = vunpack.c.l.bf16 %v292_v8  ;;  %v313_v18 = vunpack.c.l.bf16 %v293_v9  ;;  %v297_v19 = vld [vmem:[%s1205_s9 + $0x2c] sm:$0x1]  ;;  %v314_v22 = vunpack.c.l.bf16 %v294_v13  ;;  %v324_v25 = vmax.f32 %v306_v5, %v308_v10 }
  0x1b   : > { %v298_v20 = vld [vmem:[%s1205_s9 + $0x30] sm:$0xf]  ;;  %v299_v21 = vld [vmem:[%s1205_s9 + $0x34] sm:$0x1]  ;;  %v315_v23 = vunpack.c.l.bf16 %v295_v14  ;;  %v316_v24 = vunpack.c.l.bf16 %v296_v15  ;;  %v300_v26 = vld [vmem:[%s1205_s9 + $0x38] sm:$0xf]  ;;  %v317_v29 = vunpack.c.l.bf16 %v297_v19  ;;  %v325_v32 = vmax.f32 %v307_v6, %v309_v11 }
  0x1c   : > { %v301_v27 = vld [vmem:[%s1205_s9 + $0x3c] sm:$0x1]  ;;  %v302_v28 = vld [vmem:[%s1205_s9 + $0x40] sm:$0xf]  ;;  %v318_v30 = vunpack.c.l.bf16 %v298_v20  ;;  %v319_v31 = vunpack.c.l.bf16 %v299_v21  ;;  %v303_v33 = vld [vmem:[%s1205_s9 + $0x44] sm:$0x1]  ;;  %v320_v34 = vunpack.c.l.bf16 %v300_v26  ;;  %v326_v37 = vmax.f32 %v308_v10, %v310_v12 }
  0x1d   : > { %v321_v35 = vunpack.c.l.bf16 %v301_v27  ;;  %v322_v36 = vunpack.c.l.bf16 %v302_v28  ;;  %v304_v38 = vld [vmem:[%s1205_s9 + $0x48] sm:$0xf]  ;;  %v305_v39 = vld [vmem:[%s1205_s9 + $0x4c] sm:$0x1]  ;;  %v323_v40 = vunpack.c.l.bf16 %v303_v33  ;;  %v327_v41 = vmax.f32 %v309_v11, %v311_v16 }
  0x1e   : > { %v328_v42 = vmax.f32 %v310_v12, %v312_v17  ;;  %v329_v43 = vmax.f32 %v311_v16, %v313_v18  ;;  %v330_v44 = vmax.f32 %v312_v17, %v314_v22  ;;  %v331_v45 = vmax.f32 %v313_v18, %v315_v23 }
  0x1f   : > { %v332_v46 = vmax.f32 %v314_v22, %v316_v24  ;;  %v333_v47 = vmax.f32 %v315_v23, %v317_v29  ;;  %v334_v48 = vmax.f32 %v316_v24, %v318_v30  ;;  %v335_v49 = vmax.f32 %v317_v29, %v319_v31 }
  0x20   : > { %v336_v50 = vmax.f32 %v318_v30, %v320_v34  ;;  %v337_v51 = vmax.f32 %v319_v31, %v321_v35  ;;  %v338_v52 = vmax.f32 %v320_v34, %v322_v36  ;;  %v339_v53 = vmax.f32 %v321_v35, %v323_v40 }
  0x21   : > { %v372_v54 = vunpack.c.l.bf16 %v304_v38  ;;  %v373_v55 = vunpack.c.l.bf16 %v305_v39  ;;  %v1242_v56 = vmax.f32 %v324_v25, %v310_v12  ;;  %v375_v57 = vmax.f32 %v325_v32, %v311_v16 }
  0x22   : > { %v1244_v58 = vmax.f32 %v326_v37, %v312_v17  ;;  %v377_v59 = vmax.f32 %v327_v41, %v313_v18  ;;  %v1246_v60 = vmax.f32 %v328_v42, %v314_v22  ;;  %v379_v61 = vmax.f32 %v329_v43, %v315_v23 }
  0x23   : > { %v1248_v62 = vmax.f32 %v330_v44, %v316_v24  ;;  %v381_v63 = vmax.f32 %v331_v45, %v317_v29  ;;  %v1250_v0 = vmax.f32 %v332_v46, %v318_v30  ;;  %v383_v1 = vmax.f32 %v333_v47, %v319_v31 }
  0x24   : > { %v1252_v2 = vmax.f32 %v334_v48, %v320_v34  ;;  %v385_v3 = vmax.f32 %v335_v49, %v321_v35  ;;  %v1254_v4 = vmax.f32 %v336_v50, %v322_v36  ;;  %v387_v5 = vmax.f32 %v337_v51, %v323_v40 }
  0x25   : > { %v1256_v6 = vmax.f32 %v338_v52, %v372_v54  ;;  %v1258_v7 = vmax.f32 %v339_v53, %v373_v55  ;;  %v439_v8 = vrot.slane %v1242_v56, 1  ;;  %v440_v9 = vrot.slane %v375_v57, 1 }
  0x26   : > { %v442_v10 = vrot.slane %v1244_v58, 1  ;;  %v443_v11 = vrot.slane %v377_v59, 1  ;;  %v445_v12 = vrot.slane %v1246_v60, 1  ;;  %v446_v13 = vrot.slane %v379_v61, 1 }
  0x27   : > { %v448_v14 = vrot.slane %v1248_v62, 1  ;;  %v449_v15 = vrot.slane %v381_v63, 1  ;;  %v441_v16 = vsel %vm438_vm0, %v439_v8, %v440_v9  ;;  %v451_v18 = vrot.slane %v1250_v0, 1 }
  0x28   : > { %v444_v17 = vsel %vm438_vm0, %v442_v10, %v443_v11  ;;  %v452_v19 = vrot.slane %v383_v1, 1  ;;  %v447_v20 = vsel %vm438_vm0, %v445_v12, %v446_v13  ;;  %v454_v22 = vrot.slane %v1252_v2, 1 }
  0x29   : > { %v450_v21 = vsel %vm438_vm0, %v448_v14, %v449_v15  ;;  %v455_v23 = vrot.slane %v385_v3, 1  ;;  %v457_v25 = vrot.slane %v1254_v4, 1  ;;  %v458_v26 = vrot.slane %v387_v5, 1 }
  0x2a   : > { %v453_v24 = vsel %vm438_vm0, %v451_v18, %v452_v19  ;;  %v460_v27 = vrot.slane %v1256_v6, 1  ;;  %v461_v29 = vrot.slane %v1258_v7, 1  ;;  %v471_v30 = vmax.f32 %v1242_v56, %v441_v16 }
  0x2b   : > { %v456_v28 = vsel %vm438_vm0, %v454_v22, %v455_v23  ;;  %v472_v31 = vmax.f32 %v1244_v58, %v444_v17  ;;  %v459_v32 = vsel %vm438_vm0, %v457_v25, %v458_v26  ;;  %v473_v33 = vmax.f32 %v1246_v60, %v447_v20 }
  0x2c   : > { %v474_v34 = vmax.f32 %v1248_v62, %v450_v21  ;;  %v475_v35 = vmax.f32 %v1250_v0, %v453_v24  ;;  %v462_v36 = vsel %vm438_vm0, %v460_v27, %v461_v29  ;;  %v476_v37 = vmax.f32 %v1252_v2, %v456_v28 }
  0x2d   : > { %v477_v38 = vmax.f32 %v1254_v4, %v459_v32  ;;  %v496_v39 = vrot.slane %v1242_v56, 2  ;;  %v478_v40 = vmax.f32 %v1256_v6, %v462_v36  ;;  %v497_v41 = vrot.slane %v375_v57, 2 }
  0x2e   : > { %v499_v42 = vrot.slane %v1244_v58, 2  ;;  %v500_v43 = vrot.slane %v377_v59, 2  ;;  %v502_v44 = vrot.slane %v1246_v60, 2  ;;  %v503_v45 = vrot.slane %v379_v61, 2 }
  0x2f   : > { %v505_v46 = vrot.slane %v1248_v62, 2  ;;  %v506_v47 = vrot.slane %v381_v63, 2  ;;  %v498_v48 = vsel %vm495_vm1, %v496_v39, %v497_v41  ;;  %v508_v50 = vrot.slane %v1250_v0, 2 }
  0x30   : > { %v501_v49 = vsel %vm495_vm1, %v499_v42, %v500_v43  ;;  %v509_v51 = vrot.slane %v383_v1, 2  ;;  %v504_v52 = vsel %vm495_vm1, %v502_v44, %v503_v45  ;;  %v511_v54 = vrot.slane %v1252_v2, 2 }
  0x31   : > { %v507_v53 = vsel %vm495_vm1, %v505_v46, %v506_v47  ;;  %v512_v55 = vrot.slane %v385_v3, 2  ;;  %v514_v57 = vrot.slane %v1254_v4, 2  ;;  %v515_v58 = vrot.slane %v387_v5, 2 }
  0x32   : > { %v510_v56 = vsel %vm495_vm1, %v508_v50, %v509_v51  ;;  %v517_v59 = vrot.slane %v1256_v6, 2  ;;  %v518_v61 = vrot.slane %v1258_v7, 2  ;;  %v528_v62 = vmax.f32 %v471_v30, %v498_v48 }
  0x33   : > { %v513_v60 = vsel %vm495_vm1, %v511_v54, %v512_v55  ;;  %v529_v63 = vmax.f32 %v472_v31, %v501_v49  ;;  %v516_v0 = vsel %vm495_vm1, %v514_v57, %v515_v58  ;;  %v530_v1 = vmax.f32 %v473_v33, %v504_v52  ;;  %547 = sbr.rel (%p957_p9) target bundleno = 65 (0x41), region = 32 }
  0x34   : > { %v531_v8 = vmax.f32 %v474_v34, %v507_v53  ;;  %v532_v9 = vmax.f32 %v475_v35, %v510_v56  ;;  %v519_v2 = vsel %vm495_vm1, %v517_v59, %v518_v61  ;;  %v533_v3 = vmax.f32 %v476_v37, %v513_v60 }
  0x35   : > { %v534_v10 = vmax.f32 %v477_v38, %v516_v0  ;;  %v536_v11 = vpack.c.bf16 %v528_v62, %v528_v62  ;;  %v535_v4 = vmax.f32 %v478_v40, %v519_v2  ;;  %v537_v5 = vpack.c.bf16 %v529_v63, %v529_v63 }
  0x36   : > { %v538_v12 = vpack.c.bf16 %v530_v1, %v530_v1  ;;  %v539_v6 = vpack.c.bf16 %v531_v8, %v531_v8  ;;  %v540_v13 = vpack.c.bf16 %v532_v9, %v532_v9  ;;  %v541_v14 = vpack.c.bf16 %v533_v3, %v533_v3 }
  0x37   : > { %v542_v15 = vpack.c.bf16 %v534_v10, %v534_v10  ;;  %v543_v7 = vpack.c.bf16 %v535_v4, %v535_v4 }
  0x38   : > { %vm548_vm2 = vcmask 125952  }
  0x39   : > { %549 = vst.msk [vmem:[#allocation2] sm:$0xf] %vm548_vm2, %v536_v11 }
  0x3a   : > { %550 = vst.msk [vmem:[#allocation2 + $0x4] sm:$0xf] %vm548_vm2, %v537_v5 }
  0x3b   : > { %551 = vst.msk [vmem:[#allocation2 + $0x8] sm:$0xf] %vm548_vm2, %v538_v12 }
  0x3c   : > { %552 = vst.msk [vmem:[#allocation2 + $0xc] sm:$0xf] %vm548_vm2, %v539_v6 }
  0x3d   : > { %553 = vst.msk [vmem:[#allocation2 + $0x10] sm:$0xf] %vm548_vm2, %v540_v13 }
  0x3e   : > { %554 = vst.msk [vmem:[#allocation2 + $0x14] sm:$0xf] %vm548_vm2, %v541_v14 }
  0x3f   : > { %555 = vst.msk [vmem:[#allocation2 + $0x18] sm:$0xf] %vm548_vm2, %v542_v15 }
  0x40   : > { %556 = vst.msk [vmem:[#allocation2 + $0x1c] sm:$0xf] %vm548_vm2, %v543_v7 }
  0x41 PF: > { %p958_p10 = scmp.le.s32.totalorder %s1101_s15, 0 }
  0x43   : > { %560 = sbr.rel (%p958_p10) target bundleno = 87 (0x57), region = 36 }
  0x48   : > { %v992_v16 = vld [vmem:[#allocation2] sm:$0xff]   ;;  %v1007_v17 = vld [vmem:[#allocation2 + $0x8] sm:$0xff]   ;;  %v1008_v18 = vld [vmem:[#allocation2 + $0x10] sm:$0xff]   ;;  %vm601_vm3 = vcmask 125952  }
  0x49   : > { %v993_v19 = vunpack.c.l.bf16 %v992_v16  ;;  %v994_v20 = vunpack.c.h.bf16 %v992_v16  ;;  %v997_v21 = vunpack.c.l.bf16 %v1007_v17  ;;  %v998_v22 = vunpack.c.h.bf16 %v1007_v17  ;;  %v1009_v23 = vld [vmem:[#allocation2 + $0x18] sm:$0xff]  }
  0x4a   : > { %v1001_v24 = vunpack.c.l.bf16 %v1008_v18  ;;  %v1002_v25 = vunpack.c.h.bf16 %v1008_v18  ;;  %v1005_v26 = vunpack.c.l.bf16 %v1009_v23  ;;  %v1006_v27 = vunpack.c.h.bf16 %v1009_v23 }
  0x4b   : > { %v585_v28 = vmax.f32 %v993_v19, %v528_v62  ;;  %v586_v29 = vmax.f32 %v994_v20, %v529_v63  ;;  %v587_v30 = vmax.f32 %v997_v21, %v530_v1  ;;  %v588_v31 = vmax.f32 %v998_v22, %v531_v8 }
  0x4c   : > { %v589_v32 = vmax.f32 %v1001_v24, %v532_v9  ;;  %v590_v33 = vmax.f32 %v1002_v25, %v533_v3  ;;  %v591_v37 = vmax.f32 %v1005_v26, %v534_v10  ;;  %v592_v39 = vmax.f32 %v1006_v27, %v535_v4 }
  0x4d   : > { %v593_v34 = vpack.c.bf16 %v585_v28, %v585_v28  ;;  %v594_v35 = vpack.c.bf16 %v586_v29, %v586_v29  ;;  %v595_v36 = vpack.c.bf16 %v587_v30, %v587_v30  ;;  %v596_v38 = vpack.c.bf16 %v588_v31, %v588_v31 }
  0x4e   : > { %v597_v40 = vpack.c.bf16 %v589_v32, %v589_v32  ;;  %v598_v41 = vpack.c.bf16 %v590_v33, %v590_v33  ;;  %v599_v42 = vpack.c.bf16 %v591_v37, %v591_v37  ;;  %v600_v43 = vpack.c.bf16 %v592_v39, %v592_v39 }
  0x4f   : > { %602 = vst.msk [vmem:[#allocation2] sm:$0xf] %vm601_vm3, %v593_v34 }
  0x50   : > { %603 = vst.msk [vmem:[#allocation2 + $0x4] sm:$0xf] %vm601_vm3, %v594_v35 }
  0x51   : > { %604 = vst.msk [vmem:[#allocation2 + $0x8] sm:$0xf] %vm601_vm3, %v595_v36 }
  0x52   : > { %605 = vst.msk [vmem:[#allocation2 + $0xc] sm:$0xf] %vm601_vm3, %v596_v38 }
  0x53   : > { %606 = vst.msk [vmem:[#allocation2 + $0x10] sm:$0xf] %vm601_vm3, %v597_v40 }
  0x54   : > { %607 = vst.msk [vmem:[#allocation2 + $0x14] sm:$0xf] %vm601_vm3, %v598_v41 }
  0x55   : > { %608 = vst.msk [vmem:[#allocation2 + $0x18] sm:$0xf] %vm601_vm3, %v599_v42 }
  0x56   : > { %609 = vst.msk [vmem:[#allocation2 + $0x1c] sm:$0xf] %vm601_vm3, %v600_v43 }
  0x57 PF: > { %p959_p11 = scmp.ne.s32.totalorder %s1101_s15, 2 }
  0x59   : > { %613 = sbr.rel (%p959_p11) target bundleno = 262 (0x106), region = 40 }
  0x5e   : > { %v990_v44 = vld [vmem:[%s1380_s1] sm:$0xff]  ;;  %v987_v46 = vld [vmem:[#allocation2 + $0x8] sm:$0xff]  ;;  %vm650_vm4 = vcmask 130048   ;;  %v988_v47 = vld [vmem:[#allocation2 + $0x10] sm:$0xff]  ;;  %vm700_vm5 = vcmask 60416   ;;  %vm709_vm6 = vcmask 64512  }
  0x5f   : > { %v986_v45 = vld [vmem:[#allocation2] sm:$0xff]  ;;  %670 = vmatpush.bf16.msra.mxu0 %v990_v44  ;;  %1010 = vmatpush.bf16.msra.mxu1 %v990_v44  ;;  %v989_v48 = vld [vmem:[#allocation2 + $0x18] sm:$0xff]  ;;  %vm731_vm7 = vcmask 57344  }
  0x60   : > { %1011 = vmatpush.bf16.msra.mxu2 %v990_v44  ;;  %1012 = vmatpush.bf16.msra.mxu3 %v990_v44 }
  0x62   : > { %980 = vmatmul.msk.bf16.vlgmr.msra.gmra.mxu0 %vm650_vm4, %v986_v45  ;;  %981 = vmatmul.msk.bf16.vlgmr.msra.gmra.mxu1 %vm650_vm4, %v987_v46 }
  0x63   : > { %982 = vmatmul.msk.bf16.vlgmr.msra.gmra.mxu2 %vm650_vm4, %v988_v47  ;;  %983 = vmatmul.msk.bf16.vlgmr.msra.gmra.mxu3 %vm650_vm4, %v989_v48 }
  0xdf   : > { %v672_v49 = vpop.f32.mrf.mxu0  ;;  %v677_v50 = vpop.f32.mrf.mxu1 }
  0xe0   : > { %v692_v51 = vpack.c.bf16 %v672_v49, %v672_v49  ;;  %v694_v52 = vpack.c.bf16 %v677_v50, %v677_v50  ;;  %v733_v55 = vmul.f32 %v672_v49, %v672_v49  ;;  %v710_v60 = vsel %vm709_vm6, %v672_v49, 0.0 }
  0xe1   : > { %v735_v63 = vmul.f32 %v677_v50, %v677_v50  ;;  %v713_v9 = vsel %vm709_vm6, %v677_v50, 0.0 }
  0xe2   : > { %701 = vst.msk [vmem:[%s1214_s17] sm:$0xf] %vm700_vm5, %v692_v51  ;;  %v741_v2 = vsel %vm709_vm6, %v733_v55, 0.0 }
  0xe3   : > { %703 = vst.msk [vmem:[%s1214_s17 + $0x8] sm:$0xf] %vm700_vm5, %v694_v52  ;;  %v744_v12 = vsel %vm709_vm6, %v735_v63, 0.0 }
  0xe6   : > { %v682_v53 = vpop.f32.mrf.mxu2  ;;  %v687_v54 = vpop.f32.mrf.mxu3 }
  0xe7   : > { %v696_v56 = vpack.c.bf16 %v682_v53, %v682_v53  ;;  %v698_v57 = vpack.c.bf16 %v687_v54, %v687_v54  ;;  %v674_v58 = vpop.f32.mrf.mxu0  ;;  %v679_v59 = vpop.f32.mrf.mxu1  ;;  %v737_v6 = vmul.f32 %v682_v53, %v682_v53  ;;  %v717_v14 = vsel %vm709_vm6, %v682_v53, 0.0 }
  0xe8   : > { %v693_v61 = vpack.c.bf16 %v674_v58, %v674_v58  ;;  %v711_v62 = vsel %vm709_vm6, %v674_v58, 0.0  ;;  %v734_v1 = vmul.f32 %v674_v58, %v674_v58  ;;  %v695_v8 = vpack.c.bf16 %v679_v59, %v679_v59 }
  0xe9   : > { %705 = vst.msk [vmem:[%s1214_s17 + $0x10] sm:$0xf] %vm700_vm5, %v696_v56  ;;  %v712_v0 = vadd.f32 %v711_v62, %v710_v60  ;;  %v736_v11 = vmul.f32 %v679_v59, %v679_v59  ;;  %v715_v5 = vsel %vm709_vm6, %v679_v59, 0.0  ;;  %v748_v24 = vsel %vm709_vm6, %v737_v6, 0.0 }
  0xea   : > { %707 = vst.msk [vmem:[%s1214_s17 + $0x18] sm:$0xf] %vm700_vm5, %v698_v57  ;;  %v742_v3 = vsel %vm709_vm6, %v734_v1, 0.0  ;;  %v739_v25 = vmul.f32 %v687_v54, %v687_v54  ;;  %v721_v27 = vsel %vm709_vm6, %v687_v54, 0.0 }
  0xeb   : > { %702 = vst.msk [vmem:[%s1214_s17 + $0x4] sm:$0xf] %vm700_vm5, %v693_v61  ;;  %v714_v10 = vadd.f32 %v713_v9, %v712_v0  ;;  %v743_v4 = vadd.f32 %v742_v3, %v741_v2  ;;  %v746_v17 = vsel %vm709_vm6, %v736_v11, 0.0 }
  0xec   : > { %704 = vst.msk [vmem:[%s1214_s17 + $0xc] sm:$0xf] %vm700_vm5, %v695_v8  ;;  %v752_v34 = vsel %vm709_vm6, %v739_v25, 0.0 }
  0xed   : > { %v716_v13 = vadd.f32 %v715_v5, %v714_v10  ;;  %v745_v15 = vadd.f32 %v744_v12, %v743_v4 }
  0xee   : > { %v684_v7 = vpop.f32.mrf.mxu2  ;;  %v689_v16 = vpop.f32.mrf.mxu3 }
  0xef   : > { %v697_v18 = vpack.c.bf16 %v684_v7, %v684_v7  ;;  %v718_v19 = vadd.f32 %v717_v14, %v716_v13  ;;  %v738_v20 = vmul.f32 %v684_v7, %v684_v7  ;;  %v747_v21 = vadd.f32 %v746_v17, %v745_v15 }
  0xf0   : > { %v719_v22 = vsel %vm709_vm6, %v684_v7, 0.0  ;;  %v699_v23 = vpack.c.bf16 %v689_v16, %v689_v16  ;;  %v740_v31 = vmul.f32 %v689_v16, %v689_v16  ;;  %v723_v33 = vsel %vm709_vm6, %v689_v16, 0.0 }
  0xf1   : > { %706 = vst.msk [vmem:[%s1214_s17 + $0x14] sm:$0xf] %vm700_vm5, %v697_v18  ;;  %v720_v26 = vadd.f32 %v719_v22, %v718_v19  ;;  %v749_v28 = vadd.f32 %v748_v24, %v747_v21  ;;  %v750_v29 = vsel %vm709_vm6, %v738_v20, 0.0 }
  0xf2   : > { %708 = vst.msk [vmem:[%s1214_s17 + $0x1c] sm:$0xf] %vm700_vm5, %v699_v23  ;;  %v754_v38 = vsel %vm709_vm6, %v740_v31, 0.0 }
  0xf3   : > { %v722_v30 = vadd.f32 %v721_v27, %v720_v26  ;;  %v751_v32 = vadd.f32 %v750_v29, %v749_v28 }
  0xf5   : > { %v724_v35 = vadd.f32 %v723_v33, %v722_v30  ;;  %v753_v36 = vadd.f32 %v752_v34, %v751_v32 }
  0xf7   : > { %v725_v37 = vrot.slane %v724_v35, 4  ;;  %v755_v39 = vadd.f32 %v754_v38, %v753_v36 }
  0xf9   : > { %v726_v40 = vadd.f32 %v725_v37, %v724_v35  ;;  %v756_v41 = vrot.slane %v755_v39, 4 }
  0xfb   : > { %v727_v42 = vrot.slane %v726_v40, 2  ;;  %v757_v43 = vadd.f32 %v756_v41, %v755_v39 }
  0xfd   : > { %v728_v44 = vadd.f32 %v727_v42, %v726_v40  ;;  %v758_v45 = vrot.slane %v757_v43, 2 }
  0xff   : > { %v729_v46 = vrot.slane %v728_v44, 1  ;;  %v759_v47 = vadd.f32 %v758_v45, %v757_v43 }
 0x101   : > { %v730_v48 = vadd.f32 %v729_v46, %v728_v44  ;;  %v760_v49 = vrot.slane %v759_v47, 1 }
 0x103   : > { %732 = vst.msk [vmem:[%s277_s27] sm:$0x1] %vm731_vm7, %v730_v48  ;;  %v761_v50 = vadd.f32 %v760_v49, %v759_v47 }
 0x105   : > { %762 = vst.msk [vmem:[%s284_s29] sm:$0x1] %vm731_vm7, %v761_v50 }
 0x106 PF: > { %s15_s21 = sadd.s32 1, %s1125_s21   ;;  %s1384_s15 = smov %s1113_s18 }
 0x107   : > { %p12_p12 = scmp.ge.s32.totalorder %s15_s21, 26   ;;  %s1385_s16 = smov %s1117_s19 }
 0x108   : > { %s1386_s17 = smov %s1121_s20  ;;  %s1387_s18 = smov %s1391_s22 }
 0x109   : > { %s1388_s19 = smov %s1395_s23  ;;  %s1389_s20 = smov %s1399_s24 }
 0x10a   :  { %14 = sbr.rel (!%p12_p12) target bundleno = 4 (0x4), region = 94 }

// kernel: inception_module.11
= control target key start
LH: loop header
LB: loop body
LE: loop exit
PB: predicated region body
PF: predicated region fallthrough
CT: control target
= control target key end

     0   :  { %s3527_s23 = smov 16   ;;  %s3528_s12 = smov 112   ;;  %vm675_vm0 = vcmask 60416   ;;  %vm1386_vm1 = vcmask 191552   ;;  %vm2097_vm2 = vcmask 322752   ;;  %vm2808_vm3 = vcmask 388416   ;;  %s5804_s4 = inlined_call_operand.vmem [shape: f32[1,48], index: 4, kind: input, shape index: {}]   ;;  %s5805_s5 = inlined_call_operand.vmem [shape: f32[1,48], index: 5, kind: input, shape index: {}]   ;;  %s5806_s0 = inlined_call_operand.vmem [shape: bf16[512,24], index: 0, kind: input, shape index: {}]   ;;  %s5807_s6 = inlined_call_operand.vmem [shape: bf16[512,48], index: 6, kind: output, shape index: {}]   ;;  %s5808_s1 = inlined_call_operand.vmem [shape: bf16[512,16], index: 1, kind: input, shape index: {}]   ;;  %s5809_s2 = inlined_call_operand.vmem [shape: bf16[512,16], index: 2, kind: input, shape index: {}]   ;;  %s5810_s3 = inlined_call_operand.vmem [shape: bf16[512,8], index: 3, kind: input, shape index: {}]  }
   0x1   :  { %v3573_v0 = vld [vmem:[%s5804_s4] ss:$0 sm:$0xff]  ;;  %v3390_v3 = vld [vmem:[%s5806_s0 + $0x10] sm:$0xff]   ;;  %v3389_v4 = vld [vmem:[%s5806_s0 + $0x8] sm:$0xff]   ;;  %s3529_s16 = smov 120   ;;  %s3530_s13 = smov 8  }
   0x2   :  { %155 = vrot.lane.b32.xlu0 %v3573_v0, %s3527_s23  ;;  %v3579_v1 = vld [vmem:[%s5805_s5] ss:$0 sm:$0xff]  ;;  %v2887_v6 = vunpack.c.l.bf16 %v3390_v3  ;;  %v2883_v7 = vunpack.c.l.bf16 %v3389_v4  ;;  %v3391_v9 = vld [vmem:[%s5806_s0 + $0x18] sm:$0xff]   ;;  %v2884_v12 = vunpack.c.h.bf16 %v3389_v4  ;;  %v3393_v27 = vld [vmem:[%s5806_s0 + $0x28] sm:$0xff]   ;;  %v2888_v35 = vunpack.c.h.bf16 %v3390_v3  ;;  %s3531_s21 = smov 104   ;;  %s3532_s9 = smov 24  }
   0x3   :  { %v2878_v5 = vld [vmem:[%s5806_s0] sm:$0xff]   ;;  %v2892_v10 = vunpack.c.h.bf16 %v3391_v9  ;;  %v2899_v33 = vunpack.c.l.bf16 %v3393_v27  ;;  %v2891_v34 = vunpack.c.l.bf16 %v3391_v9  ;;  %v3394_v42 = vld [vmem:[%s5806_s0 + $0x30] sm:$0xff]   ;;  %s3533_s14 = smov 88  }
   0x4   :  { %v2879_v8 = vunpack.c.l.bf16 %v2878_v5  ;;  %v2880_v16 = vunpack.c.h.bf16 %v2878_v5  ;;  %v3392_v43 = vld [vmem:[%s5806_s0 + $0x20] sm:$0xff]   ;;  %v2904_v50 = vunpack.c.h.bf16 %v3394_v42 }
   0x5   :  { %v2896_v51 = vunpack.c.h.bf16 %v3392_v43  ;;  %v2895_v52 = vunpack.c.l.bf16 %v3392_v43  ;;  %v3396_v59 = vld [vmem:[%s5806_s0 + $0x40] sm:$0xff]  }
   0x6   :  { %v2911_v5 = vunpack.c.l.bf16 %v3396_v59 }
   0xa   :  { %224 = vrot.lane.b32.xlu0 %v3579_v1, %s3527_s23 }
  0x74   :  { %v3582_v2 = vpop.permute.xlu0 %155 }
  0x75   :  { %v162_v11 = vmul.f32 %v2887_v6, %v3582_v2  ;;  %v160_v13 = vmul.f32 %v2883_v7, %v3582_v2  ;;  %v158_v14 = vmul.f32 %v2879_v8, %v3582_v2  ;;  %v165_v20 = vmul.f32 %v2892_v10, %v3582_v2 }
  0x76   :  { %v161_v24 = vmul.f32 %v2884_v12, %v3582_v2  ;;  %v159_v26 = vmul.f32 %v2880_v16, %v3582_v2  ;;  %v168_v39 = vmul.f32 %v2899_v33, %v3582_v2  ;;  %v164_v40 = vmul.f32 %v2891_v34, %v3582_v2  ;;  %v3395_v16 = vld [vmem:[%s5806_s0 + $0x38] sm:$0xff]  }
  0x77   :  { %v163_v41 = vmul.f32 %v2888_v35, %v3582_v2  ;;  %v171_v56 = vmul.f32 %v2904_v50, %v3582_v2  ;;  %v167_v57 = vmul.f32 %v2896_v51, %v3582_v2  ;;  %v166_v58 = vmul.f32 %v2895_v52, %v3582_v2 }
  0x78   :  { %v2903_v6 = vunpack.c.l.bf16 %v3394_v42  ;;  %v2900_v7 = vunpack.c.h.bf16 %v3393_v27 }
  0x7a   :  { %v170_v12 = vmul.f32 %v2903_v6, %v3582_v2 }
  0x7c   :  { %v3599_v15 = vpop.permute.xlu0 %224 }
  0x7d   :  { %v231_v17 = vadd.f32 %v3599_v15, %v162_v11  ;;  %v229_v18 = vadd.f32 %v3599_v15, %v160_v13  ;;  %v227_v19 = vadd.f32 %v3599_v15, %v158_v14  ;;  %v234_v25 = vadd.f32 %v3599_v15, %v165_v20  ;;  %v3397_v14 = vld [vmem:[%s5806_s0 + $0x48] sm:$0xff]  }
  0x7e   :  { %v230_v31 = vadd.f32 %v3599_v15, %v161_v24  ;;  %v228_v32 = vadd.f32 %v3599_v15, %v159_v26  ;;  %v237_v46 = vadd.f32 %v3599_v15, %v168_v39  ;;  %v233_v47 = vadd.f32 %v3599_v15, %v164_v40 }
  0x7f   :  { %v295_v21 = vmax.f32 %v231_v17, 0.0  ;;  %v293_v22 = vmax.f32 %v229_v18, 0.0  ;;  %v291_v23 = vmax.f32 %v227_v19, 0.0  ;;  %v298_v36 = vmax.f32 %v234_v25, 0.0 }
  0x80   :  { %v294_v37 = vmax.f32 %v230_v31, 0.0  ;;  %v292_v38 = vmax.f32 %v228_v32, 0.0  ;;  %v232_v49 = vadd.f32 %v3599_v15, %v163_v41  ;;  %v301_v53 = vmax.f32 %v237_v46, 0.0  ;;  %v3399_v32 = vld [vmem:[%s5806_s0 + $0x58] sm:$0xff]  }
  0x81   :  { %v359_v28 = vpack.c.bf16 %v295_v21, %v295_v21  ;;  %v357_v29 = vpack.c.bf16 %v293_v22, %v293_v22  ;;  %v355_v30 = vpack.c.bf16 %v291_v23, %v291_v23  ;;  %v362_v44 = vpack.c.bf16 %v298_v36, %v298_v36 }
  0x82   :  { %v358_v45 = vpack.c.bf16 %v294_v37, %v294_v37  ;;  %v356_v48 = vpack.c.bf16 %v292_v38, %v292_v38  ;;  %v297_v54 = vmax.f32 %v233_v47, 0.0  ;;  %v296_v55 = vmax.f32 %v232_v49, 0.0  ;;  %v3398_v49 = vld [vmem:[%s5806_s0 + $0x50] sm:$0xff]  }
  0x83   :  { %491 = vrot.lane.b32.xlu0 %v359_v28, %s3528_s12  ;;  %487 = vrot.lane.b32.xlu2 %v357_v29, %s3528_s12  ;;  %v365_v60 = vpack.c.bf16 %v301_v53, %v301_v53  ;;  %v240_v62 = vadd.f32 %v3599_v15, %v171_v56  ;;  %v236_v63 = vadd.f32 %v3599_v15, %v167_v57  ;;  %v2916_v23 = vunpack.c.h.bf16 %v3397_v14 }
  0x84   :  { %483 = vrot.lane.b32.xlu1 %v355_v30, %s3528_s12  ;;  %v361_v61 = vpack.c.bf16 %v297_v54, %v297_v54  ;;  %v360_v3 = vpack.c.bf16 %v296_v55, %v296_v55  ;;  %v235_v4 = vadd.f32 %v3599_v15, %v166_v58  ;;  %v174_v11 = vmul.f32 %v2911_v5, %v3582_v2 }
  0x85   :  { %v304_v8 = vmax.f32 %v240_v62, 0.0  ;;  %v300_v9 = vmax.f32 %v236_v63, 0.0  ;;  %v169_v13 = vmul.f32 %v2900_v7, %v3582_v2  ;;  %v239_v20 = vadd.f32 %v3599_v15, %v170_v12 }
  0x86   :  { %v299_v10 = vmax.f32 %v235_v4, 0.0  ;;  %v243_v19 = vadd.f32 %v3599_v15, %v174_v11  ;;  %v2908_v24 = vunpack.c.h.bf16 %v3395_v16  ;;  %v2907_v25 = vunpack.c.l.bf16 %v3395_v16  ;;  %v3402_v4 = vld [vmem:[%s5806_s0 + $0x70] sm:$0xff]  }
  0x87   :  { %v368_v17 = vpack.c.bf16 %v304_v8, %v304_v8  ;;  %v364_v18 = vpack.c.bf16 %v300_v9, %v300_v9  ;;  %v238_v22 = vadd.f32 %v3599_v15, %v169_v13  ;;  %v303_v27 = vmax.f32 %v239_v20, 0.0 }
  0x88   :  { %v363_v21 = vpack.c.bf16 %v299_v10, %v299_v10  ;;  %v307_v26 = vmax.f32 %v243_v19, 0.0  ;;  %v177_v29 = vmul.f32 %v2916_v23, %v3582_v2  ;;  %v173_v30 = vmul.f32 %v2908_v24, %v3582_v2 }
  0x89   :  { %v302_v28 = vmax.f32 %v238_v22, 0.0  ;;  %v172_v31 = vmul.f32 %v2907_v25, %v3582_v2  ;;  %v367_v34 = vpack.c.bf16 %v303_v27, %v303_v27  ;;  %v2923_v39 = vunpack.c.l.bf16 %v3399_v32  ;;  %v3401_v22 = vld [vmem:[%s5806_s0 + $0x68] sm:$0xff]  }
  0x8a   :  { %v371_v33 = vpack.c.bf16 %v307_v26, %v307_v26  ;;  %v246_v35 = vadd.f32 %v3599_v15, %v177_v29  ;;  %v242_v36 = vadd.f32 %v3599_v15, %v173_v30  ;;  %v2915_v40 = vunpack.c.l.bf16 %v3397_v14 }
  0x8b   :  { %497 = vrot.lane.b32.xlu0 %v362_v44, %s3528_s12  ;;  %489 = vrot.lane.b32.xlu2 %v358_v45, %s3528_s12  ;;  %v366_v37 = vpack.c.bf16 %v302_v28, %v302_v28  ;;  %v241_v38 = vadd.f32 %v3599_v15, %v172_v31  ;;  %v2912_v41 = vunpack.c.h.bf16 %v3396_v59  ;;  %v180_v45 = vmul.f32 %v2923_v39, %v3582_v2 }
  0x8c   :  { %485 = vrot.lane.b32.xlu1 %v356_v48, %s3528_s12  ;;  %v310_v42 = vmax.f32 %v246_v35, 0.0  ;;  %v306_v43 = vmax.f32 %v242_v36, 0.0  ;;  %v176_v46 = vmul.f32 %v2915_v40, %v3582_v2  ;;  %v3400_v48 = vld [vmem:[%s5806_s0 + $0x60] sm:$0xff]   ;;  %v2920_v57 = vunpack.c.h.bf16 %v3398_v49 }
  0x8d   :  { %v305_v44 = vmax.f32 %v241_v38, 0.0  ;;  %v175_v47 = vmul.f32 %v2912_v41, %v3582_v2  ;;  %v249_v52 = vadd.f32 %v3599_v15, %v180_v45  ;;  %v2928_v56 = vunpack.c.h.bf16 %v3400_v48  ;;  %v3405_v38 = vld [vmem:[%s5806_s0 + $0x88] sm:$0xff]  }
  0x8e   :  { %v374_v50 = vpack.c.bf16 %v310_v42, %v310_v42  ;;  %v370_v51 = vpack.c.bf16 %v306_v43, %v306_v43  ;;  %v245_v53 = vadd.f32 %v3599_v15, %v176_v46  ;;  %v2919_v58 = vunpack.c.l.bf16 %v3398_v49 }
  0x8f   :  { %v369_v54 = vpack.c.bf16 %v305_v44, %v305_v44  ;;  %v244_v55 = vadd.f32 %v3599_v15, %v175_v47  ;;  %v313_v59 = vmax.f32 %v249_v52, 0.0  ;;  %v183_v62 = vmul.f32 %v2928_v56, %v3582_v2 }
  0x90   :  { %v179_v63 = vmul.f32 %v2920_v57, %v3582_v2  ;;  %v2935_v11 = vunpack.c.l.bf16 %v3402_v4  ;;  %v2927_v12 = vunpack.c.l.bf16 %v3400_v48  ;;  %v2924_v13 = vunpack.c.h.bf16 %v3399_v32 }
  0x91   :  { %v377_v5 = vpack.c.bf16 %v313_v59, %v313_v59  ;;  %v252_v7 = vadd.f32 %v3599_v15, %v183_v62  ;;  %v2932_v30 = vunpack.c.h.bf16 %v3401_v22  ;;  %v2931_v31 = vunpack.c.l.bf16 %v3401_v22 }
  0x92   :  { %v248_v8 = vadd.f32 %v3599_v15, %v179_v63  ;;  %v182_v19 = vmul.f32 %v2927_v12, %v3582_v2  ;;  %v181_v20 = vmul.f32 %v2924_v13, %v3582_v2  ;;  %v2947_v45 = vunpack.c.l.bf16 %v3405_v38 }
  0x93   :  { %503 = vrot.lane.b32.xlu0 %v365_v60, %s3528_s12  ;;  %495 = vrot.lane.b32.xlu2 %v361_v61, %s3528_s12  ;;  %v309_v60 = vmax.f32 %v245_v53, 0.0  ;;  %v308_v61 = vmax.f32 %v244_v55, 0.0  ;;  %v316_v14 = vmax.f32 %v252_v7, 0.0  ;;  %v185_v36 = vmul.f32 %v2932_v30, %v3582_v2  ;;  %v3404_v55 = vld [vmem:[%s5806_s0 + $0x80] sm:$0xff]  }
  0x94   :  { %493 = vrot.lane.b32.xlu1 %v360_v3, %s3528_s12  ;;  %v178_v3 = vmul.f32 %v2919_v58, %v3582_v2  ;;  %v312_v16 = vmax.f32 %v248_v8, 0.0  ;;  %v251_v26 = vadd.f32 %v3599_v15, %v182_v19  ;;  %v250_v28 = vadd.f32 %v3599_v15, %v181_v20 }
  0x95   :  { %v373_v6 = vpack.c.bf16 %v309_v60, %v309_v60  ;;  %v372_v9 = vpack.c.bf16 %v308_v61, %v308_v61  ;;  %v380_v23 = vpack.c.bf16 %v316_v14, %v316_v14  ;;  %v254_v42 = vadd.f32 %v3599_v15, %v185_v36 }
  0x96   :  { %v247_v10 = vadd.f32 %v3599_v15, %v178_v3  ;;  %v376_v24 = vpack.c.bf16 %v312_v16, %v312_v16  ;;  %v2936_v47 = vunpack.c.h.bf16 %v3402_v4  ;;  %v2944_v63 = vunpack.c.h.bf16 %v3404_v55 }
  0x97   :  { %v318_v49 = vmax.f32 %v254_v42, 0.0  ;;  %v2943_v3 = vunpack.c.l.bf16 %v3404_v55  ;;  %v2948_v20 = vunpack.c.h.bf16 %v3405_v38 }
  0x98   :  { %v187_v53 = vmul.f32 %v2936_v47, %v3582_v2  ;;  %v191_v8 = vmul.f32 %v2944_v63, %v3582_v2  ;;  %v3410_v63 = vld [vmem:[%s5806_s0 + $0xb0] sm:$0xff]  }
  0x99   :  { %v382_v57 = vpack.c.bf16 %v318_v49, %v318_v49 }
  0x9a   :  { %v256_v61 = vadd.f32 %v3599_v15, %v187_v53  ;;  %v260_v14 = vadd.f32 %v3599_v15, %v191_v8 }
  0x9b   :  { %509 = vrot.lane.b32.xlu0 %v368_v17, %s3528_s12  ;;  %501 = vrot.lane.b32.xlu2 %v364_v18, %s3528_s12  ;;  %v311_v17 = vmax.f32 %v247_v10, 0.0  ;;  %v186_v18 = vmul.f32 %v2935_v11, %v3582_v2  ;;  %v3745_v10 = vld [vmem:[%s5806_s0 + $0xa0] sm:$0xff]  }
  0x9c   :  { %499 = vrot.lane.b32.xlu1 %v363_v21, %s3528_s12  ;;  %v3403_v21 = vld [vmem:[%s5806_s0 + $0x78] sm:$0xff]   ;;  %v324_v22 = vmax.f32 %v260_v14, 0.0 }
  0x9d   :  { %v255_v25 = vadd.f32 %v3599_v15, %v186_v18  ;;  %v375_v27 = vpack.c.bf16 %v311_v17, %v311_v17  ;;  %v2940_v29 = vunpack.c.h.bf16 %v3403_v21  ;;  %v2939_v46 = vunpack.c.l.bf16 %v3403_v21 }
  0x9e   :  { %v2959_v18 = vunpack.c.l.bf16 %v3745_v10  ;;  %v388_v30 = vpack.c.bf16 %v324_v22, %v324_v22 }
  0x9f   :  { %v319_v32 = vmax.f32 %v255_v25, 0.0  ;;  %v189_v35 = vmul.f32 %v2940_v29, %v3582_v2  ;;  %v188_v52 = vmul.f32 %v2939_v46, %v3582_v2 }
  0xa1   :  { %v383_v39 = vpack.c.bf16 %v319_v32, %v319_v32  ;;  %v258_v41 = vadd.f32 %v3599_v15, %v189_v35  ;;  %v257_v59 = vadd.f32 %v3599_v15, %v188_v52 }
  0xa3   :  { %515 = vrot.lane.b32.xlu0 %v371_v33, %s3528_s12  ;;  %507 = vrot.lane.b32.xlu2 %v367_v34, %s3528_s12  ;;  %v315_v33 = vmax.f32 %v251_v26, 0.0  ;;  %v314_v34 = vmax.f32 %v250_v28, 0.0  ;;  %v322_v48 = vmax.f32 %v258_v41, 0.0  ;;  %v193_v26 = vmul.f32 %v2948_v20, %v3582_v2  ;;  %v3407_v28 = vld [vmem:[%s5806_s0 + $0x98] sm:$0xff]   ;;  %v3818_v20 = vld [vmem:[%s5806_s0 + $0xd0] sm:$0xff]  }
  0xa4   :  { %505 = vrot.lane.b32.xlu1 %v366_v37, %s3528_s12  ;;  %v184_v37 = vmul.f32 %v2931_v31, %v3582_v2  ;;  %v2956_v36 = vunpack.c.h.bf16 %v3407_v28 }
  0xa5   :  { %v379_v40 = vpack.c.bf16 %v315_v33, %v315_v33  ;;  %v378_v43 = vpack.c.bf16 %v314_v34, %v314_v34  ;;  %v386_v56 = vpack.c.bf16 %v322_v48, %v322_v48  ;;  %v262_v34 = vadd.f32 %v3599_v15, %v193_v26 }
  0xa6   :  { %v253_v44 = vadd.f32 %v3599_v15, %v184_v37  ;;  %v2955_v37 = vunpack.c.l.bf16 %v3407_v28 }
  0xa7   :  { %v326_v41 = vmax.f32 %v262_v34, 0.0 }
  0xab   :  { %521 = vrot.lane.b32.xlu0 %v374_v50, %s3528_s12  ;;  %513 = vrot.lane.b32.xlu2 %v370_v51, %s3528_s12  ;;  %v317_v50 = vmax.f32 %v253_v44, 0.0  ;;  %v192_v51 = vmul.f32 %v2947_v45, %v3582_v2  ;;  %v196_v44 = vmul.f32 %v2955_v37, %v3582_v2  ;;  %v3779_v45 = vld [vmem:[%s5806_s0 + $0xb8] sm:$0xff]  }
  0xac   :  { %511 = vrot.lane.b32.xlu1 %v369_v54, %s3528_s12  ;;  %v3406_v54 = vld [vmem:[%s5806_s0 + $0x90] sm:$0xff]   ;;  %v2971_v52 = vunpack.c.l.bf16 %v3779_v45 }
  0xad   :  { %v261_v58 = vadd.f32 %v3599_v15, %v192_v51  ;;  %v381_v60 = vpack.c.bf16 %v317_v50, %v317_v50  ;;  %v2952_v62 = vunpack.c.h.bf16 %v3406_v54  ;;  %v2951_v19 = vunpack.c.l.bf16 %v3406_v54 }
  0xae   :  { %v390_v50 = vpack.c.bf16 %v326_v41, %v326_v41  ;;  %v265_v51 = vadd.f32 %v3599_v15, %v196_v44  ;;  %v2960_v54 = vunpack.c.h.bf16 %v3745_v10  ;;  %v2968_v10 = vunpack.c.h.bf16 %v3410_v63 }
  0xaf   :  { %v325_v4 = vmax.f32 %v261_v58, 0.0  ;;  %v195_v7 = vmul.f32 %v2952_v62, %v3582_v2  ;;  %v194_v25 = vmul.f32 %v2951_v19, %v3582_v2  ;;  %v3412_v62 = vld [vmem:[%s5806_s0 + $0xc0] sm:$0xff]  }
  0xb0   :  { %v329_v58 = vmax.f32 %v265_v51, 0.0  ;;  %v2975_v28 = vunpack.c.l.bf16 %v3412_v62 }
  0xb1   :  { %v389_v11 = vpack.c.bf16 %v325_v4, %v325_v4  ;;  %v264_v13 = vadd.f32 %v3599_v15, %v195_v7  ;;  %v263_v32 = vadd.f32 %v3599_v15, %v194_v25 }
  0xb2   :  { %v393_v7 = vpack.c.bf16 %v329_v58, %v329_v58  ;;  %v206_v37 = vmul.f32 %v2975_v28, %v3582_v2 }
  0xb3   :  { %527 = vrot.lane.b32.xlu0 %v377_v5, %s3528_s12  ;;  %519 = vrot.lane.b32.xlu2 %v373_v6, %s3528_s12  ;;  %v321_v5 = vmax.f32 %v257_v59, 0.0  ;;  %v320_v6 = vmax.f32 %v256_v61, 0.0  ;;  %v328_v21 = vmax.f32 %v264_v13, 0.0  ;;  %v204_v59 = vmul.f32 %v2971_v52, %v3582_v2 }
  0xb4   :  { %517 = vrot.lane.b32.xlu1 %v372_v9, %s3528_s12  ;;  %v190_v9 = vmul.f32 %v2943_v3, %v3582_v2  ;;  %v199_v61 = vmul.f32 %v2960_v54, %v3582_v2  ;;  %v275_v44 = vadd.f32 %v3599_v15, %v206_v37 }
  0xb5   :  { %v385_v12 = vpack.c.bf16 %v321_v5, %v321_v5  ;;  %v384_v16 = vpack.c.bf16 %v320_v6, %v320_v6  ;;  %v392_v29 = vpack.c.bf16 %v328_v21, %v328_v21  ;;  %v273_v5 = vadd.f32 %v3599_v15, %v204_v59  ;;  %v3873_v59 = vld [vmem:[%s5806_s0 + $0xe8] sm:$0xff]  }
  0xb6   :  { %v259_v17 = vadd.f32 %v3599_v15, %v190_v9  ;;  %v268_v8 = vadd.f32 %v3599_v15, %v199_v61  ;;  %v2976_v9 = vunpack.c.h.bf16 %v3412_v62 }
  0xb7   :  { %v337_v13 = vmax.f32 %v273_v5, 0.0  ;;  %v2995_v5 = vunpack.c.l.bf16 %v3873_v59 }
  0xb9   :  { %v401_v21 = vpack.c.bf16 %v337_v13, %v337_v13 }
  0xbb   :  { %533 = vrot.lane.b32.xlu0 %v380_v23, %s3528_s12  ;;  %525 = vrot.lane.b32.xlu2 %v376_v24, %s3528_s12  ;;  %v323_v23 = vmax.f32 %v259_v17, 0.0  ;;  %v198_v24 = vmul.f32 %v2959_v18, %v3582_v2  ;;  %v207_v17 = vmul.f32 %v2976_v9, %v3582_v2  ;;  %v203_v18 = vmul.f32 %v2968_v10, %v3582_v2 }
  0xbc   :  { %523 = vrot.lane.b32.xlu1 %v375_v27, %s3528_s12  ;;  %v3409_v27 = vld [vmem:[%s5806_s0 + $0xa8] sm:$0xff]  }
  0xbd   :  { %v267_v31 = vadd.f32 %v3599_v15, %v198_v24  ;;  %v387_v33 = vpack.c.bf16 %v323_v23, %v323_v23  ;;  %v2964_v35 = vunpack.c.h.bf16 %v3409_v27  ;;  %v2963_v53 = vunpack.c.l.bf16 %v3409_v27 }
  0xbe   :  { %v276_v23 = vadd.f32 %v3599_v15, %v207_v17  ;;  %v272_v24 = vadd.f32 %v3599_v15, %v203_v18  ;;  %v2983_v27 = vunpack.c.l.bf16 %v3818_v20  ;;  %v3418_v18 = vld [vmem:[%s5806_s0 + $0xf0] sm:$0xff]  }
  0xbf   :  { %v201_v42 = vmul.f32 %v2964_v35, %v3582_v2 }
  0xc1   :  { %v270_v48 = vadd.f32 %v3599_v15, %v201_v42 }
  0xc3   :  { %539 = vrot.lane.b32.xlu0 %v383_v39, %s3528_s12  ;;  %531 = vrot.lane.b32.xlu2 %v379_v40, %s3528_s12  ;;  %v331_v39 = vmax.f32 %v267_v31, 0.0  ;;  %v327_v40 = vmax.f32 %v263_v32, 0.0  ;;  %v340_v32 = vmax.f32 %v276_v23, 0.0 }
  0xc4   :  { %529 = vrot.lane.b32.xlu1 %v378_v43, %s3528_s12  ;;  %v197_v43 = vmul.f32 %v2956_v36, %v3582_v2  ;;  %v210_v36 = vmul.f32 %v2983_v27, %v3582_v2 }
  0xc5   :  { %v395_v46 = vpack.c.bf16 %v331_v39, %v331_v39  ;;  %v391_v47 = vpack.c.bf16 %v327_v40, %v327_v40  ;;  %v3415_v39 = vld [vmem:[%s5806_s0 + $0xd8] sm:$0xff]   ;;  %v3413_v40 = vld [vmem:[%s5806_s0 + $0xc8] sm:$0xff]   ;;  %v404_v41 = vpack.c.bf16 %v340_v32, %v340_v32 }
  0xc6   :  { %v266_v49 = vadd.f32 %v3599_v15, %v197_v43  ;;  %v279_v43 = vadd.f32 %v3599_v15, %v210_v36 }
  0xc8   :  { %v343_v52 = vmax.f32 %v279_v43, 0.0 }
  0xcb   :  { %545 = vrot.lane.b32.xlu0 %v386_v56, %s3528_s12  ;;  %537 = vrot.lane.b32.xlu2 %v382_v57, %s3528_s12  ;;  %v334_v56 = vmax.f32 %v270_v48, 0.0  ;;  %v330_v57 = vmax.f32 %v266_v49, 0.0  ;;  %v2980_v48 = vunpack.c.h.bf16 %v3413_v40  ;;  %v2979_v49 = vunpack.c.l.bf16 %v3413_v40 }
  0xcc   :  { %535 = vrot.lane.b32.xlu1 %v381_v60, %s3528_s12  ;;  %v200_v60 = vmul.f32 %v2963_v53, %v3582_v2  ;;  %v339_v53 = vmax.f32 %v275_v44, 0.0  ;;  %v2999_v44 = vunpack.c.l.bf16 %v3418_v18 }
  0xcd   :  { %v398_v3 = vpack.c.bf16 %v334_v56, %v334_v56  ;;  %v394_v4 = vpack.c.bf16 %v330_v57, %v330_v57  ;;  %v209_v57 = vmul.f32 %v2980_v48, %v3582_v2  ;;  %v208_v58 = vmul.f32 %v2979_v49, %v3582_v2 }
  0xce   :  { %v269_v6 = vadd.f32 %v3599_v15, %v200_v60  ;;  %v407_v60 = vpack.c.bf16 %v343_v52, %v343_v52  ;;  %v403_v61 = vpack.c.bf16 %v339_v53, %v339_v53  ;;  %v218_v52 = vmul.f32 %v2999_v44, %v3582_v2 }
  0xd0   :  { %v333_v14 = vmax.f32 %v269_v6, 0.0  ;;  %v2987_v6 = vunpack.c.l.bf16 %v3415_v39 }
  0xd2   :  { %v397_v22 = vpack.c.bf16 %v333_v14, %v333_v14  ;;  %v216_v14 = vmul.f32 %v2995_v5, %v3582_v2 }
  0xd3   :  { %551 = vrot.lane.b32.xlu0 %v389_v11, %s3528_s12  ;;  %543 = vrot.lane.b32.xlu2 %v385_v12, %s3528_s12  ;;  %v2967_v11 = vunpack.c.l.bf16 %v3410_v63  ;;  %v278_v63 = vadd.f32 %v3599_v15, %v209_v57  ;;  %v287_v57 = vadd.f32 %v3599_v15, %v218_v52 }
  0xd4   :  { %541 = vrot.lane.b32.xlu1 %v384_v16, %s3528_s12  ;;  %v332_v16 = vmax.f32 %v268_v8, 0.0 }
  0xd5   :  { %v202_v19 = vmul.f32 %v2967_v11, %v3582_v2  ;;  %v342_v11 = vmax.f32 %v278_v63, 0.0 }
  0xd6   :  { %v396_v25 = vpack.c.bf16 %v332_v16, %v332_v16  ;;  %v212_v16 = vmul.f32 %v2987_v6, %v3582_v2 }
  0xd7   :  { %v271_v26 = vadd.f32 %v3599_v15, %v202_v19  ;;  %v3416_v19 = vld [vmem:[%s5806_s0 + $0xe0] sm:$0xff]  }
  0xd8   :  { %v281_v23 = vadd.f32 %v3599_v15, %v212_v16  ;;  %v2992_v27 = vunpack.c.h.bf16 %v3416_v19  ;;  %v2991_v28 = vunpack.c.l.bf16 %v3416_v19 }
  0xd9   :  { %v335_v35 = vmax.f32 %v271_v26, 0.0  ;;  %v3000_v26 = vunpack.c.h.bf16 %v3418_v18 }
  0xda   :  { %v345_v32 = vmax.f32 %v281_v23, 0.0  ;;  %v215_v36 = vmul.f32 %v2992_v27, %v3582_v2  ;;  %v214_v37 = vmul.f32 %v2991_v28, %v3582_v2 }
  0xdb   :  { %557 = vrot.lane.b32.xlu0 %v392_v29, %s3528_s12  ;;  %549 = vrot.lane.b32.xlu2 %v388_v30, %s3528_s12  ;;  %v2972_v29 = vunpack.c.h.bf16 %v3779_v45  ;;  %v399_v45 = vpack.c.bf16 %v335_v35, %v335_v35  ;;  %v219_v35 = vmul.f32 %v3000_v26, %v3582_v2 }
  0xdc   :  { %547 = vrot.lane.b32.xlu1 %v387_v33, %s3528_s12  ;;  %v336_v33 = vmax.f32 %v272_v24, 0.0  ;;  %v283_v43 = vadd.f32 %v3599_v15, %v214_v37 }
  0xdd   :  { %v488_v38 = vpop.permute.xlu2 %487  ;;  %v288_v40 = vadd.f32 %v3599_v15, %v219_v35 }
  0xde   :  { %678 = vst.msk [vmem:[%s5807_s6 + $0x8] sm:$0xf] %vm675_vm0, %v488_v38  ;;  %v205_v38 = vmul.f32 %v2972_v29, %v3582_v2  ;;  %v400_v42 = vpack.c.bf16 %v336_v33, %v336_v33 }
  0xdf   :  { %v352_v48 = vmax.f32 %v288_v40, 0.0 }
  0xe3   :  { %563 = vrot.lane.b32.xlu0 %v395_v46, %s3528_s12  ;;  %555 = vrot.lane.b32.xlu2 %v391_v47, %s3528_s12  ;;  %v274_v46 = vadd.f32 %v3599_v15, %v205_v38  ;;  %v2988_v47 = vunpack.c.h.bf16 %v3415_v39  ;;  %v409_v39 = vpack.c.bf16 %v345_v32, %v345_v32 }
  0xe4   :  { %553 = vrot.lane.b32.xlu1 %v390_v50, %s3528_s12 }
  0xe5   :  { %v490_v55 = vpop.permute.xlu2 %489  ;;  %v213_v56 = vmul.f32 %v2988_v47, %v3582_v2 }
  0xe6   :  { %679 = vst.msk [vmem:[%s5807_s6 + $0xc] sm:$0xf] %vm675_vm0, %v490_v55  ;;  %v338_v55 = vmax.f32 %v274_v46, 0.0 }
  0xe7   :  { %v282_v62 = vadd.f32 %v3599_v15, %v213_v56 }
  0xe9   :  { %v346_v10 = vmax.f32 %v282_v62, 0.0 }
  0xeb   :  { %569 = vrot.lane.b32.xlu0 %v398_v3, %s3528_s12  ;;  %561 = vrot.lane.b32.xlu2 %v394_v4, %s3528_s12  ;;  %v402_v3 = vpack.c.bf16 %v338_v55, %v338_v55  ;;  %v277_v4 = vadd.f32 %v3599_v15, %v208_v58  ;;  %v416_v55 = vpack.c.bf16 %v352_v48, %v352_v48 }
  0xec   :  { %559 = vrot.lane.b32.xlu1 %v393_v7, %s3528_s12  ;;  %v2984_v7 = vunpack.c.h.bf16 %v3818_v20  ;;  %v410_v20 = vpack.c.bf16 %v346_v10, %v346_v10 }
  0xed   :  { %v496_v12 = vpop.permute.xlu2 %495  ;;  %v341_v13 = vmax.f32 %v277_v4, 0.0 }
  0xee   :  { %682 = vst.msk [vmem:[%s5807_s6 + $0x18] sm:$0xf] %vm675_vm0, %v496_v12  ;;  %v211_v17 = vmul.f32 %v2984_v7, %v3582_v2 }
  0xef   :  { %v405_v24 = vpack.c.bf16 %v341_v13, %v341_v13 }
  0xf3   :  { %575 = vrot.lane.b32.xlu0 %v401_v21, %s3528_s12  ;;  %567 = vrot.lane.b32.xlu2 %v397_v22, %s3528_s12  ;;  %v406_v21 = vpack.c.bf16 %v342_v11, %v342_v11  ;;  %v285_v22 = vadd.f32 %v3599_v15, %v216_v14 }
  0xf4   :  { %565 = vrot.lane.b32.xlu1 %v396_v25, %s3528_s12  ;;  %v280_v25 = vadd.f32 %v3599_v15, %v211_v17 }
  0xf5   :  { %v492_v30 = vpop.permute.xlu0 %491  ;;  %v502_v31 = vpop.permute.xlu2 %501 }
  0xf6   :  { %680 = vst.msk [vmem:[%s5807_s6 + $0x10] sm:$0xf] %vm675_vm0, %v492_v30  ;;  %v484_v34 = vpop.permute.xlu1 %483 }
  0xf7   :  { %685 = vst.msk [vmem:[%s5807_s6 + $0x24] sm:$0xf] %vm675_vm0, %v502_v31  ;;  %v349_v31 = vmax.f32 %v285_v22, 0.0 }
  0xf8   :  { %676 = vst.msk [vmem:[%s5807_s6] sm:$0xf] %vm675_vm0, %v484_v34  ;;  %v344_v34 = vmax.f32 %v280_v25, 0.0 }
  0xf9   :  { %v413_v38 = vpack.c.bf16 %v349_v31, %v349_v31 }
  0xfb   :  { %581 = vrot.lane.b32.xlu0 %v404_v41, %s3528_s12  ;;  %573 = vrot.lane.b32.xlu2 %v400_v42, %s3528_s12  ;;  %v284_v41 = vadd.f32 %v3599_v15, %v215_v36  ;;  %v408_v42 = vpack.c.bf16 %v344_v34, %v344_v34 }
  0xfc   :  { %571 = vrot.lane.b32.xlu1 %v399_v45, %s3528_s12  ;;  %v2996_v45 = vunpack.c.h.bf16 %v3873_v59 }
  0xfd   :  { %v498_v50 = vpop.permute.xlu0 %497  ;;  %v508_v51 = vpop.permute.xlu2 %507  ;;  %v348_v49 = vmax.f32 %v284_v41, 0.0 }
  0xfe   :  { %683 = vst.msk [vmem:[%s5807_s6 + $0x1c] sm:$0xf] %vm675_vm0, %v498_v50  ;;  %v486_v54 = vpop.permute.xlu1 %485  ;;  %v217_v53 = vmul.f32 %v2996_v45, %v3582_v2 }
  0xff   :  { %688 = vst.msk [vmem:[%s5807_s6 + $0x30] sm:$0xf] %vm675_vm0, %v508_v51  ;;  %v347_v51 = vmax.f32 %v283_v43, 0.0  ;;  %v412_v56 = vpack.c.bf16 %v348_v49, %v348_v49 }
 0x100   :  { %677 = vst.msk [vmem:[%s5807_s6 + $0x4] sm:$0xf] %vm675_vm0, %v486_v54  ;;  %v3419_v54 = vld [vmem:[%s5806_s0 + $0xf8] sm:$0xff]   ;;  %v286_v59 = vadd.f32 %v3599_v15, %v217_v53 }
 0x101   :  { %v411_v58 = vpack.c.bf16 %v347_v51, %v347_v51 }
 0x102   :  { %v350_v5 = vmax.f32 %v286_v59, 0.0 }
 0x103   :  { %587 = vrot.lane.b32.xlu0 %v407_v60, %s3528_s12  ;;  %579 = vrot.lane.b32.xlu2 %v403_v61, %s3528_s12  ;;  %v3004_v60 = vunpack.c.h.bf16 %v3419_v54  ;;  %v3003_v61 = vunpack.c.l.bf16 %v3419_v54 }
 0x104   :  { %577 = vrot.lane.b32.xlu1 %v402_v3, %s3528_s12  ;;  %v351_v3 = vmax.f32 %v287_v57, 0.0  ;;  %v414_v10 = vpack.c.bf16 %v350_v5, %v350_v5 }
 0x105   :  { %v504_v8 = vpop.permute.xlu0 %503  ;;  %v514_v9 = vpop.permute.xlu2 %513  ;;  %v221_v6 = vmul.f32 %v3004_v60, %v3582_v2  ;;  %v220_v7 = vmul.f32 %v3003_v61, %v3582_v2  ;;  %v3421_v61 = vld [vmem:[%s5808_s1 + $0x10] sm:$0xff]  }
 0x106   :  { %686 = vst.msk [vmem:[%s5807_s6 + $0x28] sm:$0xf] %vm675_vm0, %v504_v8  ;;  %v494_v12 = vpop.permute.xlu1 %493  ;;  %v415_v8 = vpack.c.bf16 %v351_v3, %v351_v3 }
 0x107   :  { %691 = vst.msk [vmem:[%s5807_s6 + $0x3c] sm:$0xf] %vm675_vm0, %v514_v9  ;;  %v290_v9 = vadd.f32 %v3599_v15, %v221_v6  ;;  %v289_v11 = vadd.f32 %v3599_v15, %v220_v7  ;;  %v3015_v6 = vunpack.c.l.bf16 %v3421_v61 }
 0x108   :  { %681 = vst.msk [vmem:[%s5807_s6 + $0x14] sm:$0xf] %vm675_vm0, %v494_v12 }
 0x109   :  { %v354_v14 = vmax.f32 %v290_v9, 0.0  ;;  %v353_v16 = vmax.f32 %v289_v11, 0.0 }
 0x10b   :  { %593 = vrot.lane.b32.xlu0 %v410_v20, %s3528_s12  ;;  %585 = vrot.lane.b32.xlu2 %v406_v21, %s3528_s12  ;;  %v417_v15 = vpack.c.bf16 %v353_v16, %v353_v16 }
 0x10c   :  { %583 = vrot.lane.b32.xlu1 %v405_v24, %s3528_s12 }
 0x10d   :  { %v510_v29 = vpop.permute.xlu0 %509  ;;  %v520_v30 = vpop.permute.xlu2 %519 }
 0x10e   :  { %689 = vst.msk [vmem:[%s5807_s6 + $0x34] sm:$0xf] %vm675_vm0, %v510_v29  ;;  %v500_v33 = vpop.permute.xlu1 %499 }
 0x10f   :  { %694 = vst.msk [vmem:[%s5807_s6 + $0x48] sm:$0xf] %vm675_vm0, %v520_v30 }
 0x110   :  { %684 = vst.msk [vmem:[%s5807_s6 + $0x20] sm:$0xf] %vm675_vm0, %v500_v33 }
 0x113   :  { %599 = vrot.lane.b32.xlu0 %v413_v38, %s3528_s12  ;;  %591 = vrot.lane.b32.xlu2 %v409_v39, %s3528_s12 }
 0x114   :  { %589 = vrot.lane.b32.xlu1 %v408_v42, %s3528_s12 }
 0x115   :  { %v516_v46 = vpop.permute.xlu0 %515  ;;  %v526_v47 = vpop.permute.xlu2 %525 }
 0x116   :  { %692 = vst.msk [vmem:[%s5807_s6 + $0x40] sm:$0xf] %vm675_vm0, %v516_v46  ;;  %v506_v50 = vpop.permute.xlu1 %505 }
 0x117   :  { %697 = vst.msk [vmem:[%s5807_s6 + $0x54] sm:$0xf] %vm675_vm0, %v526_v47 }
 0x118   :  { %687 = vst.msk [vmem:[%s5807_s6 + $0x2c] sm:$0xf] %vm675_vm0, %v506_v50 }
 0x11b   :  { %605 = vrot.lane.b32.xlu0 %v416_v55, %s3528_s12  ;;  %597 = vrot.lane.b32.xlu2 %v412_v56, %s3528_s12  ;;  %v3420_v55 = vld [vmem:[%s5808_s1 + $0x8] sm:$0xff]   ;;  %v3006_v56 = vld [vmem:[%s5808_s1] sm:$0xff]  }
 0x11c   :  { %595 = vrot.lane.b32.xlu1 %v411_v58, %s3528_s12  ;;  %v3011_v58 = vunpack.c.l.bf16 %v3420_v55  ;;  %v3008_v59 = vunpack.c.h.bf16 %v3006_v56  ;;  %v3007_v60 = vunpack.c.l.bf16 %v3006_v56  ;;  %v3012_v7 = vunpack.c.h.bf16 %v3420_v55 }
 0x11d   :  { %v522_v62 = vpop.permute.xlu0 %521  ;;  %v532_v63 = vpop.permute.xlu2 %531 }
 0x11e   :  { %695 = vst.msk [vmem:[%s5807_s6 + $0x4c] sm:$0xf] %vm675_vm0, %v522_v62  ;;  %v512_v4 = vpop.permute.xlu1 %511 }
 0x11f   :  { %700 = vst.msk [vmem:[%s5807_s6 + $0x60] sm:$0xf] %vm675_vm0, %v532_v63  ;;  %v3016_v63 = vunpack.c.h.bf16 %v3421_v61 }
 0x120   :  { %690 = vst.msk [vmem:[%s5807_s6 + $0x38] sm:$0xf] %vm675_vm0, %v512_v4 }
 0x123   :  { %603 = vrot.lane.b32.xlu2 %v415_v8, %s3528_s12  ;;  %868 = vrot.lane.b32.xlu0 %v3573_v0, %s3529_s16  ;;  %v418_v0 = vpack.c.bf16 %v354_v14, %v354_v14  ;;  %v3423_v14 = vld [vmem:[%s5808_s1 + $0x20] sm:$0xff]  }
 0x124   :  { %601 = vrot.lane.b32.xlu1 %v414_v10, %s3528_s12 }
 0x125   :  { %v528_v12 = vpop.permute.xlu0 %527  ;;  %v538_v13 = vpop.permute.xlu2 %537 }
 0x126   :  { %698 = vst.msk [vmem:[%s5807_s6 + $0x58] sm:$0xf] %vm675_vm0, %v528_v12  ;;  %v518_v2 = vpop.permute.xlu1 %517 }
 0x127   :  { %703 = vst.msk [vmem:[%s5807_s6 + $0x6c] sm:$0xf] %vm675_vm0, %v538_v13 }
 0x128   :  { %693 = vst.msk [vmem:[%s5807_s6 + $0x44] sm:$0xf] %vm675_vm0, %v518_v2  ;;  %v3422_v2 = vld [vmem:[%s5808_s1 + $0x18] sm:$0xff]  }
 0x12b   :  { %609 = vrot.lane.b32.xlu2 %v418_v0, %s3528_s12 }
 0x12c   :  { %607 = vrot.lane.b32.xlu1 %v417_v15, %s3528_s12 }
 0x12d   :  { %v534_v17 = vpop.permute.xlu0 %533  ;;  %v544_v18 = vpop.permute.xlu2 %543 }
 0x12e   :  { %701 = vst.msk [vmem:[%s5807_s6 + $0x64] sm:$0xf] %vm675_vm0, %v534_v17  ;;  %v524_v19 = vpop.permute.xlu1 %523 }
 0x12f   :  { %706 = vst.msk [vmem:[%s5807_s6 + $0x78] sm:$0xf] %vm675_vm0, %v544_v18 }
 0x130   :  { %696 = vst.msk [vmem:[%s5807_s6 + $0x50] sm:$0xf] %vm675_vm0, %v524_v19  ;;  %v3023_v19 = vunpack.c.l.bf16 %v3423_v14 }
 0x134   :  { %935 = vrot.lane.b32.xlu1 %v3579_v1, %s3529_s16 }
 0x135   :  { %v540_v20 = vpop.permute.xlu0 %539  ;;  %v550_v21 = vpop.permute.xlu2 %549 }
 0x136   :  { %704 = vst.msk [vmem:[%s5807_s6 + $0x70] sm:$0xf] %vm675_vm0, %v540_v20  ;;  %v530_v22 = vpop.permute.xlu1 %529  ;;  %v3020_v20 = vunpack.c.h.bf16 %v3422_v2 }
 0x137   :  { %709 = vst.msk [vmem:[%s5807_s6 + $0x84] sm:$0xf] %vm675_vm0, %v550_v21 }
 0x138   :  { %699 = vst.msk [vmem:[%s5807_s6 + $0x5c] sm:$0xf] %vm675_vm0, %v530_v22 }
 0x13d   :  { %v546_v23 = vpop.permute.xlu0 %545  ;;  %v556_v1 = vpop.permute.xlu2 %555 }
 0x13e   :  { %707 = vst.msk [vmem:[%s5807_s6 + $0x7c] sm:$0xf] %vm675_vm0, %v546_v23  ;;  %v536_v24 = vpop.permute.xlu1 %535 }
 0x13f   :  { %712 = vst.msk [vmem:[%s5807_s6 + $0x90] sm:$0xf] %vm675_vm0, %v556_v1 }
 0x140   :  { %702 = vst.msk [vmem:[%s5807_s6 + $0x68] sm:$0xf] %vm675_vm0, %v536_v24 }
 0x145   :  { %v552_v25 = vpop.permute.xlu0 %551  ;;  %v562_v26 = vpop.permute.xlu2 %561 }
 0x146   :  { %710 = vst.msk [vmem:[%s5807_s6 + $0x88] sm:$0xf] %vm675_vm0, %v552_v25  ;;  %v542_v27 = vpop.permute.xlu1 %541  ;;  %v3019_v25 = vunpack.c.l.bf16 %v3422_v2 }
 0x147   :  { %715 = vst.msk [vmem:[%s5807_s6 + $0x9c] sm:$0xf] %vm675_vm0, %v562_v26 }
 0x148   :  { %705 = vst.msk [vmem:[%s5807_s6 + $0x74] sm:$0xf] %vm675_vm0, %v542_v27 }
 0x14d   :  { %v558_v28 = vpop.permute.xlu0 %557  ;;  %v568_v29 = vpop.permute.xlu2 %567 }
 0x14e   :  { %713 = vst.msk [vmem:[%s5807_s6 + $0x94] sm:$0xf] %vm675_vm0, %v558_v28  ;;  %v548_v30 = vpop.permute.xlu1 %547 }
 0x14f   :  { %718 = vst.msk [vmem:[%s5807_s6 + $0xa8] sm:$0xf] %vm675_vm0, %v568_v29 }
 0x150   :  { %708 = vst.msk [vmem:[%s5807_s6 + $0x80] sm:$0xf] %vm675_vm0, %v548_v30  ;;  %v3424_v30 = vld [vmem:[%s5808_s1 + $0x28] sm:$0xff]  }
 0x155   :  { %v564_v31 = vpop.permute.xlu0 %563  ;;  %v574_v32 = vpop.permute.xlu2 %573 }
 0x156   :  { %716 = vst.msk [vmem:[%s5807_s6 + $0xa0] sm:$0xf] %vm675_vm0, %v564_v31  ;;  %v554_v33 = vpop.permute.xlu1 %553 }
 0x157   :  { %721 = vst.msk [vmem:[%s5807_s6 + $0xb4] sm:$0xf] %vm675_vm0, %v574_v32 }
 0x158   :  { %711 = vst.msk [vmem:[%s5807_s6 + $0x8c] sm:$0xf] %vm675_vm0, %v554_v33 }
 0x15d   :  { %v570_v34 = vpop.permute.xlu0 %569  ;;  %v580_v35 = vpop.permute.xlu2 %579 }
 0x15e   :  { %719 = vst.msk [vmem:[%s5807_s6 + $0xac] sm:$0xf] %vm675_vm0, %v570_v34  ;;  %v560_v36 = vpop.permute.xlu1 %559  ;;  %v3028_v34 = vunpack.c.h.bf16 %v3424_v30 }
 0x15f   :  { %724 = vst.msk [vmem:[%s5807_s6 + $0xc0] sm:$0xf] %vm675_vm0, %v580_v35 }
 0x160   :  { %714 = vst.msk [vmem:[%s5807_s6 + $0x98] sm:$0xf] %vm675_vm0, %v560_v36 }
 0x165   :  { %v576_v37 = vpop.permute.xlu0 %575  ;;  %v586_v38 = vpop.permute.xlu2 %585 }
 0x166   :  { %722 = vst.msk [vmem:[%s5807_s6 + $0xb8] sm:$0xf] %vm675_vm0, %v576_v37  ;;  %v566_v39 = vpop.permute.xlu1 %565 }
 0x167   :  { %727 = vst.msk [vmem:[%s5807_s6 + $0xcc] sm:$0xf] %vm675_vm0, %v586_v38  ;;  %v3027_v38 = vunpack.c.l.bf16 %v3424_v30 }
 0x168   :  { %717 = vst.msk [vmem:[%s5807_s6 + $0xa4] sm:$0xf] %vm675_vm0, %v566_v39 }
 0x16d   :  { %v582_v40 = vpop.permute.xlu0 %581  ;;  %v592_v41 = vpop.permute.xlu2 %591 }
 0x16e   :  { %725 = vst.msk [vmem:[%s5807_s6 + $0xc4] sm:$0xf] %vm675_vm0, %v582_v40  ;;  %v572_v42 = vpop.permute.xlu1 %571 }
 0x16f   :  { %730 = vst.msk [vmem:[%s5807_s6 + $0xd8] sm:$0xf] %vm675_vm0, %v592_v41  ;;  %v3024_v41 = vunpack.c.h.bf16 %v3423_v14 }
 0x170   :  { %720 = vst.msk [vmem:[%s5807_s6 + $0xb0] sm:$0xf] %vm675_vm0, %v572_v42 }
 0x175   :  { %v588_v43 = vpop.permute.xlu0 %587  ;;  %v598_v44 = vpop.permute.xlu2 %597 }
 0x176   :  { %728 = vst.msk [vmem:[%s5807_s6 + $0xd0] sm:$0xf] %vm675_vm0, %v588_v43  ;;  %v578_v45 = vpop.permute.xlu1 %577 }
 0x177   :  { %733 = vst.msk [vmem:[%s5807_s6 + $0xe4] sm:$0xf] %vm675_vm0, %v598_v44 }
 0x178   :  { %723 = vst.msk [vmem:[%s5807_s6 + $0xbc] sm:$0xf] %vm675_vm0, %v578_v45 }
 0x17d   :  { %v594_v46 = vpop.permute.xlu0 %593  ;;  %v604_v47 = vpop.permute.xlu2 %603 }
 0x17e   :  { %731 = vst.msk [vmem:[%s5807_s6 + $0xdc] sm:$0xf] %vm675_vm0, %v594_v46  ;;  %v584_v48 = vpop.permute.xlu1 %583 }
 0x17f   :  { %736 = vst.msk [vmem:[%s5807_s6 + $0xf0] sm:$0xf] %vm675_vm0, %v604_v47 }
 0x180   :  { %726 = vst.msk [vmem:[%s5807_s6 + $0xc8] sm:$0xf] %vm675_vm0, %v584_v48  ;;  %v3426_v48 = vld [vmem:[%s5808_s1 + $0x38] sm:$0xff]  }
 0x181   :  { %v3036_v2 = vunpack.c.h.bf16 %v3426_v48 }
 0x185   :  { %v600_v49 = vpop.permute.xlu0 %599  ;;  %v610_v50 = vpop.permute.xlu2 %609 }
 0x186   :  { %734 = vst.msk [vmem:[%s5807_s6 + $0xe8] sm:$0xf] %vm675_vm0, %v600_v49  ;;  %v590_v51 = vpop.permute.xlu1 %589  ;;  %v3425_v49 = vld [vmem:[%s5808_s1 + $0x30] sm:$0xff]  }
 0x187   :  { %739 = vst.msk [vmem:[%s5807_s6 + $0xfc] sm:$0xf] %vm675_vm0, %v610_v50  ;;  %v3032_v55 = vunpack.c.h.bf16 %v3425_v49 }
 0x188   :  { %729 = vst.msk [vmem:[%s5807_s6 + $0xd4] sm:$0xf] %vm675_vm0, %v590_v51 }
 0x18d   :  { %v606_v52 = vpop.permute.xlu0 %605 }
 0x18e   :  { %737 = vst.msk [vmem:[%s5807_s6 + $0xf4] sm:$0xf] %vm675_vm0, %v606_v52  ;;  %v596_v53 = vpop.permute.xlu1 %595 }
 0x18f   :  { %732 = vst.msk [vmem:[%s5807_s6 + $0xe0] sm:$0xf] %vm675_vm0, %v596_v53 }
 0x195   :  { %v4157_v62 = vpop.permute.xlu0 %868 }
 0x196   :  { %v602_v54 = vpop.permute.xlu1 %601  ;;  %v873_v3 = vmul.f32 %v3011_v58, %v4157_v62  ;;  %v872_v4 = vmul.f32 %v3008_v59, %v4157_v62  ;;  %v871_v5 = vmul.f32 %v3007_v60, %v4157_v62  ;;  %v876_v9 = vmul.f32 %v3016_v63, %v4157_v62 }
 0x197   :  { %735 = vst.msk [vmem:[%s5807_s6 + $0xec] sm:$0xf] %vm675_vm0, %v602_v54  ;;  %v875_v13 = vmul.f32 %v3015_v6, %v4157_v62  ;;  %v874_v16 = vmul.f32 %v3012_v7, %v4157_v62  ;;  %v879_v26 = vmul.f32 %v3023_v19, %v4157_v62  ;;  %v878_v29 = vmul.f32 %v3020_v20, %v4157_v62 }
 0x198   :  { %v877_v32 = vmul.f32 %v3019_v25, %v4157_v62  ;;  %v882_v43 = vmul.f32 %v3028_v34, %v4157_v62  ;;  %v881_v45 = vmul.f32 %v3027_v38, %v4157_v62  ;;  %v880_v47 = vmul.f32 %v3024_v41, %v4157_v62 }
 0x199   :  { %v3035_v54 = vunpack.c.l.bf16 %v3426_v48  ;;  %v3031_v58 = vunpack.c.l.bf16 %v3425_v49  ;;  %v884_v63 = vmul.f32 %v3032_v55, %v4157_v62  ;;  %v886_v20 = vmul.f32 %v3036_v2, %v4157_v62 }
 0x19b   :  { %v885_v61 = vmul.f32 %v3035_v54, %v4157_v62 }
 0x19e   :  { %v608_v57 = vpop.permute.xlu1 %607 }
 0x19f   :  { %738 = vst.msk [vmem:[%s5807_s6 + $0xf8] sm:$0xf] %vm675_vm0, %v608_v57 }
 0x1a6   :  { %v4162_v8 = vpop.permute.xlu1 %935 }
 0x1a7   :  { %v940_v10 = vadd.f32 %v4162_v8, %v873_v3  ;;  %v939_v11 = vadd.f32 %v4162_v8, %v872_v4  ;;  %v938_v12 = vadd.f32 %v4162_v8, %v871_v5  ;;  %v943_v18 = vadd.f32 %v4162_v8, %v876_v9  ;;  %v3427_v3 = vld [vmem:[%s5808_s1 + $0x40] sm:$0xff]  }
 0x1a8   :  { %v942_v1 = vadd.f32 %v4162_v8, %v875_v13  ;;  %v941_v24 = vadd.f32 %v4162_v8, %v874_v16  ;;  %v946_v33 = vadd.f32 %v4162_v8, %v879_v26  ;;  %v945_v37 = vadd.f32 %v4162_v8, %v878_v29 }
 0x1a9   :  { %v1004_v0 = vmax.f32 %v940_v10, 0.0  ;;  %v1003_v15 = vmax.f32 %v939_v11, 0.0  ;;  %v1002_v17 = vmax.f32 %v938_v12, 0.0  ;;  %v1007_v27 = vmax.f32 %v943_v18, 0.0  ;;  %v3429_v18 = vld [vmem:[%s5808_s1 + $0x50] sm:$0xff]  }
 0x1aa   :  { %v1006_v28 = vmax.f32 %v942_v1, 0.0  ;;  %v1005_v31 = vmax.f32 %v941_v24, 0.0  ;;  %v944_v40 = vadd.f32 %v4162_v8, %v877_v32  ;;  %v1010_v42 = vmax.f32 %v946_v33, 0.0 }
 0x1ab   :  { %v1068_v21 = vpack.c.bf16 %v1004_v0, %v1004_v0  ;;  %v1067_v22 = vpack.c.bf16 %v1003_v15, %v1003_v15  ;;  %v1066_v23 = vpack.c.bf16 %v1002_v17, %v1002_v17  ;;  %v1071_v35 = vpack.c.bf16 %v1007_v27, %v1007_v27 }
 0x1ac   :  { %v1070_v36 = vpack.c.bf16 %v1006_v28, %v1006_v28  ;;  %v1069_v39 = vpack.c.bf16 %v1005_v31, %v1005_v31  ;;  %v1009_v44 = vmax.f32 %v945_v37, 0.0  ;;  %v1008_v46 = vmax.f32 %v944_v40, 0.0 }
 0x1ad   :  { %1198 = vrot.lane.b32.xlu1 %v1068_v21, %s3530_s13  ;;  %1196 = vrot.lane.b32.xlu0 %v1067_v22, %s3530_s13  ;;  %v1074_v50 = vpack.c.bf16 %v1010_v42, %v1010_v42  ;;  %v949_v51 = vadd.f32 %v4162_v8, %v882_v43  ;;  %v948_v53 = vadd.f32 %v4162_v8, %v881_v45  ;;  %v3040_v7 = vunpack.c.h.bf16 %v3427_v3  ;;  %v3428_v21 = vld [vmem:[%s5808_s1 + $0x48] sm:$0xff]  }
 0x1ae   :  { %1194 = vrot.lane.b32.xlu2 %v1066_v23, %s3530_s13  ;;  %v1073_v52 = vpack.c.bf16 %v1009_v44, %v1009_v44  ;;  %v1072_v56 = vpack.c.bf16 %v1008_v46, %v1008_v46  ;;  %v947_v57 = vadd.f32 %v4162_v8, %v880_v47  ;;  %v883_v5 = vmul.f32 %v3031_v58, %v4157_v62 }
 0x1af   :  { %v1013_v59 = vmax.f32 %v949_v51, 0.0  ;;  %v1012_v60 = vmax.f32 %v948_v53, 0.0  ;;  %v952_v10 = vadd.f32 %v4162_v8, %v885_v61  ;;  %v951_v11 = vadd.f32 %v4162_v8, %v884_v63  ;;  %v3431_v51 = vld [vmem:[%s5808_s1 + $0x60] sm:$0xff]  }
 0x1b0   :  { %v1011_v4 = vmax.f32 %v947_v57, 0.0  ;;  %v3039_v12 = vunpack.c.l.bf16 %v3427_v3  ;;  %v950_v14 = vadd.f32 %v4162_v8, %v883_v5  ;;  %v888_v16 = vmul.f32 %v3040_v7, %v4157_v62 }
 0x1b1   :  { %v1077_v6 = vpack.c.bf16 %v1013_v59, %v1013_v59  ;;  %v1076_v9 = vpack.c.bf16 %v1012_v60, %v1012_v60  ;;  %v1016_v0 = vmax.f32 %v952_v10, 0.0  ;;  %v1015_v15 = vmax.f32 %v951_v11, 0.0  ;;  %v3433_v10 = vld [vmem:[%s5808_s1 + $0x70] sm:$0xff]  }
 0x1b2   :  { %v1075_v13 = vpack.c.bf16 %v1011_v4, %v1011_v4  ;;  %v887_v17 = vmul.f32 %v3039_v12, %v4157_v62  ;;  %v1014_v19 = vmax.f32 %v950_v14, 0.0  ;;  %v955_v22 = vadd.f32 %v4162_v8, %v888_v16 }
 0x1b3   :  { %v3047_v23 = vunpack.c.l.bf16 %v3429_v18  ;;  %v1080_v1 = vpack.c.bf16 %v1016_v0, %v1016_v0  ;;  %v1079_v24 = vpack.c.bf16 %v1015_v15, %v1015_v15  ;;  %v3044_v26 = vunpack.c.h.bf16 %v3428_v21 }
 0x1b4   :  { %v954_v25 = vadd.f32 %v4162_v8, %v887_v17  ;;  %v1078_v27 = vpack.c.bf16 %v1014_v19, %v1014_v19  ;;  %v953_v28 = vadd.f32 %v4162_v8, %v886_v20  ;;  %v3043_v29 = vunpack.c.l.bf16 %v3428_v21 }
 0x1b5   :  { %1204 = vrot.lane.b32.xlu1 %v1071_v35, %s3530_s13  ;;  %1202 = vrot.lane.b32.xlu0 %v1070_v36, %s3530_s13  ;;  %v1019_v30 = vmax.f32 %v955_v22, 0.0  ;;  %v891_v31 = vmul.f32 %v3047_v23, %v4157_v62  ;;  %v890_v33 = vmul.f32 %v3044_v26, %v4157_v62  ;;  %v3430_v36 = vld [vmem:[%s5808_s1 + $0x58] sm:$0xff]   ;;  %v3048_v45 = vunpack.c.h.bf16 %v3429_v18 }
 0x1b6   :  { %1200 = vrot.lane.b32.xlu2 %v1069_v39, %s3530_s13  ;;  %v1018_v32 = vmax.f32 %v954_v25, 0.0  ;;  %v1017_v34 = vmax.f32 %v953_v28, 0.0  ;;  %v889_v35 = vmul.f32 %v3043_v29, %v4157_v62  ;;  %v3052_v41 = vunpack.c.h.bf16 %v3430_v36 }
 0x1b7   :  { %v1083_v37 = vpack.c.bf16 %v1019_v30, %v1019_v30  ;;  %v958_v38 = vadd.f32 %v4162_v8, %v891_v31  ;;  %v957_v40 = vadd.f32 %v4162_v8, %v890_v33  ;;  %v3051_v42 = vunpack.c.l.bf16 %v3430_v36 }
 0x1b8   :  { %v1082_v39 = vpack.c.bf16 %v1018_v32, %v1018_v32  ;;  %v1081_v43 = vpack.c.bf16 %v1017_v34, %v1017_v34  ;;  %v956_v44 = vadd.f32 %v4162_v8, %v889_v35  ;;  %v894_v48 = vmul.f32 %v3052_v41, %v4157_v62 }
 0x1b9   :  { %v1022_v46 = vmax.f32 %v958_v38, 0.0  ;;  %v1021_v47 = vmax.f32 %v957_v40, 0.0  ;;  %v893_v49 = vmul.f32 %v3051_v42, %v4157_v62  ;;  %v892_v53 = vmul.f32 %v3048_v45, %v4157_v62  ;;  %v3436_v38 = vld [vmem:[%s5808_s1 + $0x88] sm:$0xff]  }
 0x1ba   :  { %v3056_v55 = vunpack.c.h.bf16 %v3431_v51  ;;  %v961_v58 = vadd.f32 %v4162_v8, %v894_v48  ;;  %v3055_v63 = vunpack.c.l.bf16 %v3431_v51  ;;  %v3064_v2 = vunpack.c.h.bf16 %v3433_v10 }
 0x1bb   :  { %v1085_v57 = vpack.c.bf16 %v1021_v47, %v1021_v47  ;;  %v960_v59 = vadd.f32 %v4162_v8, %v893_v49  ;;  %v959_v61 = vadd.f32 %v4162_v8, %v892_v53  ;;  %v3063_v16 = vunpack.c.l.bf16 %v3433_v10 }
 0x1bc   :  { %v896_v4 = vmul.f32 %v3056_v55, %v4157_v62  ;;  %v1025_v5 = vmax.f32 %v961_v58, 0.0  ;;  %v900_v20 = vmul.f32 %v3064_v2, %v4157_v62  ;;  %v3076_v41 = vunpack.c.h.bf16 %v3436_v38 }
 0x1bd   :  { %1210 = vrot.lane.b32.xlu1 %v1074_v50, %s3530_s13  ;;  %1208 = vrot.lane.b32.xlu0 %v1073_v52, %s3530_s13  ;;  %v3432_v50 = vld [vmem:[%s5808_s1 + $0x68] sm:$0xff]   ;;  %v1020_v52 = vmax.f32 %v956_v44, 0.0  ;;  %v1023_v7 = vmax.f32 %v959_v61, 0.0  ;;  %v899_v21 = vmul.f32 %v3063_v16, %v4157_v62  ;;  %v3075_v42 = vunpack.c.l.bf16 %v3436_v38 }
 0x1be   :  { %1206 = vrot.lane.b32.xlu2 %v1072_v56, %s3530_s13  ;;  %v3059_v54 = vunpack.c.l.bf16 %v3432_v50  ;;  %v1086_v56 = vpack.c.bf16 %v1022_v46, %v1022_v46  ;;  %v963_v12 = vadd.f32 %v4162_v8, %v896_v4  ;;  %v3060_v17 = vunpack.c.h.bf16 %v3432_v50 }
 0x1bf   :  { %v1084_v60 = vpack.c.bf16 %v1020_v52, %v1020_v52  ;;  %v1087_v0 = vpack.c.bf16 %v1023_v7, %v1023_v7  ;;  %v966_v28 = vadd.f32 %v4162_v8, %v899_v21  ;;  %v906_v50 = vmul.f32 %v3076_v41, %v4157_v62 }
 0x1c0   :  { %v897_v3 = vmul.f32 %v3059_v54, %v4157_v62  ;;  %v1027_v19 = vmax.f32 %v963_v12, 0.0  ;;  %v898_v23 = vmul.f32 %v3060_v17, %v4157_v62  ;;  %v905_v51 = vmul.f32 %v3075_v42, %v4157_v62  ;;  %v3439_v12 = vld [vmem:[%s5808_s1 + $0xa0] sm:$0xff]  }
 0x1c1   :  { %v1030_v35 = vmax.f32 %v966_v28, 0.0  ;;  %v973_v58 = vadd.f32 %v4162_v8, %v906_v50  ;;  %v3088_v16 = vunpack.c.h.bf16 %v3439_v12 }
 0x1c2   :  { %v964_v11 = vadd.f32 %v4162_v8, %v897_v3  ;;  %v1091_v26 = vpack.c.bf16 %v1027_v19, %v1027_v19  ;;  %v965_v32 = vadd.f32 %v4162_v8, %v898_v23 }
 0x1c3   :  { %v1094_v44 = vpack.c.bf16 %v1030_v35, %v1030_v35  ;;  %v1037_v7 = vmax.f32 %v973_v58, 0.0 }
 0x1c4   :  { %v1028_v18 = vmax.f32 %v964_v11, 0.0 }
 0x1c5   :  { %1216 = vrot.lane.b32.xlu1 %v1077_v6, %s3530_s13  ;;  %1214 = vrot.lane.b32.xlu0 %v1076_v9, %s3530_s13  ;;  %v1024_v6 = vmax.f32 %v960_v59, 0.0  ;;  %v895_v9 = vmul.f32 %v3055_v63, %v4157_v62  ;;  %v972_v59 = vadd.f32 %v4162_v8, %v905_v51  ;;  %v1101_v2 = vpack.c.bf16 %v1037_v7, %v1037_v7 }
 0x1c6   :  { %1212 = vrot.lane.b32.xlu2 %v1075_v13, %s3530_s13  ;;  %v1089_v13 = vpack.c.bf16 %v1025_v5, %v1025_v5  ;;  %v1092_v25 = vpack.c.bf16 %v1028_v18, %v1028_v18  ;;  %v3087_v18 = vunpack.c.l.bf16 %v3439_v12 }
 0x1c7   :  { %v1088_v14 = vpack.c.bf16 %v1024_v6, %v1024_v6  ;;  %v962_v15 = vadd.f32 %v4162_v8, %v895_v9  ;;  %v1036_v9 = vmax.f32 %v972_v59, 0.0 }
 0x1c9   :  { %v1026_v22 = vmax.f32 %v962_v15, 0.0 }
 0x1cb   :  { %v1090_v31 = vpack.c.bf16 %v1026_v22, %v1026_v22  ;;  %v912_v22 = vmul.f32 %v3088_v16, %v4157_v62 }
 0x1cd   :  { %1222 = vrot.lane.b32.xlu1 %v1080_v1, %s3530_s13  ;;  %1220 = vrot.lane.b32.xlu0 %v1079_v24, %s3530_s13  ;;  %v3435_v1 = vld [vmem:[%s5808_s1 + $0x80] sm:$0xff]   ;;  %v3434_v24 = vld [vmem:[%s5808_s1 + $0x78] sm:$0xff]  }
 0x1ce   :  { %1218 = vrot.lane.b32.xlu2 %v1078_v27, %s3530_s13  ;;  %v967_v27 = vadd.f32 %v4162_v8, %v900_v20  ;;  %v3071_v29 = vunpack.c.l.bf16 %v3435_v1  ;;  %v3068_v30 = vunpack.c.h.bf16 %v3434_v24  ;;  %v3067_v33 = vunpack.c.l.bf16 %v3434_v24 }
 0x1cf   :  { %v3072_v49 = vunpack.c.h.bf16 %v3435_v1  ;;  %v911_v24 = vmul.f32 %v3087_v18, %v4157_v62 }
 0x1d0   :  { %v1031_v34 = vmax.f32 %v967_v27, 0.0  ;;  %v903_v36 = vmul.f32 %v3071_v29, %v4157_v62  ;;  %v901_v40 = vmul.f32 %v3067_v33, %v4157_v62  ;;  %v3440_v29 = vld [vmem:[%s5808_s1 + $0xa8] sm:$0xff]  }
 0x1d1   :  { %v904_v55 = vmul.f32 %v3072_v49, %v4157_v62  ;;  %v3092_v35 = vunpack.c.h.bf16 %v3440_v29  ;;  %v3091_v38 = vunpack.c.l.bf16 %v3440_v29 }
 0x1d2   :  { %v970_v45 = vadd.f32 %v4162_v8, %v903_v36  ;;  %v968_v48 = vadd.f32 %v4162_v8, %v901_v40 }
 0x1d3   :  { %v971_v5 = vadd.f32 %v4162_v8, %v904_v55  ;;  %v914_v42 = vmul.f32 %v3092_v35, %v4157_v62 }
 0x1d4   :  { %v1034_v52 = vmax.f32 %v970_v45, 0.0  ;;  %v1032_v54 = vmax.f32 %v968_v48, 0.0  ;;  %v913_v45 = vmul.f32 %v3091_v38, %v4157_v62 }
 0x1d5   :  { %1228 = vrot.lane.b32.xlu1 %v1083_v37, %s3530_s13  ;;  %1226 = vrot.lane.b32.xlu0 %v1082_v39, %s3530_s13  ;;  %v902_v37 = vmul.f32 %v3068_v30, %v4157_v62  ;;  %v1029_v39 = vmax.f32 %v965_v32, 0.0  ;;  %v979_v30 = vadd.f32 %v4162_v8, %v912_v22  ;;  %v981_v50 = vadd.f32 %v4162_v8, %v914_v42  ;;  %v3445_v22 = vld [vmem:[%s5808_s1 + $0xd0] sm:$0xff]  }
 0x1d6   :  { %1224 = vrot.lane.b32.xlu2 %v1081_v43, %s3530_s13  ;;  %v1095_v43 = vpack.c.bf16 %v1031_v34, %v1031_v34  ;;  %v1096_v4 = vpack.c.bf16 %v1032_v54, %v1032_v54  ;;  %v978_v34 = vadd.f32 %v4162_v8, %v911_v24  ;;  %v980_v54 = vadd.f32 %v4162_v8, %v913_v45 }
 0x1d7   :  { %v969_v46 = vadd.f32 %v4162_v8, %v902_v37  ;;  %v1093_v47 = vpack.c.bf16 %v1029_v39, %v1029_v39  ;;  %v1043_v39 = vmax.f32 %v979_v30, 0.0 }
 0x1d8   :  { %v1042_v41 = vmax.f32 %v978_v34, 0.0 }
 0x1d9   :  { %v1033_v53 = vmax.f32 %v969_v46, 0.0  ;;  %v3442_v46 = vld [vmem:[%s5808_s1 + $0xb8] sm:$0xff]  }
 0x1da   :  { %v1106_v49 = vpack.c.bf16 %v1042_v41, %v1042_v41  ;;  %v3100_v51 = vunpack.c.h.bf16 %v3442_v46  ;;  %v3446_v41 = vld [vmem:[%s5808_s1 + $0xd8] sm:$0xff]  }
 0x1db   :  { %v1097_v61 = vpack.c.bf16 %v1033_v53, %v1033_v53 }
 0x1dc   :  { %v918_v58 = vmul.f32 %v3100_v51, %v4157_v62 }
 0x1dd   :  { %1234 = vrot.lane.b32.xlu1 %v1086_v56, %s3530_s13  ;;  %1232 = vrot.lane.b32.xlu0 %v1085_v57, %s3530_s13  ;;  %v3438_v56 = vld [vmem:[%s5808_s1 + $0x98] sm:$0xff]   ;;  %v3437_v57 = vld [vmem:[%s5808_s1 + $0x90] sm:$0xff]  }
 0x1de   :  { %1230 = vrot.lane.b32.xlu2 %v1084_v60, %s3530_s13  ;;  %v1098_v60 = vpack.c.bf16 %v1034_v52, %v1034_v52  ;;  %v3083_v63 = vunpack.c.l.bf16 %v3438_v56  ;;  %v3080_v3 = vunpack.c.h.bf16 %v3437_v57  ;;  %v3079_v6 = vunpack.c.l.bf16 %v3437_v57 }
 0x1df   :  { %v3084_v21 = vunpack.c.h.bf16 %v3438_v56  ;;  %v3099_v52 = vunpack.c.l.bf16 %v3442_v46  ;;  %v1045_v57 = vmax.f32 %v981_v50, 0.0  ;;  %v3115_v50 = vunpack.c.l.bf16 %v3446_v41 }
 0x1e0   :  { %v909_v10 = vmul.f32 %v3083_v63, %v4157_v62  ;;  %v908_v11 = vmul.f32 %v3080_v3, %v4157_v62  ;;  %v1044_v3 = vmax.f32 %v980_v54, 0.0 }
 0x1e1   :  { %v910_v28 = vmul.f32 %v3084_v21, %v4157_v62  ;;  %v917_v59 = vmul.f32 %v3099_v52, %v4157_v62 }
 0x1e2   :  { %v976_v15 = vadd.f32 %v4162_v8, %v909_v10  ;;  %v975_v17 = vadd.f32 %v4162_v8, %v908_v11  ;;  %v985_v10 = vadd.f32 %v4162_v8, %v918_v58  ;;  %v1108_v12 = vpack.c.bf16 %v1044_v3, %v1044_v3 }
 0x1e3   :  { %v977_v37 = vadd.f32 %v4162_v8, %v910_v28  ;;  %v984_v11 = vadd.f32 %v4162_v8, %v917_v59 }
 0x1e4   :  { %v1040_v23 = vmax.f32 %v976_v15, 0.0  ;;  %v1039_v1 = vmax.f32 %v975_v17, 0.0  ;;  %v1049_v17 = vmax.f32 %v985_v10, 0.0 }
 0x1e5   :  { %1240 = vrot.lane.b32.xlu1 %v1089_v13, %s3530_s13  ;;  %1238 = vrot.lane.b32.xlu0 %v1088_v14, %s3530_s13  ;;  %v1035_v13 = vmax.f32 %v971_v5, 0.0  ;;  %v907_v14 = vmul.f32 %v3079_v6, %v4157_v62  ;;  %v1048_v18 = vmax.f32 %v984_v11, 0.0 }
 0x1e6   :  { %1236 = vrot.lane.b32.xlu2 %v1087_v0, %s3530_s13  ;;  %v1100_v0 = vpack.c.bf16 %v1036_v9, %v1036_v9  ;;  %v1104_v32 = vpack.c.bf16 %v1040_v23, %v1040_v23  ;;  %v1103_v33 = vpack.c.bf16 %v1039_v1, %v1039_v1  ;;  %v1109_v9 = vpack.c.bf16 %v1045_v57, %v1045_v57  ;;  %v3448_v57 = vld [vmem:[%s5808_s1 + $0xe8] sm:$0xff]  }
 0x1e7   :  { %v1099_v19 = vpack.c.bf16 %v1035_v13, %v1035_v13  ;;  %v974_v20 = vadd.f32 %v4162_v8, %v907_v14  ;;  %v1113_v24 = vpack.c.bf16 %v1049_v17, %v1049_v17 }
 0x1e9   :  { %v1038_v27 = vmax.f32 %v974_v20, 0.0 }
 0x1eb   :  { %v1102_v36 = vpack.c.bf16 %v1038_v27, %v1038_v27  ;;  %v3111_v27 = vunpack.c.l.bf16 %v3445_v22 }
 0x1ed   :  { %1246 = vrot.lane.b32.xlu1 %v1092_v25, %s3530_s13  ;;  %1244 = vrot.lane.b32.xlu0 %v1091_v26, %s3530_s13  ;;  %v3441_v25 = vld [vmem:[%s5808_s1 + $0xb0] sm:$0xff]  }
 0x1ee   :  { %1242 = vrot.lane.b32.xlu2 %v1090_v31, %s3530_s13  ;;  %v3095_v31 = vunpack.c.l.bf16 %v3441_v25  ;;  %v3096_v55 = vunpack.c.h.bf16 %v3441_v25  ;;  %v1112_v25 = vpack.c.bf16 %v1048_v18, %v1048_v18  ;;  %v3450_v18 = vld [vmem:[%s5808_s1 + $0xf8] sm:$0xff]  }
 0x1f0   :  { %v915_v40 = vmul.f32 %v3095_v31, %v4157_v62 }
 0x1f2   :  { %v982_v48 = vadd.f32 %v4162_v8, %v915_v40 }
 0x1f4   :  { %v1046_v56 = vmax.f32 %v982_v48, 0.0 }
 0x1f5   :  { %1252 = vrot.lane.b32.xlu1 %v1095_v43, %s3530_s13  ;;  %1250 = vrot.lane.b32.xlu0 %v1094_v44, %s3530_s13  ;;  %v1041_v44 = vmax.f32 %v977_v37, 0.0  ;;  %v3447_v37 = vld [vmem:[%s5808_s1 + $0xe0] sm:$0xff]  }
 0x1f6   :  { %1248 = vrot.lane.b32.xlu2 %v1093_v47, %s3530_s13  ;;  %v1107_v47 = vpack.c.bf16 %v1043_v39, %v1043_v39  ;;  %v1110_v7 = vpack.c.bf16 %v1046_v56, %v1046_v56  ;;  %v3120_v10 = vunpack.c.h.bf16 %v3447_v37 }
 0x1f7   :  { %v1105_v53 = vpack.c.bf16 %v1041_v44, %v1041_v44 }
 0x1f8   :  { %v928_v17 = vmul.f32 %v3120_v10, %v4157_v62 }
 0x1fd   :  { %1258 = vrot.lane.b32.xlu1 %v1098_v60, %s3530_s13  ;;  %1256 = vrot.lane.b32.xlu0 %v1097_v61, %s3530_s13  ;;  %v3444_v60 = vld [vmem:[%s5808_s1 + $0xc8] sm:$0xff]   ;;  %v3443_v61 = vld [vmem:[%s5808_s1 + $0xc0] sm:$0xff]  }
 0x1fe   :  { %1254 = vrot.lane.b32.xlu2 %v1096_v4, %s3530_s13  ;;  %v916_v4 = vmul.f32 %v3096_v55, %v4157_v62  ;;  %v3107_v5 = vunpack.c.l.bf16 %v3444_v60  ;;  %v3104_v6 = vunpack.c.h.bf16 %v3443_v61  ;;  %v3103_v14 = vunpack.c.l.bf16 %v3443_v61 }
 0x1ff   :  { %v3108_v30 = vunpack.c.h.bf16 %v3444_v60  ;;  %v925_v60 = vmul.f32 %v3115_v50, %v4157_v62 }
 0x200   :  { %v983_v13 = vadd.f32 %v4162_v8, %v916_v4  ;;  %v920_v16 = vmul.f32 %v3104_v6, %v4157_v62  ;;  %v919_v21 = vmul.f32 %v3103_v14, %v4157_v62  ;;  %v3123_v6 = vunpack.c.l.bf16 %v3448_v57 }
 0x201   :  { %v922_v40 = vmul.f32 %v3108_v30, %v4157_v62 }
 0x202   :  { %v1047_v20 = vmax.f32 %v983_v13, 0.0  ;;  %v987_v1 = vadd.f32 %v4162_v8, %v920_v16  ;;  %v986_v29 = vadd.f32 %v4162_v8, %v919_v21  ;;  %v929_v16 = vmul.f32 %v3123_v6, %v4157_v62 }
 0x204   :  { %v1111_v28 = vpack.c.bf16 %v1047_v20, %v1047_v20  ;;  %v1051_v34 = vmax.f32 %v987_v1, 0.0  ;;  %v1050_v39 = vmax.f32 %v986_v29, 0.0  ;;  %v3131_v1 = vunpack.c.l.bf16 %v3450_v18 }
 0x205   :  { %1264 = vrot.lane.b32.xlu1 %v1101_v2, %s3530_s13  ;;  %1262 = vrot.lane.b32.xlu0 %v1100_v0, %s3530_s13  ;;  %v921_v2 = vmul.f32 %v3107_v5, %v4157_v62 }
 0x206   :  { %1260 = vrot.lane.b32.xlu2 %v1099_v19, %s3530_s13  ;;  %v1115_v44 = vpack.c.bf16 %v1051_v34, %v1051_v34  ;;  %v1114_v48 = vpack.c.bf16 %v1050_v39, %v1050_v39 }
 0x207   :  { %v988_v23 = vadd.f32 %v4162_v8, %v921_v2 }
 0x208   :  { %v1195_v26 = vpop.permute.xlu2 %1194 }
 0x209   :  { %1387 = vst.msk [vmem:[%s5807_s6] sm:$0xf] %vm1386_vm1, %v1195_v26  ;;  %v3112_v26 = vunpack.c.h.bf16 %v3445_v22  ;;  %v1052_v31 = vmax.f32 %v988_v23, 0.0  ;;  %v996_v23 = vadd.f32 %v4162_v8, %v929_v16 }
 0x20b   :  { %v924_v35 = vmul.f32 %v3112_v26, %v4157_v62  ;;  %v1116_v42 = vpack.c.bf16 %v1052_v31, %v1052_v31  ;;  %v995_v26 = vadd.f32 %v4162_v8, %v928_v17  ;;  %v1060_v31 = vmax.f32 %v996_v23, 0.0 }
 0x20d   :  { %1270 = vrot.lane.b32.xlu1 %v1104_v32, %s3530_s13  ;;  %1268 = vrot.lane.b32.xlu0 %v1103_v33, %s3530_s13  ;;  %v991_v45 = vadd.f32 %v4162_v8, %v924_v35  ;;  %v1059_v35 = vmax.f32 %v995_v26, 0.0 }
 0x20e   :  { %1266 = vrot.lane.b32.xlu2 %v1102_v36, %s3530_s13  ;;  %v923_v36 = vmul.f32 %v3111_v27, %v4157_v62 }
 0x20f   :  { %v1055_v54 = vmax.f32 %v991_v45, 0.0 }
 0x210   :  { %v1201_v43 = vpop.permute.xlu2 %1200  ;;  %v990_v46 = vadd.f32 %v4162_v8, %v923_v36 }
 0x211   :  { %1390 = vst.msk [vmem:[%s5807_s6 + $0xc] sm:$0xf] %vm1386_vm1, %v1201_v43  ;;  %v3119_v43 = vunpack.c.l.bf16 %v3447_v37  ;;  %v1119_v3 = vpack.c.bf16 %v1055_v54, %v1055_v54 }
 0x212   :  { %v1054_v55 = vmax.f32 %v990_v46, 0.0 }
 0x213   :  { %v927_v51 = vmul.f32 %v3119_v43, %v4157_v62  ;;  %v3132_v43 = vunpack.c.h.bf16 %v3450_v18 }
 0x214   :  { %v1118_v4 = vpack.c.bf16 %v1054_v55, %v1054_v55 }
 0x215   :  { %1276 = vrot.lane.b32.xlu1 %v1107_v47, %s3530_s13  ;;  %1274 = vrot.lane.b32.xlu0 %v1106_v49, %s3530_s13  ;;  %v3116_v47 = vunpack.c.h.bf16 %v3446_v41  ;;  %v989_v49 = vadd.f32 %v4162_v8, %v922_v40  ;;  %v994_v61 = vadd.f32 %v4162_v8, %v927_v51  ;;  %v1123_v41 = vpack.c.bf16 %v1059_v35, %v1059_v35 }
 0x216   :  { %1272 = vrot.lane.b32.xlu2 %v1105_v53, %s3530_s13  ;;  %v934_v50 = vmul.f32 %v3132_v43, %v4157_v62 }
 0x217   :  { %v926_v56 = vmul.f32 %v3116_v47, %v4157_v62  ;;  %v1053_v59 = vmax.f32 %v989_v49, 0.0  ;;  %v1058_v11 = vmax.f32 %v994_v61, 0.0 }
 0x218   :  { %v1207_v63 = vpop.permute.xlu2 %1206  ;;  %v1001_v54 = vadd.f32 %v4162_v8, %v934_v50 }
 0x219   :  { %1393 = vst.msk [vmem:[%s5807_s6 + $0x18] sm:$0xf] %vm1386_vm1, %v1207_v63  ;;  %v3124_v63 = vunpack.c.h.bf16 %v3448_v57  ;;  %v993_v5 = vadd.f32 %v4162_v8, %v926_v56  ;;  %v1122_v20 = vpack.c.bf16 %v1058_v11, %v1058_v11 }
 0x21a   :  { %v1065_v57 = vmax.f32 %v1001_v54, 0.0 }
 0x21b   :  { %v1057_v2 = vmax.f32 %v993_v5, 0.0 }
 0x21d   :  { %1282 = vrot.lane.b32.xlu1 %v1110_v7, %s3530_s13  ;;  %1280 = vrot.lane.b32.xlu0 %v1109_v9, %s3530_s13  ;;  %v1117_v7 = vpack.c.bf16 %v1053_v59, %v1053_v59  ;;  %v992_v9 = vadd.f32 %v4162_v8, %v925_v60  ;;  %v1121_v22 = vpack.c.bf16 %v1057_v2, %v1057_v2  ;;  %v3524_v59 = vld [vmem:[%s5805_s5] ss:$0 sm:$0xff] }
 0x21e   :  { %1278 = vrot.lane.b32.xlu2 %v1108_v12, %s3530_s13  ;;  %v930_v12 = vmul.f32 %v3124_v63, %v4157_v62 }
 0x21f   :  { %v1199_v0 = vpop.permute.xlu1 %1198  ;;  %v1197_v15 = vpop.permute.xlu0 %1196 }
 0x220   :  { %1389 = vst.msk [vmem:[%s5807_s6 + $0x8] sm:$0xf] %vm1386_vm1, %v1199_v0  ;;  %v1213_v19 = vpop.permute.xlu2 %1212  ;;  %v997_v21 = vadd.f32 %v4162_v8, %v930_v12 }
 0x221   :  { %1388 = vst.msk [vmem:[%s5807_s6 + $0x4] sm:$0xf] %vm1386_vm1, %v1197_v15  ;;  %v1056_v15 = vmax.f32 %v992_v9, 0.0 }
 0x222   :  { %1396 = vst.msk [vmem:[%s5807_s6 + $0x24] sm:$0xf] %vm1386_vm1, %v1213_v19  ;;  %v3449_v19 = vld [vmem:[%s5808_s1 + $0xf0] sm:$0xff]   ;;  %v1061_v30 = vmax.f32 %v997_v21, 0.0 }
 0x223   :  { %v3127_v27 = vunpack.c.l.bf16 %v3449_v19 }
 0x224   :  { %v1125_v37 = vpack.c.bf16 %v1061_v30, %v1061_v30 }
 0x225   :  { %1288 = vrot.lane.b32.xlu1 %v1113_v24, %s3530_s13  ;;  %1286 = vrot.lane.b32.xlu0 %v1112_v25, %s3530_s13  ;;  %v3128_v24 = vunpack.c.h.bf16 %v3449_v19  ;;  %v1120_v25 = vpack.c.bf16 %v1056_v15, %v1056_v15  ;;  %v931_v36 = vmul.f32 %v3127_v27, %v4157_v62 }
 0x226   :  { %1284 = vrot.lane.b32.xlu2 %v1111_v28, %s3530_s13 }
 0x227   :  { %v1205_v32 = vpop.permute.xlu1 %1204  ;;  %v1203_v33 = vpop.permute.xlu0 %1202 }
 0x228   :  { %1392 = vst.msk [vmem:[%s5807_s6 + $0x14] sm:$0xf] %vm1386_vm1, %v1205_v32  ;;  %v1219_v38 = vpop.permute.xlu2 %1218  ;;  %v933_v32 = vmul.f32 %v3131_v1, %v4157_v62 }
 0x229   :  { %1391 = vst.msk [vmem:[%s5807_s6 + $0x10] sm:$0xf] %vm1386_vm1, %v1203_v33  ;;  %v932_v33 = vmul.f32 %v3128_v24, %v4157_v62 }
 0x22a   :  { %1399 = vst.msk [vmem:[%s5807_s6 + $0x30] sm:$0xf] %vm1386_vm1, %v1219_v38  ;;  %v1124_v38 = vpack.c.bf16 %v1060_v31, %v1060_v31  ;;  %v1000_v39 = vadd.f32 %v4162_v8, %v933_v32 }
 0x22b   :  { %v999_v40 = vadd.f32 %v4162_v8, %v932_v33 }
 0x22c   :  { %v1064_v46 = vmax.f32 %v1000_v39, 0.0  ;;  %v3134_v39 = vld [vmem:[%s5809_s2] sm:$0xff]  }
 0x22d   :  { %1294 = vrot.lane.b32.xlu1 %v1116_v42, %s3530_s13  ;;  %1292 = vrot.lane.b32.xlu0 %v1115_v44, %s3530_s13  ;;  %v998_v42 = vadd.f32 %v4162_v8, %v931_v36  ;;  %v1063_v47 = vmax.f32 %v999_v40, 0.0  ;;  %v1129_v8 = vpack.c.bf16 %v1065_v57, %v1065_v57  ;;  %v3452_v40 = vld [vmem:[%s5809_s2 + $0x10] sm:$0xff]   ;;  %v3135_v43 = vunpack.c.l.bf16 %v3134_v39  ;;  %v3453_v57 = vld [vmem:[%s5809_s2 + $0x18] sm:$0xff]  }
 0x22e   :  { %1290 = vrot.lane.b32.xlu2 %v1114_v48, %s3530_s13  ;;  %v1128_v51 = vpack.c.bf16 %v1064_v46, %v1064_v46 }
 0x22f   :  { %v1211_v52 = vpop.permute.xlu1 %1210  ;;  %v1209_v53 = vpop.permute.xlu0 %1208  ;;  %v1062_v49 = vmax.f32 %v998_v42, 0.0  ;;  %v3136_v42 = vunpack.c.h.bf16 %v3134_v39 }
 0x230   :  { %1395 = vst.msk [vmem:[%s5807_s6 + $0x20] sm:$0xf] %vm1386_vm1, %v1211_v52  ;;  %v1225_v58 = vpop.permute.xlu2 %1224  ;;  %v1127_v52 = vpack.c.bf16 %v1063_v47, %v1063_v47 }
 0x231   :  { %1394 = vst.msk [vmem:[%s5807_s6 + $0x1c] sm:$0xf] %vm1386_vm1, %v1209_v53  ;;  %v1126_v53 = vpack.c.bf16 %v1062_v49, %v1062_v49 }
 0x232   :  { %1402 = vst.msk [vmem:[%s5807_s6 + $0x3c] sm:$0xf] %vm1386_vm1, %v1225_v58  ;;  %v3523_v58 = vld [vmem:[%s5804_s4] ss:$0 sm:$0xff] }
 0x235   :  { %1300 = vrot.lane.b32.xlu1 %v1119_v3, %s3530_s13  ;;  %1298 = vrot.lane.b32.xlu0 %v1118_v4, %s3530_s13 }
 0x236   :  { %1296 = vrot.lane.b32.xlu2 %v1117_v7, %s3530_s13 }
 0x237   :  { %v1217_v13 = vpop.permute.xlu1 %1216  ;;  %v1215_v14 = vpop.permute.xlu0 %1214 }
 0x238   :  { %1398 = vst.msk [vmem:[%s5807_s6 + $0x2c] sm:$0xf] %vm1386_vm1, %v1217_v13  ;;  %v1231_v0 = vpop.permute.xlu2 %1230 }
 0x239   :  { %1397 = vst.msk [vmem:[%s5807_s6 + $0x28] sm:$0xf] %vm1386_vm1, %v1215_v14 }
 0x23a   :  { %1405 = vst.msk [vmem:[%s5807_s6 + $0x48] sm:$0xf] %vm1386_vm1, %v1231_v0 }
 0x23d   :  { %1306 = vrot.lane.b32.xlu1 %v1122_v20, %s3530_s13  ;;  %1304 = vrot.lane.b32.xlu0 %v1121_v22, %s3530_s13 }
 0x23e   :  { %1302 = vrot.lane.b32.xlu2 %v1120_v25, %s3530_s13 }
 0x23f   :  { %v1223_v28 = vpop.permute.xlu1 %1222  ;;  %v1221_v29 = vpop.permute.xlu0 %1220 }
 0x240   :  { %1401 = vst.msk [vmem:[%s5807_s6 + $0x38] sm:$0xf] %vm1386_vm1, %v1223_v28  ;;  %v1237_v34 = vpop.permute.xlu2 %1236 }
 0x241   :  { %1400 = vst.msk [vmem:[%s5807_s6 + $0x34] sm:$0xf] %vm1386_vm1, %v1221_v29 }
 0x242   :  { %1408 = vst.msk [vmem:[%s5807_s6 + $0x54] sm:$0xf] %vm1386_vm1, %v1237_v34 }
 0x245   :  { %1312 = vrot.lane.b32.xlu1 %v1125_v37, %s3530_s13  ;;  %1310 = vrot.lane.b32.xlu0 %v1124_v38, %s3530_s13  ;;  %v3451_v38 = vld [vmem:[%s5809_s2 + $0x8] sm:$0xff]  }
 0x246   :  { %1308 = vrot.lane.b32.xlu2 %v1123_v41, %s3530_s13  ;;  %v3139_v41 = vunpack.c.l.bf16 %v3451_v38 }
 0x247   :  { %v1229_v44 = vpop.permute.xlu1 %1228  ;;  %v1227_v45 = vpop.permute.xlu0 %1226 }
 0x248   :  { %1404 = vst.msk [vmem:[%s5807_s6 + $0x44] sm:$0xf] %vm1386_vm1, %v1229_v44  ;;  %v1243_v48 = vpop.permute.xlu2 %1242  ;;  %v3144_v44 = vunpack.c.h.bf16 %v3452_v40 }
 0x249   :  { %1403 = vst.msk [vmem:[%s5807_s6 + $0x40] sm:$0xf] %vm1386_vm1, %v1227_v45  ;;  %v3143_v45 = vunpack.c.l.bf16 %v3452_v40 }
 0x24a   :  { %1411 = vst.msk [vmem:[%s5807_s6 + $0x60] sm:$0xf] %vm1386_vm1, %v1243_v48  ;;  %v3140_v48 = vunpack.c.h.bf16 %v3451_v38 }
 0x24d   :  { %1318 = vrot.lane.b32.xlu1 %v1128_v51, %s3530_s13  ;;  %1316 = vrot.lane.b32.xlu0 %v1127_v52, %s3530_s13 }
 0x24e   :  { %1314 = vrot.lane.b32.xlu2 %v1126_v53, %s3530_s13 }
 0x24f   :  { %v1235_v62 = vpop.permute.xlu1 %1234  ;;  %v1233_v55 = vpop.permute.xlu0 %1232 }
 0x250   :  { %1407 = vst.msk [vmem:[%s5807_s6 + $0x50] sm:$0xf] %vm1386_vm1, %v1235_v62  ;;  %v1249_v56 = vpop.permute.xlu2 %1248 }
 0x251   :  { %1406 = vst.msk [vmem:[%s5807_s6 + $0x4c] sm:$0xf] %vm1386_vm1, %v1233_v55 }
 0x252   :  { %1414 = vst.msk [vmem:[%s5807_s6 + $0x6c] sm:$0xf] %vm1386_vm1, %v1249_v56  ;;  %v3454_v56 = vld [vmem:[%s5809_s2 + $0x20] sm:$0xff]  }
 0x255   :  { %1579 = vrot.lane.b32.xlu0 %v3523_v58, %s3531_s21  ;;  %1646 = vrot.lane.b32.xlu1 %v3524_v59, %s3531_s21 }
 0x256   :  { %1320 = vrot.lane.b32.xlu2 %v1129_v8, %s3530_s13 }
 0x257   :  { %v1241_v60 = vpop.permute.xlu1 %1240  ;;  %v1239_v61 = vpop.permute.xlu0 %1238 }
 0x258   :  { %1410 = vst.msk [vmem:[%s5807_s6 + $0x5c] sm:$0xf] %vm1386_vm1, %v1241_v60  ;;  %v1255_v63 = vpop.permute.xlu2 %1254 }
 0x259   :  { %1409 = vst.msk [vmem:[%s5807_s6 + $0x58] sm:$0xf] %vm1386_vm1, %v1239_v61 }
 0x25a   :  { %1417 = vst.msk [vmem:[%s5807_s6 + $0x78] sm:$0xf] %vm1386_vm1, %v1255_v63  ;;  %v3151_v63 = vunpack.c.l.bf16 %v3454_v56 }
 0x25f   :  { %v1247_v3 = vpop.permute.xlu1 %1246  ;;  %v1245_v4 = vpop.permute.xlu0 %1244 }
 0x260   :  { %1413 = vst.msk [vmem:[%s5807_s6 + $0x68] sm:$0xf] %vm1386_vm1, %v1247_v3  ;;  %v1261_v5 = vpop.permute.xlu2 %1260  ;;  %v3148_v3 = vunpack.c.h.bf16 %v3453_v57 }
 0x261   :  { %1412 = vst.msk [vmem:[%s5807_s6 + $0x64] sm:$0xf] %vm1386_vm1, %v1245_v4 }
 0x262   :  { %1420 = vst.msk [vmem:[%s5807_s6 + $0x84] sm:$0xf] %vm1386_vm1, %v1261_v5 }
 0x267   :  { %v1253_v6 = vpop.permute.xlu1 %1252  ;;  %v1251_v7 = vpop.permute.xlu0 %1250 }
 0x268   :  { %1416 = vst.msk [vmem:[%s5807_s6 + $0x74] sm:$0xf] %vm1386_vm1, %v1253_v6  ;;  %v1267_v9 = vpop.permute.xlu2 %1266 }
 0x269   :  { %1415 = vst.msk [vmem:[%s5807_s6 + $0x70] sm:$0xf] %vm1386_vm1, %v1251_v7 }
 0x26a   :  { %1423 = vst.msk [vmem:[%s5807_s6 + $0x90] sm:$0xf] %vm1386_vm1, %v1267_v9 }
 0x26f   :  { %v1259_v10 = vpop.permute.xlu1 %1258  ;;  %v1257_v11 = vpop.permute.xlu0 %1256 }
 0x270   :  { %1419 = vst.msk [vmem:[%s5807_s6 + $0x80] sm:$0xf] %vm1386_vm1, %v1259_v10  ;;  %v1273_v12 = vpop.permute.xlu2 %1272  ;;  %v3147_v10 = vunpack.c.l.bf16 %v3453_v57 }
 0x271   :  { %1418 = vst.msk [vmem:[%s5807_s6 + $0x7c] sm:$0xf] %vm1386_vm1, %v1257_v11 }
 0x272   :  { %1426 = vst.msk [vmem:[%s5807_s6 + $0x9c] sm:$0xf] %vm1386_vm1, %v1273_v12 }
 0x277   :  { %v1265_v13 = vpop.permute.xlu1 %1264  ;;  %v1263_v14 = vpop.permute.xlu0 %1262 }
 0x278   :  { %1422 = vst.msk [vmem:[%s5807_s6 + $0x8c] sm:$0xf] %vm1386_vm1, %v1265_v13  ;;  %v1279_v2 = vpop.permute.xlu2 %1278 }
 0x279   :  { %1421 = vst.msk [vmem:[%s5807_s6 + $0x88] sm:$0xf] %vm1386_vm1, %v1263_v14 }
 0x27a   :  { %1429 = vst.msk [vmem:[%s5807_s6 + $0xa8] sm:$0xf] %vm1386_vm1, %v1279_v2  ;;  %v3455_v2 = vld [vmem:[%s5809_s2 + $0x28] sm:$0xff]  }
 0x27f   :  { %v1271_v16 = vpop.permute.xlu1 %1270  ;;  %v1269_v0 = vpop.permute.xlu0 %1268 }
 0x280   :  { %1425 = vst.msk [vmem:[%s5807_s6 + $0x98] sm:$0xf] %vm1386_vm1, %v1271_v16  ;;  %v1285_v15 = vpop.permute.xlu2 %1284 }
 0x281   :  { %1424 = vst.msk [vmem:[%s5807_s6 + $0x94] sm:$0xf] %vm1386_vm1, %v1269_v0 }
 0x282   :  { %1432 = vst.msk [vmem:[%s5807_s6 + $0xb4] sm:$0xf] %vm1386_vm1, %v1285_v15 }
 0x287   :  { %v1277_v17 = vpop.permute.xlu1 %1276  ;;  %v1275_v18 = vpop.permute.xlu0 %1274 }
 0x288   :  { %1428 = vst.msk [vmem:[%s5807_s6 + $0xa4] sm:$0xf] %vm1386_vm1, %v1277_v17  ;;  %v1291_v19 = vpop.permute.xlu2 %1290  ;;  %v3156_v17 = vunpack.c.h.bf16 %v3455_v2 }
 0x289   :  { %1427 = vst.msk [vmem:[%s5807_s6 + $0xa0] sm:$0xf] %vm1386_vm1, %v1275_v18 }
 0x28a   :  { %1435 = vst.msk [vmem:[%s5807_s6 + $0xc0] sm:$0xf] %vm1386_vm1, %v1291_v19 }
 0x28f   :  { %v1283_v20 = vpop.permute.xlu1 %1282  ;;  %v1281_v21 = vpop.permute.xlu0 %1280 }
 0x290   :  { %1431 = vst.msk [vmem:[%s5807_s6 + $0xb0] sm:$0xf] %vm1386_vm1, %v1283_v20  ;;  %v1297_v22 = vpop.permute.xlu2 %1296 }
 0x291   :  { %1430 = vst.msk [vmem:[%s5807_s6 + $0xac] sm:$0xf] %vm1386_vm1, %v1281_v21  ;;  %v3155_v21 = vunpack.c.l.bf16 %v3455_v2 }
 0x292   :  { %1438 = vst.msk [vmem:[%s5807_s6 + $0xcc] sm:$0xf] %vm1386_vm1, %v1297_v22 }
 0x297   :  { %v1289_v23 = vpop.permute.xlu1 %1288  ;;  %v1287_v1 = vpop.permute.xlu0 %1286 }
 0x298   :  { %1434 = vst.msk [vmem:[%s5807_s6 + $0xbc] sm:$0xf] %vm1386_vm1, %v1289_v23  ;;  %v1303_v24 = vpop.permute.xlu2 %1302 }
 0x299   :  { %1433 = vst.msk [vmem:[%s5807_s6 + $0xb8] sm:$0xf] %vm1386_vm1, %v1287_v1  ;;  %v3152_v1 = vunpack.c.h.bf16 %v3454_v56 }
 0x29a   :  { %1441 = vst.msk [vmem:[%s5807_s6 + $0xd8] sm:$0xf] %vm1386_vm1, %v1303_v24 }
 0x29f   :  { %v1295_v25 = vpop.permute.xlu1 %1294  ;;  %v1293_v26 = vpop.permute.xlu0 %1292 }
 0x2a0   :  { %1437 = vst.msk [vmem:[%s5807_s6 + $0xc8] sm:$0xf] %vm1386_vm1, %v1295_v25  ;;  %v1309_v27 = vpop.permute.xlu2 %1308 }
 0x2a1   :  { %1436 = vst.msk [vmem:[%s5807_s6 + $0xc4] sm:$0xf] %vm1386_vm1, %v1293_v26 }
 0x2a2   :  { %1444 = vst.msk [vmem:[%s5807_s6 + $0xe4] sm:$0xf] %vm1386_vm1, %v1309_v27 }
 0x2a7   :  { %v1301_v28 = vpop.permute.xlu1 %1300  ;;  %v1299_v29 = vpop.permute.xlu0 %1298 }
 0x2a8   :  { %1440 = vst.msk [vmem:[%s5807_s6 + $0xd4] sm:$0xf] %vm1386_vm1, %v1301_v28  ;;  %v1315_v30 = vpop.permute.xlu2 %1314  ;;  %v3457_v28 = vld [vmem:[%s5809_s2 + $0x38] sm:$0xff]  }
 0x2a9   :  { %1439 = vst.msk [vmem:[%s5807_s6 + $0xd0] sm:$0xf] %vm1386_vm1, %v1299_v29  ;;  %v3164_v57 = vunpack.c.h.bf16 %v3457_v28 }
 0x2aa   :  { %1447 = vst.msk [vmem:[%s5807_s6 + $0xf0] sm:$0xf] %vm1386_vm1, %v1315_v30 }
 0x2af   :  { %v1307_v31 = vpop.permute.xlu1 %1306  ;;  %v1305_v32 = vpop.permute.xlu0 %1304 }
 0x2b0   :  { %1443 = vst.msk [vmem:[%s5807_s6 + $0xe0] sm:$0xf] %vm1386_vm1, %v1307_v31  ;;  %v1321_v33 = vpop.permute.xlu2 %1320  ;;  %v3456_v31 = vld [vmem:[%s5809_s2 + $0x30] sm:$0xff]  }
 0x2b1   :  { %1442 = vst.msk [vmem:[%s5807_s6 + $0xdc] sm:$0xf] %vm1386_vm1, %v1305_v32  ;;  %v3159_v40 = vunpack.c.l.bf16 %v3456_v31 }
 0x2b2   :  { %1450 = vst.msk [vmem:[%s5807_s6 + $0xfc] sm:$0xf] %vm1386_vm1, %v1321_v33  ;;  %v3163_v33 = vunpack.c.l.bf16 %v3457_v28 }
 0x2b7   :  { %v1313_v34 = vpop.permute.xlu1 %1312  ;;  %v1311_v35 = vpop.permute.xlu0 %1310 }
 0x2b8   :  { %1446 = vst.msk [vmem:[%s5807_s6 + $0xec] sm:$0xf] %vm1386_vm1, %v1313_v34 }
 0x2b9   :  { %1445 = vst.msk [vmem:[%s5807_s6 + $0xe8] sm:$0xf] %vm1386_vm1, %v1311_v35 }
 0x2bf   :  { %v1319_v36 = vpop.permute.xlu1 %1318  ;;  %v1317_v37 = vpop.permute.xlu0 %1316 }
 0x2c0   :  { %1449 = vst.msk [vmem:[%s5807_s6 + $0xf8] sm:$0xf] %vm1386_vm1, %v1319_v36 }
 0x2c1   :  { %1448 = vst.msk [vmem:[%s5807_s6 + $0xf4] sm:$0xf] %vm1386_vm1, %v1317_v37  ;;  %v3160_v37 = vunpack.c.h.bf16 %v3456_v31 }
 0x2c7   :  { %v4711_v46 = vpop.permute.xlu0 %1579  ;;  %v4713_v47 = vpop.permute.xlu1 %1646 }
 0x2c8   :  { %v1584_v49 = vmul.f32 %v3139_v41, %v4711_v46  ;;  %v1583_v50 = vmul.f32 %v3136_v42, %v4711_v46  ;;  %v1582_v51 = vmul.f32 %v3135_v43, %v4711_v46  ;;  %v1587_v52 = vmul.f32 %v3144_v44, %v4711_v46 }
 0x2c9   :  { %v1586_v55 = vmul.f32 %v3143_v45, %v4711_v46  ;;  %v1585_v8 = vmul.f32 %v3140_v48, %v4711_v46  ;;  %v1590_v11 = vmul.f32 %v3151_v63, %v4711_v46  ;;  %v1589_v14 = vmul.f32 %v3148_v3, %v4711_v46  ;;  %v3458_v45 = vld [vmem:[%s5809_s2 + $0x40] sm:$0xff]  }
 0x2ca   :  { %v1651_v53 = vadd.f32 %v4713_v47, %v1584_v49  ;;  %v1650_v54 = vadd.f32 %v4713_v47, %v1583_v50  ;;  %v1649_v62 = vadd.f32 %v4713_v47, %v1582_v51  ;;  %v1654_v61 = vadd.f32 %v4713_v47, %v1587_v52 }
 0x2cb   :  { %v1653_v7 = vadd.f32 %v4713_v47, %v1586_v55  ;;  %v1652_v9 = vadd.f32 %v4713_v47, %v1585_v8  ;;  %v1588_v0 = vmul.f32 %v3147_v10, %v4711_v46  ;;  %v1657_v15 = vadd.f32 %v4713_v47, %v1590_v11 }
 0x2cc   :  { %v1715_v58 = vmax.f32 %v1651_v53, 0.0  ;;  %v1714_v59 = vmax.f32 %v1650_v54, 0.0  ;;  %v1713_v60 = vmax.f32 %v1649_v62, 0.0  ;;  %v1718_v12 = vmax.f32 %v1654_v61, 0.0  ;;  %v3460_v61 = vld [vmem:[%s5809_s2 + $0x50] sm:$0xff]  }
 0x2cd   :  { %v1717_v13 = vmax.f32 %v1653_v7, 0.0  ;;  %v1716_v16 = vmax.f32 %v1652_v9, 0.0  ;;  %v1656_v20 = vadd.f32 %v4713_v47, %v1589_v14  ;;  %v1655_v23 = vadd.f32 %v4713_v47, %v1588_v0 }
 0x2ce   :  { %v1779_v4 = vpack.c.bf16 %v1715_v58, %v1715_v58  ;;  %v1778_v5 = vpack.c.bf16 %v1714_v59, %v1714_v59  ;;  %v1777_v6 = vpack.c.bf16 %v1713_v60, %v1713_v60  ;;  %v1782_v18 = vpack.c.bf16 %v1718_v12, %v1718_v12 }
 0x2cf   :  { %v1781_v19 = vpack.c.bf16 %v1717_v13, %v1717_v13  ;;  %v1780_v22 = vpack.c.bf16 %v1716_v16, %v1716_v16  ;;  %v1721_v24 = vmax.f32 %v1657_v15, 0.0  ;;  %v1720_v25 = vmax.f32 %v1656_v20, 0.0 }
 0x2d0   :  { %1909 = vrot.lane.b32.xlu1 %v1779_v4, %s3532_s9  ;;  %1907 = vrot.lane.b32.xlu0 %v1778_v5, %s3532_s9  ;;  %v1593_v26 = vmul.f32 %v3156_v17, %v4711_v46  ;;  %v1592_v27 = vmul.f32 %v3155_v21, %v4711_v46  ;;  %v1719_v29 = vmax.f32 %v1655_v23, 0.0  ;;  %v1591_v30 = vmul.f32 %v3152_v1, %v4711_v46  ;;  %v3459_v4 = vld [vmem:[%s5809_s2 + $0x48] sm:$0xff]  }
 0x2d1   :  { %1905 = vrot.lane.b32.xlu2 %v1777_v6, %s3532_s9  ;;  %v1785_v32 = vpack.c.bf16 %v1721_v24, %v1721_v24  ;;  %v1784_v34 = vpack.c.bf16 %v1720_v25, %v1720_v25  ;;  %v1596_v41 = vmul.f32 %v3163_v33, %v4711_v46  ;;  %v1595_v44 = vmul.f32 %v3160_v37, %v4711_v46 }
 0x2d2   :  { %v1660_v35 = vadd.f32 %v4713_v47, %v1593_v26  ;;  %v1659_v36 = vadd.f32 %v4713_v47, %v1592_v27  ;;  %v1783_v38 = vpack.c.bf16 %v1719_v29, %v1719_v29  ;;  %v1658_v39 = vadd.f32 %v4713_v47, %v1591_v30 }
 0x2d3   :  { %v1594_v49 = vmul.f32 %v3159_v40, %v4711_v46  ;;  %v1663_v50 = vadd.f32 %v4713_v47, %v1596_v41  ;;  %v3168_v51 = vunpack.c.h.bf16 %v3458_v45  ;;  %v1662_v54 = vadd.f32 %v4713_v47, %v1595_v44 }
 0x2d4   :  { %v1724_v42 = vmax.f32 %v1660_v35, 0.0  ;;  %v1723_v43 = vmax.f32 %v1659_v36, 0.0  ;;  %v1722_v48 = vmax.f32 %v1658_v39, 0.0  ;;  %v3167_v62 = vunpack.c.l.bf16 %v3458_v45  ;;  %v3462_v35 = vld [vmem:[%s5809_s2 + $0x60] sm:$0xff]  }
 0x2d5   :  { %v1661_v56 = vadd.f32 %v4713_v47, %v1594_v49  ;;  %v1599_v8 = vmul.f32 %v3168_v51, %v4711_v46  ;;  %v1727_v58 = vmax.f32 %v1663_v50, 0.0  ;;  %v1726_v59 = vmax.f32 %v1662_v54, 0.0  ;;  %v3464_v51 = vld [vmem:[%s5809_s2 + $0x70] sm:$0xff]  }
 0x2d6   :  { %v1788_v52 = vpack.c.bf16 %v1724_v42, %v1724_v42  ;;  %v1787_v53 = vpack.c.bf16 %v1723_v43, %v1723_v43  ;;  %v1786_v55 = vpack.c.bf16 %v1722_v48, %v1722_v48  ;;  %v1598_v60 = vmul.f32 %v3167_v62, %v4711_v46 }
 0x2d7   :  { %v1725_v63 = vmax.f32 %v1661_v56, 0.0  ;;  %v1597_v3 = vmul.f32 %v3164_v57, %v4711_v46  ;;  %v1666_v5 = vadd.f32 %v4713_v47, %v1599_v8  ;;  %v3175_v6 = vunpack.c.l.bf16 %v3460_v61 }
 0x2d8   :  { %1915 = vrot.lane.b32.xlu1 %v1782_v18, %s3532_s9  ;;  %1913 = vrot.lane.b32.xlu0 %v1781_v19, %s3532_s9  ;;  %v1791_v7 = vpack.c.bf16 %v1727_v58, %v1727_v58  ;;  %v1790_v9 = vpack.c.bf16 %v1726_v59, %v1726_v59  ;;  %v1665_v10 = vadd.f32 %v4713_v47, %v1598_v60  ;;  %v3172_v11 = vunpack.c.h.bf16 %v3459_v4  ;;  %v3461_v19 = vld [vmem:[%s5809_s2 + $0x58] sm:$0xff]  }
 0x2d9   :  { %1911 = vrot.lane.b32.xlu2 %v1780_v22, %s3532_s9  ;;  %v1789_v12 = vpack.c.bf16 %v1725_v63, %v1725_v63  ;;  %v1664_v13 = vadd.f32 %v4713_v47, %v1597_v3  ;;  %v3171_v14 = vunpack.c.l.bf16 %v3459_v4  ;;  %v1730_v2 = vmax.f32 %v1666_v5, 0.0 }
 0x2da   :  { %v1602_v16 = vmul.f32 %v3175_v6, %v4711_v46  ;;  %v1729_v0 = vmax.f32 %v1665_v10, 0.0  ;;  %v1601_v15 = vmul.f32 %v3172_v11, %v4711_v46  ;;  %v3180_v1 = vunpack.c.h.bf16 %v3461_v19 }
 0x2db   :  { %v1728_v17 = vmax.f32 %v1664_v13, 0.0  ;;  %v1600_v18 = vmul.f32 %v3171_v14, %v4711_v46  ;;  %v1794_v20 = vpack.c.bf16 %v1730_v2, %v1730_v2  ;;  %v3179_v24 = vunpack.c.l.bf16 %v3461_v19 }
 0x2dc   :  { %v1669_v21 = vadd.f32 %v4713_v47, %v1602_v16  ;;  %v1793_v22 = vpack.c.bf16 %v1729_v0, %v1729_v0  ;;  %v1668_v23 = vadd.f32 %v4713_v47, %v1601_v15  ;;  %v3176_v27 = vunpack.c.h.bf16 %v3460_v61 }
 0x2dd   :  { %v1792_v25 = vpack.c.bf16 %v1728_v17, %v1728_v17  ;;  %v1667_v26 = vadd.f32 %v4713_v47, %v1600_v18  ;;  %v1605_v30 = vmul.f32 %v3180_v1, %v4711_v46  ;;  %v1604_v31 = vmul.f32 %v3179_v24, %v4711_v46 }
 0x2de   :  { %v1733_v28 = vmax.f32 %v1669_v21, 0.0  ;;  %v1732_v29 = vmax.f32 %v1668_v23, 0.0  ;;  %v3184_v41 = vunpack.c.h.bf16 %v3462_v35  ;;  %v3183_v44 = vunpack.c.l.bf16 %v3462_v35  ;;  %v3467_v21 = vld [vmem:[%s5809_s2 + $0x88] sm:$0xff]  }
 0x2df   :  { %v1731_v33 = vmax.f32 %v1667_v26, 0.0  ;;  %v1672_v39 = vadd.f32 %v4713_v47, %v1605_v30  ;;  %v1671_v40 = vadd.f32 %v4713_v47, %v1604_v31  ;;  %v3192_v62 = vunpack.c.h.bf16 %v3464_v51 }
 0x2e0   :  { %1921 = vrot.lane.b32.xlu1 %v1785_v32, %s3532_s9  ;;  %1919 = vrot.lane.b32.xlu0 %v1784_v34, %s3532_s9  ;;  %v3463_v32 = vld [vmem:[%s5809_s2 + $0x68] sm:$0xff]   ;;  %v1603_v34 = vmul.f32 %v3176_v27, %v4711_v46  ;;  %v1797_v36 = vpack.c.bf16 %v1733_v28, %v1733_v28  ;;  %v1607_v50 = vmul.f32 %v3184_v41, %v4711_v46  ;;  %v3191_v8 = vunpack.c.l.bf16 %v3464_v51 }
 0x2e1   :  { %1917 = vrot.lane.b32.xlu2 %v1783_v38, %s3532_s9  ;;  %v3187_v37 = vunpack.c.l.bf16 %v3463_v32  ;;  %v1796_v38 = vpack.c.bf16 %v1732_v29, %v1732_v29  ;;  %v1795_v42 = vpack.c.bf16 %v1731_v33, %v1731_v33  ;;  %v1736_v48 = vmax.f32 %v1672_v39, 0.0  ;;  %v3468_v39 = vld [vmem:[%s5809_s2 + $0x90] sm:$0xff]  }
 0x2e2   :  { %v1670_v43 = vadd.f32 %v4713_v47, %v1603_v34  ;;  %v1735_v49 = vmax.f32 %v1671_v40, 0.0  ;;  %v1674_v57 = vadd.f32 %v4713_v47, %v1607_v50  ;;  %v3188_v60 = vunpack.c.h.bf16 %v3463_v32 }
 0x2e3   :  { %v1608_v45 = vmul.f32 %v3187_v37, %v4711_v46  ;;  %v1611_v63 = vmul.f32 %v3192_v62, %v4711_v46  ;;  %v1610_v4 = vmul.f32 %v3191_v8, %v4711_v46  ;;  %v3204_v1 = vunpack.c.h.bf16 %v3467_v21  ;;  %v3470_v62 = vld [vmem:[%s5809_s2 + $0xa0] sm:$0xff]  }
 0x2e4   :  { %v1799_v56 = vpack.c.bf16 %v1735_v49, %v1735_v49  ;;  %v1738_v3 = vmax.f32 %v1674_v57, 0.0  ;;  %v1609_v6 = vmul.f32 %v3188_v60, %v4711_v46  ;;  %v3203_v24 = vunpack.c.l.bf16 %v3467_v21 }
 0x2e5   :  { %v1675_v54 = vadd.f32 %v4713_v47, %v1608_v45  ;;  %v1678_v11 = vadd.f32 %v4713_v47, %v1611_v63  ;;  %v1677_v13 = vadd.f32 %v4713_v47, %v1610_v4  ;;  %v1617_v32 = vmul.f32 %v3204_v1, %v4711_v46 }
 0x2e6   :  { %v1676_v0 = vadd.f32 %v4713_v47, %v1609_v6  ;;  %v1616_v33 = vmul.f32 %v3203_v24, %v4711_v46  ;;  %v3208_v45 = vunpack.c.h.bf16 %v3468_v39  ;;  %v3207_v50 = vunpack.c.l.bf16 %v3468_v39 }
 0x2e7   :  { %v1739_v61 = vmax.f32 %v1675_v54, 0.0  ;;  %v1742_v17 = vmax.f32 %v1678_v11, 0.0  ;;  %v1741_v18 = vmax.f32 %v1677_v13, 0.0  ;;  %v1684_v40 = vadd.f32 %v4713_v47, %v1617_v32 }
 0x2e8   :  { %1927 = vrot.lane.b32.xlu1 %v1788_v52, %s3532_s9  ;;  %1925 = vrot.lane.b32.xlu0 %v1787_v53, %s3532_s9  ;;  %v1734_v52 = vmax.f32 %v1670_v43, 0.0  ;;  %v1606_v53 = vmul.f32 %v3183_v44, %v4711_v46  ;;  %v1683_v41 = vadd.f32 %v4713_v47, %v1616_v33  ;;  %v1619_v54 = vmul.f32 %v3208_v45, %v4711_v46 }
 0x2e9   :  { %1923 = vrot.lane.b32.xlu2 %v1786_v55, %s3532_s9  ;;  %v1800_v55 = vpack.c.bf16 %v1736_v48, %v1736_v48  ;;  %v1803_v10 = vpack.c.bf16 %v1739_v61, %v1739_v61  ;;  %v1805_v26 = vpack.c.bf16 %v1741_v18, %v1741_v18  ;;  %v1748_v51 = vmax.f32 %v1684_v40, 0.0 }
 0x2ea   :  { %v1798_v58 = vpack.c.bf16 %v1734_v52, %v1734_v52  ;;  %v1673_v59 = vadd.f32 %v4713_v47, %v1606_v53  ;;  %v1747_v52 = vmax.f32 %v1683_v41, 0.0  ;;  %v3216_v57 = vunpack.c.h.bf16 %v3470_v62 }
 0x2eb   :  { %v3215_v8 = vunpack.c.l.bf16 %v3470_v62  ;;  %v1686_v61 = vadd.f32 %v4713_v47, %v1619_v54 }
 0x2ec   :  { %v1737_v5 = vmax.f32 %v1673_v59, 0.0  ;;  %v1811_v59 = vpack.c.bf16 %v1747_v52, %v1747_v52 }
 0x2ee   :  { %v1801_v16 = vpack.c.bf16 %v1737_v5, %v1737_v5  ;;  %v1623_v5 = vmul.f32 %v3216_v57, %v4711_v46 }
 0x2f0   :  { %1933 = vrot.lane.b32.xlu1 %v1791_v7, %s3532_s9  ;;  %1931 = vrot.lane.b32.xlu0 %v1790_v9, %s3532_s9  ;;  %v3466_v7 = vld [vmem:[%s5809_s2 + $0x80] sm:$0xff]   ;;  %v3465_v9 = vld [vmem:[%s5809_s2 + $0x78] sm:$0xff]  }
 0x2f1   :  { %1929 = vrot.lane.b32.xlu2 %v1789_v12, %s3532_s9  ;;  %v1802_v12 = vpack.c.bf16 %v1738_v3, %v1738_v3  ;;  %v3199_v14 = vunpack.c.l.bf16 %v3466_v7  ;;  %v3196_v2 = vunpack.c.h.bf16 %v3465_v9  ;;  %v3195_v15 = vunpack.c.l.bf16 %v3465_v9 }
 0x2f2   :  { %v3200_v31 = vunpack.c.h.bf16 %v3466_v7  ;;  %v1750_v7 = vmax.f32 %v1686_v61, 0.0  ;;  %v1622_v9 = vmul.f32 %v3215_v8, %v4711_v46 }
 0x2f3   :  { %v1614_v19 = vmul.f32 %v3199_v14, %v4711_v46  ;;  %v1612_v23 = vmul.f32 %v3195_v15, %v4711_v46  ;;  %v3471_v14 = vld [vmem:[%s5809_s2 + $0xa8] sm:$0xff]  }
 0x2f4   :  { %v1615_v37 = vmul.f32 %v3200_v31, %v4711_v46  ;;  %v1814_v15 = vpack.c.bf16 %v1750_v7, %v1750_v7  ;;  %v3220_v18 = vunpack.c.h.bf16 %v3471_v14  ;;  %v3219_v21 = vunpack.c.l.bf16 %v3471_v14 }
 0x2f5   :  { %v1681_v27 = vadd.f32 %v4713_v47, %v1614_v19  ;;  %v1679_v30 = vadd.f32 %v4713_v47, %v1612_v23 }
 0x2f6   :  { %v1682_v49 = vadd.f32 %v4713_v47, %v1615_v37  ;;  %v1625_v24 = vmul.f32 %v3220_v18, %v4711_v46 }
 0x2f7   :  { %v1745_v34 = vmax.f32 %v1681_v27, 0.0  ;;  %v1624_v27 = vmul.f32 %v3219_v21, %v4711_v46 }
 0x2f8   :  { %1939 = vrot.lane.b32.xlu1 %v1794_v20, %s3532_s9  ;;  %1937 = vrot.lane.b32.xlu0 %v1793_v22, %s3532_s9  ;;  %v1613_v20 = vmul.f32 %v3196_v2, %v4711_v46  ;;  %v1740_v22 = vmax.f32 %v1676_v0, 0.0  ;;  %v1690_v2 = vadd.f32 %v4713_v47, %v1623_v5  ;;  %v1692_v32 = vadd.f32 %v4713_v47, %v1625_v24 }
 0x2f9   :  { %1935 = vrot.lane.b32.xlu2 %v1792_v25, %s3532_s9  ;;  %v1806_v25 = vpack.c.bf16 %v1742_v17, %v1742_v17  ;;  %v1689_v17 = vadd.f32 %v4713_v47, %v1622_v9 }
 0x2fa   :  { %v1680_v28 = vadd.f32 %v4713_v47, %v1613_v20  ;;  %v1804_v29 = vpack.c.bf16 %v1740_v22, %v1740_v22  ;;  %v1754_v22 = vmax.f32 %v1690_v2, 0.0  ;;  %v1756_v39 = vmax.f32 %v1692_v32, 0.0 }
 0x2fb   :  { %v1753_v1 = vmax.f32 %v1689_v17, 0.0 }
 0x2fc   :  { %v1744_v35 = vmax.f32 %v1680_v28, 0.0  ;;  %v3473_v28 = vld [vmem:[%s5809_s2 + $0xb8] sm:$0xff]  }
 0x2fd   :  { %v1817_v31 = vpack.c.bf16 %v1753_v1, %v1753_v1  ;;  %v3228_v33 = vunpack.c.h.bf16 %v3473_v28  ;;  %v3477_v1 = vld [vmem:[%s5809_s2 + $0xd8] sm:$0xff]  }
 0x2fe   :  { %v1808_v43 = vpack.c.bf16 %v1744_v35, %v1744_v35  ;;  %v3243_v32 = vunpack.c.l.bf16 %v3477_v1 }
 0x2ff   :  { %v1629_v40 = vmul.f32 %v3228_v33, %v4711_v46 }
 0x300   :  { %1945 = vrot.lane.b32.xlu1 %v1797_v36, %s3532_s9  ;;  %1943 = vrot.lane.b32.xlu0 %v1796_v38, %s3532_s9  ;;  %v1743_v36 = vmax.f32 %v1679_v30, 0.0  ;;  %v3469_v38 = vld [vmem:[%s5809_s2 + $0x98] sm:$0xff]  }
 0x301   :  { %1941 = vrot.lane.b32.xlu2 %v1795_v42, %s3532_s9  ;;  %v1809_v42 = vpack.c.bf16 %v1745_v34, %v1745_v34  ;;  %v3211_v44 = vunpack.c.l.bf16 %v3469_v38  ;;  %v3212_v4 = vunpack.c.h.bf16 %v3469_v38  ;;  %v3227_v34 = vunpack.c.l.bf16 %v3473_v28 }
 0x302   :  { %v1807_v48 = vpack.c.bf16 %v1743_v36, %v1743_v36  ;;  %v1691_v36 = vadd.f32 %v4713_v47, %v1624_v27  ;;  %v1696_v52 = vadd.f32 %v4713_v47, %v1629_v40 }
 0x303   :  { %v1620_v53 = vmul.f32 %v3211_v44, %v4711_v46  ;;  %v1621_v13 = vmul.f32 %v3212_v4, %v4711_v46  ;;  %v1628_v41 = vmul.f32 %v3227_v34, %v4711_v46 }
 0x304   :  { %v1755_v44 = vmax.f32 %v1691_v36, 0.0 }
 0x305   :  { %v1687_v60 = vadd.f32 %v4713_v47, %v1620_v53  ;;  %v1688_v20 = vadd.f32 %v4713_v47, %v1621_v13  ;;  %v1695_v53 = vadd.f32 %v4713_v47, %v1628_v41 }
 0x306   :  { %v1819_v62 = vpack.c.bf16 %v1755_v44, %v1755_v44 }
 0x307   :  { %v1751_v6 = vmax.f32 %v1687_v60, 0.0  ;;  %v1759_v60 = vmax.f32 %v1695_v53, 0.0 }
 0x308   :  { %1951 = vrot.lane.b32.xlu1 %v1800_v55, %s3532_s9  ;;  %1949 = vrot.lane.b32.xlu0 %v1799_v56, %s3532_s9  ;;  %v1746_v55 = vmax.f32 %v1682_v49, 0.0  ;;  %v1618_v56 = vmul.f32 %v3207_v50, %v4711_v46 }
 0x309   :  { %1947 = vrot.lane.b32.xlu2 %v1798_v58, %s3532_s9  ;;  %v1812_v58 = vpack.c.bf16 %v1748_v51, %v1748_v51  ;;  %v1815_v0 = vpack.c.bf16 %v1751_v6, %v1751_v6  ;;  %v1820_v51 = vpack.c.bf16 %v1756_v39, %v1756_v39  ;;  %v3479_v39 = vld [vmem:[%s5809_s2 + $0xe8] sm:$0xff]  }
 0x30a   :  { %v1810_v63 = vpack.c.bf16 %v1746_v55, %v1746_v55  ;;  %v1685_v3 = vadd.f32 %v4713_v47, %v1618_v56  ;;  %v3252_v44 = vunpack.c.h.bf16 %v3479_v39 }
 0x310   :  { %1957 = vrot.lane.b32.xlu1 %v1803_v10, %s3532_s9  ;;  %1955 = vrot.lane.b32.xlu0 %v1802_v12, %s3532_s9  ;;  %v3472_v10 = vld [vmem:[%s5809_s2 + $0xb0] sm:$0xff]   ;;  %v1749_v12 = vmax.f32 %v1685_v3, 0.0 }
 0x311   :  { %1953 = vrot.lane.b32.xlu2 %v1801_v16, %s3532_s9  ;;  %v3223_v16 = vunpack.c.l.bf16 %v3472_v10  ;;  %v3224_v37 = vunpack.c.h.bf16 %v3472_v10  ;;  %v1823_v10 = vpack.c.bf16 %v1759_v60, %v1759_v60 }
 0x312   :  { %v1813_v19 = vpack.c.bf16 %v1749_v12, %v1749_v12 }
 0x313   :  { %v1626_v23 = vmul.f32 %v3223_v16, %v4711_v46  ;;  %v1627_v45 = vmul.f32 %v3224_v37, %v4711_v46 }
 0x315   :  { %v1693_v30 = vadd.f32 %v4713_v47, %v1626_v23  ;;  %v1694_v55 = vadd.f32 %v4713_v47, %v1627_v45 }
 0x317   :  { %v1757_v38 = vmax.f32 %v1693_v30, 0.0  ;;  %v1758_v4 = vmax.f32 %v1694_v55, 0.0 }
 0x318   :  { %1963 = vrot.lane.b32.xlu1 %v1806_v25, %s3532_s9  ;;  %1961 = vrot.lane.b32.xlu0 %v1805_v26, %s3532_s9  ;;  %v1752_v26 = vmax.f32 %v1688_v20, 0.0  ;;  %v3478_v20 = vld [vmem:[%s5809_s2 + $0xe0] sm:$0xff]  }
 0x319   :  { %1959 = vrot.lane.b32.xlu2 %v1804_v29, %s3532_s9  ;;  %v1818_v29 = vpack.c.bf16 %v1754_v22, %v1754_v22  ;;  %v1821_v49 = vpack.c.bf16 %v1757_v38, %v1757_v38  ;;  %v1822_v13 = vpack.c.bf16 %v1758_v4, %v1758_v4  ;;  %v3248_v53 = vunpack.c.h.bf16 %v3478_v20 }
 0x31a   :  { %v1816_v35 = vpack.c.bf16 %v1752_v26, %v1752_v26 }
 0x31b   :  { %v1639_v60 = vmul.f32 %v3248_v53, %v4711_v46 }
 0x320   :  { %1969 = vrot.lane.b32.xlu1 %v1809_v42, %s3532_s9  ;;  %1967 = vrot.lane.b32.xlu0 %v1808_v43, %s3532_s9  ;;  %v3475_v42 = vld [vmem:[%s5809_s2 + $0xc8] sm:$0xff]  }
 0x321   :  { %1965 = vrot.lane.b32.xlu2 %v1807_v48, %s3532_s9  ;;  %v3474_v48 = vld [vmem:[%s5809_s2 + $0xc0] sm:$0xff]   ;;  %v3235_v50 = vunpack.c.l.bf16 %v3475_v42  ;;  %v3236_v2 = vunpack.c.h.bf16 %v3475_v42  ;;  %v1636_v42 = vmul.f32 %v3243_v32, %v4711_v46 }
 0x322   :  { %v3232_v54 = vunpack.c.h.bf16 %v3474_v48  ;;  %v3231_v56 = vunpack.c.l.bf16 %v3474_v48 }
 0x323   :  { %v1632_v57 = vmul.f32 %v3235_v50, %v4711_v46  ;;  %v1633_v23 = vmul.f32 %v3236_v2, %v4711_v46  ;;  %v3251_v50 = vunpack.c.l.bf16 %v3479_v39 }
 0x324   :  { %v1631_v61 = vmul.f32 %v3232_v54, %v4711_v46  ;;  %v1630_v5 = vmul.f32 %v3231_v56, %v4711_v46 }
 0x325   :  { %v1699_v6 = vadd.f32 %v4713_v47, %v1632_v57 }
 0x326   :  { %v1697_v14 = vadd.f32 %v4713_v47, %v1630_v5 }
 0x327   :  { %v1763_v17 = vmax.f32 %v1699_v6, 0.0 }
 0x328   :  { %1975 = vrot.lane.b32.xlu1 %v1812_v58, %s3532_s9  ;;  %1973 = vrot.lane.b32.xlu0 %v1811_v59, %s3532_s9  ;;  %v1760_v59 = vmax.f32 %v1696_v52, 0.0  ;;  %v1761_v22 = vmax.f32 %v1697_v14, 0.0  ;;  %v1703_v52 = vadd.f32 %v4713_v47, %v1636_v42 }
 0x329   :  { %1971 = vrot.lane.b32.xlu2 %v1810_v63, %s3532_s9  ;;  %v3476_v63 = vld [vmem:[%s5809_s2 + $0xd0] sm:$0xff]   ;;  %v1827_v26 = vpack.c.bf16 %v1763_v17, %v1763_v17 }
 0x32a   :  { %v3240_v7 = vunpack.c.h.bf16 %v3476_v63  ;;  %v1824_v9 = vpack.c.bf16 %v1760_v59, %v1760_v59  ;;  %v3239_v12 = vunpack.c.l.bf16 %v3476_v63  ;;  %v1825_v30 = vpack.c.bf16 %v1761_v22, %v1761_v22  ;;  %v3480_v63 = vld [vmem:[%s5809_s2 + $0xf0] sm:$0xff]  }
 0x32b   :  { %v1906_v11 = vpop.permute.xlu2 %1905  ;;  %v1767_v59 = vmax.f32 %v1703_v52, 0.0 }
 0x32c   :  { %2098 = vst.msk [vmem:[%s5807_s6] sm:$0xf] %vm2097_vm2, %v1906_v11  ;;  %v1698_v11 = vadd.f32 %v4713_v47, %v1631_v61  ;;  %v1635_v16 = vmul.f32 %v3240_v7, %v4711_v46  ;;  %v3481_v61 = vld [vmem:[%s5809_s2 + $0xf8] sm:$0xff]  }
 0x32d   :  { %v3259_v7 = vunpack.c.l.bf16 %v3481_v61 }
 0x32e   :  { %v1762_v18 = vmax.f32 %v1698_v11, 0.0  ;;  %v1702_v24 = vadd.f32 %v4713_v47, %v1635_v16  ;;  %v1706_v11 = vadd.f32 %v4713_v47, %v1639_v60 }
 0x330   :  { %1981 = vrot.lane.b32.xlu1 %v1815_v0, %s3532_s9  ;;  %1979 = vrot.lane.b32.xlu0 %v1814_v15, %s3532_s9  ;;  %v1826_v27 = vpack.c.bf16 %v1762_v18, %v1762_v18  ;;  %v1766_v36 = vmax.f32 %v1702_v24, 0.0  ;;  %v1770_v18 = vmax.f32 %v1706_v11, 0.0 }
 0x331   :  { %1977 = vrot.lane.b32.xlu2 %v1813_v19, %s3532_s9  ;;  %v1634_v19 = vmul.f32 %v3239_v12, %v4711_v46  ;;  %v3255_v12 = vunpack.c.l.bf16 %v3480_v63 }
 0x332   :  { %v1830_v45 = vpack.c.bf16 %v1766_v36, %v1766_v36 }
 0x333   :  { %v1912_v25 = vpop.permute.xlu2 %1911  ;;  %v1701_v28 = vadd.f32 %v4713_v47, %v1634_v19  ;;  %v1642_v19 = vmul.f32 %v3255_v12, %v4711_v46 }
 0x334   :  { %2101 = vst.msk [vmem:[%s5807_s6 + $0xc] sm:$0xf] %vm2097_vm2, %v1912_v25  ;;  %v3247_v25 = vunpack.c.l.bf16 %v3478_v20 }
 0x335   :  { %v1765_v37 = vmax.f32 %v1701_v28, 0.0  ;;  %v1709_v24 = vadd.f32 %v4713_v47, %v1642_v19 }
 0x336   :  { %v1638_v33 = vmul.f32 %v3247_v25, %v4711_v46  ;;  %v3260_v25 = vunpack.c.h.bf16 %v3481_v61 }
 0x337   :  { %v1829_v48 = vpack.c.bf16 %v1765_v37, %v1765_v37 }
 0x338   :  { %1987 = vrot.lane.b32.xlu1 %v1818_v29, %s3532_s9  ;;  %1985 = vrot.lane.b32.xlu0 %v1817_v31, %s3532_s9  ;;  %v3244_v29 = vunpack.c.h.bf16 %v3477_v1  ;;  %v1700_v31 = vadd.f32 %v4713_v47, %v1633_v23  ;;  %v1834_v1 = vpack.c.bf16 %v1770_v18, %v1770_v18  ;;  %v1645_v32 = vmul.f32 %v3260_v25, %v4711_v46 }
 0x339   :  { %1983 = vrot.lane.b32.xlu2 %v1816_v35, %s3532_s9 }
 0x33a   :  { %v1637_v38 = vmul.f32 %v3244_v29, %v4711_v46  ;;  %v1764_v41 = vmax.f32 %v1700_v31, 0.0  ;;  %v1773_v31 = vmax.f32 %v1709_v24, 0.0  ;;  %v1712_v36 = vadd.f32 %v4713_v47, %v1645_v32 }
 0x33b   :  { %v1918_v43 = vpop.permute.xlu2 %1917 }
 0x33c   :  { %2104 = vst.msk [vmem:[%s5807_s6 + $0x18] sm:$0xf] %vm2097_vm2, %v1918_v43  ;;  %v1705_v43 = vadd.f32 %v4713_v47, %v1638_v33  ;;  %v1776_v39 = vmax.f32 %v1712_v36, 0.0 }
 0x33e   :  { %v1769_v54 = vmax.f32 %v1705_v43, 0.0 }
 0x340   :  { %1993 = vrot.lane.b32.xlu1 %v1821_v49, %s3532_s9  ;;  %1991 = vrot.lane.b32.xlu0 %v1820_v51, %s3532_s9  ;;  %v1704_v49 = vadd.f32 %v4713_v47, %v1637_v38  ;;  %v1828_v51 = vpack.c.bf16 %v1764_v41, %v1764_v41  ;;  %v3526_v41 = vld [vmem:[%s5805_s5] ss:$0 sm:$0xff] }
 0x341   :  { %1989 = vrot.lane.b32.xlu2 %v1819_v62, %s3532_s9  ;;  %v1641_v62 = vmul.f32 %v3252_v44, %v4711_v46 }
 0x342   :  { %v1910_v8 = vpop.permute.xlu1 %1909  ;;  %v1908_v58 = vpop.permute.xlu0 %1907  ;;  %v1768_v57 = vmax.f32 %v1704_v49, 0.0 }
 0x343   :  { %2100 = vst.msk [vmem:[%s5807_s6 + $0x8] sm:$0xf] %vm2097_vm2, %v1910_v8  ;;  %v1924_v3 = vpop.permute.xlu2 %1923  ;;  %v1640_v8 = vmul.f32 %v3251_v50, %v4711_v46  ;;  %v1708_v4 = vadd.f32 %v4713_v47, %v1641_v62 }
 0x344   :  { %2099 = vst.msk [vmem:[%s5807_s6 + $0x4] sm:$0xf] %vm2097_vm2, %v1908_v58  ;;  %v1832_v5 = vpack.c.bf16 %v1768_v57, %v1768_v57 }
 0x345   :  { %2107 = vst.msk [vmem:[%s5807_s6 + $0x24] sm:$0xf] %vm2097_vm2, %v1924_v3  ;;  %v1833_v3 = vpack.c.bf16 %v1769_v54, %v1769_v54  ;;  %v1707_v6 = vadd.f32 %v4713_v47, %v1640_v8  ;;  %v1772_v2 = vmax.f32 %v1708_v4, 0.0 }
 0x347   :  { %v1771_v16 = vmax.f32 %v1707_v6, 0.0  ;;  %v1836_v20 = vpack.c.bf16 %v1772_v2, %v1772_v2 }
 0x348   :  { %1999 = vrot.lane.b32.xlu1 %v1824_v9, %s3532_s9  ;;  %1997 = vrot.lane.b32.xlu0 %v1823_v10, %s3532_s9  ;;  %v3256_v9 = vunpack.c.h.bf16 %v3480_v63  ;;  %v1831_v10 = vpack.c.bf16 %v1767_v59, %v1767_v59 }
 0x349   :  { %1995 = vrot.lane.b32.xlu2 %v1822_v13, %s3532_s9 }
 0x34a   :  { %v1916_v0 = vpop.permute.xlu1 %1915  ;;  %v1914_v15 = vpop.permute.xlu0 %1913 }
 0x34b   :  { %2103 = vst.msk [vmem:[%s5807_s6 + $0x14] sm:$0xf] %vm2097_vm2, %v1916_v0  ;;  %v1930_v21 = vpop.permute.xlu2 %1929  ;;  %v1644_v0 = vmul.f32 %v3259_v7, %v4711_v46 }
 0x34c   :  { %2102 = vst.msk [vmem:[%s5807_s6 + $0x10] sm:$0xf] %vm2097_vm2, %v1914_v15  ;;  %v1643_v15 = vmul.f32 %v3256_v9, %v4711_v46 }
 0x34d   :  { %2110 = vst.msk [vmem:[%s5807_s6 + $0x30] sm:$0xf] %vm2097_vm2, %v1930_v21  ;;  %v1835_v21 = vpack.c.bf16 %v1771_v16, %v1771_v16  ;;  %v1711_v22 = vadd.f32 %v4713_v47, %v1644_v0 }
 0x34e   :  { %v1710_v23 = vadd.f32 %v4713_v47, %v1643_v15  ;;  %v1840_v47 = vpack.c.bf16 %v1776_v39, %v1776_v39  ;;  %v3484_v39 = vld [vmem:[%s5810_s3 + $0x18] sm:$0xff]  }
 0x34f   :  { %v1775_v28 = vmax.f32 %v1711_v22, 0.0  ;;  %v3262_v22 = vld [vmem:[%s5810_s3] sm:$0xff]  }
 0x350   :  { %2005 = vrot.lane.b32.xlu1 %v1827_v26, %s3532_s9  ;;  %2003 = vrot.lane.b32.xlu0 %v1826_v27, %s3532_s9  ;;  %v1774_v29 = vmax.f32 %v1710_v23, 0.0  ;;  %v3483_v23 = vld [vmem:[%s5810_s3 + $0x10] sm:$0xff]   ;;  %v3264_v24 = vunpack.c.h.bf16 %v3262_v22  ;;  %v3263_v25 = vunpack.c.l.bf16 %v3262_v22 }
 0x351   :  { %2001 = vrot.lane.b32.xlu2 %v1825_v30, %s3532_s9  ;;  %v1839_v33 = vpack.c.bf16 %v1775_v28, %v1775_v28 }
 0x352   :  { %v1922_v34 = vpop.permute.xlu1 %1921  ;;  %v1920_v35 = vpop.permute.xlu0 %1919 }
 0x353   :  { %2106 = vst.msk [vmem:[%s5807_s6 + $0x20] sm:$0xf] %vm2097_vm2, %v1922_v34  ;;  %v1936_v40 = vpop.permute.xlu2 %1935  ;;  %v1838_v34 = vpack.c.bf16 %v1774_v29, %v1774_v29 }
 0x354   :  { %2105 = vst.msk [vmem:[%s5807_s6 + $0x1c] sm:$0xf] %vm2097_vm2, %v1920_v35  ;;  %v1837_v35 = vpack.c.bf16 %v1773_v31, %v1773_v31 }
 0x355   :  { %2113 = vst.msk [vmem:[%s5807_s6 + $0x3c] sm:$0xf] %vm2097_vm2, %v1936_v40  ;;  %v3525_v40 = vld [vmem:[%s5804_s4] ss:$0 sm:$0xff]  ;;  %s3534_s4 = smov 40  }
 0x358   :  { %2011 = vrot.lane.b32.xlu1 %v1830_v45, %s3532_s9  ;;  %2009 = vrot.lane.b32.xlu0 %v1829_v48, %s3532_s9 }
 0x359   :  { %2007 = vrot.lane.b32.xlu2 %v1828_v51, %s3532_s9 }
 0x35a   :  { %v1928_v55 = vpop.permute.xlu1 %1927  ;;  %v1926_v56 = vpop.permute.xlu0 %1925 }
 0x35b   :  { %2109 = vst.msk [vmem:[%s5807_s6 + $0x2c] sm:$0xf] %vm2097_vm2, %v1928_v55  ;;  %v1942_v58 = vpop.permute.xlu2 %1941 }
 0x35c   :  { %2108 = vst.msk [vmem:[%s5807_s6 + $0x28] sm:$0xf] %vm2097_vm2, %v1926_v56 }
 0x35d   :  { %2116 = vst.msk [vmem:[%s5807_s6 + $0x48] sm:$0xf] %vm2097_vm2, %v1942_v58 }
 0x360   :  { %2017 = vrot.lane.b32.xlu1 %v1833_v3, %s3532_s9  ;;  %2015 = vrot.lane.b32.xlu0 %v1832_v5, %s3532_s9 }
 0x361   :  { %2013 = vrot.lane.b32.xlu2 %v1831_v10, %s3532_s9 }
 0x362   :  { %v1934_v13 = vpop.permute.xlu1 %1933  ;;  %v1932_v14 = vpop.permute.xlu0 %1931 }
 0x363   :  { %2112 = vst.msk [vmem:[%s5807_s6 + $0x38] sm:$0xf] %vm2097_vm2, %v1934_v13  ;;  %v1948_v17 = vpop.permute.xlu2 %1947 }
 0x364   :  { %2111 = vst.msk [vmem:[%s5807_s6 + $0x34] sm:$0xf] %vm2097_vm2, %v1932_v14 }
 0x365   :  { %2119 = vst.msk [vmem:[%s5807_s6 + $0x54] sm:$0xf] %vm2097_vm2, %v1948_v17 }
 0x368   :  { %2023 = vrot.lane.b32.xlu1 %v1836_v20, %s3532_s9  ;;  %2021 = vrot.lane.b32.xlu0 %v1835_v21, %s3532_s9  ;;  %v3482_v21 = vld [vmem:[%s5810_s3 + $0x8] sm:$0xff]  }
 0x369   :  { %2019 = vrot.lane.b32.xlu2 %v1834_v1, %s3532_s9  ;;  %v3267_v1 = vunpack.c.l.bf16 %v3482_v21 }
 0x36a   :  { %v1940_v26 = vpop.permute.xlu1 %1939  ;;  %v1938_v27 = vpop.permute.xlu0 %1937 }
 0x36b   :  { %2115 = vst.msk [vmem:[%s5807_s6 + $0x44] sm:$0xf] %vm2097_vm2, %v1940_v26  ;;  %v1954_v30 = vpop.permute.xlu2 %1953  ;;  %v3272_v26 = vunpack.c.h.bf16 %v3483_v23 }
 0x36c   :  { %2114 = vst.msk [vmem:[%s5807_s6 + $0x40] sm:$0xf] %vm2097_vm2, %v1938_v27  ;;  %v3271_v27 = vunpack.c.l.bf16 %v3483_v23 }
 0x36d   :  { %2122 = vst.msk [vmem:[%s5807_s6 + $0x60] sm:$0xf] %vm2097_vm2, %v1954_v30  ;;  %v3268_v30 = vunpack.c.h.bf16 %v3482_v21 }
 0x370   :  { %2029 = vrot.lane.b32.xlu1 %v1839_v33, %s3532_s9  ;;  %2027 = vrot.lane.b32.xlu0 %v1838_v34, %s3532_s9 }
 0x371   :  { %2025 = vrot.lane.b32.xlu2 %v1837_v35, %s3532_s9 }
 0x372   :  { %v1946_v46 = vpop.permute.xlu1 %1945  ;;  %v1944_v37 = vpop.permute.xlu0 %1943 }
 0x373   :  { %2118 = vst.msk [vmem:[%s5807_s6 + $0x50] sm:$0xf] %vm2097_vm2, %v1946_v46  ;;  %v1960_v38 = vpop.permute.xlu2 %1959 }
 0x374   :  { %2117 = vst.msk [vmem:[%s5807_s6 + $0x4c] sm:$0xf] %vm2097_vm2, %v1944_v37 }
 0x375   :  { %2125 = vst.msk [vmem:[%s5807_s6 + $0x6c] sm:$0xf] %vm2097_vm2, %v1960_v38  ;;  %v3485_v38 = vld [vmem:[%s5810_s3 + $0x20] sm:$0xff]  }
 0x378   :  { %2290 = vrot.lane.b32.xlu0 %v3525_v40, %s3533_s14  ;;  %2357 = vrot.lane.b32.xlu1 %v3526_v41, %s3533_s14 }
 0x379   :  { %2031 = vrot.lane.b32.xlu2 %v1840_v47, %s3532_s9 }
 0x37a   :  { %v1952_v42 = vpop.permute.xlu1 %1951  ;;  %v1950_v43 = vpop.permute.xlu0 %1949 }
 0x37b   :  { %2121 = vst.msk [vmem:[%s5807_s6 + $0x5c] sm:$0xf] %vm2097_vm2, %v1952_v42  ;;  %v1966_v44 = vpop.permute.xlu2 %1965 }
 0x37c   :  { %2120 = vst.msk [vmem:[%s5807_s6 + $0x58] sm:$0xf] %vm2097_vm2, %v1950_v43 }
 0x37d   :  { %2128 = vst.msk [vmem:[%s5807_s6 + $0x78] sm:$0xf] %vm2097_vm2, %v1966_v44  ;;  %v3279_v44 = vunpack.c.l.bf16 %v3485_v38 }
 0x382   :  { %v1958_v45 = vpop.permute.xlu1 %1957  ;;  %v1956_v48 = vpop.permute.xlu0 %1955 }
 0x383   :  { %2124 = vst.msk [vmem:[%s5807_s6 + $0x68] sm:$0xf] %vm2097_vm2, %v1958_v45  ;;  %v1972_v49 = vpop.permute.xlu2 %1971  ;;  %v3276_v45 = vunpack.c.h.bf16 %v3484_v39 }
 0x384   :  { %2123 = vst.msk [vmem:[%s5807_s6 + $0x64] sm:$0xf] %vm2097_vm2, %v1956_v48 }
 0x385   :  { %2131 = vst.msk [vmem:[%s5807_s6 + $0x84] sm:$0xf] %vm2097_vm2, %v1972_v49 }
 0x38a   :  { %v1964_v50 = vpop.permute.xlu1 %1963  ;;  %v1962_v51 = vpop.permute.xlu0 %1961 }
 0x38b   :  { %2127 = vst.msk [vmem:[%s5807_s6 + $0x74] sm:$0xf] %vm2097_vm2, %v1964_v50  ;;  %v1978_v52 = vpop.permute.xlu2 %1977 }
 0x38c   :  { %2126 = vst.msk [vmem:[%s5807_s6 + $0x70] sm:$0xf] %vm2097_vm2, %v1962_v51 }
 0x38d   :  { %2134 = vst.msk [vmem:[%s5807_s6 + $0x90] sm:$0xf] %vm2097_vm2, %v1978_v52 }
 0x392   :  { %v1970_v53 = vpop.permute.xlu1 %1969  ;;  %v1968_v54 = vpop.permute.xlu0 %1967 }
 0x393   :  { %2130 = vst.msk [vmem:[%s5807_s6 + $0x80] sm:$0xf] %vm2097_vm2, %v1970_v53  ;;  %v1984_v62 = vpop.permute.xlu2 %1983  ;;  %v3275_v53 = vunpack.c.l.bf16 %v3484_v39 }
 0x394   :  { %2129 = vst.msk [vmem:[%s5807_s6 + $0x7c] sm:$0xf] %vm2097_vm2, %v1968_v54 }
 0x395   :  { %2137 = vst.msk [vmem:[%s5807_s6 + $0x9c] sm:$0xf] %vm2097_vm2, %v1984_v62 }
 0x39a   :  { %v1976_v55 = vpop.permute.xlu1 %1975  ;;  %v1974_v56 = vpop.permute.xlu0 %1973 }
 0x39b   :  { %2133 = vst.msk [vmem:[%s5807_s6 + $0x8c] sm:$0xf] %vm2097_vm2, %v1976_v55  ;;  %v1990_v57 = vpop.permute.xlu2 %1989 }
 0x39c   :  { %2132 = vst.msk [vmem:[%s5807_s6 + $0x88] sm:$0xf] %vm2097_vm2, %v1974_v56 }
 0x39d   :  { %2140 = vst.msk [vmem:[%s5807_s6 + $0xa8] sm:$0xf] %vm2097_vm2, %v1990_v57  ;;  %v3486_v57 = vld [vmem:[%s5810_s3 + $0x28] sm:$0xff]  }
 0x3a2   :  { %v1982_v8 = vpop.permute.xlu1 %1981  ;;  %v1980_v58 = vpop.permute.xlu0 %1979 }
 0x3a3   :  { %2136 = vst.msk [vmem:[%s5807_s6 + $0x98] sm:$0xf] %vm2097_vm2, %v1982_v8  ;;  %v1996_v59 = vpop.permute.xlu2 %1995 }
 0x3a4   :  { %2135 = vst.msk [vmem:[%s5807_s6 + $0x94] sm:$0xf] %vm2097_vm2, %v1980_v58 }
 0x3a5   :  { %2143 = vst.msk [vmem:[%s5807_s6 + $0xb4] sm:$0xf] %vm2097_vm2, %v1996_v59 }
 0x3aa   :  { %v1988_v60 = vpop.permute.xlu1 %1987  ;;  %v1986_v61 = vpop.permute.xlu0 %1985 }
 0x3ab   :  { %2139 = vst.msk [vmem:[%s5807_s6 + $0xa4] sm:$0xf] %vm2097_vm2, %v1988_v60  ;;  %v2002_v63 = vpop.permute.xlu2 %2001  ;;  %v3284_v60 = vunpack.c.h.bf16 %v3486_v57 }
 0x3ac   :  { %2138 = vst.msk [vmem:[%s5807_s6 + $0xa0] sm:$0xf] %vm2097_vm2, %v1986_v61 }
 0x3ad   :  { %2146 = vst.msk [vmem:[%s5807_s6 + $0xc0] sm:$0xf] %vm2097_vm2, %v2002_v63 }
 0x3b2   :  { %v1994_v3 = vpop.permute.xlu1 %1993  ;;  %v1992_v4 = vpop.permute.xlu0 %1991 }
 0x3b3   :  { %2142 = vst.msk [vmem:[%s5807_s6 + $0xb0] sm:$0xf] %vm2097_vm2, %v1994_v3  ;;  %v2008_v5 = vpop.permute.xlu2 %2007 }
 0x3b4   :  { %2141 = vst.msk [vmem:[%s5807_s6 + $0xac] sm:$0xf] %vm2097_vm2, %v1992_v4  ;;  %v3283_v4 = vunpack.c.l.bf16 %v3486_v57 }
 0x3b5   :  { %2149 = vst.msk [vmem:[%s5807_s6 + $0xcc] sm:$0xf] %vm2097_vm2, %v2008_v5 }
 0x3ba   :  { %v2000_v6 = vpop.permute.xlu1 %1999  ;;  %v1998_v7 = vpop.permute.xlu0 %1997 }
 0x3bb   :  { %2145 = vst.msk [vmem:[%s5807_s6 + $0xbc] sm:$0xf] %vm2097_vm2, %v2000_v6  ;;  %v2014_v9 = vpop.permute.xlu2 %2013 }
 0x3bc   :  { %2144 = vst.msk [vmem:[%s5807_s6 + $0xb8] sm:$0xf] %vm2097_vm2, %v1998_v7  ;;  %v3280_v7 = vunpack.c.h.bf16 %v3485_v38 }
 0x3bd   :  { %2152 = vst.msk [vmem:[%s5807_s6 + $0xd8] sm:$0xf] %vm2097_vm2, %v2014_v9 }
 0x3c2   :  { %v2006_v10 = vpop.permute.xlu1 %2005  ;;  %v2004_v11 = vpop.permute.xlu0 %2003 }
 0x3c3   :  { %2148 = vst.msk [vmem:[%s5807_s6 + $0xc8] sm:$0xf] %vm2097_vm2, %v2006_v10  ;;  %v2020_v12 = vpop.permute.xlu2 %2019 }
 0x3c4   :  { %2147 = vst.msk [vmem:[%s5807_s6 + $0xc4] sm:$0xf] %vm2097_vm2, %v2004_v11 }
 0x3c5   :  { %2155 = vst.msk [vmem:[%s5807_s6 + $0xe4] sm:$0xf] %vm2097_vm2, %v2020_v12 }
 0x3ca   :  { %v2012_v13 = vpop.permute.xlu1 %2011  ;;  %v2010_v14 = vpop.permute.xlu0 %2009 }
 0x3cb   :  { %2151 = vst.msk [vmem:[%s5807_s6 + $0xd4] sm:$0xf] %vm2097_vm2, %v2012_v13  ;;  %v2026_v2 = vpop.permute.xlu2 %2025  ;;  %v3488_v13 = vld [vmem:[%s5810_s3 + $0x38] sm:$0xff]  }
 0x3cc   :  { %2150 = vst.msk [vmem:[%s5807_s6 + $0xd0] sm:$0xf] %vm2097_vm2, %v2010_v14  ;;  %v3292_v39 = vunpack.c.h.bf16 %v3488_v13 }
 0x3cd   :  { %2158 = vst.msk [vmem:[%s5807_s6 + $0xf0] sm:$0xf] %vm2097_vm2, %v2026_v2 }
 0x3d2   :  { %v2018_v16 = vpop.permute.xlu1 %2017  ;;  %v2016_v0 = vpop.permute.xlu0 %2015 }
 0x3d3   :  { %2154 = vst.msk [vmem:[%s5807_s6 + $0xe0] sm:$0xf] %vm2097_vm2, %v2018_v16  ;;  %v2032_v15 = vpop.permute.xlu2 %2031  ;;  %v3487_v16 = vld [vmem:[%s5810_s3 + $0x30] sm:$0xff]  }
 0x3d4   :  { %2153 = vst.msk [vmem:[%s5807_s6 + $0xdc] sm:$0xf] %vm2097_vm2, %v2016_v0  ;;  %v3287_v23 = vunpack.c.l.bf16 %v3487_v16 }
 0x3d5   :  { %2161 = vst.msk [vmem:[%s5807_s6 + $0xfc] sm:$0xf] %vm2097_vm2, %v2032_v15  ;;  %v3291_v15 = vunpack.c.l.bf16 %v3488_v13 }
 0x3da   :  { %v2024_v17 = vpop.permute.xlu1 %2023  ;;  %v2022_v18 = vpop.permute.xlu0 %2021 }
 0x3db   :  { %2157 = vst.msk [vmem:[%s5807_s6 + $0xec] sm:$0xf] %vm2097_vm2, %v2024_v17 }
 0x3dc   :  { %2156 = vst.msk [vmem:[%s5807_s6 + $0xe8] sm:$0xf] %vm2097_vm2, %v2022_v18 }
 0x3e2   :  { %v2030_v19 = vpop.permute.xlu1 %2029  ;;  %v2028_v20 = vpop.permute.xlu0 %2027 }
 0x3e3   :  { %2160 = vst.msk [vmem:[%s5807_s6 + $0xf8] sm:$0xf] %vm2097_vm2, %v2030_v19 }
 0x3e4   :  { %2159 = vst.msk [vmem:[%s5807_s6 + $0xf4] sm:$0xf] %vm2097_vm2, %v2028_v20  ;;  %v3288_v20 = vunpack.c.h.bf16 %v3487_v16 }
 0x3ea   :  { %v5265_v28 = vpop.permute.xlu0 %2290  ;;  %v5267_v29 = vpop.permute.xlu1 %2357 }
 0x3eb   :  { %v2295_v31 = vmul.f32 %v3267_v1, %v5265_v28  ;;  %v2294_v32 = vmul.f32 %v3264_v24, %v5265_v28  ;;  %v2293_v33 = vmul.f32 %v3263_v25, %v5265_v28  ;;  %v2298_v34 = vmul.f32 %v3272_v26, %v5265_v28 }
 0x3ec   :  { %v2297_v37 = vmul.f32 %v3271_v27, %v5265_v28  ;;  %v2296_v47 = vmul.f32 %v3268_v30, %v5265_v28  ;;  %v2301_v54 = vmul.f32 %v3279_v44, %v5265_v28  ;;  %v2300_v56 = vmul.f32 %v3276_v45, %v5265_v28  ;;  %v3489_v27 = vld [vmem:[%s5810_s3 + $0x40] sm:$0xff]  }
 0x3ed   :  { %v2362_v35 = vadd.f32 %v5267_v29, %v2295_v31  ;;  %v2361_v36 = vadd.f32 %v5267_v29, %v2294_v32  ;;  %v2360_v46 = vadd.f32 %v5267_v29, %v2293_v33  ;;  %v2365_v43 = vadd.f32 %v5267_v29, %v2298_v34 }
 0x3ee   :  { %v2364_v51 = vadd.f32 %v5267_v29, %v2297_v37  ;;  %v2363_v52 = vadd.f32 %v5267_v29, %v2296_v47  ;;  %v2299_v58 = vmul.f32 %v3275_v53, %v5265_v28  ;;  %v2368_v59 = vadd.f32 %v5267_v29, %v2301_v54 }
 0x3ef   :  { %v2426_v40 = vmax.f32 %v2362_v35, 0.0  ;;  %v2425_v41 = vmax.f32 %v2361_v36, 0.0  ;;  %v2424_v42 = vmax.f32 %v2360_v46, 0.0  ;;  %v2429_v62 = vmax.f32 %v2365_v43, 0.0  ;;  %v3491_v43 = vld [vmem:[%s5810_s3 + $0x50] sm:$0xff]  }
 0x3f0   :  { %v2428_v55 = vmax.f32 %v2364_v51, 0.0  ;;  %v2427_v8 = vmax.f32 %v2363_v52, 0.0  ;;  %v2367_v3 = vadd.f32 %v5267_v29, %v2300_v56  ;;  %v2366_v6 = vadd.f32 %v5267_v29, %v2299_v58 }
 0x3f1   :  { %v2490_v48 = vpack.c.bf16 %v2426_v40, %v2426_v40  ;;  %v2489_v49 = vpack.c.bf16 %v2425_v41, %v2425_v41  ;;  %v2488_v50 = vpack.c.bf16 %v2424_v42, %v2424_v42  ;;  %v2493_v61 = vpack.c.bf16 %v2429_v62, %v2429_v62 }
 0x3f2   :  { %v2492_v63 = vpack.c.bf16 %v2428_v55, %v2428_v55  ;;  %v2491_v5 = vpack.c.bf16 %v2427_v8, %v2427_v8  ;;  %v2432_v9 = vmax.f32 %v2368_v59, 0.0  ;;  %v2431_v10 = vmax.f32 %v2367_v3, 0.0 }
 0x3f3   :  { %2620 = vrot.lane.b32.xlu1 %v2490_v48, %s3534_s4  ;;  %2618 = vrot.lane.b32.xlu0 %v2489_v49, %s3534_s4  ;;  %v2304_v11 = vmul.f32 %v3284_v60, %v5265_v28  ;;  %v2303_v12 = vmul.f32 %v3283_v4, %v5265_v28  ;;  %v2430_v14 = vmax.f32 %v2366_v6, 0.0  ;;  %v2302_v2 = vmul.f32 %v3280_v7, %v5265_v28  ;;  %v3490_v48 = vld [vmem:[%s5810_s3 + $0x48] sm:$0xff]   ;;  %v3492_v60 = vld [vmem:[%s5810_s3 + $0x58] sm:$0xff]  }
 0x3f4   :  { %2616 = vrot.lane.b32.xlu2 %v2488_v50, %s3534_s4  ;;  %v2496_v0 = vpack.c.bf16 %v2432_v9, %v2432_v9  ;;  %v2495_v17 = vpack.c.bf16 %v2431_v10, %v2431_v10  ;;  %v2307_v1 = vmul.f32 %v3291_v15, %v5265_v28  ;;  %v2306_v26 = vmul.f32 %v3288_v20, %v5265_v28 }
 0x3f5   :  { %v2371_v18 = vadd.f32 %v5267_v29, %v2304_v11  ;;  %v2370_v19 = vadd.f32 %v5267_v29, %v2303_v12  ;;  %v2494_v21 = vpack.c.bf16 %v2430_v14, %v2430_v14  ;;  %v2369_v22 = vadd.f32 %v5267_v29, %v2302_v2 }
 0x3f6   :  { %v2305_v31 = vmul.f32 %v3287_v23, %v5265_v28  ;;  %v2374_v32 = vadd.f32 %v5267_v29, %v2307_v1  ;;  %v3296_v33 = vunpack.c.h.bf16 %v3489_v27  ;;  %v2373_v36 = vadd.f32 %v5267_v29, %v2306_v26 }
 0x3f7   :  { %v2435_v24 = vmax.f32 %v2371_v18, 0.0  ;;  %v2434_v25 = vmax.f32 %v2370_v19, 0.0  ;;  %v2433_v30 = vmax.f32 %v2369_v22, 0.0  ;;  %v3295_v46 = vunpack.c.l.bf16 %v3489_v27  ;;  %v3493_v18 = vld [vmem:[%s5810_s3 + $0x60] sm:$0xff]  }
 0x3f8   :  { %v2372_v38 = vadd.f32 %v5267_v29, %v2305_v31  ;;  %v2310_v47 = vmul.f32 %v3296_v33, %v5265_v28  ;;  %v2438_v40 = vmax.f32 %v2374_v32, 0.0  ;;  %v2437_v41 = vmax.f32 %v2373_v36, 0.0  ;;  %v3495_v33 = vld [vmem:[%s5810_s3 + $0x70] sm:$0xff]  }
 0x3f9   :  { %v2499_v34 = vpack.c.bf16 %v2435_v24, %v2435_v24  ;;  %v2498_v35 = vpack.c.bf16 %v2434_v25, %v2434_v25  ;;  %v2497_v37 = vpack.c.bf16 %v2433_v30, %v2433_v30  ;;  %v2309_v42 = vmul.f32 %v3295_v46, %v5265_v28 }
 0x3fa   :  { %v2436_v44 = vmax.f32 %v2372_v38, 0.0  ;;  %v2308_v45 = vmul.f32 %v3292_v39, %v5265_v28  ;;  %v2377_v49 = vadd.f32 %v5267_v29, %v2310_v47  ;;  %v3303_v50 = vunpack.c.l.bf16 %v3491_v43 }
 0x3fb   :  { %2626 = vrot.lane.b32.xlu1 %v2493_v61, %s3534_s4  ;;  %2624 = vrot.lane.b32.xlu0 %v2492_v63, %s3534_s4  ;;  %v2502_v51 = vpack.c.bf16 %v2438_v40, %v2438_v40  ;;  %v2501_v52 = vpack.c.bf16 %v2437_v41, %v2437_v41  ;;  %v2376_v53 = vadd.f32 %v5267_v29, %v2309_v42  ;;  %v3300_v54 = vunpack.c.h.bf16 %v3490_v48 }
 0x3fc   :  { %2622 = vrot.lane.b32.xlu2 %v2491_v5, %s3534_s4  ;;  %v2500_v62 = vpack.c.bf16 %v2436_v44, %v2436_v44  ;;  %v2375_v55 = vadd.f32 %v5267_v29, %v2308_v45  ;;  %v3299_v56 = vunpack.c.l.bf16 %v3490_v48  ;;  %v2313_v57 = vmul.f32 %v3303_v50, %v5265_v28 }
 0x3fd   :  { %v2441_v8 = vmax.f32 %v2377_v49, 0.0  ;;  %v2440_v58 = vmax.f32 %v2376_v53, 0.0  ;;  %v2312_v59 = vmul.f32 %v3300_v54, %v5265_v28  ;;  %v3308_v4 = vunpack.c.h.bf16 %v3492_v60  ;;  %v3497_v49 = vld [vmem:[%s5810_s3 + $0x80] sm:$0xff]  }
 0x3fe   :  { %v2439_v61 = vmax.f32 %v2375_v55, 0.0  ;;  %v2311_v63 = vmul.f32 %v3299_v56, %v5265_v28  ;;  %v2380_v3 = vadd.f32 %v5267_v29, %v2313_v57  ;;  %v3307_v9 = vunpack.c.l.bf16 %v3492_v60 }
 0x3ff   :  { %v2505_v5 = vpack.c.bf16 %v2441_v8, %v2441_v8  ;;  %v2504_v6 = vpack.c.bf16 %v2440_v58, %v2440_v58  ;;  %v2379_v7 = vadd.f32 %v5267_v29, %v2312_v59  ;;  %v3304_v12 = vunpack.c.h.bf16 %v3491_v43 }
 0x400   :  { %v2503_v10 = vpack.c.bf16 %v2439_v61, %v2439_v61  ;;  %v2378_v11 = vadd.f32 %v5267_v29, %v2311_v63  ;;  %v2444_v13 = vmax.f32 %v2380_v3, 0.0  ;;  %v2316_v14 = vmul.f32 %v3308_v4, %v5265_v28 }
 0x401   :  { %v2443_v2 = vmax.f32 %v2379_v7, 0.0  ;;  %v2315_v16 = vmul.f32 %v3307_v9, %v5265_v28  ;;  %v2314_v15 = vmul.f32 %v3304_v12, %v5265_v28  ;;  %v3312_v1 = vunpack.c.h.bf16 %v3493_v18 }
 0x402   :  { %v2508_v19 = vpack.c.bf16 %v2444_v13, %v2444_v13  ;;  %v2383_v20 = vadd.f32 %v5267_v29, %v2316_v14  ;;  %v3311_v26 = vunpack.c.l.bf16 %v3493_v18  ;;  %v3320_v46 = vunpack.c.h.bf16 %v3495_v33 }
 0x403   :  { %2632 = vrot.lane.b32.xlu1 %v2496_v0, %s3534_s4  ;;  %2630 = vrot.lane.b32.xlu0 %v2495_v17, %s3534_s4  ;;  %v2442_v0 = vmax.f32 %v2378_v11, 0.0  ;;  %v3494_v17 = vld [vmem:[%s5810_s3 + $0x68] sm:$0xff]   ;;  %v2382_v22 = vadd.f32 %v5267_v29, %v2315_v16  ;;  %v2381_v25 = vadd.f32 %v5267_v29, %v2314_v15  ;;  %v2318_v32 = vmul.f32 %v3312_v1, %v5265_v28 }
 0x404   :  { %2628 = vrot.lane.b32.xlu2 %v2494_v21, %s3534_s4  ;;  %v2507_v21 = vpack.c.bf16 %v2443_v2, %v2443_v2  ;;  %v3315_v23 = vunpack.c.l.bf16 %v3494_v17  ;;  %v2447_v27 = vmax.f32 %v2383_v20, 0.0  ;;  %v3319_v47 = vunpack.c.l.bf16 %v3495_v33  ;;  %v3499_v20 = vld [vmem:[%s5810_s3 + $0x90] sm:$0xff]  }
 0x405   :  { %v2506_v24 = vpack.c.bf16 %v2442_v0, %v2442_v0  ;;  %v2446_v30 = vmax.f32 %v2382_v22, 0.0  ;;  %v2385_v39 = vadd.f32 %v5267_v29, %v2318_v32  ;;  %v3316_v42 = vunpack.c.h.bf16 %v3494_v17 }
 0x406   :  { %v2319_v31 = vmul.f32 %v3315_v23, %v5265_v28  ;;  %v2511_v36 = vpack.c.bf16 %v2447_v27, %v2447_v27  ;;  %v2322_v43 = vmul.f32 %v3320_v46, %v5265_v28  ;;  %v2321_v48 = vmul.f32 %v3319_v47, %v5265_v28 }
 0x407   :  { %v2449_v45 = vmax.f32 %v2385_v39, 0.0  ;;  %v3327_v54 = vunpack.c.l.bf16 %v3497_v49  ;;  %v3328_v16 = vunpack.c.h.bf16 %v3497_v49  ;;  %v3336_v1 = vunpack.c.h.bf16 %v3499_v20 }
 0x408   :  { %v2386_v38 = vadd.f32 %v5267_v29, %v2319_v31  ;;  %v2389_v53 = vadd.f32 %v5267_v29, %v2322_v43  ;;  %v2388_v56 = vadd.f32 %v5267_v29, %v2321_v48  ;;  %v3335_v32 = vunpack.c.l.bf16 %v3499_v20 }
 0x409   :  { %v2513_v55 = vpack.c.bf16 %v2449_v45, %v2449_v45  ;;  %v2325_v61 = vmul.f32 %v3327_v54, %v5265_v28  ;;  %v2326_v22 = vmul.f32 %v3328_v16, %v5265_v28 }
 0x40a   :  { %v2450_v44 = vmax.f32 %v2386_v38, 0.0  ;;  %v2453_v60 = vmax.f32 %v2389_v53, 0.0  ;;  %v2452_v63 = vmax.f32 %v2388_v56, 0.0  ;;  %v3501_v38 = vld [vmem:[%s5810_s3 + $0xa0] sm:$0xff]   ;;  %v3503_v53 = vld [vmem:[%s5810_s3 + $0xb0] sm:$0xff]   ;;  %v3502_v56 = vld [vmem:[%s5810_s3 + $0xa8] sm:$0xff]  }
 0x40b   :  { %2638 = vrot.lane.b32.xlu1 %v2499_v34, %s3534_s4  ;;  %2636 = vrot.lane.b32.xlu0 %v2498_v35, %s3534_s4  ;;  %v2445_v34 = vmax.f32 %v2381_v25, 0.0  ;;  %v2317_v35 = vmul.f32 %v3311_v26, %v5265_v28  ;;  %v2392_v9 = vadd.f32 %v5267_v29, %v2325_v61  ;;  %v2393_v31 = vadd.f32 %v5267_v29, %v2326_v22 }
 0x40c   :  { %2634 = vrot.lane.b32.xlu2 %v2497_v37, %s3534_s4  ;;  %v2510_v37 = vpack.c.bf16 %v2446_v30, %v2446_v30  ;;  %v2517_v7 = vpack.c.bf16 %v2453_v60, %v2453_v60  ;;  %v3343_v43 = vunpack.c.l.bf16 %v3501_v38  ;;  %v3348_v61 = vunpack.c.h.bf16 %v3502_v56 }
 0x40d   :  { %v2509_v40 = vpack.c.bf16 %v2445_v34, %v2445_v34  ;;  %v2384_v41 = vadd.f32 %v5267_v29, %v2317_v35  ;;  %v2456_v0 = vmax.f32 %v2392_v9, 0.0  ;;  %v2330_v34 = vmul.f32 %v3336_v1, %v5265_v28 }
 0x40e   :  { %v2457_v46 = vmax.f32 %v2393_v31, 0.0  ;;  %v2336_v9 = vmul.f32 %v3348_v61, %v5265_v28  ;;  %v3352_v20 = vunpack.c.h.bf16 %v3503_v53 }
 0x40f   :  { %v2448_v50 = vmax.f32 %v2384_v41, 0.0  ;;  %v2397_v47 = vadd.f32 %v5267_v29, %v2330_v34 }
 0x411   :  { %v2512_v8 = vpack.c.bf16 %v2448_v50, %v2448_v50  ;;  %v2461_v50 = vmax.f32 %v2397_v47, 0.0 }
 0x413   :  { %2644 = vrot.lane.b32.xlu1 %v2502_v51, %s3534_s4  ;;  %2642 = vrot.lane.b32.xlu0 %v2501_v52, %s3534_s4  ;;  %v2320_v51 = vmul.f32 %v3316_v42, %v5265_v28  ;;  %v3496_v52 = vld [vmem:[%s5810_s3 + $0x78] sm:$0xff]   ;;  %v3344_v42 = vunpack.c.h.bf16 %v3501_v38 }
 0x414   :  { %2640 = vrot.lane.b32.xlu2 %v2500_v62, %s3534_s4  ;;  %v2514_v62 = vpack.c.bf16 %v2450_v44, %v2450_v44  ;;  %v3324_v57 = vunpack.c.h.bf16 %v3496_v52  ;;  %v3323_v59 = vunpack.c.l.bf16 %v3496_v52  ;;  %v2521_v44 = vpack.c.bf16 %v2457_v46, %v2457_v46 }
 0x415   :  { %v2387_v58 = vadd.f32 %v5267_v29, %v2320_v51  ;;  %v2334_v51 = vmul.f32 %v3344_v42, %v5265_v28  ;;  %v2333_v52 = vmul.f32 %v3343_v43, %v5265_v28 }
 0x416   :  { %v2324_v3 = vmul.f32 %v3324_v57, %v5265_v28 }
 0x417   :  { %v2451_v4 = vmax.f32 %v2387_v58, 0.0  ;;  %v2525_v58 = vpack.c.bf16 %v2461_v50, %v2461_v50  ;;  %v2400_v60 = vadd.f32 %v5267_v29, %v2333_v52 }
 0x418   :  { %v2391_v11 = vadd.f32 %v5267_v29, %v2324_v3 }
 0x419   :  { %v2515_v14 = vpack.c.bf16 %v2451_v4, %v2451_v4  ;;  %v3347_v4 = vunpack.c.l.bf16 %v3502_v56 }
 0x41a   :  { %v2455_v15 = vmax.f32 %v2391_v11, 0.0 }
 0x41b   :  { %2650 = vrot.lane.b32.xlu1 %v2505_v5, %s3534_s4  ;;  %2648 = vrot.lane.b32.xlu0 %v2504_v6, %s3534_s4  ;;  %v2323_v5 = vmul.f32 %v3323_v59, %v5265_v28  ;;  %v3498_v6 = vld [vmem:[%s5810_s3 + $0x88] sm:$0xff]   ;;  %v2401_v59 = vadd.f32 %v5267_v29, %v2334_v51 }
 0x41c   :  { %2646 = vrot.lane.b32.xlu2 %v2503_v10, %s3534_s4  ;;  %v2516_v10 = vpack.c.bf16 %v2452_v63, %v2452_v63  ;;  %v3332_v12 = vunpack.c.h.bf16 %v3498_v6  ;;  %v3331_v13 = vunpack.c.l.bf16 %v3498_v6  ;;  %v2519_v25 = vpack.c.bf16 %v2455_v15, %v2455_v15 }
 0x41d   :  { %v2390_v2 = vadd.f32 %v5267_v29, %v2323_v5  ;;  %v2465_v6 = vmax.f32 %v2401_v59, 0.0  ;;  %v2403_v15 = vadd.f32 %v5267_v29, %v2336_v9 }
 0x41e   :  { %v2328_v17 = vmul.f32 %v3332_v12, %v5265_v28  ;;  %v2327_v18 = vmul.f32 %v3331_v13, %v5265_v28  ;;  %v2335_v13 = vmul.f32 %v3347_v4, %v5265_v28 }
 0x41f   :  { %v2529_v16 = vpack.c.bf16 %v2465_v6, %v2465_v6 }
 0x420   :  { %v2395_v26 = vadd.f32 %v5267_v29, %v2328_v17  ;;  %v2394_v27 = vadd.f32 %v5267_v29, %v2327_v18 }
 0x422   :  { %v2459_v35 = vmax.f32 %v2395_v26, 0.0  ;;  %v2338_v26 = vmul.f32 %v3352_v20, %v5265_v28 }
 0x423   :  { %2656 = vrot.lane.b32.xlu1 %v2508_v19, %s3534_s4  ;;  %2654 = vrot.lane.b32.xlu0 %v2507_v21, %s3534_s4  ;;  %v3500_v19 = vld [vmem:[%s5810_s3 + $0x98] sm:$0xff]   ;;  %v2454_v21 = vmax.f32 %v2390_v2, 0.0 }
 0x424   :  { %2652 = vrot.lane.b32.xlu2 %v2506_v24, %s3534_s4  ;;  %v3339_v23 = vunpack.c.l.bf16 %v3500_v19  ;;  %v2520_v24 = vpack.c.bf16 %v2456_v0, %v2456_v0  ;;  %v3340_v48 = vunpack.c.h.bf16 %v3500_v19  ;;  %v2402_v19 = vadd.f32 %v5267_v29, %v2335_v13 }
 0x425   :  { %v2518_v30 = vpack.c.bf16 %v2454_v21, %v2454_v21 }
 0x426   :  { %v2331_v33 = vmul.f32 %v3339_v23, %v5265_v28  ;;  %v2467_v23 = vmax.f32 %v2403_v15, 0.0 }
 0x428   :  { %v2398_v39 = vadd.f32 %v5267_v29, %v2331_v33  ;;  %v2531_v33 = vpack.c.bf16 %v2467_v23, %v2467_v23 }
 0x42a   :  { %v2462_v49 = vmax.f32 %v2398_v39, 0.0 }
 0x42b   :  { %2662 = vrot.lane.b32.xlu1 %v2511_v36, %s3534_s4  ;;  %2660 = vrot.lane.b32.xlu0 %v2510_v37, %s3534_s4  ;;  %v2458_v36 = vmax.f32 %v2394_v27, 0.0  ;;  %v2329_v37 = vmul.f32 %v3335_v32, %v5265_v28  ;;  %v3506_v27 = vld [vmem:[%s5810_s3 + $0xc8] sm:$0xff]  }
 0x42c   :  { %2658 = vrot.lane.b32.xlu2 %v2509_v40, %s3534_s4  ;;  %v2523_v40 = vpack.c.bf16 %v2459_v35, %v2459_v35  ;;  %v2526_v57 = vpack.c.bf16 %v2462_v49, %v2462_v49  ;;  %v3363_v35 = vunpack.c.l.bf16 %v3506_v27 }
 0x42d   :  { %v2522_v41 = vpack.c.bf16 %v2458_v36, %v2458_v36  ;;  %v2396_v45 = vadd.f32 %v5267_v29, %v2329_v37  ;;  %v2405_v37 = vadd.f32 %v5267_v29, %v2338_v26 }
 0x42e   :  { %v2343_v42 = vmul.f32 %v3363_v35, %v5265_v28 }
 0x433   :  { %2668 = vrot.lane.b32.xlu1 %v2514_v62, %s3534_s4  ;;  %2666 = vrot.lane.b32.xlu0 %v2513_v55, %s3534_s4  ;;  %v2460_v62 = vmax.f32 %v2396_v45, 0.0  ;;  %v2332_v55 = vmul.f32 %v3340_v48, %v5265_v28  ;;  %v2469_v48 = vmax.f32 %v2405_v37, 0.0 }
 0x434   :  { %2664 = vrot.lane.b32.xlu2 %v2512_v8, %s3534_s4  ;;  %v3351_v8 = vunpack.c.l.bf16 %v3503_v53  ;;  %v2410_v53 = vadd.f32 %v5267_v29, %v2343_v42 }
 0x435   :  { %v2524_v63 = vpack.c.bf16 %v2460_v62, %v2460_v62  ;;  %v2399_v3 = vadd.f32 %v5267_v29, %v2332_v55  ;;  %v2533_v55 = vpack.c.bf16 %v2469_v48, %v2469_v48 }
 0x436   :  { %v2337_v5 = vmul.f32 %v3351_v8, %v5265_v28 }
 0x437   :  { %v2463_v12 = vmax.f32 %v2399_v3, 0.0  ;;  %v3509_v3 = vld [vmem:[%s5810_s3 + $0xe0] sm:$0xff]  }
 0x438   :  { %v3376_v35 = vunpack.c.h.bf16 %v3509_v3 }
 0x439   :  { %v2527_v18 = vpack.c.bf16 %v2463_v12, %v2463_v12 }
 0x43b   :  { %2674 = vrot.lane.b32.xlu1 %v2517_v7, %s3534_s4  ;;  %2672 = vrot.lane.b32.xlu0 %v2516_v10, %s3534_s4  ;;  %v2464_v7 = vmax.f32 %v2400_v60, 0.0  ;;  %v3504_v10 = vld [vmem:[%s5810_s3 + $0xb8] sm:$0xff]   ;;  %v2474_v60 = vmax.f32 %v2410_v53, 0.0 }
 0x43c   :  { %2670 = vrot.lane.b32.xlu2 %v2515_v14, %s3534_s4  ;;  %v2404_v14 = vadd.f32 %v5267_v29, %v2337_v5  ;;  %v3356_v2 = vunpack.c.h.bf16 %v3504_v10  ;;  %v3355_v17 = vunpack.c.l.bf16 %v3504_v10  ;;  %v3375_v10 = vunpack.c.l.bf16 %v3509_v3 }
 0x43d   :  { %v2528_v0 = vpack.c.bf16 %v2464_v7, %v2464_v7  ;;  %v3508_v7 = vld [vmem:[%s5810_s3 + $0xd8] sm:$0xff]  }
 0x43e   :  { %v2468_v21 = vmax.f32 %v2404_v14, 0.0  ;;  %v2340_v22 = vmul.f32 %v3356_v2, %v5265_v28  ;;  %v2339_v1 = vmul.f32 %v3355_v17, %v5265_v28  ;;  %v3372_v14 = vunpack.c.h.bf16 %v3508_v7 }
 0x43f   :  { %v2349_v17 = vmul.f32 %v3375_v10, %v5265_v28 }
 0x440   :  { %v2532_v31 = vpack.c.bf16 %v2468_v21, %v2468_v21  ;;  %v2407_v32 = vadd.f32 %v5267_v29, %v2340_v22  ;;  %v2406_v34 = vadd.f32 %v5267_v29, %v2339_v1  ;;  %v2348_v21 = vmul.f32 %v3372_v14, %v5265_v28 }
 0x441   :  { %v2416_v26 = vadd.f32 %v5267_v29, %v2349_v17 }
 0x442   :  { %v2471_v39 = vmax.f32 %v2407_v32, 0.0 }
 0x443   :  { %2680 = vrot.lane.b32.xlu1 %v2520_v24, %s3534_s4  ;;  %2678 = vrot.lane.b32.xlu0 %v2519_v25, %s3534_s4  ;;  %v2466_v25 = vmax.f32 %v2402_v19, 0.0 }
 0x444   :  { %2676 = vrot.lane.b32.xlu2 %v2518_v30, %s3534_s4  ;;  %v3505_v30 = vld [vmem:[%s5810_s3 + $0xc0] sm:$0xff]   ;;  %v2535_v50 = vpack.c.bf16 %v2471_v39, %v2471_v39 }
 0x445   :  { %v3360_v36 = vunpack.c.h.bf16 %v3505_v30  ;;  %v2530_v46 = vpack.c.bf16 %v2466_v25, %v2466_v25  ;;  %v3359_v38 = vunpack.c.l.bf16 %v3505_v30  ;;  %v2415_v30 = vadd.f32 %v5267_v29, %v2348_v21 }
 0x447   :  { %v2342_v43 = vmul.f32 %v3360_v36, %v5265_v28  ;;  %v2341_v49 = vmul.f32 %v3359_v38, %v5265_v28  ;;  %v2480_v36 = vmax.f32 %v2416_v26, 0.0  ;;  %v2479_v38 = vmax.f32 %v2415_v30, 0.0 }
 0x449   :  { %v2408_v56 = vadd.f32 %v5267_v29, %v2341_v49  ;;  %v2543_v49 = vpack.c.bf16 %v2479_v38, %v2479_v38 }
 0x44b   :  { %2686 = vrot.lane.b32.xlu1 %v2523_v40, %s3534_s4  ;;  %2684 = vrot.lane.b32.xlu0 %v2522_v41, %s3534_s4  ;;  %v2470_v41 = vmax.f32 %v2406_v34, 0.0  ;;  %v2472_v5 = vmax.f32 %v2408_v56, 0.0 }
 0x44c   :  { %2682 = vrot.lane.b32.xlu2 %v2521_v44, %s3534_s4  ;;  %v3507_v44 = vld [vmem:[%s5810_s3 + $0xd0] sm:$0xff]  }
 0x44d   :  { %v3368_v51 = vunpack.c.h.bf16 %v3507_v44  ;;  %v2534_v52 = vpack.c.bf16 %v2470_v41, %v2470_v41  ;;  %v3367_v62 = vunpack.c.l.bf16 %v3507_v44  ;;  %v2536_v2 = vpack.c.bf16 %v2472_v5, %v2472_v5  ;;  %v3511_v44 = vld [vmem:[%s5810_s3 + $0xf0] sm:$0xff]  }
 0x44e   :  { %v2617_v54 = vpop.permute.xlu2 %2616 }
 0x44f   :  { %2809 = vst.msk [vmem:[%s5807_s6] sm:$0xf] %vm2808_vm3, %v2617_v54  ;;  %v2409_v54 = vadd.f32 %v5267_v29, %v2342_v43  ;;  %v2346_v8 = vmul.f32 %v3368_v51, %v5265_v28  ;;  %v2350_v43 = vmul.f32 %v3376_v35, %v5265_v28 }
 0x451   :  { %v2473_v61 = vmax.f32 %v2409_v54, 0.0  ;;  %v2413_v9 = vadd.f32 %v5267_v29, %v2346_v8  ;;  %v2417_v54 = vadd.f32 %v5267_v29, %v2350_v43 }
 0x453   :  { %2692 = vrot.lane.b32.xlu1 %v2526_v57, %s3534_s4  ;;  %2690 = vrot.lane.b32.xlu0 %v2525_v58, %s3534_s4  ;;  %v3364_v57 = vunpack.c.h.bf16 %v3506_v27  ;;  %v2537_v12 = vpack.c.bf16 %v2473_v61, %v2473_v61  ;;  %v2477_v15 = vmax.f32 %v2413_v9, 0.0  ;;  %v2481_v61 = vmax.f32 %v2417_v54, 0.0 }
 0x454   :  { %2688 = vrot.lane.b32.xlu2 %v2524_v63, %s3534_s4  ;;  %v2345_v63 = vmul.f32 %v3367_v62, %v5265_v28  ;;  %v3383_v62 = vunpack.c.l.bf16 %v3511_v44 }
 0x455   :  { %v2344_v6 = vmul.f32 %v3364_v57, %v5265_v28  ;;  %v2541_v25 = vpack.c.bf16 %v2477_v15, %v2477_v15 }
 0x456   :  { %v2623_v11 = vpop.permute.xlu2 %2622  ;;  %v2412_v13 = vadd.f32 %v5267_v29, %v2345_v63  ;;  %v2353_v63 = vmul.f32 %v3383_v62, %v5265_v28 }
 0x457   :  { %2812 = vst.msk [vmem:[%s5807_s6 + $0xc] sm:$0xf] %vm2808_vm3, %v2623_v11  ;;  %v2538_v11 = vpack.c.bf16 %v2474_v60, %v2474_v60 }
 0x458   :  { %v2476_v20 = vmax.f32 %v2412_v13, 0.0  ;;  %v2420_v9 = vadd.f32 %v5267_v29, %v2353_v63 }
 0x45a   :  { %v2540_v27 = vpack.c.bf16 %v2476_v20, %v2476_v20 }
 0x45b   :  { %2698 = vrot.lane.b32.xlu1 %v2529_v16, %s3534_s4  ;;  %2696 = vrot.lane.b32.xlu0 %v2528_v0, %s3534_s4  ;;  %v2411_v16 = vadd.f32 %v5267_v29, %v2344_v6  ;;  %v3371_v0 = vunpack.c.l.bf16 %v3508_v7  ;;  %v2545_v7 = vpack.c.bf16 %v2481_v61, %v2481_v61 }
 0x45c   :  { %2694 = vrot.lane.b32.xlu2 %v2527_v18, %s3534_s4 }
 0x45d   :  { %v2475_v23 = vmax.f32 %v2411_v16, 0.0  ;;  %v2347_v1 = vmul.f32 %v3371_v0, %v5265_v28  ;;  %v2484_v16 = vmax.f32 %v2420_v9, 0.0 }
 0x45e   :  { %v2629_v24 = vpop.permute.xlu2 %2628 }
 0x45f   :  { %2815 = vst.msk [vmem:[%s5807_s6 + $0x18] sm:$0xf] %vm2808_vm3, %v2629_v24  ;;  %v3510_v24 = vld [vmem:[%s5810_s3 + $0xe8] sm:$0xff]   ;;  %v2414_v34 = vadd.f32 %v5267_v29, %v2347_v1 }
 0x460   :  { %v3379_v32 = vunpack.c.l.bf16 %v3510_v24 }
 0x461   :  { %v2478_v42 = vmax.f32 %v2414_v34, 0.0 }
 0x463   :  { %2704 = vrot.lane.b32.xlu1 %v2532_v31, %s3534_s4  ;;  %2702 = vrot.lane.b32.xlu0 %v2531_v33, %s3534_s4  ;;  %v3380_v31 = vunpack.c.h.bf16 %v3510_v24  ;;  %v2539_v33 = vpack.c.bf16 %v2475_v23, %v2475_v23  ;;  %v2542_v53 = vpack.c.bf16 %v2478_v42, %v2478_v42 }
 0x464   :  { %2700 = vrot.lane.b32.xlu2 %v2530_v46, %s3534_s4 }
 0x465   :  { %v2621_v47 = vpop.permute.xlu1 %2620  ;;  %v2619_v40 = vpop.permute.xlu0 %2618  ;;  %v2352_v39 = vmul.f32 %v3380_v31, %v5265_v28 }
 0x466   :  { %2811 = vst.msk [vmem:[%s5807_s6 + $0x8] sm:$0xf] %vm2808_vm3, %v2621_v47  ;;  %v2635_v45 = vpop.permute.xlu2 %2634  ;;  %v2351_v47 = vmul.f32 %v3379_v32, %v5265_v28 }
 0x467   :  { %2810 = vst.msk [vmem:[%s5807_s6 + $0x4] sm:$0xf] %vm2808_vm3, %v2619_v40  ;;  %v3512_v40 = vld [vmem:[%s5810_s3 + $0xf8] sm:$0xff]  }
 0x468   :  { %2818 = vst.msk [vmem:[%s5807_s6 + $0x24] sm:$0xf] %vm2808_vm3, %v2635_v45  ;;  %v2544_v45 = vpack.c.bf16 %v2480_v36, %v2480_v36  ;;  %v3387_v48 = vunpack.c.l.bf16 %v3512_v40  ;;  %v2418_v51 = vadd.f32 %v5267_v29, %v2351_v47  ;;  %v3388_v10 = vunpack.c.h.bf16 %v3512_v40 }
 0x46a   :  { %v2482_v8 = vmax.f32 %v2418_v51, 0.0  ;;  %v2356_v0 = vmul.f32 %v3388_v10, %v5265_v28 }
 0x46b   :  { %2710 = vrot.lane.b32.xlu1 %v2535_v50, %s3534_s4  ;;  %2708 = vrot.lane.b32.xlu0 %v2534_v52, %s3534_s4  ;;  %v2419_v50 = vadd.f32 %v5267_v29, %v2352_v39  ;;  %v3384_v52 = vunpack.c.h.bf16 %v3511_v44 }
 0x46c   :  { %2706 = vrot.lane.b32.xlu2 %v2533_v55, %s3534_s4 }
 0x46d   :  { %v2627_v58 = vpop.permute.xlu1 %2626  ;;  %v2625_v59 = vpop.permute.xlu0 %2624  ;;  %v2483_v57 = vmax.f32 %v2419_v50, 0.0 }
 0x46e   :  { %2814 = vst.msk [vmem:[%s5807_s6 + $0x14] sm:$0xf] %vm2808_vm3, %v2627_v58  ;;  %v2641_v4 = vpop.permute.xlu2 %2640  ;;  %v2355_v58 = vmul.f32 %v3387_v48, %v5265_v28 }
 0x46f   :  { %2813 = vst.msk [vmem:[%s5807_s6 + $0x10] sm:$0xf] %vm2808_vm3, %v2625_v59  ;;  %v2354_v59 = vmul.f32 %v3384_v52, %v5265_v28  ;;  %v2547_v3 = vpack.c.bf16 %v2483_v57, %v2483_v57 }
 0x470   :  { %2821 = vst.msk [vmem:[%s5807_s6 + $0x30] sm:$0xf] %vm2808_vm3, %v2641_v4  ;;  %v2546_v4 = vpack.c.bf16 %v2482_v8, %v2482_v8  ;;  %v2422_v5 = vadd.f32 %v5267_v29, %v2355_v58 }
 0x471   :  { %v2421_v6 = vadd.f32 %v5267_v29, %v2354_v59 }
 0x472   :  { %v2486_v13 = vmax.f32 %v2422_v5, 0.0 }
 0x473   :  { %2716 = vrot.lane.b32.xlu1 %v2538_v11, %s3534_s4  ;;  %2714 = vrot.lane.b32.xlu0 %v2537_v12, %s3534_s4  ;;  %v2485_v14 = vmax.f32 %v2421_v6, 0.0 }
 0x474   :  { %2712 = vrot.lane.b32.xlu2 %v2536_v2, %s3534_s4  ;;  %v2550_v15 = vpack.c.bf16 %v2486_v13, %v2486_v13 }
 0x475   :  { %v2633_v18 = vpop.permute.xlu1 %2632  ;;  %v2631_v19 = vpop.permute.xlu0 %2630  ;;  %v2549_v17 = vpack.c.bf16 %v2485_v14, %v2485_v14 }
 0x476   :  { %2817 = vst.msk [vmem:[%s5807_s6 + $0x20] sm:$0xf] %vm2808_vm3, %v2633_v18  ;;  %v2647_v22 = vpop.permute.xlu2 %2646  ;;  %v2548_v18 = vpack.c.bf16 %v2484_v16, %v2484_v16 }
 0x477   :  { %2816 = vst.msk [vmem:[%s5807_s6 + $0x1c] sm:$0xf] %vm2808_vm3, %v2631_v19  ;;  %v2423_v19 = vadd.f32 %v5267_v29, %v2356_v0 }
 0x478   :  { %2824 = vst.msk [vmem:[%s5807_s6 + $0x3c] sm:$0xf] %vm2808_vm3, %v2647_v22 }
 0x479   :  { %v2487_v22 = vmax.f32 %v2423_v19, 0.0 }
 0x47b   :  { %2722 = vrot.lane.b32.xlu1 %v2541_v25, %s3534_s4  ;;  %2720 = vrot.lane.b32.xlu0 %v2540_v27, %s3534_s4  ;;  %v2551_v29 = vpack.c.bf16 %v2487_v22, %v2487_v22 }
 0x47c   :  { %2718 = vrot.lane.b32.xlu2 %v2539_v33, %s3534_s4 }
 0x47d   :  { %v2639_v46 = vpop.permute.xlu1 %2638  ;;  %v2637_v37 = vpop.permute.xlu0 %2636 }
 0x47e   :  { %2820 = vst.msk [vmem:[%s5807_s6 + $0x2c] sm:$0xf] %vm2808_vm3, %v2639_v46  ;;  %v2653_v41 = vpop.permute.xlu2 %2652 }
 0x47f   :  { %2819 = vst.msk [vmem:[%s5807_s6 + $0x28] sm:$0xf] %vm2808_vm3, %v2637_v37 }
 0x480   :  { %2827 = vst.msk [vmem:[%s5807_s6 + $0x48] sm:$0xf] %vm2808_vm3, %v2653_v41 }
 0x483   :  { %2728 = vrot.lane.b32.xlu1 %v2544_v45, %s3534_s4  ;;  %2726 = vrot.lane.b32.xlu0 %v2543_v49, %s3534_s4 }
 0x484   :  { %2724 = vrot.lane.b32.xlu2 %v2542_v53, %s3534_s4 }
 0x485   :  { %v2645_v55 = vpop.permute.xlu1 %2644  ;;  %v2643_v56 = vpop.permute.xlu0 %2642 }
 0x486   :  { %2823 = vst.msk [vmem:[%s5807_s6 + $0x38] sm:$0xf] %vm2808_vm3, %v2645_v55  ;;  %v2659_v60 = vpop.permute.xlu2 %2658 }
 0x487   :  { %2822 = vst.msk [vmem:[%s5807_s6 + $0x34] sm:$0xf] %vm2808_vm3, %v2643_v56 }
 0x488   :  { %2830 = vst.msk [vmem:[%s5807_s6 + $0x54] sm:$0xf] %vm2808_vm3, %v2659_v60 }
 0x48b   :  { %2734 = vrot.lane.b32.xlu1 %v2547_v3, %s3534_s4  ;;  %2732 = vrot.lane.b32.xlu0 %v2546_v4, %s3534_s4 }
 0x48c   :  { %2730 = vrot.lane.b32.xlu2 %v2545_v7, %s3534_s4 }
 0x48d   :  { %v2651_v11 = vpop.permute.xlu1 %2650  ;;  %v2649_v12 = vpop.permute.xlu0 %2648 }
 0x48e   :  { %2826 = vst.msk [vmem:[%s5807_s6 + $0x44] sm:$0xf] %vm2808_vm3, %v2651_v11  ;;  %v2665_v2 = vpop.permute.xlu2 %2664 }
 0x48f   :  { %2825 = vst.msk [vmem:[%s5807_s6 + $0x40] sm:$0xf] %vm2808_vm3, %v2649_v12 }
 0x490   :  { %2833 = vst.msk [vmem:[%s5807_s6 + $0x60] sm:$0xf] %vm2808_vm3, %v2665_v2 }
 0x493   :  { %2740 = vrot.lane.b32.xlu1 %v2550_v15, %s3534_s4  ;;  %2738 = vrot.lane.b32.xlu0 %v2549_v17, %s3534_s4 }
 0x494   :  { %2736 = vrot.lane.b32.xlu2 %v2548_v18, %s3534_s4 }
 0x495   :  { %v2657_v28 = vpop.permute.xlu1 %2656  ;;  %v2655_v20 = vpop.permute.xlu0 %2654 }
 0x496   :  { %2829 = vst.msk [vmem:[%s5807_s6 + $0x50] sm:$0xf] %vm2808_vm3, %v2657_v28  ;;  %v2671_v21 = vpop.permute.xlu2 %2670 }
 0x497   :  { %2828 = vst.msk [vmem:[%s5807_s6 + $0x4c] sm:$0xf] %vm2808_vm3, %v2655_v20 }
 0x498   :  { %2836 = vst.msk [vmem:[%s5807_s6 + $0x6c] sm:$0xf] %vm2808_vm3, %v2671_v21 }
 0x49c   :  { %2742 = vrot.lane.b32.xlu2 %v2551_v29, %s3534_s4 }
 0x49d   :  { %v2663_v23 = vpop.permute.xlu1 %2662  ;;  %v2661_v1 = vpop.permute.xlu0 %2660 }
 0x49e   :  { %2832 = vst.msk [vmem:[%s5807_s6 + $0x5c] sm:$0xf] %vm2808_vm3, %v2663_v23  ;;  %v2677_v24 = vpop.permute.xlu2 %2676 }
 0x49f   :  { %2831 = vst.msk [vmem:[%s5807_s6 + $0x58] sm:$0xf] %vm2808_vm3, %v2661_v1 }
 0x4a0   :  { %2839 = vst.msk [vmem:[%s5807_s6 + $0x78] sm:$0xf] %vm2808_vm3, %v2677_v24 }
 0x4a5   :  { %v2669_v25 = vpop.permute.xlu1 %2668  ;;  %v2667_v26 = vpop.permute.xlu0 %2666 }
 0x4a6   :  { %2835 = vst.msk [vmem:[%s5807_s6 + $0x68] sm:$0xf] %vm2808_vm3, %v2669_v25  ;;  %v2683_v27 = vpop.permute.xlu2 %2682 }
 0x4a7   :  { %2834 = vst.msk [vmem:[%s5807_s6 + $0x64] sm:$0xf] %vm2808_vm3, %v2667_v26 }
 0x4a8   :  { %2842 = vst.msk [vmem:[%s5807_s6 + $0x84] sm:$0xf] %vm2808_vm3, %v2683_v27 }
 0x4ad   :  { %v2675_v30 = vpop.permute.xlu1 %2674  ;;  %v2673_v31 = vpop.permute.xlu0 %2672 }
 0x4ae   :  { %2838 = vst.msk [vmem:[%s5807_s6 + $0x74] sm:$0xf] %vm2808_vm3, %v2675_v30  ;;  %v2689_v32 = vpop.permute.xlu2 %2688 }
 0x4af   :  { %2837 = vst.msk [vmem:[%s5807_s6 + $0x70] sm:$0xf] %vm2808_vm3, %v2673_v31 }
 0x4b0   :  { %2845 = vst.msk [vmem:[%s5807_s6 + $0x90] sm:$0xf] %vm2808_vm3, %v2689_v32 }
 0x4b5   :  { %v2681_v33 = vpop.permute.xlu1 %2680  ;;  %v2679_v34 = vpop.permute.xlu0 %2678 }
 0x4b6   :  { %2841 = vst.msk [vmem:[%s5807_s6 + $0x80] sm:$0xf] %vm2808_vm3, %v2681_v33  ;;  %v2695_v35 = vpop.permute.xlu2 %2694 }
 0x4b7   :  { %2840 = vst.msk [vmem:[%s5807_s6 + $0x7c] sm:$0xf] %vm2808_vm3, %v2679_v34 }
 0x4b8   :  { %2848 = vst.msk [vmem:[%s5807_s6 + $0x9c] sm:$0xf] %vm2808_vm3, %v2695_v35 }
 0x4bd   :  { %v2687_v36 = vpop.permute.xlu1 %2686  ;;  %v2685_v46 = vpop.permute.xlu0 %2684 }
 0x4be   :  { %2844 = vst.msk [vmem:[%s5807_s6 + $0x8c] sm:$0xf] %vm2808_vm3, %v2687_v36  ;;  %v2701_v37 = vpop.permute.xlu2 %2700 }
 0x4bf   :  { %2843 = vst.msk [vmem:[%s5807_s6 + $0x88] sm:$0xf] %vm2808_vm3, %v2685_v46 }
 0x4c0   :  { %2851 = vst.msk [vmem:[%s5807_s6 + $0xa8] sm:$0xf] %vm2808_vm3, %v2701_v37 }
 0x4c5   :  { %v2693_v38 = vpop.permute.xlu1 %2692  ;;  %v2691_v39 = vpop.permute.xlu0 %2690 }
 0x4c6   :  { %2847 = vst.msk [vmem:[%s5807_s6 + $0x98] sm:$0xf] %vm2808_vm3, %v2693_v38  ;;  %v2707_v47 = vpop.permute.xlu2 %2706 }
 0x4c7   :  { %2846 = vst.msk [vmem:[%s5807_s6 + $0x94] sm:$0xf] %vm2808_vm3, %v2691_v39 }
 0x4c8   :  { %2854 = vst.msk [vmem:[%s5807_s6 + $0xb4] sm:$0xf] %vm2808_vm3, %v2707_v47 }
 0x4cd   :  { %v2699_v40 = vpop.permute.xlu1 %2698  ;;  %v2697_v41 = vpop.permute.xlu0 %2696 }
 0x4ce   :  { %2850 = vst.msk [vmem:[%s5807_s6 + $0xa4] sm:$0xf] %vm2808_vm3, %v2699_v40  ;;  %v2713_v42 = vpop.permute.xlu2 %2712 }
 0x4cf   :  { %2849 = vst.msk [vmem:[%s5807_s6 + $0xa0] sm:$0xf] %vm2808_vm3, %v2697_v41 }
 0x4d0   :  { %2857 = vst.msk [vmem:[%s5807_s6 + $0xc0] sm:$0xf] %vm2808_vm3, %v2713_v42 }
 0x4d5   :  { %v2705_v43 = vpop.permute.xlu1 %2704  ;;  %v2703_v44 = vpop.permute.xlu0 %2702 }
 0x4d6   :  { %2853 = vst.msk [vmem:[%s5807_s6 + $0xb0] sm:$0xf] %vm2808_vm3, %v2705_v43  ;;  %v2719_v45 = vpop.permute.xlu2 %2718 }
 0x4d7   :  { %2852 = vst.msk [vmem:[%s5807_s6 + $0xac] sm:$0xf] %vm2808_vm3, %v2703_v44 }
 0x4d8   :  { %2860 = vst.msk [vmem:[%s5807_s6 + $0xcc] sm:$0xf] %vm2808_vm3, %v2719_v45 }
 0x4dd   :  { %v2711_v48 = vpop.permute.xlu1 %2710  ;;  %v2709_v49 = vpop.permute.xlu0 %2708 }
 0x4de   :  { %2856 = vst.msk [vmem:[%s5807_s6 + $0xbc] sm:$0xf] %vm2808_vm3, %v2711_v48  ;;  %v2725_v50 = vpop.permute.xlu2 %2724 }
 0x4df   :  { %2855 = vst.msk [vmem:[%s5807_s6 + $0xb8] sm:$0xf] %vm2808_vm3, %v2709_v49 }
 0x4e0   :  { %2863 = vst.msk [vmem:[%s5807_s6 + $0xd8] sm:$0xf] %vm2808_vm3, %v2725_v50 }
 0x4e5   :  { %v2717_v51 = vpop.permute.xlu1 %2716  ;;  %v2715_v52 = vpop.permute.xlu0 %2714 }
 0x4e6   :  { %2859 = vst.msk [vmem:[%s5807_s6 + $0xc8] sm:$0xf] %vm2808_vm3, %v2717_v51  ;;  %v2731_v53 = vpop.permute.xlu2 %2730 }
 0x4e7   :  { %2858 = vst.msk [vmem:[%s5807_s6 + $0xc4] sm:$0xf] %vm2808_vm3, %v2715_v52 }
 0x4e8   :  { %2866 = vst.msk [vmem:[%s5807_s6 + $0xe4] sm:$0xf] %vm2808_vm3, %v2731_v53 }
 0x4ed   :  { %v2723_v54 = vpop.permute.xlu1 %2722  ;;  %v2721_v62 = vpop.permute.xlu0 %2720 }
 0x4ee   :  { %2862 = vst.msk [vmem:[%s5807_s6 + $0xd4] sm:$0xf] %vm2808_vm3, %v2723_v54  ;;  %v2737_v55 = vpop.permute.xlu2 %2736 }
 0x4ef   :  { %2861 = vst.msk [vmem:[%s5807_s6 + $0xd0] sm:$0xf] %vm2808_vm3, %v2721_v62 }
 0x4f0   :  { %2869 = vst.msk [vmem:[%s5807_s6 + $0xf0] sm:$0xf] %vm2808_vm3, %v2737_v55 }
 0x4f5   :  { %v2729_v56 = vpop.permute.xlu1 %2728  ;;  %v2727_v57 = vpop.permute.xlu0 %2726 }
 0x4f6   :  { %2865 = vst.msk [vmem:[%s5807_s6 + $0xe0] sm:$0xf] %vm2808_vm3, %v2729_v56  ;;  %v2743_v8 = vpop.permute.xlu2 %2742 }
 0x4f7   :  { %2864 = vst.msk [vmem:[%s5807_s6 + $0xdc] sm:$0xf] %vm2808_vm3, %v2727_v57 }
 0x4f8   :  { %2872 = vst.msk [vmem:[%s5807_s6 + $0xfc] sm:$0xf] %vm2808_vm3, %v2743_v8 }
 0x4fd   :  { %v2735_v58 = vpop.permute.xlu1 %2734  ;;  %v2733_v59 = vpop.permute.xlu0 %2732 }
 0x4fe   :  { %2868 = vst.msk [vmem:[%s5807_s6 + $0xec] sm:$0xf] %vm2808_vm3, %v2735_v58 }
 0x4ff   :  { %2867 = vst.msk [vmem:[%s5807_s6 + $0xe8] sm:$0xf] %vm2808_vm3, %v2733_v59 }
 0x505   :  { %v2741_v60 = vpop.permute.xlu1 %2740  ;;  %v2739_v61 = vpop.permute.xlu0 %2738 }
 0x506   :  { %2871 = vst.msk [vmem:[%s5807_s6 + $0xf8] sm:$0xf] %vm2808_vm3, %v2741_v60 }
 0x507   :  { %2870 = vst.msk [vmem:[%s5807_s6 + $0xf4] sm:$0xf] %vm2808_vm3, %v2739_v61 }

</bundles_post_ra>
